<compile_context>
chip_gen: v6e
topology: v6e:2x2x1
jax: 0.10.0
libtpu: 0.0.40
codegen_flags: <defaults>
</compile_context>

<pallas_src>
import functools

import jax
import jax.numpy as jnp
from jax.experimental import pallas as pl
from jax.experimental.pallas import tpu as pltpu


def _upsample_conv_kernel(xp_ref, wf_ref, bias_ref, o_ref, acc_ref, *, TH, W, C):
    # xp_ref  : (TH+2, W+2, C)   halo'd row tile of the zero-padded input (compute dtype)
    # wf_ref  : (4, 4, C, C)     folded weights [phase = 2a+b, tap = 2r+c, Cin, Cout]
    # bias_ref: (1, C)           f32 bias
    # o_ref   : (4, TH, W, C)    output tile, phase-major
    # acc_ref : (4, TH*W, C)     f32 accumulator scratch
    # Bias init hoisted out of all loops (also zero-inits the accumulator).
    acc_ref[...] = jnp.broadcast_to(bias_ref[...], acc_ref.shape)

    # 9 shifted patches of the original-resolution tile; each feeds every
    # phase matmul that needs it (16 MXU matmuls total, f32 accumulation).
    for s in range(3):                       # row start inside the padded tile
        for u in range(3):                   # col start inside the padded tile
            patch = xp_ref[s:s + TH, u:u + W, :].reshape(TH * W, C)
            for pa in (0, 1):
                if not 0 <= s - pa <= 1:
                    continue
                for pb in (0, 1):
                    if not 0 <= u - pb <= 1:
                        continue
                    phase = 2 * pa + pb
                    tap = 2 * (s - pa) + (u - pb)
                    acc_ref[phase] += jnp.dot(
                        patch, wf_ref[phase, tap],
                        preferred_element_type=jnp.float32)

    for phase in range(4):
        o_ref[phase] = acc_ref[phase].reshape(TH, W, C).astype(o_ref.dtype)


def _fold_upsample_into_weights(w_oihw):
    """Fold nearest-2x upsample into the 3x3 conv weights.

    Returns wf[a, b, r, c, Cin, Cout] (reshaped to (4, 4, Cin, Cout)) s.t.
        out[2i+a, 2j+b] = bias + sum_{r,c in {0,1}} xpad[i+a+r, j+b+c] @ wf[a,b,r,c]
    where xpad is the ORIGINAL-resolution input zero-padded by 1 on each side.
    """
    Cout, Cin, _, _ = w_oihw.shape
    w_hwio = jnp.transpose(w_oihw, (2, 3, 1, 0)).astype(jnp.float32)  # (3,3,Cin,Cout)
    wf = jnp.zeros((2, 2, 2, 2, Cin, Cout), jnp.float32)
    for a in range(2):
        for b in range(2):
            for di in range(3):
                for dj in range(3):
                    r = (di + 1 - a) // 2
                    c = (dj + 1 - b) // 2
                    wf = wf.at[a, b, r, c].add(w_hwio[di, dj])
    return wf.reshape(4, 4, Cin, Cout)


def _pick_tile_h(H, W, C, in_bytes, out_bytes, budget=12 * 1024 * 1024):
    """Largest row-tile height dividing H whose per-step footprint fits the budget."""
    Wp = W + 2

    def footprint(th):
        inp = 2 * (th + 2) * Wp * C * in_bytes       # double-buffered input block
        out = 2 * 4 * th * W * C * out_bytes         # double-buffered output block (4 phases)
        acc = 4 * th * W * C * 4                     # f32 accumulator scratch
        tmp = 2 * th * W * C * max(in_bytes, 4)      # live patch / store temporaries
        return inp + out + acc + tmp

    for th in sorted((d for d in range(1, H + 1) if H % d == 0), reverse=True):
        if footprint(th) <= budget:
            return th
    return 1


def upsample_block(x_nchw, w_oihw, bias, *, compute_dtype=jnp.bfloat16):
    """Forward of UpSampleBlock: F.interpolate(x, 2.0, 'nearest') -> Conv2d(C, C, 3, 1, 1)."""
    N, C, H, W = x_nchw.shape
    out_dtype = x_nchw.dtype
    Wp = W + 2

    # ---- parameter / layout glue (original-resolution data only) ----
    wf = _fold_upsample_into_weights(w_oihw).astype(compute_dtype)     # (4,4,C,C)
    b2 = bias.reshape(1, C).astype(jnp.float32)

    x_nhwc = jnp.transpose(x_nchw, (0, 2, 3, 1))                        # (N,H,W,C)
    xp = jnp.pad(x_nhwc, ((0, 0), (1, 1), (1, 1), (0, 0))).astype(compute_dtype)

    # ---- row tiling with a 2-row halo, sized from a VMEM budget ----
    TH = _pick_tile_h(H, W, C,
                      jnp.dtype(compute_dtype).itemsize,
                      jnp.dtype(out_dtype).itemsize)
    T = H // TH
    xp_tiles = jnp.stack([xp[:, t * TH:t * TH + TH + 2] for t in range(T)], axis=1)
    # xp_tiles: (N, T, TH+2, Wp, C)

    kernel = functools.partial(_upsample_conv_kernel, TH=TH, W=W, C=C)
    out_ph = pl.pallas_call(
        kernel,
        out_shape=jax.ShapeDtypeStruct((N, 4, H, W, C), out_dtype),
        grid_spec=pltpu.PrefetchScalarGridSpec(
            num_scalar_prefetch=0,
            grid=(N, T),
            in_specs=[
                pl.BlockSpec((None, None, TH + 2, Wp, C),
                             lambda n, t: (n, t, 0, 0, 0)),
                pl.BlockSpec((4, 4, C, C), lambda n, t: (0, 0, 0, 0)),
                pl.BlockSpec((1, C), lambda n, t: (0, 0)),
            ],
            out_specs=pl.BlockSpec((None, 4, TH, W, C),
                                   lambda n, t: (n, 0, t, 0, 0)),
            scratch_shapes=[pltpu.VMEM((4, TH * W, C), jnp.float32)],
        ),
        compiler_params=pltpu.CompilerParams(
            dimension_semantics=("parallel", "parallel"),
            vmem_limit_bytes=32 * 1024 * 1024,
        ),
    )(xp_tiles, wf, b2)

    # Single XLA transpose (needed anyway for the NCHW interface) interleaves
    # the 4 phases: (N,4,H,W,C) -> (N,2,2,H,W,C) -> (N,C,H,2,W,2) -> (N,C,2H,2W).
    out6 = out_ph.reshape(N, 2, 2, H, W, C)
    out = jnp.transpose(out6, (0, 5, 3, 1, 4, 2)).reshape(N, C, 2 * H, 2 * W)
    return out
    # TODO(synk): for very small C (< 128 lanes) the per-phase stores are masked;
    # a lane-dense (.., 2W*C) output packing would further improve store density.


def _reference_forward(x_nchw, w_oihw, bias):
    """Pure-JAX reference matching PyTorch semantics (NCHW)."""
    up = jnp.repeat(jnp.repeat(x_nchw, 2, axis=2), 2, axis=3)           # nearest 2x
    out = jax.lax.conv_general_dilated(
        up, w_oihw, window_strides=(1, 1), padding="SAME",
        dimension_numbers=("NCHW", "OIHW", "NCHW"))
    return out + bias.reshape(1, -1, 1, 1)


if __name__ == "__main__":
    # Small shapes consistent with the module's forward (NCHW input).
    N, C, H, W = 2, 8, 16, 16

    key = jax.random.PRNGKey(0)
    kx, kw, kb = jax.random.split(key, 3)

    x = jax.random.normal(kx, (N, C, H, W), dtype=jnp.float32)

    # Deterministic synthetic parameters (same shapes as nn.Conv2d(C, C, 3, 1, 1)).
    fan_in = C * 3 * 3
    bound = (1.0 / fan_in) ** 0.5
    w = jax.random.uniform(kw, (C, C, 3, 3), jnp.float32, -bound, bound)
    b = jax.random.uniform(kb, (C,), jnp.float32, -bound, bound)

    ref = _reference_forward(x, w, b)

    f32_fn = jax.jit(functools.partial(upsample_block, compute_dtype=jnp.float32))
    bf16_fn = jax.jit(functools.partial(upsample_block, compute_dtype=jnp.bfloat16))

    out_f32 = jax.block_until_ready(f32_fn(x, w, b))
    out_bf16 = jax.block_until_ready(bf16_fn(x, w, b))

    assert out_f32.shape == (N, C, 2 * H, 2 * W), out_f32.shape
    assert out_bf16.shape == (N, C, 2 * H, 2 * W), out_bf16.shape

    ok_f32 = bool(jnp.allclose(out_f32, ref, atol=1e-3, rtol=1e-3))
    ok_bf16 = bool(jnp.allclose(out_bf16, ref, atol=1e-1, rtol=1e-1))

    if ok_f32 and ok_bf16:
        print("KERNEL_OK")
    else:
        print("MISMATCH f32_err=", float(jnp.max(jnp.abs(out_f32 - ref))),
              " bf16_err=", float(jnp.max(jnp.abs(out_bf16 - ref))))
</pallas_src>

<mosaic_0001>
module attributes {stable_mosaic.version = 11 : i64} {
  func.func @_upsample_conv_kernel(%arg0: i32, %arg1: i32, %arg2: memref<1x1x18x18x8xf32, #tpu.memory_space<vmem>>, %arg3: memref<4x4x8x8xf32, #tpu.memory_space<vmem>>, %arg4: memref<1x8xf32, #tpu.memory_space<vmem>>, %arg5: memref<1x4x16x16x8xf32, #tpu.memory_space<vmem>>, %arg6: memref<4x256x8xf32, #tpu.memory_space<vmem>>) attributes {dimension_semantics = [#tpu.dimension_semantics<parallel>, #tpu.dimension_semantics<parallel>], iteration_bounds = array<i64: 2, 1>, scalar_prefetch = 0 : i64, scratch_operands = 1 : i64, tpu.core_type = #tpu.core_type<tc>, window_params = [{transform_indices = @transform_0, window_bounds = array<i64: 1, 1, 18, 18, 8>}, {pipeline_mode = #tpu.pipeline_mode<synchronous>, transform_indices = @transform_1, window_bounds = array<i64: 4, 4, 8, 8>}, {pipeline_mode = #tpu.pipeline_mode<synchronous>, transform_indices = @transform_2, window_bounds = array<i64: 1, 8>}, {transform_indices = @transform_3, window_bounds = array<i64: 1, 4, 16, 16, 8>}]} {
    %c0 = arith.constant 0 : index
    %c0_0 = arith.constant 0 : index
    %0 = vector.load %arg4[%c0, %c0_0] : memref<1x8xf32, #tpu.memory_space<vmem>>, vector<1x8xf32>
    %1 = vector.shape_cast %0 : vector<1x8xf32> to vector<1x1x8xf32>
    %2 = vector.broadcast %1 : vector<1x1x8xf32> to vector<4x256x8xf32>
    %c0_1 = arith.constant 0 : index
    %c0_2 = arith.constant 0 : index
    %c0_3 = arith.constant 0 : index
    %3 = vector.load %arg6[%c0_1, %c0_2, %c0_3] : memref<4x256x8xf32, #tpu.memory_space<vmem>>, vector<4x256x8xf32>
    tpu.vector_store %arg6[%c0_1, %c0_2, %c0_3], %2 {strides = array<i32>} : memref<4x256x8xf32, #tpu.memory_space<vmem>>, vector<4x256x8xf32>,
    %c0_4 = arith.constant 0 : index
    %c0_5 = arith.constant 0 : index
    %c0_6 = arith.constant 0 : index
    %c0_7 = arith.constant 0 : index
    %c0_8 = arith.constant 0 : index
    %4 = vector.load %arg2[%c0_4, %c0_5, %c0_6, %c0_7, %c0_8] : memref<1x1x18x18x8xf32, #tpu.memory_space<vmem>>, vector<1x1x16x16x8xf32>
    %5 = vector.shape_cast %4 : vector<1x1x16x16x8xf32> to vector<16x16x8xf32>
    %6 = vector.shape_cast %5 : vector<16x16x8xf32> to vector<256x8xf32>
    %c0_9 = arith.constant 0 : index
    %c0_10 = arith.constant 0 : index
    %c0_11 = arith.constant 0 : index
    %7 = vector.load %arg6[%c0_9, %c0_10, %c0_11] : memref<4x256x8xf32, #tpu.memory_space<vmem>>, vector<1x256x8xf32>
    %8 = vector.shape_cast %7 : vector<1x256x8xf32> to vector<256x8xf32>
    %c0_12 = arith.constant 0 : index
    %c0_13 = arith.constant 0 : index
    %c0_14 = arith.constant 0 : index
    %c0_15 = arith.constant 0 : index
    %9 = vector.load %arg3[%c0_12, %c0_13, %c0_14, %c0_15] : memref<4x4x8x8xf32, #tpu.memory_space<vmem>>, vector<1x1x8x8xf32>
    %10 = vector.shape_cast %9 : vector<1x1x8x8xf32> to vector<8x8xf32>
    %cst = arith.constant dense<0.000000e+00> : vector<256x8xf32>
    %11 = tpu.matmul %6, %10, %cst {dimension_numbers = #tpu.dot_dimension_numbers<[1], [0], [0], [1], [0, 0, 1, 1], [], []>} : vector<256x8xf32>, vector<8x8xf32>, vector<256x8xf32> -> vector<256x8xf32>
    %12 = arith.addf %8, %11 : vector<256x8xf32>
    %c0_16 = arith.constant 0 : index
    %c0_17 = arith.constant 0 : index
    %c0_18 = arith.constant 0 : index
    %13 = vector.load %arg6[%c0_16, %c0_17, %c0_18] : memref<4x256x8xf32, #tpu.memory_space<vmem>>, vector<1x256x8xf32>
    %14 = vector.shape_cast %13 : vector<1x256x8xf32> to vector<256x8xf32>
    %15 = vector.shape_cast %12 : vector<256x8xf32> to vector<1x256x8xf32>
    tpu.vector_store %arg6[%c0_16, %c0_17, %c0_18], %15 {strides = array<i32>} : memref<4x256x8xf32, #tpu.memory_space<vmem>>, vector<1x256x8xf32>,
    %c0_19 = arith.constant 0 : index
    %c0_20 = arith.constant 0 : index
    %c0_21 = arith.constant 0 : index
    %c1 = arith.constant 1 : index
    %c0_22 = arith.constant 0 : index
    %16 = vector.load %arg2[%c0_19, %c0_20, %c0_21, %c1, %c0_22] : memref<1x1x18x18x8xf32, #tpu.memory_space<vmem>>, vector<1x1x16x16x8xf32>
    %17 = vector.shape_cast %16 : vector<1x1x16x16x8xf32> to vector<16x16x8xf32>
    %18 = vector.shape_cast %17 : vector<16x16x8xf32> to vector<256x8xf32>
    %c0_23 = arith.constant 0 : index
    %c0_24 = arith.constant 0 : index
    %c0_25 = arith.constant 0 : index
    %19 = vector.load %arg6[%c0_23, %c0_24, %c0_25] : memref<4x256x8xf32, #tpu.memory_space<vmem>>, vector<1x256x8xf32>
    %20 = vector.shape_cast %19 : vector<1x256x8xf32> to vector<256x8xf32>
    %c0_26 = arith.constant 0 : index
    %c1_27 = arith.constant 1 : index
    %c0_28 = arith.constant 0 : index
    %c0_29 = arith.constant 0 : index
    %21 = vector.load %arg3[%c0_26, %c1_27, %c0_28, %c0_29] : memref<4x4x8x8xf32, #tpu.memory_space<vmem>>, vector<1x1x8x8xf32>
    %22 = vector.shape_cast %21 : vector<1x1x8x8xf32> to vector<8x8xf32>
    %cst_30 = arith.constant dense<0.000000e+00> : vector<256x8xf32>
    %23 = tpu.matmul %18, %22, %cst_30 {dimension_numbers = #tpu.dot_dimension_numbers<[1], [0], [0], [1], [0, 0, 1, 1], [], []>} : vector<256x8xf32>, vector<8x8xf32>, vector<256x8xf32> -> vector<256x8xf32>
    %24 = arith.addf %20, %23 : vector<256x8xf32>
    %c0_31 = arith.constant 0 : index
    %c0_32 = arith.constant 0 : index
    %c0_33 = arith.constant 0 : index
    %25 = vector.load %arg6[%c0_31, %c0_32, %c0_33] : memref<4x256x8xf32, #tpu.memory_space<vmem>>, vector<1x256x8xf32>
    %26 = vector.shape_cast %25 : vector<1x256x8xf32> to vector<256x8xf32>
    %27 = vector.shape_cast %24 : vector<256x8xf32> to vector<1x256x8xf32>
    tpu.vector_store %arg6[%c0_31, %c0_32, %c0_33], %27 {strides = array<i32>} : memref<4x256x8xf32, #tpu.memory_space<vmem>>, vector<1x256x8xf32>,
    %c1_34 = arith.constant 1 : index
    %c0_35 = arith.constant 0 : index
    %c0_36 = arith.constant 0 : index
    %28 = vector.load %arg6[%c1_34, %c0_35, %c0_36] : memref<4x256x8xf32, #tpu.memory_space<vmem>>, vector<1x256x8xf32>
    %29 = vector.shape_cast %28 : vector<1x256x8xf32> to vector<256x8xf32>
    %c1_37 = arith.constant 1 : index
    %c0_38 = arith.constant 0 : index
    %c0_39 = arith.constant 0 : index
    %c0_40 = arith.constant 0 : index
    %30 = vector.load %arg3[%c1_37, %c0_38, %c0_39, %c0_40] : memref<4x4x8x8xf32, #tpu.memory_space<vmem>>, vector<1x1x8x8xf32>
    %31 = vector.shape_cast %30 : vector<1x1x8x8xf32> to vector<8x8xf32>
    %cst_41 = arith.constant dense<0.000000e+00> : vector<256x8xf32>
    %32 = tpu.matmul %18, %31, %cst_41 {dimension_numbers = #tpu.dot_dimension_numbers<[1], [0], [0], [1], [0, 0, 1, 1], [], []>} : vector<256x8xf32>, vector<8x8xf32>, vector<256x8xf32> -> vector<256x8xf32>
    %33 = arith.addf %29, %32 : vector<256x8xf32>
    %c1_42 = arith.constant 1 : index
    %c0_43 = arith.constant 0 : index
    %c0_44 = arith.constant 0 : index
    %34 = vector.load %arg6[%c1_42, %c0_43, %c0_44] : memref<4x256x8xf32, #tpu.memory_space<vmem>>, vector<1x256x8xf32>
    %35 = vector.shape_cast %34 : vector<1x256x8xf32> to vector<256x8xf32>
    %36 = vector.shape_cast %33 : vector<256x8xf32> to vector<1x256x8xf32>
    tpu.vector_store %arg6[%c1_42, %c0_43, %c0_44], %36 {strides = array<i32>} : memref<4x256x8xf32, #tpu.memory_space<vmem>>, vector<1x256x8xf32>,
    %c0_45 = arith.constant 0 : index
    %c0_46 = arith.constant 0 : index
    %c0_47 = arith.constant 0 : index
    %c2 = arith.constant 2 : index
    %c0_48 = arith.constant 0 : index
    %37 = vector.load %arg2[%c0_45, %c0_46, %c0_47, %c2, %c0_48] : memref<1x1x18x18x8xf32, #tpu.memory_space<vmem>>, vector<1x1x16x16x8xf32>
    %38 = vector.shape_cast %37 : vector<1x1x16x16x8xf32> to vector<16x16x8xf32>
    %39 = vector.shape_cast %38 : vector<16x16x8xf32> to vector<256x8xf32>
    %c1_49 = arith.constant 1 : index
    %c0_50 = arith.constant 0 : index
    %c0_51 = arith.constant 0 : index
    %40 = vector.load %arg6[%c1_49, %c0_50, %c0_51] : memref<4x256x8xf32, #tpu.memory_space<vmem>>, vector<1x256x8xf32>
    %41 = vector.shape_cast %40 : vector<1x256x8xf32> to vector<256x8xf32>
    %c1_52 = arith.constant 1 : index
    %c1_53 = arith.constant 1 : index
    %c0_54 = arith.constant 0 : index
    %c0_55 = arith.constant 0 : index
    %42 = vector.load %arg3[%c1_52, %c1_53, %c0_54, %c0_55] : memref<4x4x8x8xf32, #tpu.memory_space<vmem>>, vector<1x1x8x8xf32>
    %43 = vector.shape_cast %42 : vector<1x1x8x8xf32> to vector<8x8xf32>
    %cst_56 = arith.constant dense<0.000000e+00> : vector<256x8xf32>
    %44 = tpu.matmul %39, %43, %cst_56 {dimension_numbers = #tpu.dot_dimension_numbers<[1], [0], [0], [1], [0, 0, 1, 1], [], []>} : vector<256x8xf32>, vector<8x8xf32>, vector<256x8xf32> -> vector<256x8xf32>
    %45 = arith.addf %41, %44 : vector<256x8xf32>
    %c1_57 = arith.constant 1 : index
    %c0_58 = arith.constant 0 : index
    %c0_59 = arith.constant 0 : index
    %46 = vector.load %arg6[%c1_57, %c0_58, %c0_59] : memref<4x256x8xf32, #tpu.memory_space<vmem>>, vector<1x256x8xf32>
    %47 = vector.shape_cast %46 : vector<1x256x8xf32> to vector<256x8xf32>
    %48 = vector.shape_cast %45 : vector<256x8xf32> to vector<1x256x8xf32>
    tpu.vector_store %arg6[%c1_57, %c0_58, %c0_59], %48 {strides = array<i32>} : memref<4x256x8xf32, #tpu.memory_space<vmem>>, vector<1x256x8xf32>,
    %c0_60 = arith.constant 0 : index
    %c0_61 = arith.constant 0 : index
    %c1_62 = arith.constant 1 : index
    %c0_63 = arith.constant 0 : index
    %c0_64 = arith.constant 0 : index
    %49 = vector.load %arg2[%c0_60, %c0_61, %c1_62, %c0_63, %c0_64] : memref<1x1x18x18x8xf32, #tpu.memory_space<vmem>>, vector<1x1x16x16x8xf32>
    %50 = vector.shape_cast %49 : vector<1x1x16x16x8xf32> to vector<16x16x8xf32>
    %51 = vector.shape_cast %50 : vector<16x16x8xf32> to vector<256x8xf32>
    %c0_65 = arith.constant 0 : index
    %c0_66 = arith.constant 0 : index
    %c0_67 = arith.constant 0 : index
    %52 = vector.load %arg6[%c0_65, %c0_66, %c0_67] : memref<4x256x8xf32, #tpu.memory_space<vmem>>, vector<1x256x8xf32>
    %53 = vector.shape_cast %52 : vector<1x256x8xf32> to vector<256x8xf32>
    %c0_68 = arith.constant 0 : index
    %c2_69 = arith.constant 2 : index
    %c0_70 = arith.constant 0 : index
    %c0_71 = arith.constant 0 : index
    %54 = vector.load %arg3[%c0_68, %c2_69, %c0_70, %c0_71] : memref<4x4x8x8xf32, #tpu.memory_space<vmem>>, vector<1x1x8x8xf32>
    %55 = vector.shape_cast %54 : vector<1x1x8x8xf32> to vector<8x8xf32>
    %cst_72 = arith.constant dense<0.000000e+00> : vector<256x8xf32>
    %56 = tpu.matmul %51, %55, %cst_72 {dimension_numbers = #tpu.dot_dimension_numbers<[1], [0], [0], [1], [0, 0, 1, 1], [], []>} : vector<256x8xf32>, vector<8x8xf32>, vector<256x8xf32> -> vector<256x8xf32>
    %57 = arith.addf %53, %56 : vector<256x8xf32>
    %c0_73 = arith.constant 0 : index
    %c0_74 = arith.constant 0 : index
    %c0_75 = arith.constant 0 : index
    %58 = vector.load %arg6[%c0_73, %c0_74, %c0_75] : memref<4x256x8xf32, #tpu.memory_space<vmem>>, vector<1x256x8xf32>
    %59 = vector.shape_cast %58 : vector<1x256x8xf32> to vector<256x8xf32>
    %60 = vector.shape_cast %57 : vector<256x8xf32> to vector<1x256x8xf32>
    tpu.vector_store %arg6[%c0_73, %c0_74, %c0_75], %60 {strides = array<i32>} : memref<4x256x8xf32, #tpu.memory_space<vmem>>, vector<1x256x8xf32>,
    %c2_76 = arith.constant 2 : index
    %c0_77 = arith.constant 0 : index
    %c0_78 = arith.constant 0 : index
    %61 = vector.load %arg6[%c2_76, %c0_77, %c0_78] : memref<4x256x8xf32, #tpu.memory_space<vmem>>, vector<1x256x8xf32>
    %62 = vector.shape_cast %61 : vector<1x256x8xf32> to vector<256x8xf32>
    %c2_79 = arith.constant 2 : index
    %c0_80 = arith.constant 0 : index
    %c0_81 = arith.constant 0 : index
    %c0_82 = arith.constant 0 : index
    %63 = vector.load %arg3[%c2_79, %c0_80, %c0_81, %c0_82] : memref<4x4x8x8xf32, #tpu.memory_space<vmem>>, vector<1x1x8x8xf32>
    %64 = vector.shape_cast %63 : vector<1x1x8x8xf32> to vector<8x8xf32>
    %cst_83 = arith.constant dense<0.000000e+00> : vector<256x8xf32>
    %65 = tpu.matmul %51, %64, %cst_83 {dimension_numbers = #tpu.dot_dimension_numbers<[1], [0], [0], [1], [0, 0, 1, 1], [], []>} : vector<256x8xf32>, vector<8x8xf32>, vector<256x8xf32> -> vector<256x8xf32>
    %66 = arith.addf %62, %65 : vector<256x8xf32>
    %c2_84 = arith.constant 2 : index
    %c0_85 = arith.constant 0 : index
    %c0_86 = arith.constant 0 : index
    %67 = vector.load %arg6[%c2_84, %c0_85, %c0_86] : memref<4x256x8xf32, #tpu.memory_space<vmem>>, vector<1x256x8xf32>
    %68 = vector.shape_cast %67 : vector<1x256x8xf32> to vector<256x8xf32>
    %69 = vector.shape_cast %66 : vector<256x8xf32> to vector<1x256x8xf32>
    tpu.vector_store %arg6[%c2_84, %c0_85, %c0_86], %69 {strides = array<i32>} : memref<4x256x8xf32, #tpu.memory_space<vmem>>, vector<1x256x8xf32>,
    %c0_87 = arith.constant 0 : index
    %c0_88 = arith.constant 0 : index
    %c1_89 = arith.constant 1 : index
    %c1_90 = arith.constant 1 : index
    %c0_91 = arith.constant 0 : index
    %70 = vector.load %arg2[%c0_87, %c0_88, %c1_89, %c1_90, %c0_91] : memref<1x1x18x18x8xf32, #tpu.memory_space<vmem>>, vector<1x1x16x16x8xf32>
    %71 = vector.shape_cast %70 : vector<1x1x16x16x8xf32> to vector<16x16x8xf32>
    %72 = vector.shape_cast %71 : vector<16x16x8xf32> to vector<256x8xf32>
    %c0_92 = arith.constant 0 : index
    %c0_93 = arith.constant 0 : index
    %c0_94 = arith.constant 0 : index
    %73 = vector.load %arg6[%c0_92, %c0_93, %c0_94] : memref<4x256x8xf32, #tpu.memory_space<vmem>>, vector<1x256x8xf32>
    %74 = vector.shape_cast %73 : vector<1x256x8xf32> to vector<256x8xf32>
    %c0_95 = arith.constant 0 : index
    %c3 = arith.constant 3 : index
    %c0_96 = arith.constant 0 : index
    %c0_97 = arith.constant 0 : index
    %75 = vector.load %arg3[%c0_95, %c3, %c0_96, %c0_97] : memref<4x4x8x8xf32, #tpu.memory_space<vmem>>, vector<1x1x8x8xf32>
    %76 = vector.shape_cast %75 : vector<1x1x8x8xf32> to vector<8x8xf32>
    %cst_98 = arith.constant dense<0.000000e+00> : vector<256x8xf32>
    %77 = tpu.matmul %72, %76, %cst_98 {dimension_numbers = #tpu.dot_dimension_numbers<[1], [0], [0], [1], [0, 0, 1, 1], [], []>} : vector<256x8xf32>, vector<8x8xf32>, vector<256x8xf32> -> vector<256x8xf32>
    %78 = arith.addf %74, %77 : vector<256x8xf32>
    %c0_99 = arith.constant 0 : index
    %c0_100 = arith.constant 0 : index
    %c0_101 = arith.constant 0 : index
    %79 = vector.load %arg6[%c0_99, %c0_100, %c0_101] : memref<4x256x8xf32, #tpu.memory_space<vmem>>, vector<1x256x8xf32>
    %80 = vector.shape_cast %79 : vector<1x256x8xf32> to vector<256x8xf32>
    %81 = vector.shape_cast %78 : vector<256x8xf32> to vector<1x256x8xf32>
    tpu.vector_store %arg6[%c0_99, %c0_100, %c0_101], %81 {strides = array<i32>} : memref<4x256x8xf32, #tpu.memory_space<vmem>>, vector<1x256x8xf32>,
    %c1_102 = arith.constant 1 : index
    %c0_103 = arith.constant 0 : index
    %c0_104 = arith.constant 0 : index
    %82 = vector.load %arg6[%c1_102, %c0_103, %c0_104] : memref<4x256x8xf32, #tpu.memory_space<vmem>>, vector<1x256x8xf32>
    %83 = vector.shape_cast %82 : vector<1x256x8xf32> to vector<256x8xf32>
    %c1_105 = arith.constant 1 : index
    %c2_106 = arith.constant 2 : index
    %c0_107 = arith.constant 0 : index
    %c0_108 = arith.constant 0 : index
    %84 = vector.load %arg3[%c1_105, %c2_106, %c0_107, %c0_108] : memref<4x4x8x8xf32, #tpu.memory_space<vmem>>, vector<1x1x8x8xf32>
    %85 = vector.shape_cast %84 : vector<1x1x8x8xf32> to vector<8x8xf32>
    %cst_109 = arith.constant dense<0.000000e+00> : vector<256x8xf32>
    %86 = tpu.matmul %72, %85, %cst_109 {dimension_numbers = #tpu.dot_dimension_numbers<[1], [0], [0], [1], [0, 0, 1, 1], [], []>} : vector<256x8xf32>, vector<8x8xf32>, vector<256x8xf32> -> vector<256x8xf32>
    %87 = arith.addf %83, %86 : vector<256x8xf32>
    %c1_110 = arith.constant 1 : index
    %c0_111 = arith.constant 0 : index
    %c0_112 = arith.constant 0 : index
    %88 = vector.load %arg6[%c1_110, %c0_111, %c0_112] : memref<4x256x8xf32, #tpu.memory_space<vmem>>, vector<1x256x8xf32>
    %89 = vector.shape_cast %88 : vector<1x256x8xf32> to vector<256x8xf32>
    %90 = vector.shape_cast %87 : vector<256x8xf32> to vector<1x256x8xf32>
    tpu.vector_store %arg6[%c1_110, %c0_111, %c0_112], %90 {strides = array<i32>} : memref<4x256x8xf32, #tpu.memory_space<vmem>>, vector<1x256x8xf32>,
    %c2_113 = arith.constant 2 : index
    %c0_114 = arith.constant 0 : index
    %c0_115 = arith.constant 0 : index
    %91 = vector.load %arg6[%c2_113, %c0_114, %c0_115] : memref<4x256x8xf32, #tpu.memory_space<vmem>>, vector<1x256x8xf32>
    %92 = vector.shape_cast %91 : vector<1x256x8xf32> to vector<256x8xf32>
    %c2_116 = arith.constant 2 : index
    %c1_117 = arith.constant 1 : index
    %c0_118 = arith.constant 0 : index
    %c0_119 = arith.constant 0 : index
    %93 = vector.load %arg3[%c2_116, %c1_117, %c0_118, %c0_119] : memref<4x4x8x8xf32, #tpu.memory_space<vmem>>, vector<1x1x8x8xf32>
    %94 = vector.shape_cast %93 : vector<1x1x8x8xf32> to vector<8x8xf32>
    %cst_120 = arith.constant dense<0.000000e+00> : vector<256x8xf32>
    %95 = tpu.matmul %72, %94, %cst_120 {dimension_numbers = #tpu.dot_dimension_numbers<[1], [0], [0], [1], [0, 0, 1, 1], [], []>} : vector<256x8xf32>, vector<8x8xf32>, vector<256x8xf32> -> vector<256x8xf32>
    %96 = arith.addf %92, %95 : vector<256x8xf32>
    %c2_121 = arith.constant 2 : index
    %c0_122 = arith.constant 0 : index
    %c0_123 = arith.constant 0 : index
    %97 = vector.load %arg6[%c2_121, %c0_122, %c0_123] : memref<4x256x8xf32, #tpu.memory_space<vmem>>, vector<1x256x8xf32>
    %98 = vector.shape_cast %97 : vector<1x256x8xf32> to vector<256x8xf32>
    %99 = vector.shape_cast %96 : vector<256x8xf32> to vector<1x256x8xf32>
    tpu.vector_store %arg6[%c2_121, %c0_122, %c0_123], %99 {strides = array<i32>} : memref<4x256x8xf32, #tpu.memory_space<vmem>>, vector<1x256x8xf32>,
    %c3_124 = arith.constant 3 : index
    %c0_125 = arith.constant 0 : index
    %c0_126 = arith.constant 0 : index
    %100 = vector.load %arg6[%c3_124, %c0_125, %c0_126] : memref<4x256x8xf32, #tpu.memory_space<vmem>>, vector<1x256x8xf32>
    %101 = vector.shape_cast %100 : vector<1x256x8xf32> to vector<256x8xf32>
    %c3_127 = arith.constant 3 : index
    %c0_128 = arith.constant 0 : index
    %c0_129 = arith.constant 0 : index
    %c0_130 = arith.constant 0 : index
    %102 = vector.load %arg3[%c3_127, %c0_128, %c0_129, %c0_130] : memref<4x4x8x8xf32, #tpu.memory_space<vmem>>, vector<1x1x8x8xf32>
    %103 = vector.shape_cast %102 : vector<1x1x8x8xf32> to vector<8x8xf32>
    %cst_131 = arith.constant dense<0.000000e+00> : vector<256x8xf32>
    %104 = tpu.matmul %72, %103, %cst_131 {dimension_numbers = #tpu.dot_dimension_numbers<[1], [0], [0], [1], [0, 0, 1, 1], [], []>} : vector<256x8xf32>, vector<8x8xf32>, vector<256x8xf32> -> vector<256x8xf32>
    %105 = arith.addf %101, %104 : vector<256x8xf32>
    %c3_132 = arith.constant 3 : index
    %c0_133 = arith.constant 0 : index
    %c0_134 = arith.constant 0 : index
    %106 = vector.load %arg6[%c3_132, %c0_133, %c0_134] : memref<4x256x8xf32, #tpu.memory_space<vmem>>, vector<1x256x8xf32>
    %107 = vector.shape_cast %106 : vector<1x256x8xf32> to vector<256x8xf32>
    %108 = vector.shape_cast %105 : vector<256x8xf32> to vector<1x256x8xf32>
    tpu.vector_store %arg6[%c3_132, %c0_133, %c0_134], %108 {strides = array<i32>} : memref<4x256x8xf32, #tpu.memory_space<vmem>>, vector<1x256x8xf32>,
    %c0_135 = arith.constant 0 : index
    %c0_136 = arith.constant 0 : index
    %c1_137 = arith.constant 1 : index
    %c2_138 = arith.constant 2 : index
    %c0_139 = arith.constant 0 : index
    %109 = vector.load %arg2[%c0_135, %c0_136, %c1_137, %c2_138, %c0_139] : memref<1x1x18x18x8xf32, #tpu.memory_space<vmem>>, vector<1x1x16x16x8xf32>
    %110 = vector.shape_cast %109 : vector<1x1x16x16x8xf32> to vector<16x16x8xf32>
    %111 = vector.shape_cast %110 : vector<16x16x8xf32> to vector<256x8xf32>
    %c1_140 = arith.constant 1 : index
    %c0_141 = arith.constant 0 : index
    %c0_142 = arith.constant 0 : index
    %112 = vector.load %arg6[%c1_140, %c0_141, %c0_142] : memref<4x256x8xf32, #tpu.memory_space<vmem>>, vector<1x256x8xf32>
    %113 = vector.shape_cast %112 : vector<1x256x8xf32> to vector<256x8xf32>
    %c1_143 = arith.constant 1 : index
    %c3_144 = arith.constant 3 : index
    %c0_145 = arith.constant 0 : index
    %c0_146 = arith.constant 0 : index
    %114 = vector.load %arg3[%c1_143, %c3_144, %c0_145, %c0_146] : memref<4x4x8x8xf32, #tpu.memory_space<vmem>>, vector<1x1x8x8xf32>
    %115 = vector.shape_cast %114 : vector<1x1x8x8xf32> to vector<8x8xf32>
    %cst_147 = arith.constant dense<0.000000e+00> : vector<256x8xf32>
    %116 = tpu.matmul %111, %115, %cst_147 {dimension_numbers = #tpu.dot_dimension_numbers<[1], [0], [0], [1], [0, 0, 1, 1], [], []>} : vector<256x8xf32>, vector<8x8xf32>, vector<256x8xf32> -> vector<256x8xf32>
    %117 = arith.addf %113, %116 : vector<256x8xf32>
    %c1_148 = arith.constant 1 : index
    %c0_149 = arith.constant 0 : index
    %c0_150 = arith.constant 0 : index
    %118 = vector.load %arg6[%c1_148, %c0_149, %c0_150] : memref<4x256x8xf32, #tpu.memory_space<vmem>>, vector<1x256x8xf32>
    %119 = vector.shape_cast %118 : vector<1x256x8xf32> to vector<256x8xf32>
    %120 = vector.shape_cast %117 : vector<256x8xf32> to vector<1x256x8xf32>
    tpu.vector_store %arg6[%c1_148, %c0_149, %c0_150], %120 {strides = array<i32>} : memref<4x256x8xf32, #tpu.memory_space<vmem>>, vector<1x256x8xf32>,
    %c3_151 = arith.constant 3 : index
    %c0_152 = arith.constant 0 : index
    %c0_153 = arith.constant 0 : index
    %121 = vector.load %arg6[%c3_151, %c0_152, %c0_153] : memref<4x256x8xf32, #tpu.memory_space<vmem>>, vector<1x256x8xf32>
    %122 = vector.shape_cast %121 : vector<1x256x8xf32> to vector<256x8xf32>
    %c3_154 = arith.constant 3 : index
    %c1_155 = arith.constant 1 : index
    %c0_156 = arith.constant 0 : index
    %c0_157 = arith.constant 0 : index
    %123 = vector.load %arg3[%c3_154, %c1_155, %c0_156, %c0_157] : memref<4x4x8x8xf32, #tpu.memory_space<vmem>>, vector<1x1x8x8xf32>
    %124 = vector.shape_cast %123 : vector<1x1x8x8xf32> to vector<8x8xf32>
    %cst_158 = arith.constant dense<0.000000e+00> : vector<256x8xf32>
    %125 = tpu.matmul %111, %124, %cst_158 {dimension_numbers = #tpu.dot_dimension_numbers<[1], [0], [0], [1], [0, 0, 1, 1], [], []>} : vector<256x8xf32>, vector<8x8xf32>, vector<256x8xf32> -> vector<256x8xf32>
    %126 = arith.addf %122, %125 : vector<256x8xf32>
    %c3_159 = arith.constant 3 : index
    %c0_160 = arith.constant 0 : index
    %c0_161 = arith.constant 0 : index
    %127 = vector.load %arg6[%c3_159, %c0_160, %c0_161] : memref<4x256x8xf32, #tpu.memory_space<vmem>>, vector<1x256x8xf32>
    %128 = vector.shape_cast %127 : vector<1x256x8xf32> to vector<256x8xf32>
    %129 = vector.shape_cast %126 : vector<256x8xf32> to vector<1x256x8xf32>
    tpu.vector_store %arg6[%c3_159, %c0_160, %c0_161], %129 {strides = array<i32>} : memref<4x256x8xf32, #tpu.memory_space<vmem>>, vector<1x256x8xf32>,
    %c0_162 = arith.constant 0 : index
    %c0_163 = arith.constant 0 : index
    %c2_164 = arith.constant 2 : index
    %c0_165 = arith.constant 0 : index
    %c0_166 = arith.constant 0 : index
    %130 = vector.load %arg2[%c0_162, %c0_163, %c2_164, %c0_165, %c0_166] : memref<1x1x18x18x8xf32, #tpu.memory_space<vmem>>, vector<1x1x16x16x8xf32>
    %131 = vector.shape_cast %130 : vector<1x1x16x16x8xf32> to vector<16x16x8xf32>
    %132 = vector.shape_cast %131 : vector<16x16x8xf32> to vector<256x8xf32>
    %c2_167 = arith.constant 2 : index
    %c0_168 = arith.constant 0 : index
    %c0_169 = arith.constant 0 : index
    %133 = vector.load %arg6[%c2_167, %c0_168, %c0_169] : memref<4x256x8xf32, #tpu.memory_space<vmem>>, vector<1x256x8xf32>
    %134 = vector.shape_cast %133 : vector<1x256x8xf32> to vector<256x8xf32>
    %c2_170 = arith.constant 2 : index
    %c2_171 = arith.constant 2 : index
    %c0_172 = arith.constant 0 : index
    %c0_173 = arith.constant 0 : index
    %135 = vector.load %arg3[%c2_170, %c2_171, %c0_172, %c0_173] : memref<4x4x8x8xf32, #tpu.memory_space<vmem>>, vector<1x1x8x8xf32>
    %136 = vector.shape_cast %135 : vector<1x1x8x8xf32> to vector<8x8xf32>
    %cst_174 = arith.constant dense<0.000000e+00> : vector<256x8xf32>
    %137 = tpu.matmul %132, %136, %cst_174 {dimension_numbers = #tpu.dot_dimension_numbers<[1], [0], [0], [1], [0, 0, 1, 1], [], []>} : vector<256x8xf32>, vector<8x8xf32>, vector<256x8xf32> -> vector<256x8xf32>
    %138 = arith.addf %134, %137 : vector<256x8xf32>
    %c2_175 = arith.constant 2 : index
    %c0_176 = arith.constant 0 : index
    %c0_177 = arith.constant 0 : index
    %139 = vector.load %arg6[%c2_175, %c0_176, %c0_177] : memref<4x256x8xf32, #tpu.memory_space<vmem>>, vector<1x256x8xf32>
    %140 = vector.shape_cast %139 : vector<1x256x8xf32> to vector<256x8xf32>
    %141 = vector.shape_cast %138 : vector<256x8xf32> to vector<1x256x8xf32>
    tpu.vector_store %arg6[%c2_175, %c0_176, %c0_177], %141 {strides = array<i32>} : memref<4x256x8xf32, #tpu.memory_space<vmem>>, vector<1x256x8xf32>,
    %c0_178 = arith.constant 0 : index
    %c0_179 = arith.constant 0 : index
    %c2_180 = arith.constant 2 : index
    %c1_181 = arith.constant 1 : index
    %c0_182 = arith.constant 0 : index
    %142 = vector.load %arg2[%c0_178, %c0_179, %c2_180, %c1_181, %c0_182] : memref<1x1x18x18x8xf32, #tpu.memory_space<vmem>>, vector<1x1x16x16x8xf32>
    %143 = vector.shape_cast %142 : vector<1x1x16x16x8xf32> to vector<16x16x8xf32>
    %144 = vector.shape_cast %143 : vector<16x16x8xf32> to vector<256x8xf32>
    %c2_183 = arith.constant 2 : index
    %c0_184 = arith.constant 0 : index
    %c0_185 = arith.constant 0 : index
    %145 = vector.load %arg6[%c2_183, %c0_184, %c0_185] : memref<4x256x8xf32, #tpu.memory_space<vmem>>, vector<1x256x8xf32>
    %146 = vector.shape_cast %145 : vector<1x256x8xf32> to vector<256x8xf32>
    %c2_186 = arith.constant 2 : index
    %c3_187 = arith.constant 3 : index
    %c0_188 = arith.constant 0 : index
    %c0_189 = arith.constant 0 : index
    %147 = vector.load %arg3[%c2_186, %c3_187, %c0_188, %c0_189] : memref<4x4x8x8xf32, #tpu.memory_space<vmem>>, vector<1x1x8x8xf32>
    %148 = vector.shape_cast %147 : vector<1x1x8x8xf32> to vector<8x8xf32>
    %cst_190 = arith.constant dense<0.000000e+00> : vector<256x8xf32>
    %149 = tpu.matmul %144, %148, %cst_190 {dimension_numbers = #tpu.dot_dimension_numbers<[1], [0], [0], [1], [0, 0, 1, 1], [], []>} : vector<256x8xf32>, vector<8x8xf32>, vector<256x8xf32> -> vector<256x8xf32>
    %150 = arith.addf %146, %149 : vector<256x8xf32>
    %c2_191 = arith.constant 2 : index
    %c0_192 = arith.constant 0 : index
    %c0_193 = arith.constant 0 : index
    %151 = vector.load %arg6[%c2_191, %c0_192, %c0_193] : memref<4x256x8xf32, #tpu.memory_space<vmem>>, vector<1x256x8xf32>
    %152 = vector.shape_cast %151 : vector<1x256x8xf32> to vector<256x8xf32>
    %153 = vector.shape_cast %150 : vector<256x8xf32> to vector<1x256x8xf32>
    tpu.vector_store %arg6[%c2_191, %c0_192, %c0_193], %153 {strides = array<i32>} : memref<4x256x8xf32, #tpu.memory_space<vmem>>, vector<1x256x8xf32>,
    %c3_194 = arith.constant 3 : index
    %c0_195 = arith.constant 0 : index
    %c0_196 = arith.constant 0 : index
    %154 = vector.load %arg6[%c3_194, %c0_195, %c0_196] : memref<4x256x8xf32, #tpu.memory_space<vmem>>, vector<1x256x8xf32>
    %155 = vector.shape_cast %154 : vector<1x256x8xf32> to vector<256x8xf32>
    %c3_197 = arith.constant 3 : index
    %c2_198 = arith.constant 2 : index
    %c0_199 = arith.constant 0 : index
    %c0_200 = arith.constant 0 : index
    %156 = vector.load %arg3[%c3_197, %c2_198, %c0_199, %c0_200] : memref<4x4x8x8xf32, #tpu.memory_space<vmem>>, vector<1x1x8x8xf32>
    %157 = vector.shape_cast %156 : vector<1x1x8x8xf32> to vector<8x8xf32>
    %cst_201 = arith.constant dense<0.000000e+00> : vector<256x8xf32>
    %158 = tpu.matmul %144, %157, %cst_201 {dimension_numbers = #tpu.dot_dimension_numbers<[1], [0], [0], [1], [0, 0, 1, 1], [], []>} : vector<256x8xf32>, vector<8x8xf32>, vector<256x8xf32> -> vector<256x8xf32>
    %159 = arith.addf %155, %158 : vector<256x8xf32>
    %c3_202 = arith.constant 3 : index
    %c0_203 = arith.constant 0 : index
    %c0_204 = arith.constant 0 : index
    %160 = vector.load %arg6[%c3_202, %c0_203, %c0_204] : memref<4x256x8xf32, #tpu.memory_space<vmem>>, vector<1x256x8xf32>
    %161 = vector.shape_cast %160 : vector<1x256x8xf32> to vector<256x8xf32>
    %162 = vector.shape_cast %159 : vector<256x8xf32> to vector<1x256x8xf32>
    tpu.vector_store %arg6[%c3_202, %c0_203, %c0_204], %162 {strides = array<i32>} : memref<4x256x8xf32, #tpu.memory_space<vmem>>, vector<1x256x8xf32>,
    %c0_205 = arith.constant 0 : index
    %c0_206 = arith.constant 0 : index
    %c2_207 = arith.constant 2 : index
    %c2_208 = arith.constant 2 : index
    %c0_209 = arith.constant 0 : index
    %163 = vector.load %arg2[%c0_205, %c0_206, %c2_207, %c2_208, %c0_209] : memref<1x1x18x18x8xf32, #tpu.memory_space<vmem>>, vector<1x1x16x16x8xf32>
    %164 = vector.shape_cast %163 : vector<1x1x16x16x8xf32> to vector<16x16x8xf32>
    %165 = vector.shape_cast %164 : vector<16x16x8xf32> to vector<256x8xf32>
    %c3_210 = arith.constant 3 : index
    %c0_211 = arith.constant 0 : index
    %c0_212 = arith.constant 0 : index
    %166 = vector.load %arg6[%c3_210, %c0_211, %c0_212] : memref<4x256x8xf32, #tpu.memory_space<vmem>>, vector<1x256x8xf32>
    %167 = vector.shape_cast %166 : vector<1x256x8xf32> to vector<256x8xf32>
    %c3_213 = arith.constant 3 : index
    %c3_214 = arith.constant 3 : index
    %c0_215 = arith.constant 0 : index
    %c0_216 = arith.constant 0 : index
    %168 = vector.load %arg3[%c3_213, %c3_214, %c0_215, %c0_216] : memref<4x4x8x8xf32, #tpu.memory_space<vmem>>, vector<1x1x8x8xf32>
    %169 = vector.shape_cast %168 : vector<1x1x8x8xf32> to vector<8x8xf32>
    %cst_217 = arith.constant dense<0.000000e+00> : vector<256x8xf32>
    %170 = tpu.matmul %165, %169, %cst_217 {dimension_numbers = #tpu.dot_dimension_numbers<[1], [0], [0], [1], [0, 0, 1, 1], [], []>} : vector<256x8xf32>, vector<8x8xf32>, vector<256x8xf32> -> vector<256x8xf32>
    %171 = arith.addf %167, %170 : vector<256x8xf32>
    %c3_218 = arith.constant 3 : index
    %c0_219 = arith.constant 0 : index
    %c0_220 = arith.constant 0 : index
    %172 = vector.load %arg6[%c3_218, %c0_219, %c0_220] : memref<4x256x8xf32, #tpu.memory_space<vmem>>, vector<1x256x8xf32>
    %173 = vector.shape_cast %172 : vector<1x256x8xf32> to vector<256x8xf32>
    %174 = vector.shape_cast %171 : vector<256x8xf32> to vector<1x256x8xf32>
    tpu.vector_store %arg6[%c3_218, %c0_219, %c0_220], %174 {strides = array<i32>} : memref<4x256x8xf32, #tpu.memory_space<vmem>>, vector<1x256x8xf32>,
    %c0_221 = arith.constant 0 : index
    %c0_222 = arith.constant 0 : index
    %c0_223 = arith.constant 0 : index
    %175 = vector.load %arg6[%c0_221, %c0_222, %c0_223] : memref<4x256x8xf32, #tpu.memory_space<vmem>>, vector<1x256x8xf32>
    %176 = vector.shape_cast %175 : vector<1x256x8xf32> to vector<256x8xf32>
    %177 = vector.shape_cast %176 : vector<256x8xf32> to vector<16x16x8xf32>
    %c0_224 = arith.constant 0 : index
    %c0_225 = arith.constant 0 : index
    %c0_226 = arith.constant 0 : index
    %c0_227 = arith.constant 0 : index
    %c0_228 = arith.constant 0 : index
    %178 = vector.load %arg5[%c0_224, %c0_225, %c0_226, %c0_227, %c0_228] : memref<1x4x16x16x8xf32, #tpu.memory_space<vmem>>, vector<1x1x16x16x8xf32>
    %179 = vector.shape_cast %178 : vector<1x1x16x16x8xf32> to vector<16x16x8xf32>
    %180 = vector.shape_cast %177 : vector<16x16x8xf32> to vector<1x1x16x16x8xf32>
    tpu.vector_store %arg5[%c0_224, %c0_225, %c0_226, %c0_227, %c0_228], %180 {strides = array<i32>} : memref<1x4x16x16x8xf32, #tpu.memory_space<vmem>>, vector<1x1x16x16x8xf32>,
    %c1_229 = arith.constant 1 : index
    %c0_230 = arith.constant 0 : index
    %c0_231 = arith.constant 0 : index
    %181 = vector.load %arg6[%c1_229, %c0_230, %c0_231] : memref<4x256x8xf32, #tpu.memory_space<vmem>>, vector<1x256x8xf32>
    %182 = vector.shape_cast %181 : vector<1x256x8xf32> to vector<256x8xf32>
    %183 = vector.shape_cast %182 : vector<256x8xf32> to vector<16x16x8xf32>
    %c0_232 = arith.constant 0 : index
    %c1_233 = arith.constant 1 : index
    %c0_234 = arith.constant 0 : index
    %c0_235 = arith.constant 0 : index
    %c0_236 = arith.constant 0 : index
    %184 = vector.load %arg5[%c0_232, %c1_233, %c0_234, %c0_235, %c0_236] : memref<1x4x16x16x8xf32, #tpu.memory_space<vmem>>, vector<1x1x16x16x8xf32>
    %185 = vector.shape_cast %184 : vector<1x1x16x16x8xf32> to vector<16x16x8xf32>
    %186 = vector.shape_cast %183 : vector<16x16x8xf32> to vector<1x1x16x16x8xf32>
    tpu.vector_store %arg5[%c0_232, %c1_233, %c0_234, %c0_235, %c0_236], %186 {strides = array<i32>} : memref<1x4x16x16x8xf32, #tpu.memory_space<vmem>>, vector<1x1x16x16x8xf32>,
    %c2_237 = arith.constant 2 : index
    %c0_238 = arith.constant 0 : index
    %c0_239 = arith.constant 0 : index
    %187 = vector.load %arg6[%c2_237, %c0_238, %c0_239] : memref<4x256x8xf32, #tpu.memory_space<vmem>>, vector<1x256x8xf32>
    %188 = vector.shape_cast %187 : vector<1x256x8xf32> to vector<256x8xf32>
    %189 = vector.shape_cast %188 : vector<256x8xf32> to vector<16x16x8xf32>
    %c0_240 = arith.constant 0 : index
    %c2_241 = arith.constant 2 : index
    %c0_242 = arith.constant 0 : index
    %c0_243 = arith.constant 0 : index
    %c0_244 = arith.constant 0 : index
    %190 = vector.load %arg5[%c0_240, %c2_241, %c0_242, %c0_243, %c0_244] : memref<1x4x16x16x8xf32, #tpu.memory_space<vmem>>, vector<1x1x16x16x8xf32>
    %191 = vector.shape_cast %190 : vector<1x1x16x16x8xf32> to vector<16x16x8xf32>
    %192 = vector.shape_cast %189 : vector<16x16x8xf32> to vector<1x1x16x16x8xf32>
    tpu.vector_store %arg5[%c0_240, %c2_241, %c0_242, %c0_243, %c0_244], %192 {strides = array<i32>} : memref<1x4x16x16x8xf32, #tpu.memory_space<vmem>>, vector<1x1x16x16x8xf32>,
    %c3_245 = arith.constant 3 : index
    %c0_246 = arith.constant 0 : index
    %c0_247 = arith.constant 0 : index
    %193 = vector.load %arg6[%c3_245, %c0_246, %c0_247] : memref<4x256x8xf32, #tpu.memory_space<vmem>>, vector<1x256x8xf32>
    %194 = vector.shape_cast %193 : vector<1x256x8xf32> to vector<256x8xf32>
    %195 = vector.shape_cast %194 : vector<256x8xf32> to vector<16x16x8xf32>
    %c0_248 = arith.constant 0 : index
    %c3_249 = arith.constant 3 : index
    %c0_250 = arith.constant 0 : index
    %c0_251 = arith.constant 0 : index
    %c0_252 = arith.constant 0 : index
    %196 = vector.load %arg5[%c0_248, %c3_249, %c0_250, %c0_251, %c0_252] : memref<1x4x16x16x8xf32, #tpu.memory_space<vmem>>, vector<1x1x16x16x8xf32>
    %197 = vector.shape_cast %196 : vector<1x1x16x16x8xf32> to vector<16x16x8xf32>
    %198 = vector.shape_cast %195 : vector<16x16x8xf32> to vector<1x1x16x16x8xf32>
    tpu.vector_store %arg5[%c0_248, %c3_249, %c0_250, %c0_251, %c0_252], %198 {strides = array<i32>} : memref<1x4x16x16x8xf32, #tpu.memory_space<vmem>>, vector<1x1x16x16x8xf32>,
    return
  }
  func.func @transform_0(%arg0: i32, %arg1: i32) -> (i32, i32, i32, i32, i32) {
    %c0_i32 = arith.constant 0 : i32
    %c0_i32_0 = arith.constant 0 : i32
    %c0_i32_1 = arith.constant 0 : i32
    %c0_i32_2 = arith.constant 0 : i32
    return %arg0, %arg1, %c0_i32, %c0_i32_0, %c0_i32_1 : i32, i32, i32, i32, i32
  }
  func.func @transform_1(%arg0: i32, %arg1: i32) -> (i32, i32, i32, i32) {
    %c0_i32 = arith.constant 0 : i32
    %c0_i32_0 = arith.constant 0 : i32
    %c0_i32_1 = arith.constant 0 : i32
    %c0_i32_2 = arith.constant 0 : i32
    %c0_i32_3 = arith.constant 0 : i32
    return %c0_i32, %c0_i32_0, %c0_i32_1, %c0_i32_2 : i32, i32, i32, i32
  }
  func.func @transform_2(%arg0: i32, %arg1: i32) -> (i32, i32) {
    %c0_i32 = arith.constant 0 : i32
    %c0_i32_0 = arith.constant 0 : i32
    %c0_i32_1 = arith.constant 0 : i32
    return %c0_i32, %c0_i32_0 : i32, i32
  }
  func.func @transform_3(%arg0: i32, %arg1: i32) -> (i32, i32, i32, i32, i32) {
    %c0_i32 = arith.constant 0 : i32
    %c0_i32_0 = arith.constant 0 : i32
    %c0_i32_1 = arith.constant 0 : i32
    %c0_i32_2 = arith.constant 0 : i32
    return %arg0, %c0_i32, %arg1, %c0_i32_0, %c0_i32_1 : i32, i32, i32, i32, i32
  }
}

</mosaic_0001>

<bundles_post_ra>
// kernel: upsample_block.1
= control target key start
LH: loop header
LB: loop body
LE: loop exit
PB: predicated region body
PF: predicated region fallthrough
CT: control target
= control target key end

     0   :  { %s9257_s12 = smov 0   ;;  %s9259_s13 = smov 0   ;;  %s11786_s0 = inlined_call_operand.vmem [shape: f32[2,1,18,18,8], index: 0, kind: input, shape index: {}]   ;;  %s11787_s1 = inlined_call_operand.vmem [shape: f32[4,4,8,8], index: 1, kind: input, shape index: {}]   ;;  %s11788_s2 = inlined_call_operand.vmem [shape: f32[1,8], index: 2, kind: input, shape index: {}]   ;;  %s11789_s3 = inlined_call_operand.vmem [shape: f32[2,4,16,16,8], index: 3, kind: output, shape index: {}]  }
   0x1   :  { %s9261_s14 = smov 0  }
   0x2 LB: > { %s25_s15 = sadd.s32 1, %s9231_s13  ;;  %p7029_p0 = scmp.ge.s32.totalorder %s9235_s14, 1  ;;  %s9235_s14 = sphi %s9261_s14, %s13_s14   ;;  %s9231_s13 = sphi %s9259_s13, %s11807_s13   ;;  %s9227_s12 = sphi %s9257_s12, %s11806_s12  }
   0x3   : > { %p27_p1 = scmp.ge.s32.totalorder %s25_s15, 2  ;;  %p157_p2 = scmp.lt.s32.totalorder %s9235_s14, 3 }
   0x5   : > { %s11809_s15 = smov (%p27_p1, %s25_s15), 0  ;;  %p158_p3 = pnand %p7029_p0, %p157_p2 }
   0x7   : > { %161 = sbr.rel (%p158_p3) target bundleno = 744 (0x2e8), region = 32 }
   0xc   : > { %v410_v0 = vld [vmem:[%s11787_s1] sm:$0xff]  ;;  %v7066_v1 = vld [vmem:[%s11787_s1 + $0x8] sm:$0xff]  ;;  %p190_p4 = scmp.lt.s32.totalorder %s9227_s12, 1  ;;  %vm217_vm0 = vcmask 64512   ;;  %v9318_v10 = vld [vmem:[%s11787_s1 + $0x10] sm:$0xff] }
   0xd   : > { %v7099_v2 = vld [vmem:[%s11787_s1 + $0x20] sm:$0xff]  ;;  %8380 = vmatprep.subr.mxu0 %v410_v0  ;;  %8430 = vmatprep.subr.mxu1 %v7066_v1  ;;  %v7132_v3 = vld [vmem:[%s11787_s1 + $0x28] sm:$0xff] }
   0xe   : > { %8381 = vmatpush3.msra.mxu0 %v410_v0  ;;  %s11811_s12 = smov (!%p190_p4, %s9227_s12), 1  ;;  %8431 = vmatpush3.msra.mxu1 %v7066_v1  ;;  %v9323_v11 = vld [vmem:[%s11787_s1 + $0x40] sm:$0xff] }
   0xf   : > { %8480 = vmatprep.subr.mxu0 %v7099_v2  ;;  %8530 = vmatprep.subr.mxu1 %v7132_v3  ;;  %s9180_s24 = smul.u32 432, %s11811_s12  ;;  %s7851_s5 = sshll.u32 %s11811_s12, 10 }
  0x10   : > { %s10896_s7 = scalar_lea.vmem %s11789_s3, %s7851_s5 }
  0x11   : > { %s9293_s27 = scalar_lea.vmem %s11786_s0, %s9180_s24 }
  0x12   : > { %v346_v4 = vld [vmem:[%s9293_s27] sm:$0xff]  ;;  %v347_v6 = vld [vmem:[%s9293_s27 + $0x8] sm:$0xff]  ;;  %v9307_v8 = vld [vmem:[%s9293_s27 + $0x18] sm:$0xff] }
  0x13   : > { %v9297_v5 = vld [vmem:[%s9293_s27 + $0x1] sm:$0xff]  ;;  %8382 = vmatprep.mubr.msk.f32.mxu0 %vm217_vm0, %v346_v4  ;;  %v9304_v7 = vld [vmem:[%s9293_s27 + $0x9] sm:$0xff]  ;;  %v9310_v9 = vld [vmem:[%s9293_s27 + $0x19] sm:$0xff] }
  0x14   : > { %8432 = vmatprep.mubr.msk.f32.mxu1 %vm217_vm0, %v9297_v5  ;;  %8383 = vmatmul.mubr.msk.f32.vlgmr.msra.gmra.mxu0 %vm217_vm0, %v347_v6  ;;  %v9328_v12 = vld [vmem:[%s9293_s27 + $0x20] sm:$0xff]  ;;  %v9336_v14 = vld [vmem:[%s9293_s27 + $0x30] sm:$0xff]  ;;  %v9352_v16 = vld [vmem:[%s9293_s27 + $0x38] sm:$0xff] }
  0x15   : > { %8433 = vmatmul.mubr.msk.f32.vlgmr.msra.gmra.mxu1 %vm217_vm0, %v9304_v7  ;;  %8481 = vmatpush3.msra.mxu0 %v7099_v2  ;;  %v9331_v13 = vld [vmem:[%s9293_s27 + $0x21] sm:$0xff]  ;;  %v9339_v15 = vld [vmem:[%s9293_s27 + $0x31] sm:$0xff]  ;;  %v9355_v17 = vld [vmem:[%s9293_s27 + $0x39] sm:$0xff] }
  0x16   : > { %8385 = vmatprep.mubr.msk.f32.mxu0 %vm217_vm0, %v9307_v8  ;;  %8435 = vmatprep.mubr.msk.f32.mxu1 %vm217_vm0, %v9310_v9  ;;  %v9358_v18 = vld [vmem:[%s9293_s27 + $0x48] sm:$0xff]  ;;  %v9372_v20 = vld [vmem:[%s9293_s27 + $0x50] sm:$0xff]  ;;  %v9378_v22 = vld [vmem:[%s9293_s27 + $0x60] sm:$0xff] }
  0x17   : > { %8531 = vmatpush3.msra.mxu1 %v7132_v3  ;;  %8580 = vmatprep.subr.mxu0 %v9318_v10  ;;  %v9361_v19 = vld [vmem:[%s9293_s27 + $0x49] sm:$0xff]  ;;  %v9375_v21 = vld [vmem:[%s9293_s27 + $0x51] sm:$0xff]  ;;  %v9381_v23 = vld [vmem:[%s9293_s27 + $0x61] sm:$0xff] }
  0x18   : > { %8630 = vmatprep.subr.mxu1 %v9323_v11  ;;  %8386 = vmatmul.mubr.msk.f32.gmra.mxu0 %vm217_vm0, %v9328_v12  ;;  %v9392_v24 = vld [vmem:[%s9293_s27 + $0x68] sm:$0xff]  ;;  %v9398_v26 = vld [vmem:[%s9293_s27 + $0x78] sm:$0xff]  ;;  %v9412_v28 = vld [vmem:[%s9293_s27 + $0x80] sm:$0xff] }
  0x19   : > { %8436 = vmatmul.mubr.msk.f32.gmra.mxu1 %vm217_vm0, %v9331_v13  ;;  %8388 = vmatprep.mubr.msk.f32.mxu0 %vm217_vm0, %v9336_v14  ;;  %v9395_v25 = vld [vmem:[%s9293_s27 + $0x69] sm:$0xff]  ;;  %v9401_v27 = vld [vmem:[%s9293_s27 + $0x79] sm:$0xff]  ;;  %v9415_v29 = vld [vmem:[%s9293_s27 + $0x81] sm:$0xff] }
  0x1a   : > { %8438 = vmatprep.mubr.msk.f32.mxu1 %vm217_vm0, %v9339_v15  ;;  %v9418_v30 = vld [vmem:[%s9293_s27 + $0x90] sm:$0xff]  ;;  %v9432_v32 = vld [vmem:[%s9293_s27 + $0x98] sm:$0xff]  ;;  %v9438_v34 = vld [vmem:[%s9293_s27 + $0xa8] sm:$0xff] }
  0x1b   : > { %v9421_v31 = vld [vmem:[%s9293_s27 + $0x91] sm:$0xff]  ;;  %v9435_v33 = vld [vmem:[%s9293_s27 + $0x99] sm:$0xff]  ;;  %v9441_v35 = vld [vmem:[%s9293_s27 + $0xa9] sm:$0xff] }
  0x1c   : > { %8389 = vmatmul.mubr.msk.f32.gmra.mxu0 %vm217_vm0, %v9352_v16  ;;  %v9452_v36 = vld [vmem:[%s9293_s27 + $0xb0] sm:$0xff]  ;;  %v9458_v38 = vld [vmem:[%s9293_s27 + $0xc0] sm:$0xff]  ;;  %v9472_v40 = vld [vmem:[%s9293_s27 + $0xc8] sm:$0xff] }
  0x1d   : > { %8439 = vmatmul.mubr.msk.f32.gmra.mxu1 %vm217_vm0, %v9355_v17  ;;  %8391 = vmatprep.mubr.msk.f32.mxu0 %vm217_vm0, %v9358_v18  ;;  %v9455_v37 = vld [vmem:[%s9293_s27 + $0xb1] sm:$0xff]  ;;  %v9461_v39 = vld [vmem:[%s9293_s27 + $0xc1] sm:$0xff]  ;;  %v9475_v41 = vld [vmem:[%s9293_s27 + $0xc9] sm:$0xff] }
  0x1e   : > { %8441 = vmatprep.mubr.msk.f32.mxu1 %vm217_vm0, %v9361_v19  ;;  %v9478_v42 = vld [vmem:[%s9293_s27 + $0xd8] sm:$0xff]  ;;  %v9492_v44 = vld [vmem:[%s9293_s27 + $0xe0] sm:$0xff]  ;;  %v9498_v46 = vld [vmem:[%s9293_s27 + $0xf0] sm:$0xff] }
  0x1f   : > { %v9481_v43 = vld [vmem:[%s9293_s27 + $0xd9] sm:$0xff]  ;;  %v9495_v45 = vld [vmem:[%s9293_s27 + $0xe1] sm:$0xff]  ;;  %v9501_v47 = vld [vmem:[%s9293_s27 + $0xf1] sm:$0xff] }
  0x20   : > { %8392 = vmatmul.mubr.msk.f32.gmra.mxu0 %vm217_vm0, %v9372_v20  ;;  %v9512_v48 = vld [vmem:[%s9293_s27 + $0xf8] sm:$0xff]  ;;  %v9518_v50 = vld [vmem:[%s9293_s27 + $0x108] sm:$0xff]  ;;  %v9532_v52 = vld [vmem:[%s9293_s27 + $0x110] sm:$0xff] }
  0x21   : > { %8442 = vmatmul.mubr.msk.f32.gmra.mxu1 %vm217_vm0, %v9375_v21  ;;  %8394 = vmatprep.mubr.msk.f32.mxu0 %vm217_vm0, %v9378_v22  ;;  %v9515_v49 = vld [vmem:[%s9293_s27 + $0xf9] sm:$0xff]  ;;  %v9521_v51 = vld [vmem:[%s9293_s27 + $0x109] sm:$0xff]  ;;  %v9535_v53 = vld [vmem:[%s9293_s27 + $0x111] sm:$0xff] }
  0x22   : > { %8444 = vmatprep.mubr.msk.f32.mxu1 %vm217_vm0, %v9381_v23  ;;  %v9538_v54 = vld [vmem:[%s9293_s27 + $0x120] sm:$0xff]  ;;  %v9552_v56 = vld [vmem:[%s9293_s27 + $0x128] sm:$0xff]  ;;  %v9558_v58 = vld [vmem:[%s9293_s27 + $0x138] sm:$0xff] }
  0x23   : > { %v9541_v55 = vld [vmem:[%s9293_s27 + $0x121] sm:$0xff]  ;;  %v9555_v57 = vld [vmem:[%s9293_s27 + $0x129] sm:$0xff]  ;;  %v9561_v59 = vld [vmem:[%s9293_s27 + $0x139] sm:$0xff] }
  0x24   : > { %8395 = vmatmul.mubr.msk.f32.gmra.mxu0 %vm217_vm0, %v9392_v24  ;;  %v9572_v60 = vld [vmem:[%s9293_s27 + $0x140] sm:$0xff]  ;;  %v9578_v62 = vld [vmem:[%s9293_s27 + $0x150] sm:$0xff]  ;;  %v9592_v0 = vld [vmem:[%s9293_s27 + $0x158] sm:$0xff] }
  0x25   : > { %8445 = vmatmul.mubr.msk.f32.gmra.mxu1 %vm217_vm0, %v9395_v25  ;;  %8397 = vmatprep.mubr.msk.f32.mxu0 %vm217_vm0, %v9398_v26  ;;  %11798 = vst [vmem:[#allocation3_spill] sm:$0xff] %v9572_v60  ;;  %v9575_v61 = vld [vmem:[%s9293_s27 + $0x141] sm:$0xff]  ;;  %11799 = vst [vmem:[#allocation4_spill] sm:$0xff] %v9578_v62  ;;  %v9581_v63 = vld [vmem:[%s9293_s27 + $0x151] sm:$0xff] }
  0x26   : > { %8447 = vmatprep.mubr.msk.f32.mxu1 %vm217_vm0, %v9401_v27  ;;  %11800 = vst [vmem:[#allocation5_spill] sm:$0xff] %v9592_v0  ;;  %v9595_v1 = vld [vmem:[%s9293_s27 + $0x159] sm:$0xff]  ;;  %v9598_v2 = vld [vmem:[%s9293_s27 + $0x168] sm:$0xff]  ;;  %v9617_v6 = vld [vmem:[%s9293_s27 + $0x170] sm:$0xff] }
  0x27   : > { %11801 = vst [vmem:[#allocation6_spill] sm:$0xff] %v9598_v2  ;;  %v9601_v3 = vld [vmem:[%s9293_s27 + $0x169] sm:$0xff]  ;;  %v9610_v4 = vld [vmem:[%s11788_s2] ss:$0 sm:$0xff] }
  0x28   : > { %8398 = vmatmul.mubr.msk.f32.gmra.mxu0 %vm217_vm0, %v9412_v28  ;;  %219 = vst.msk [vmem:[#allocation2 + $0x8] sm:$0xff] %vm217_vm0, %v9610_v4  ;;  %218 = vst.msk [vmem:[#allocation2] sm:$0xff] %vm217_vm0, %v9610_v4 }
  0x29   : > { %8448 = vmatmul.mubr.msk.f32.gmra.mxu1 %vm217_vm0, %v9415_v29  ;;  %8400 = vmatprep.mubr.msk.f32.mxu0 %vm217_vm0, %v9418_v30  ;;  %220 = vst.msk [vmem:[#allocation2 + $0x10] sm:$0xff] %vm217_vm0, %v9610_v4  ;;  %221 = vst.msk [vmem:[#allocation2 + $0x18] sm:$0xff] %vm217_vm0, %v9610_v4 }
  0x2a   : > { %8450 = vmatprep.mubr.msk.f32.mxu1 %vm217_vm0, %v9421_v31  ;;  %222 = vst.msk [vmem:[#allocation2 + $0x20] sm:$0xff] %vm217_vm0, %v9610_v4  ;;  %223 = vst.msk [vmem:[#allocation2 + $0x28] sm:$0xff] %vm217_vm0, %v9610_v4 }
  0x2b   : > { %224 = vst.msk [vmem:[#allocation2 + $0x30] sm:$0xff] %vm217_vm0, %v9610_v4  ;;  %225 = vst.msk [vmem:[#allocation2 + $0x38] sm:$0xff] %vm217_vm0, %v9610_v4 }
  0x2c   : > { %8401 = vmatmul.mubr.msk.f32.gmra.mxu0 %vm217_vm0, %v9432_v32  ;;  %226 = vst.msk [vmem:[#allocation2 + $0x40] sm:$0xff] %vm217_vm0, %v9610_v4  ;;  %227 = vst.msk [vmem:[#allocation2 + $0x48] sm:$0xff] %vm217_vm0, %v9610_v4 }
  0x2d   : > { %8451 = vmatmul.mubr.msk.f32.gmra.mxu1 %vm217_vm0, %v9435_v33  ;;  %8403 = vmatprep.mubr.msk.f32.mxu0 %vm217_vm0, %v9438_v34  ;;  %228 = vst.msk [vmem:[#allocation2 + $0x50] sm:$0xff] %vm217_vm0, %v9610_v4  ;;  %229 = vst.msk [vmem:[#allocation2 + $0x58] sm:$0xff] %vm217_vm0, %v9610_v4 }
  0x2e   : > { %8453 = vmatprep.mubr.msk.f32.mxu1 %vm217_vm0, %v9441_v35  ;;  %230 = vst.msk [vmem:[#allocation2 + $0x60] sm:$0xff] %vm217_vm0, %v9610_v4  ;;  %231 = vst.msk [vmem:[#allocation2 + $0x68] sm:$0xff] %vm217_vm0, %v9610_v4 }
  0x2f   : > { %232 = vst.msk [vmem:[#allocation2 + $0x70] sm:$0xff] %vm217_vm0, %v9610_v4  ;;  %233 = vst.msk [vmem:[#allocation2 + $0x78] sm:$0xff] %vm217_vm0, %v9610_v4 }
  0x30   : > { %8404 = vmatmul.mubr.msk.f32.gmra.mxu0 %vm217_vm0, %v9452_v36  ;;  %234 = vst.msk [vmem:[#allocation2 + $0x80] sm:$0xff] %vm217_vm0, %v9610_v4  ;;  %235 = vst.msk [vmem:[#allocation2 + $0x88] sm:$0xff] %vm217_vm0, %v9610_v4 }
  0x31   : > { %8454 = vmatmul.mubr.msk.f32.gmra.mxu1 %vm217_vm0, %v9455_v37  ;;  %8406 = vmatprep.mubr.msk.f32.mxu0 %vm217_vm0, %v9458_v38  ;;  %236 = vst.msk [vmem:[#allocation2 + $0x90] sm:$0xff] %vm217_vm0, %v9610_v4  ;;  %237 = vst.msk [vmem:[#allocation2 + $0x98] sm:$0xff] %vm217_vm0, %v9610_v4 }
  0x32   : > { %8456 = vmatprep.mubr.msk.f32.mxu1 %vm217_vm0, %v9461_v39  ;;  %238 = vst.msk [vmem:[#allocation2 + $0xa0] sm:$0xff] %vm217_vm0, %v9610_v4  ;;  %239 = vst.msk [vmem:[#allocation2 + $0xa8] sm:$0xff] %vm217_vm0, %v9610_v4 }
  0x33   : > { %240 = vst.msk [vmem:[#allocation2 + $0xb0] sm:$0xff] %vm217_vm0, %v9610_v4  ;;  %241 = vst.msk [vmem:[#allocation2 + $0xb8] sm:$0xff] %vm217_vm0, %v9610_v4 }
  0x34   : > { %8407 = vmatmul.mubr.msk.f32.gmra.mxu0 %vm217_vm0, %v9472_v40  ;;  %242 = vst.msk [vmem:[#allocation2 + $0xc0] sm:$0xff] %vm217_vm0, %v9610_v4  ;;  %243 = vst.msk [vmem:[#allocation2 + $0xc8] sm:$0xff] %vm217_vm0, %v9610_v4 }
  0x35   : > { %8457 = vmatmul.mubr.msk.f32.gmra.mxu1 %vm217_vm0, %v9475_v41  ;;  %8409 = vmatprep.mubr.msk.f32.mxu0 %vm217_vm0, %v9478_v42  ;;  %244 = vst.msk [vmem:[#allocation2 + $0xd0] sm:$0xff] %vm217_vm0, %v9610_v4  ;;  %245 = vst.msk [vmem:[#allocation2 + $0xd8] sm:$0xff] %vm217_vm0, %v9610_v4 }
  0x36   : > { %8459 = vmatprep.mubr.msk.f32.mxu1 %vm217_vm0, %v9481_v43  ;;  %246 = vst.msk [vmem:[#allocation2 + $0xe0] sm:$0xff] %vm217_vm0, %v9610_v4  ;;  %247 = vst.msk [vmem:[#allocation2 + $0xe8] sm:$0xff] %vm217_vm0, %v9610_v4 }
  0x37   : > { %248 = vst.msk [vmem:[#allocation2 + $0xf0] sm:$0xff] %vm217_vm0, %v9610_v4  ;;  %249 = vst.msk [vmem:[#allocation2 + $0xf8] sm:$0xff] %vm217_vm0, %v9610_v4 }
  0x38   : > { %8410 = vmatmul.mubr.msk.f32.gmra.mxu0 %vm217_vm0, %v9492_v44  ;;  %250 = vst.msk [vmem:[#allocation2 + $0x100] sm:$0xff] %vm217_vm0, %v9610_v4  ;;  %251 = vst.msk [vmem:[#allocation2 + $0x108] sm:$0xff] %vm217_vm0, %v9610_v4 }
  0x39   : > { %8460 = vmatmul.mubr.msk.f32.gmra.mxu1 %vm217_vm0, %v9495_v45  ;;  %8412 = vmatprep.mubr.msk.f32.mxu0 %vm217_vm0, %v9498_v46  ;;  %252 = vst.msk [vmem:[#allocation2 + $0x110] sm:$0xff] %vm217_vm0, %v9610_v4  ;;  %253 = vst.msk [vmem:[#allocation2 + $0x118] sm:$0xff] %vm217_vm0, %v9610_v4 }
  0x3a   : > { %8462 = vmatprep.mubr.msk.f32.mxu1 %vm217_vm0, %v9501_v47  ;;  %254 = vst.msk [vmem:[#allocation2 + $0x120] sm:$0xff] %vm217_vm0, %v9610_v4  ;;  %255 = vst.msk [vmem:[#allocation2 + $0x128] sm:$0xff] %vm217_vm0, %v9610_v4 }
  0x3b   : > { %256 = vst.msk [vmem:[#allocation2 + $0x130] sm:$0xff] %vm217_vm0, %v9610_v4  ;;  %257 = vst.msk [vmem:[#allocation2 + $0x138] sm:$0xff] %vm217_vm0, %v9610_v4 }
  0x3c   : > { %8413 = vmatmul.mubr.msk.f32.gmra.mxu0 %vm217_vm0, %v9512_v48  ;;  %258 = vst.msk [vmem:[#allocation2 + $0x140] sm:$0xff] %vm217_vm0, %v9610_v4  ;;  %259 = vst.msk [vmem:[#allocation2 + $0x148] sm:$0xff] %vm217_vm0, %v9610_v4 }
  0x3d   : > { %8463 = vmatmul.mubr.msk.f32.gmra.mxu1 %vm217_vm0, %v9515_v49  ;;  %8415 = vmatprep.mubr.msk.f32.mxu0 %vm217_vm0, %v9518_v50  ;;  %260 = vst.msk [vmem:[#allocation2 + $0x150] sm:$0xff] %vm217_vm0, %v9610_v4  ;;  %261 = vst.msk [vmem:[#allocation2 + $0x158] sm:$0xff] %vm217_vm0, %v9610_v4 }
  0x3e   : > { %8465 = vmatprep.mubr.msk.f32.mxu1 %vm217_vm0, %v9521_v51  ;;  %262 = vst.msk [vmem:[#allocation2 + $0x160] sm:$0xff] %vm217_vm0, %v9610_v4  ;;  %263 = vst.msk [vmem:[#allocation2 + $0x168] sm:$0xff] %vm217_vm0, %v9610_v4 }
  0x3f   : > { %264 = vst.msk [vmem:[#allocation2 + $0x170] sm:$0xff] %vm217_vm0, %v9610_v4  ;;  %265 = vst.msk [vmem:[#allocation2 + $0x178] sm:$0xff] %vm217_vm0, %v9610_v4 }
  0x40   : > { %8416 = vmatmul.mubr.msk.f32.gmra.mxu0 %vm217_vm0, %v9532_v52  ;;  %266 = vst.msk [vmem:[#allocation2 + $0x180] sm:$0xff] %vm217_vm0, %v9610_v4  ;;  %267 = vst.msk [vmem:[#allocation2 + $0x188] sm:$0xff] %vm217_vm0, %v9610_v4 }
  0x41   : > { %8466 = vmatmul.mubr.msk.f32.gmra.mxu1 %vm217_vm0, %v9535_v53  ;;  %8418 = vmatprep.mubr.msk.f32.mxu0 %vm217_vm0, %v9538_v54  ;;  %268 = vst.msk [vmem:[#allocation2 + $0x190] sm:$0xff] %vm217_vm0, %v9610_v4  ;;  %269 = vst.msk [vmem:[#allocation2 + $0x198] sm:$0xff] %vm217_vm0, %v9610_v4 }
  0x42   : > { %8468 = vmatprep.mubr.msk.f32.mxu1 %vm217_vm0, %v9541_v55  ;;  %270 = vst.msk [vmem:[#allocation2 + $0x1a0] sm:$0xff] %vm217_vm0, %v9610_v4  ;;  %271 = vst.msk [vmem:[#allocation2 + $0x1a8] sm:$0xff] %vm217_vm0, %v9610_v4 }
  0x43   : > { %272 = vst.msk [vmem:[#allocation2 + $0x1b0] sm:$0xff] %vm217_vm0, %v9610_v4  ;;  %273 = vst.msk [vmem:[#allocation2 + $0x1b8] sm:$0xff] %vm217_vm0, %v9610_v4 }
  0x44   : > { %8419 = vmatmul.mubr.msk.f32.gmra.mxu0 %vm217_vm0, %v9552_v56  ;;  %274 = vst.msk [vmem:[#allocation2 + $0x1c0] sm:$0xff] %vm217_vm0, %v9610_v4  ;;  %275 = vst.msk [vmem:[#allocation2 + $0x1c8] sm:$0xff] %vm217_vm0, %v9610_v4 }
  0x45   : > { %8469 = vmatmul.mubr.msk.f32.gmra.mxu1 %vm217_vm0, %v9555_v57  ;;  %8421 = vmatprep.mubr.msk.f32.mxu0 %vm217_vm0, %v9558_v58  ;;  %276 = vst.msk [vmem:[#allocation2 + $0x1d0] sm:$0xff] %vm217_vm0, %v9610_v4  ;;  %277 = vst.msk [vmem:[#allocation2 + $0x1d8] sm:$0xff] %vm217_vm0, %v9610_v4 }
  0x46   : > { %8471 = vmatprep.mubr.msk.f32.mxu1 %vm217_vm0, %v9561_v59  ;;  %278 = vst.msk [vmem:[#allocation2 + $0x1e0] sm:$0xff] %vm217_vm0, %v9610_v4  ;;  %279 = vst.msk [vmem:[#allocation2 + $0x1e8] sm:$0xff] %vm217_vm0, %v9610_v4 }
  0x47   : > { %280 = vst.msk [vmem:[#allocation2 + $0x1f0] sm:$0xff] %vm217_vm0, %v9610_v4  ;;  %281 = vst.msk [vmem:[#allocation2 + $0x1f8] sm:$0xff] %vm217_vm0, %v9610_v4 }
  0x48   : > { %8422 = vmatmul.mubr.msk.f32.gmra.mxu0 %vm217_vm0, %v9572_v60  ;;  %282 = vst.msk [vmem:[#allocation2 + $0x200] sm:$0xff] %vm217_vm0, %v9610_v4  ;;  %283 = vst.msk [vmem:[#allocation2 + $0x208] sm:$0xff] %vm217_vm0, %v9610_v4  ;;  %v1573_v60 = vld [vmem:[%s9293_s27 + $0x1a] sm:$0xff] }
  0x49   : > { %8472 = vmatmul.mubr.msk.f32.gmra.mxu1 %vm217_vm0, %v9575_v61  ;;  %8424 = vmatprep.mubr.msk.f32.mxu0 %vm217_vm0, %v9578_v62  ;;  %v9620_v62 = vld [vmem:[%s9293_s27 + $0x171] sm:$0xff]  ;;  %284 = vst.msk [vmem:[#allocation2 + $0x210] sm:$0xff] %vm217_vm0, %v9610_v4  ;;  %285 = vst.msk [vmem:[#allocation2 + $0x218] sm:$0xff] %vm217_vm0, %v9610_v4 }
  0x4a   : > { %8474 = vmatprep.mubr.msk.f32.mxu1 %vm217_vm0, %v9581_v63  ;;  %286 = vst.msk [vmem:[#allocation2 + $0x220] sm:$0xff] %vm217_vm0, %v9610_v4  ;;  %287 = vst.msk [vmem:[#allocation2 + $0x228] sm:$0xff] %vm217_vm0, %v9610_v4 }
  0x4b   : > { %288 = vst.msk [vmem:[#allocation2 + $0x230] sm:$0xff] %vm217_vm0, %v9610_v4  ;;  %289 = vst.msk [vmem:[#allocation2 + $0x238] sm:$0xff] %vm217_vm0, %v9610_v4 }
  0x4c   : > { %8425 = vmatmul.mubr.msk.f32.gmra.mxu0 %vm217_vm0, %v9592_v0  ;;  %290 = vst.msk [vmem:[#allocation2 + $0x240] sm:$0xff] %vm217_vm0, %v9610_v4  ;;  %291 = vst.msk [vmem:[#allocation2 + $0x248] sm:$0xff] %vm217_vm0, %v9610_v4  ;;  %v1572_v0 = vld [vmem:[%s9293_s27 + $0xa] sm:$0xff] }
  0x4d   : > { %8475 = vmatmul.mubr.msk.f32.gmra.mxu1 %vm217_vm0, %v9595_v1  ;;  %8427 = vmatprep.mubr.msk.f32.mxu0 %vm217_vm0, %v9598_v2  ;;  %292 = vst.msk [vmem:[#allocation2 + $0x250] sm:$0xff] %vm217_vm0, %v9610_v4  ;;  %293 = vst.msk [vmem:[#allocation2 + $0x258] sm:$0xff] %vm217_vm0, %v9610_v4  ;;  %v1571_v2 = vld [vmem:[%s9293_s27 + $0x2] sm:$0xff] }
  0x4e   : > { %8477 = vmatprep.mubr.msk.f32.mxu1 %vm217_vm0, %v9601_v3  ;;  %294 = vst.msk [vmem:[#allocation2 + $0x260] sm:$0xff] %vm217_vm0, %v9610_v4  ;;  %295 = vst.msk [vmem:[#allocation2 + $0x268] sm:$0xff] %vm217_vm0, %v9610_v4 }
  0x4f   : > { %296 = vst.msk [vmem:[#allocation2 + $0x270] sm:$0xff] %vm217_vm0, %v9610_v4  ;;  %297 = vst.msk [vmem:[#allocation2 + $0x278] sm:$0xff] %vm217_vm0, %v9610_v4 }
  0x50   : > { %298 = vst.msk [vmem:[#allocation2 + $0x280] sm:$0xff] %vm217_vm0, %v9610_v4  ;;  %299 = vst.msk [vmem:[#allocation2 + $0x288] sm:$0xff] %vm217_vm0, %v9610_v4  ;;  %8428 = vmatmul.mubr.msk.f32.gmra.mxu0 %vm217_vm0, %v9617_v6 }
  0x51   : > { %300 = vst.msk [vmem:[#allocation2 + $0x290] sm:$0xff] %vm217_vm0, %v9610_v4  ;;  %301 = vst.msk [vmem:[#allocation2 + $0x298] sm:$0xff] %vm217_vm0, %v9610_v4  ;;  %8478 = vmatmul.mubr.msk.f32.gmra.mxu1 %vm217_vm0, %v9620_v62  ;;  %8482 = vmatprep.mubr.msk.f32.mxu0 %vm217_vm0, %v9297_v5  ;;  %v9899_v5 = vld [vmem:[%s11787_s1 + $0x30] sm:$0xff] }
  0x52   : > { %302 = vst.msk [vmem:[#allocation2 + $0x2a0] sm:$0xff] %vm217_vm0, %v9610_v4  ;;  %303 = vst.msk [vmem:[#allocation2 + $0x2a8] sm:$0xff] %vm217_vm0, %v9610_v4  ;;  %8532 = vmatprep.mubr.msk.f32.mxu1 %vm217_vm0, %v1571_v2  ;;  %v1579_v2 = vld [vmem:[%s9293_s27 + $0x62] sm:$0xff] }
  0x53   : > { %304 = vst.msk [vmem:[#allocation2 + $0x2b0] sm:$0xff] %vm217_vm0, %v9610_v4  ;;  %305 = vst.msk [vmem:[#allocation2 + $0x2b8] sm:$0xff] %vm217_vm0, %v9610_v4 }
  0x54   : > { %306 = vst.msk [vmem:[#allocation2 + $0x2c0] sm:$0xff] %vm217_vm0, %v9610_v4  ;;  %307 = vst.msk [vmem:[#allocation2 + $0x2c8] sm:$0xff] %vm217_vm0, %v9610_v4  ;;  %8483 = vmatmul.mubr.msk.f32.vlgmr.msra.gmra.mxu0 %vm217_vm0, %v9304_v7  ;;  %v1574_v7 = vld [vmem:[%s9293_s27 + $0x22] sm:$0xff] }
  0x55   : > { %308 = vst.msk [vmem:[#allocation2 + $0x2d0] sm:$0xff] %vm217_vm0, %v9610_v4  ;;  %309 = vst.msk [vmem:[#allocation2 + $0x2d8] sm:$0xff] %vm217_vm0, %v9610_v4  ;;  %8533 = vmatmul.mubr.msk.f32.vlgmr.msra.gmra.mxu1 %vm217_vm0, %v1572_v0  ;;  %8581 = vmatpush3.msra.mxu0 %v9318_v10  ;;  %v1575_v0 = vld [vmem:[%s9293_s27 + $0x32] sm:$0xff]  ;;  %v1576_v10 = vld [vmem:[%s9293_s27 + $0x3a] sm:$0xff] }
  0x56   : > { %310 = vst.msk [vmem:[#allocation2 + $0x2e0] sm:$0xff] %vm217_vm0, %v9610_v4  ;;  %311 = vst.msk [vmem:[#allocation2 + $0x2e8] sm:$0xff] %vm217_vm0, %v9610_v4  ;;  %8485 = vmatprep.mubr.msk.f32.mxu0 %vm217_vm0, %v9310_v9  ;;  %8535 = vmatprep.mubr.msk.f32.mxu1 %vm217_vm0, %v1573_v60  ;;  %v1577_v60 = vld [vmem:[%s9293_s27 + $0x4a] sm:$0xff] }
  0x57   : > { %312 = vst.msk [vmem:[#allocation2 + $0x2f0] sm:$0xff] %vm217_vm0, %v9610_v4  ;;  %313 = vst.msk [vmem:[#allocation2 + $0x2f8] sm:$0xff] %vm217_vm0, %v9610_v4  ;;  %8631 = vmatpush3.msra.mxu1 %v9323_v11  ;;  %v1578_v11 = vld [vmem:[%s9293_s27 + $0x52] sm:$0xff] }
  0x58   : > { %314 = vst.msk [vmem:[#allocation2 + $0x300] sm:$0xff] %vm217_vm0, %v9610_v4  ;;  %315 = vst.msk [vmem:[#allocation2 + $0x308] sm:$0xff] %vm217_vm0, %v9610_v4  ;;  %8730 = vmatprep.subr.mxu1 %v9899_v5  ;;  %8486 = vmatmul.mubr.msk.f32.gmra.mxu0 %vm217_vm0, %v9331_v13 }
  0x59   : > { %316 = vst.msk [vmem:[#allocation2 + $0x310] sm:$0xff] %vm217_vm0, %v9610_v4  ;;  %317 = vst.msk [vmem:[#allocation2 + $0x318] sm:$0xff] %vm217_vm0, %v9610_v4  ;;  %8536 = vmatmul.mubr.msk.f32.gmra.mxu1 %vm217_vm0, %v1574_v7  ;;  %8488 = vmatprep.mubr.msk.f32.mxu0 %vm217_vm0, %v9339_v15  ;;  %v1580_v7 = vld [vmem:[%s9293_s27 + $0x6a] sm:$0xff] }
  0x5a   : > { %318 = vst.msk [vmem:[#allocation2 + $0x320] sm:$0xff] %vm217_vm0, %v9610_v4  ;;  %319 = vst.msk [vmem:[#allocation2 + $0x328] sm:$0xff] %vm217_vm0, %v9610_v4  ;;  %8538 = vmatprep.mubr.msk.f32.mxu1 %vm217_vm0, %v1575_v0  ;;  %v1581_v0 = vld [vmem:[%s9293_s27 + $0x7a] sm:$0xff] }
  0x5b   : > { %320 = vst.msk [vmem:[#allocation2 + $0x330] sm:$0xff] %vm217_vm0, %v9610_v4  ;;  %321 = vst.msk [vmem:[#allocation2 + $0x338] sm:$0xff] %vm217_vm0, %v9610_v4 }
  0x5c   : > { %322 = vst.msk [vmem:[#allocation2 + $0x340] sm:$0xff] %vm217_vm0, %v9610_v4  ;;  %323 = vst.msk [vmem:[#allocation2 + $0x348] sm:$0xff] %vm217_vm0, %v9610_v4  ;;  %8489 = vmatmul.mubr.msk.f32.gmra.mxu0 %vm217_vm0, %v9355_v17 }
  0x5d   : > { %324 = vst.msk [vmem:[#allocation2 + $0x350] sm:$0xff] %vm217_vm0, %v9610_v4  ;;  %325 = vst.msk [vmem:[#allocation2 + $0x358] sm:$0xff] %vm217_vm0, %v9610_v4  ;;  %8539 = vmatmul.mubr.msk.f32.gmra.mxu1 %vm217_vm0, %v1576_v10  ;;  %8491 = vmatprep.mubr.msk.f32.mxu0 %vm217_vm0, %v9361_v19  ;;  %v1582_v10 = vld [vmem:[%s9293_s27 + $0x82] sm:$0xff] }
  0x5e   : > { %326 = vst.msk [vmem:[#allocation2 + $0x360] sm:$0xff] %vm217_vm0, %v9610_v4  ;;  %327 = vst.msk [vmem:[#allocation2 + $0x368] sm:$0xff] %vm217_vm0, %v9610_v4  ;;  %8541 = vmatprep.mubr.msk.f32.mxu1 %vm217_vm0, %v1577_v60  ;;  %v1583_v60 = vld [vmem:[%s9293_s27 + $0x92] sm:$0xff] }
  0x5f   : > { %328 = vst.msk [vmem:[#allocation2 + $0x370] sm:$0xff] %vm217_vm0, %v9610_v4  ;;  %329 = vst.msk [vmem:[#allocation2 + $0x378] sm:$0xff] %vm217_vm0, %v9610_v4 }
  0x60   : > { %330 = vst.msk [vmem:[#allocation2 + $0x380] sm:$0xff] %vm217_vm0, %v9610_v4  ;;  %331 = vst.msk [vmem:[#allocation2 + $0x388] sm:$0xff] %vm217_vm0, %v9610_v4  ;;  %8492 = vmatmul.mubr.msk.f32.gmra.mxu0 %vm217_vm0, %v9375_v21 }
  0x61   : > { %332 = vst.msk [vmem:[#allocation2 + $0x390] sm:$0xff] %vm217_vm0, %v9610_v4  ;;  %333 = vst.msk [vmem:[#allocation2 + $0x398] sm:$0xff] %vm217_vm0, %v9610_v4  ;;  %8542 = vmatmul.mubr.msk.f32.gmra.mxu1 %vm217_vm0, %v1578_v11  ;;  %8494 = vmatprep.mubr.msk.f32.mxu0 %vm217_vm0, %v9381_v23  ;;  %v1584_v11 = vld [vmem:[%s9293_s27 + $0x9a] sm:$0xff] }
  0x62   : > { %334 = vst.msk [vmem:[#allocation2 + $0x3a0] sm:$0xff] %vm217_vm0, %v9610_v4  ;;  %335 = vst.msk [vmem:[#allocation2 + $0x3a8] sm:$0xff] %vm217_vm0, %v9610_v4  ;;  %8544 = vmatprep.mubr.msk.f32.mxu1 %vm217_vm0, %v1579_v2  ;;  %v1585_v2 = vld [vmem:[%s9293_s27 + $0xaa] sm:$0xff] }
  0x63   : > { %336 = vst.msk [vmem:[#allocation2 + $0x3b0] sm:$0xff] %vm217_vm0, %v9610_v4  ;;  %337 = vst.msk [vmem:[#allocation2 + $0x3b8] sm:$0xff] %vm217_vm0, %v9610_v4 }
  0x64   : > { %338 = vst.msk [vmem:[#allocation2 + $0x3c0] sm:$0xff] %vm217_vm0, %v9610_v4  ;;  %339 = vst.msk [vmem:[#allocation2 + $0x3c8] sm:$0xff] %vm217_vm0, %v9610_v4  ;;  %8495 = vmatmul.mubr.msk.f32.gmra.mxu0 %vm217_vm0, %v9395_v25 }
  0x65   : > { %340 = vst.msk [vmem:[#allocation2 + $0x3d0] sm:$0xff] %vm217_vm0, %v9610_v4  ;;  %341 = vst.msk [vmem:[#allocation2 + $0x3d8] sm:$0xff] %vm217_vm0, %v9610_v4  ;;  %8545 = vmatmul.mubr.msk.f32.gmra.mxu1 %vm217_vm0, %v1580_v7  ;;  %8497 = vmatprep.mubr.msk.f32.mxu0 %vm217_vm0, %v9401_v27  ;;  %v1586_v27 = vld [vmem:[%s9293_s27 + $0xb2] sm:$0xff] }
  0x66   : > { %342 = vst.msk [vmem:[#allocation2 + $0x3e0] sm:$0xff] %vm217_vm0, %v9610_v4  ;;  %343 = vst.msk [vmem:[#allocation2 + $0x3e8] sm:$0xff] %vm217_vm0, %v9610_v4  ;;  %8547 = vmatprep.mubr.msk.f32.mxu1 %vm217_vm0, %v1581_v0 }
  0x67   : > { %344 = vst.msk [vmem:[#allocation2 + $0x3f0] sm:$0xff] %vm217_vm0, %v9610_v4  ;;  %345 = vst.msk [vmem:[#allocation2 + $0x3f8] sm:$0xff] %vm217_vm0, %v9610_v4  ;;  %v9894_v4 = vld [vmem:[%s11787_s1 + $0x18] sm:$0xff] }
  0x68   : > { %8680 = vmatprep.subr.mxu0 %v9894_v4  ;;  %8498 = vmatmul.mubr.msk.f32.gmra.mxu0 %vm217_vm0, %v9415_v29  ;;  %v1587_v29 = vld [vmem:[%s9293_s27 + $0xc2] sm:$0xff] }
  0x69   : > { %8548 = vmatmul.mubr.msk.f32.gmra.mxu1 %vm217_vm0, %v1582_v10  ;;  %8500 = vmatprep.mubr.msk.f32.mxu0 %vm217_vm0, %v9421_v31  ;;  %v1588_v31 = vld [vmem:[%s9293_s27 + $0xca] sm:$0xff] }
  0x6a   : > { %8550 = vmatprep.mubr.msk.f32.mxu1 %vm217_vm0, %v1583_v60 }
  0x6c   : > { %8501 = vmatmul.mubr.msk.f32.gmra.mxu0 %vm217_vm0, %v9435_v33  ;;  %v1589_v33 = vld [vmem:[%s9293_s27 + $0xda] sm:$0xff] }
  0x6d   : > { %8551 = vmatmul.mubr.msk.f32.gmra.mxu1 %vm217_vm0, %v1584_v11  ;;  %8503 = vmatprep.mubr.msk.f32.mxu0 %vm217_vm0, %v9441_v35  ;;  %v1590_v35 = vld [vmem:[%s9293_s27 + $0xe2] sm:$0xff] }
  0x6e   : > { %8553 = vmatprep.mubr.msk.f32.mxu1 %vm217_vm0, %v1585_v2  ;;  %v10225_v11 = vld [vmem:[%s9293_s27 + $0x81] sm:$0xff] }
  0x70   : > { %8504 = vmatmul.mubr.msk.f32.gmra.mxu0 %vm217_vm0, %v9455_v37  ;;  %v1591_v37 = vld [vmem:[%s9293_s27 + $0xf2] sm:$0xff] }
  0x71   : > { %8554 = vmatmul.mubr.msk.f32.gmra.mxu1 %vm217_vm0, %v1586_v27  ;;  %8506 = vmatprep.mubr.msk.f32.mxu0 %vm217_vm0, %v9461_v39  ;;  %v1592_v39 = vld [vmem:[%s9293_s27 + $0xfa] sm:$0xff] }
  0x72   : > { %8556 = vmatprep.mubr.msk.f32.mxu1 %vm217_vm0, %v1587_v29 }
  0x74   : > { %8507 = vmatmul.mubr.msk.f32.gmra.mxu0 %vm217_vm0, %v9475_v41  ;;  %v1593_v41 = vld [vmem:[%s9293_s27 + $0x10a] sm:$0xff] }
  0x75   : > { %8557 = vmatmul.mubr.msk.f32.gmra.mxu1 %vm217_vm0, %v1588_v31  ;;  %8509 = vmatprep.mubr.msk.f32.mxu0 %vm217_vm0, %v9481_v43  ;;  %v1594_v43 = vld [vmem:[%s9293_s27 + $0x112] sm:$0xff]  ;;  %v387_v31 = vld [vmem:[#allocation2 + $0x48] sm:$0xff] }
  0x76   : > { %8559 = vmatprep.mubr.msk.f32.mxu1 %vm217_vm0, %v1589_v33 }
  0x78   : > { %8510 = vmatmul.mubr.msk.f32.gmra.mxu0 %vm217_vm0, %v9495_v45  ;;  %v1595_v45 = vld [vmem:[%s9293_s27 + $0x122] sm:$0xff] }
  0x79   : > { %8560 = vmatmul.mubr.msk.f32.gmra.mxu1 %vm217_vm0, %v1590_v35  ;;  %8512 = vmatprep.mubr.msk.f32.mxu0 %vm217_vm0, %v9501_v47  ;;  %v1596_v47 = vld [vmem:[%s9293_s27 + $0x12a] sm:$0xff] }
  0x7a   : > { %8562 = vmatprep.mubr.msk.f32.mxu1 %vm217_vm0, %v1591_v37 }
  0x7c   : > { %8513 = vmatmul.mubr.msk.f32.gmra.mxu0 %vm217_vm0, %v9515_v49  ;;  %v1597_v49 = vld [vmem:[%s9293_s27 + $0x13a] sm:$0xff] }
  0x7d   : > { %8563 = vmatmul.mubr.msk.f32.gmra.mxu1 %vm217_vm0, %v1592_v39  ;;  %8515 = vmatprep.mubr.msk.f32.mxu0 %vm217_vm0, %v9521_v51  ;;  %v1598_v51 = vld [vmem:[%s9293_s27 + $0x142] sm:$0xff] }
  0x7e   : > { %8565 = vmatprep.mubr.msk.f32.mxu1 %vm217_vm0, %v1593_v41 }
  0x80   : > { %8516 = vmatmul.mubr.msk.f32.gmra.mxu0 %vm217_vm0, %v9535_v53  ;;  %v1599_v53 = vld [vmem:[%s9293_s27 + $0x152] sm:$0xff] }
  0x81   : > { %8566 = vmatmul.mubr.msk.f32.gmra.mxu1 %vm217_vm0, %v1594_v43  ;;  %8518 = vmatprep.mubr.msk.f32.mxu0 %vm217_vm0, %v9541_v55  ;;  %v1600_v55 = vld [vmem:[%s9293_s27 + $0x15a] sm:$0xff] }
  0x82   : > { %8568 = vmatprep.mubr.msk.f32.mxu1 %vm217_vm0, %v1595_v45  ;;  %v386_v43 = vld [vmem:[#allocation2 + $0x40] sm:$0xff] }
  0x84   : > { %8519 = vmatmul.mubr.msk.f32.gmra.mxu0 %vm217_vm0, %v9555_v57  ;;  %v1601_v57 = vld [vmem:[%s9293_s27 + $0x16a] sm:$0xff] }
  0x85   : > { %8569 = vmatmul.mubr.msk.f32.gmra.mxu1 %vm217_vm0, %v1596_v47  ;;  %8521 = vmatprep.mubr.msk.f32.mxu0 %vm217_vm0, %v9561_v59  ;;  %v1602_v59 = vld [vmem:[%s9293_s27 + $0x172] sm:$0xff] }
  0x86   : > { %8571 = vmatprep.mubr.msk.f32.mxu1 %vm217_vm0, %v1597_v49  ;;  %v10243_v49 = vld [vmem:[%s9293_s27 + $0x99] sm:$0xff] }
  0x88   : > { %8522 = vmatmul.mubr.msk.f32.gmra.mxu0 %vm217_vm0, %v9575_v61  ;;  %v10035_v61 = vld [vmem:[%s11787_s1 + $0x48] sm:$0xff] }
  0x89   : > { %8572 = vmatmul.mubr.msk.f32.gmra.mxu1 %vm217_vm0, %v1598_v51  ;;  %8524 = vmatprep.mubr.msk.f32.mxu0 %vm217_vm0, %v9581_v63 }
  0x8a   : > { %8574 = vmatprep.mubr.msk.f32.mxu1 %vm217_vm0, %v1599_v53 }
  0x8c   : > { %8525 = vmatmul.mubr.msk.f32.gmra.mxu0 %vm217_vm0, %v9595_v1 }
  0x8d   : > { %8575 = vmatmul.mubr.msk.f32.gmra.mxu1 %vm217_vm0, %v1600_v55  ;;  %8527 = vmatprep.mubr.msk.f32.mxu0 %vm217_vm0, %v9601_v3  ;;  %v385_v3 = vld [vmem:[#allocation2 + $0x38] sm:$0xff] }
  0x8e   : > { %8577 = vmatprep.mubr.msk.f32.mxu1 %vm217_vm0, %v1601_v57  ;;  %v389_v57 = vld [vmem:[#allocation2 + $0x58] sm:$0xff] }
  0x90   : > { %8528 = vmatmul.mubr.msk.f32.gmra.mxu0 %vm217_vm0, %v9620_v62  ;;  %v10040_v62 = vld [vmem:[%s11787_s1 + $0x60] sm:$0xff] }
  0x91   : > { %8578 = vmatmul.mubr.msk.f32.gmra.mxu1 %vm217_vm0, %v1602_v59  ;;  %8582 = vmatprep.mubr.msk.f32.mxu0 %vm217_vm0, %v9307_v8  ;;  %v10246_v59 = vld [vmem:[%s9293_s27 + $0xa9] sm:$0xff] }
  0x92   : > { %8632 = vmatprep.mubr.msk.f32.mxu1 %vm217_vm0, %v9307_v8  ;;  %v11802_v8 = vld [vmem:[#allocation3_spill] sm:$0xff] }
  0x94   : > { %8583 = vmatmul.mubr.msk.f32.vlgmr.msra.gmra.mxu0 %vm217_vm0, %v9328_v12 }
  0x95   : > { %8633 = vmatmul.mubr.msk.f32.vlgmr.msra.gmra.mxu1 %vm217_vm0, %v9328_v12  ;;  %8681 = vmatpush3.msra.mxu0 %v9894_v4  ;;  %v11803_v12 = vld [vmem:[#allocation4_spill] sm:$0xff] }
  0x96   : > { %8585 = vmatprep.mubr.msk.f32.mxu0 %vm217_vm0, %v9336_v14  ;;  %8635 = vmatprep.mubr.msk.f32.mxu1 %vm217_vm0, %v9336_v14  ;;  %v11804_v14 = vld [vmem:[#allocation5_spill] sm:$0xff] }
  0x97   : > { %8731 = vmatpush3.msra.mxu1 %v9899_v5  ;;  %8780 = vmatprep.subr.mxu0 %v10035_v61 }
  0x98   : > { %8830 = vmatprep.subr.mxu1 %v10040_v62  ;;  %8586 = vmatmul.mubr.msk.f32.gmra.mxu0 %vm217_vm0, %v9352_v16 }
  0x99   : > { %8636 = vmatmul.mubr.msk.f32.gmra.mxu1 %vm217_vm0, %v9352_v16  ;;  %8588 = vmatprep.mubr.msk.f32.mxu0 %vm217_vm0, %v9358_v18  ;;  %v11805_v16 = vld [vmem:[#allocation6_spill] sm:$0xff] }
  0x9a   : > { %8638 = vmatprep.mubr.msk.f32.mxu1 %vm217_vm0, %v9358_v18  ;;  %v7195_v18 = vld [vmem:[%s9293_s27 + $0x180] sm:$0xff] }
  0x9c   : > { %8589 = vmatmul.mubr.msk.f32.gmra.mxu0 %vm217_vm0, %v9372_v20 }
  0x9d   : > { %8639 = vmatmul.mubr.msk.f32.gmra.mxu1 %vm217_vm0, %v9372_v20  ;;  %8591 = vmatprep.mubr.msk.f32.mxu0 %vm217_vm0, %v9378_v22  ;;  %v7196_v20 = vld [vmem:[%s9293_s27 + $0x188] sm:$0xff] }
  0x9e   : > { %8641 = vmatprep.mubr.msk.f32.mxu1 %vm217_vm0, %v9378_v22  ;;  %v379_v22 = vld [vmem:[#allocation2 + $0x8] sm:$0xff] }
  0xa0   : > { %8592 = vmatmul.mubr.msk.f32.gmra.mxu0 %vm217_vm0, %v9392_v24 }
  0xa1   : > { %8642 = vmatmul.mubr.msk.f32.gmra.mxu1 %vm217_vm0, %v9392_v24  ;;  %8594 = vmatprep.mubr.msk.f32.mxu0 %vm217_vm0, %v9398_v26 }
  0xa2   : > { %8644 = vmatprep.mubr.msk.f32.mxu1 %vm217_vm0, %v9398_v26 }
  0xa4   : > { %8595 = vmatmul.mubr.msk.f32.gmra.mxu0 %vm217_vm0, %v9412_v28 }
  0xa5   : > { %8645 = vmatmul.mubr.msk.f32.gmra.mxu1 %vm217_vm0, %v9412_v28  ;;  %8597 = vmatprep.mubr.msk.f32.mxu0 %vm217_vm0, %v9418_v30  ;;  %v378_v28 = vld [vmem:[#allocation2] sm:$0xff] }
  0xa6   : > { %8647 = vmatprep.mubr.msk.f32.mxu1 %vm217_vm0, %v9418_v30  ;;  %v10175_v30 = vld [vmem:[%s11787_s1 + $0x38] sm:$0xff] }
  0xa8   : > { %8598 = vmatmul.mubr.msk.f32.gmra.mxu0 %vm217_vm0, %v9432_v32 }
  0xa9   : > { %8648 = vmatmul.mubr.msk.f32.gmra.mxu1 %vm217_vm0, %v9432_v32  ;;  %8600 = vmatprep.mubr.msk.f32.mxu0 %vm217_vm0, %v9438_v34  ;;  %v10180_v32 = vld [vmem:[%s11787_s1 + $0x68] sm:$0xff] }
  0xaa   : > { %8650 = vmatprep.mubr.msk.f32.mxu1 %vm217_vm0, %v9438_v34 }
  0xac   : > { %8601 = vmatmul.mubr.msk.f32.gmra.mxu0 %vm217_vm0, %v9452_v36 }
  0xad   : > { %8651 = vmatmul.mubr.msk.f32.gmra.mxu1 %vm217_vm0, %v9452_v36  ;;  %8603 = vmatprep.mubr.msk.f32.mxu0 %vm217_vm0, %v9458_v38 }
  0xae   : > { %8653 = vmatprep.mubr.msk.f32.mxu1 %vm217_vm0, %v9458_v38 }
  0xb0   : > { %8604 = vmatmul.mubr.msk.f32.gmra.mxu0 %vm217_vm0, %v9472_v40 }
  0xb1   : > { %8654 = vmatmul.mubr.msk.f32.gmra.mxu1 %vm217_vm0, %v9472_v40  ;;  %8606 = vmatprep.mubr.msk.f32.mxu0 %vm217_vm0, %v9478_v42 }
  0xb2   : > { %8656 = vmatprep.mubr.msk.f32.mxu1 %vm217_vm0, %v9478_v42 }
  0xb4   : > { %8607 = vmatmul.mubr.msk.f32.gmra.mxu0 %vm217_vm0, %v9492_v44 }
  0xb5   : > { %8657 = vmatmul.mubr.msk.f32.gmra.mxu1 %vm217_vm0, %v9492_v44  ;;  %8609 = vmatprep.mubr.msk.f32.mxu0 %vm217_vm0, %v9498_v46  ;;  %v380_v44 = vld [vmem:[#allocation2 + $0x10] sm:$0xff] }
  0xb6   : > { %8659 = vmatprep.mubr.msk.f32.mxu1 %vm217_vm0, %v9498_v46 }
  0xb8   : > { %8610 = vmatmul.mubr.msk.f32.gmra.mxu0 %vm217_vm0, %v9512_v48 }
  0xb9   : > { %8660 = vmatmul.mubr.msk.f32.gmra.mxu1 %vm217_vm0, %v9512_v48  ;;  %8612 = vmatprep.mubr.msk.f32.mxu0 %vm217_vm0, %v9518_v50 }
  0xba   : > { %8662 = vmatprep.mubr.msk.f32.mxu1 %vm217_vm0, %v9518_v50  ;;  %v383_v50 = vld [vmem:[#allocation2 + $0x28] sm:$0xff] }
  0xbc   : > { %8613 = vmatmul.mubr.msk.f32.gmra.mxu0 %vm217_vm0, %v9532_v52 }
  0xbd   : > { %8663 = vmatmul.mubr.msk.f32.gmra.mxu1 %vm217_vm0, %v9532_v52  ;;  %8615 = vmatprep.mubr.msk.f32.mxu0 %vm217_vm0, %v9538_v54 }
  0xbe   : > { %8665 = vmatprep.mubr.msk.f32.mxu1 %vm217_vm0, %v9538_v54 }
  0xc0   : > { %8616 = vmatmul.mubr.msk.f32.gmra.mxu0 %vm217_vm0, %v9552_v56 }
  0xc1   : > { %8666 = vmatmul.mubr.msk.f32.gmra.mxu1 %vm217_vm0, %v9552_v56  ;;  %8618 = vmatprep.mubr.msk.f32.mxu0 %vm217_vm0, %v9558_v58 }
  0xc2   : > { %8668 = vmatprep.mubr.msk.f32.mxu1 %vm217_vm0, %v9558_v58 }
  0xc4   : > { %8619 = vmatmul.mubr.msk.f32.gmra.mxu0 %vm217_vm0, %v11802_v8 }
  0xc5   : > { %8669 = vmatmul.mubr.msk.f32.gmra.mxu1 %vm217_vm0, %v11802_v8  ;;  %8621 = vmatprep.mubr.msk.f32.mxu0 %vm217_vm0, %v11803_v12 }
  0xc6   : > { %8671 = vmatprep.mubr.msk.f32.mxu1 %vm217_vm0, %v11803_v12 }
  0xc8   : > { %8622 = vmatmul.mubr.msk.f32.gmra.mxu0 %vm217_vm0, %v11804_v14 }
  0xc9   : > { %8672 = vmatmul.mubr.msk.f32.gmra.mxu1 %vm217_vm0, %v11804_v14  ;;  %8624 = vmatprep.mubr.msk.f32.mxu0 %vm217_vm0, %v11805_v16 }
  0xca   : > { %8674 = vmatprep.mubr.msk.f32.mxu1 %vm217_vm0, %v11805_v16  ;;  %v388_v16 = vld [vmem:[#allocation2 + $0x50] sm:$0xff] }
  0xcc   : > { %8625 = vmatmul.mubr.msk.f32.gmra.mxu0 %vm217_vm0, %v9617_v6 }
  0xcd   : > { %8675 = vmatmul.mubr.msk.f32.gmra.mxu1 %vm217_vm0, %v9617_v6  ;;  %8627 = vmatprep.mubr.msk.f32.mxu0 %vm217_vm0, %v7195_v18  ;;  %v10211_v6 = vld [vmem:[%s9293_s27 + $0x79] sm:$0xff] }
  0xce   : > { %8677 = vmatprep.mubr.msk.f32.mxu1 %vm217_vm0, %v7195_v18 }
  0xd0   : > { %8628 = vmatmul.mubr.msk.f32.gmra.mxu0 %vm217_vm0, %v7196_v20 }
  0xd1   : > { %8678 = vmatmul.mubr.msk.f32.gmra.mxu1 %vm217_vm0, %v7196_v20  ;;  %8682 = vmatprep.mubr.msk.f32.mxu0 %vm217_vm0, %v9310_v9 }
  0xd2   : > { %8732 = vmatprep.mubr.msk.f32.mxu1 %vm217_vm0, %v9310_v9 }
  0xd4   : > { %v8384_v24 = vpop.f32.mrf.mxu0  ;;  %8683 = vmatmul.mubr.msk.f32.vlgmr.msra.gmra.mxu0 %vm217_vm0, %v9331_v13 }
  0xd5   : > { %v8434_v26 = vpop.f32.mrf.mxu1  ;;  %8733 = vmatmul.mubr.msk.f32.vlgmr.msra.gmra.mxu1 %vm217_vm0, %v9331_v13  ;;  %v733_v9 = vadd.f32 %v8384_v24, %v379_v22  ;;  %8781 = vmatpush3.msra.mxu0 %v10035_v61  ;;  %v381_v13 = vld [vmem:[#allocation2 + $0x18] sm:$0xff] }
  0xd6   : > { %8685 = vmatprep.mubr.msk.f32.mxu0 %vm217_vm0, %v9339_v15  ;;  %v573_v34 = vpop.f32.mrf.mxu0  ;;  %8735 = vmatprep.mubr.msk.f32.mxu1 %vm217_vm0, %v9339_v15  ;;  %v10261_v22 = vld [vmem:[%s9293_s27 + $0xb1] sm:$0xff] }
  0xd7   : > { %v1024_v36 = vpop.f32.mrf.mxu1  ;;  %8831 = vmatpush3.msra.mxu1 %v10040_v62  ;;  %765 = vst.msk [vmem:[#allocation2 + $0x8] sm:$0xff] %vm217_vm0, %v733_v9  ;;  %v732_v38 = vadd.f32 %v573_v34, %v378_v28  ;;  %8880 = vmatprep.subr.mxu0 %v10175_v30  ;;  %v391_v9 = vld [vmem:[#allocation2 + $0x68] sm:$0xff] }
  0xd8   : > { %8930 = vmatprep.subr.mxu1 %v10180_v32  ;;  %v8387_v40 = vpop.f32.mrf.mxu0  ;;  %8686 = vmatmul.mubr.msk.f32.gmra.mxu0 %vm217_vm0, %v9355_v17  ;;  %v10264_v34 = vld [vmem:[%s9293_s27 + $0xc1] sm:$0xff] }
  0xd9   : > { %v8437_v42 = vpop.f32.mrf.mxu1  ;;  %8736 = vmatmul.mubr.msk.f32.gmra.mxu1 %vm217_vm0, %v9355_v17  ;;  %764 = vst.msk [vmem:[#allocation2] sm:$0xff] %vm217_vm0, %v732_v38  ;;  %v735_v15 = vadd.f32 %v8387_v40, %v381_v13  ;;  %8688 = vmatprep.mubr.msk.f32.mxu0 %vm217_vm0, %v9361_v19  ;;  %v382_v17 = vld [vmem:[#allocation2 + $0x20] sm:$0xff] }
  0xda   : > { %8738 = vmatprep.mubr.msk.f32.mxu1 %vm217_vm0, %v9361_v19  ;;  %v583_v46 = vpop.f32.mrf.mxu0 }
  0xdb   : > { %v1034_v48 = vpop.f32.mrf.mxu1  ;;  %767 = vst.msk [vmem:[#allocation2 + $0x18] sm:$0xff] %vm217_vm0, %v735_v15  ;;  %v734_v52 = vadd.f32 %v583_v46, %v380_v44  ;;  %v390_v44 = vld [vmem:[#allocation2 + $0x60] sm:$0xff] }
  0xdc   : > { %v8390_v54 = vpop.f32.mrf.mxu0  ;;  %8689 = vmatmul.mubr.msk.f32.gmra.mxu0 %vm217_vm0, %v9375_v21 }
  0xdd   : > { %v8440_v56 = vpop.f32.mrf.mxu1  ;;  %8739 = vmatmul.mubr.msk.f32.gmra.mxu1 %vm217_vm0, %v9375_v21  ;;  %766 = vst.msk [vmem:[#allocation2 + $0x10] sm:$0xff] %vm217_vm0, %v734_v52  ;;  %v737_v58 = vadd.f32 %v8390_v54, %v383_v50  ;;  %8691 = vmatprep.mubr.msk.f32.mxu0 %vm217_vm0, %v9381_v23 }
  0xde   : > { %8741 = vmatprep.mubr.msk.f32.mxu1 %vm217_vm0, %v9381_v23  ;;  %v829_v19 = vld [vmem:[#allocation2 + $0x8] sm:$0xff]  ;;  %v593_v63 = vpop.f32.mrf.mxu0  ;;  %v384_v23 = vld [vmem:[#allocation2 + $0x30] sm:$0xff] }
  0xdf   : > { %v1044_v1 = vpop.f32.mrf.mxu1  ;;  %v1184_v4 = vadd.f32 %v8434_v26, %v829_v19  ;;  %769 = vst.msk [vmem:[#allocation2 + $0x28] sm:$0xff] %vm217_vm0, %v737_v58  ;;  %v736_v21 = vadd.f32 %v593_v63, %v382_v17  ;;  %v10282_v17 = vld [vmem:[%s9293_s27 + $0xd9] sm:$0xff] }
  0xe0   : > { %v828_v5 = vld [vmem:[#allocation2] sm:$0xff]  ;;  %v8393_v7 = vpop.f32.mrf.mxu0  ;;  %8692 = vmatmul.mubr.msk.f32.gmra.mxu0 %vm217_vm0, %v9395_v25 }
  0xe1   : > { %v8443_v0 = vpop.f32.mrf.mxu1  ;;  %8742 = vmatmul.mubr.msk.f32.gmra.mxu1 %vm217_vm0, %v9395_v25  ;;  %1216 = vst.msk [vmem:[#allocation2 + $0x8] sm:$0xff] %vm217_vm0, %v1184_v4  ;;  %v1183_v10 = vadd.f32 %v1024_v36, %v828_v5  ;;  %768 = vst.msk [vmem:[#allocation2 + $0x20] sm:$0xff] %vm217_vm0, %v736_v21  ;;  %v739_v60 = vadd.f32 %v8393_v7, %v385_v3  ;;  %8694 = vmatprep.mubr.msk.f32.mxu0 %vm217_vm0, %v10211_v6  ;;  %v10228_v25 = vld [vmem:[%s9293_s27 + $0x91] sm:$0xff]  ;;  %v10297_v7 = vld [vmem:[%s9293_s27 + $0xe1] sm:$0xff] }
  0xe2   : > { %8744 = vmatprep.mubr.msk.f32.mxu1 %vm217_vm0, %v10211_v6  ;;  %v831_v2 = vld [vmem:[#allocation2 + $0x18] sm:$0xff]  ;;  %v603_v27 = vpop.f32.mrf.mxu0  ;;  %v392_v4 = vld [vmem:[#allocation2 + $0x70] sm:$0xff] }
  0xe3   : > { %v1054_v29 = vpop.f32.mrf.mxu1  ;;  %1215 = vst.msk [vmem:[#allocation2] sm:$0xff] %vm217_vm0, %v1183_v10  ;;  %v1186_v33 = vadd.f32 %v8437_v42, %v831_v2  ;;  %771 = vst.msk [vmem:[#allocation2 + $0x38] sm:$0xff] %vm217_vm0, %v739_v60  ;;  %v738_v35 = vadd.f32 %v603_v27, %v384_v23  ;;  %v395_v60 = vld [vmem:[#allocation2 + $0x88] sm:$0xff]  ;;  %v10300_v2 = vld [vmem:[%s9293_s27 + $0xf1] sm:$0xff] }
  0xe4   : > { %v830_v37 = vld [vmem:[#allocation2 + $0x10] sm:$0xff]  ;;  %v8396_v39 = vpop.f32.mrf.mxu0  ;;  %8695 = vmatmul.mubr.msk.f32.gmra.mxu0 %vm217_vm0, %v10225_v11 }
  0xe5   : > { %v8446_v41 = vpop.f32.mrf.mxu1  ;;  %8745 = vmatmul.mubr.msk.f32.gmra.mxu1 %vm217_vm0, %v10225_v11  ;;  %1218 = vst.msk [vmem:[#allocation2 + $0x18] sm:$0xff] %vm217_vm0, %v1186_v33  ;;  %v1185_v45 = vadd.f32 %v1034_v48, %v830_v37  ;;  %770 = vst.msk [vmem:[#allocation2 + $0x30] sm:$0xff] %vm217_vm0, %v738_v35  ;;  %v741_v47 = vadd.f32 %v8396_v39, %v387_v31  ;;  %8697 = vmatprep.mubr.msk.f32.mxu0 %vm217_vm0, %v10228_v25  ;;  %v10279_v48 = vld [vmem:[%s9293_s27 + $0xc9] sm:$0xff]  ;;  %v394_v37 = vld [vmem:[#allocation2 + $0x80] sm:$0xff] }
  0xe6   : > { %8747 = vmatprep.mubr.msk.f32.mxu1 %vm217_vm0, %v10228_v25  ;;  %v833_v51 = vld [vmem:[#allocation2 + $0x28] sm:$0xff]  ;;  %v613_v53 = vpop.f32.mrf.mxu0 }
  0xe7   : > { %v1064_v55 = vpop.f32.mrf.mxu1  ;;  %1217 = vst.msk [vmem:[#allocation2 + $0x10] sm:$0xff] %vm217_vm0, %v1185_v45  ;;  %v1188_v61 = vadd.f32 %v8440_v56, %v833_v51  ;;  %773 = vst.msk [vmem:[#allocation2 + $0x48] sm:$0xff] %vm217_vm0, %v741_v47  ;;  %v740_v62 = vadd.f32 %v613_v53, %v386_v43  ;;  %v393_v56 = vld [vmem:[#allocation2 + $0x78] sm:$0xff] }
  0xe8   : > { %v832_v8 = vld [vmem:[#allocation2 + $0x20] sm:$0xff]  ;;  %v8399_v12 = vpop.f32.mrf.mxu0  ;;  %8698 = vmatmul.mubr.msk.f32.gmra.mxu0 %vm217_vm0, %v10243_v49  ;;  %v397_v53 = vld [vmem:[#allocation2 + $0x98] sm:$0xff] }
  0xe9   : > { %v8449_v14 = vpop.f32.mrf.mxu1  ;;  %8748 = vmatmul.mubr.msk.f32.gmra.mxu1 %vm217_vm0, %v10243_v49  ;;  %1220 = vst.msk [vmem:[#allocation2 + $0x28] sm:$0xff] %vm217_vm0, %v1188_v61  ;;  %v1187_v18 = vadd.f32 %v1044_v1, %v832_v8  ;;  %772 = vst.msk [vmem:[#allocation2 + $0x40] sm:$0xff] %vm217_vm0, %v740_v62  ;;  %v743_v20 = vadd.f32 %v8399_v12, %v389_v57  ;;  %8700 = vmatprep.mubr.msk.f32.mxu0 %vm217_vm0, %v10246_v59  ;;  %v10315_v43 = vld [vmem:[%s9293_s27 + $0xf9] sm:$0xff] }
  0xea   : > { %8750 = vmatprep.mubr.msk.f32.mxu1 %vm217_vm0, %v10246_v59  ;;  %v835_v24 = vld [vmem:[#allocation2 + $0x38] sm:$0xff]  ;;  %v623_v26 = vpop.f32.mrf.mxu0 }
  0xeb   : > { %v1074_v28 = vpop.f32.mrf.mxu1  ;;  %1219 = vst.msk [vmem:[#allocation2 + $0x20] sm:$0xff] %vm217_vm0, %v1187_v18  ;;  %v1190_v36 = vadd.f32 %v8443_v0, %v835_v24  ;;  %775 = vst.msk [vmem:[#allocation2 + $0x58] sm:$0xff] %vm217_vm0, %v743_v20  ;;  %v742_v13 = vadd.f32 %v623_v26, %v388_v16  ;;  %v10333_v20 = vld [vmem:[%s9293_s27 + $0x111] sm:$0xff] }
  0xec   : > { %v834_v38 = vld [vmem:[#allocation2 + $0x30] sm:$0xff]  ;;  %v8402_v40 = vpop.f32.mrf.mxu0  ;;  %8701 = vmatmul.mubr.msk.f32.gmra.mxu0 %vm217_vm0, %v10261_v22 }
  0xed   : > { %v8452_v42 = vpop.f32.mrf.mxu1  ;;  %8751 = vmatmul.mubr.msk.f32.gmra.mxu1 %vm217_vm0, %v10261_v22  ;;  %1222 = vst.msk [vmem:[#allocation2 + $0x38] sm:$0xff] %vm217_vm0, %v1190_v36  ;;  %v1189_v15 = vadd.f32 %v1054_v29, %v834_v38  ;;  %774 = vst.msk [vmem:[#allocation2 + $0x50] sm:$0xff] %vm217_vm0, %v742_v13  ;;  %v745_v46 = vadd.f32 %v8402_v40, %v391_v9  ;;  %8703 = vmatprep.mubr.msk.f32.mxu0 %vm217_vm0, %v10264_v34  ;;  %v399_v9 = vld [vmem:[#allocation2 + $0xa8] sm:$0xff] }
  0xee   : > { %8753 = vmatprep.mubr.msk.f32.mxu1 %vm217_vm0, %v10264_v34  ;;  %v837_v50 = vld [vmem:[#allocation2 + $0x48] sm:$0xff]  ;;  %v633_v52 = vpop.f32.mrf.mxu0 }
  0xef   : > { %v1084_v54 = vpop.f32.mrf.mxu1  ;;  %1221 = vst.msk [vmem:[#allocation2 + $0x30] sm:$0xff] %vm217_vm0, %v1189_v15  ;;  %v1192_v58 = vadd.f32 %v8446_v41, %v837_v50  ;;  %777 = vst.msk [vmem:[#allocation2 + $0x68] sm:$0xff] %vm217_vm0, %v745_v46  ;;  %v744_v19 = vadd.f32 %v633_v52, %v390_v44  ;;  %v10336_v36 = vld [vmem:[%s9293_s27 + $0x121] sm:$0xff]  ;;  %v10351_v52 = vld [vmem:[%s9293_s27 + $0x129] sm:$0xff] }
  0xf0   : > { %v836_v63 = vld [vmem:[#allocation2 + $0x40] sm:$0xff]  ;;  %v8405_v1 = vpop.f32.mrf.mxu0  ;;  %8704 = vmatmul.mubr.msk.f32.gmra.mxu0 %vm217_vm0, %v10279_v48 }
  0xf1   : > { %v8455_v3 = vpop.f32.mrf.mxu1  ;;  %8754 = vmatmul.mubr.msk.f32.gmra.mxu1 %vm217_vm0, %v10279_v48  ;;  %1224 = vst.msk [vmem:[#allocation2 + $0x48] sm:$0xff] %vm217_vm0, %v1192_v58  ;;  %v1191_v21 = vadd.f32 %v1064_v55, %v836_v63  ;;  %776 = vst.msk [vmem:[#allocation2 + $0x60] sm:$0xff] %vm217_vm0, %v744_v19  ;;  %v747_v5 = vadd.f32 %v8405_v1, %v393_v56  ;;  %8706 = vmatprep.mubr.msk.f32.mxu0 %vm217_vm0, %v10282_v17  ;;  %v10318_v55 = vld [vmem:[%s9293_s27 + $0x109] sm:$0xff]  ;;  %v398_v15 = vld [vmem:[#allocation2 + $0xa0] sm:$0xff] }
  0xf2   : > { %8756 = vmatprep.mubr.msk.f32.mxu1 %vm217_vm0, %v10282_v17  ;;  %v839_v0 = vld [vmem:[#allocation2 + $0x58] sm:$0xff]  ;;  %v643_v23 = vpop.f32.mrf.mxu0 }
  0xf3   : > { %v1094_v10 = vpop.f32.mrf.mxu1  ;;  %1223 = vst.msk [vmem:[#allocation2 + $0x40] sm:$0xff] %vm217_vm0, %v1191_v21  ;;  %v1194_v27 = vadd.f32 %v8449_v14, %v839_v0  ;;  %779 = vst.msk [vmem:[#allocation2 + $0x78] sm:$0xff] %vm217_vm0, %v747_v5  ;;  %v746_v29 = vadd.f32 %v643_v23, %v392_v4  ;;  %v396_v14 = vld [vmem:[#allocation2 + $0x90] sm:$0xff]  ;;  %v401_v19 = vld [vmem:[#allocation2 + $0xb8] sm:$0xff] }
  0xf4   : > { %v838_v31 = vld [vmem:[#allocation2 + $0x50] sm:$0xff]  ;;  %v8408_v33 = vpop.f32.mrf.mxu0  ;;  %8707 = vmatmul.mubr.msk.f32.gmra.mxu0 %vm217_vm0, %v10297_v7  ;;  %v10354_v63 = vld [vmem:[%s9293_s27 + $0x139] sm:$0xff] }
  0xf5   : > { %v8458_v35 = vpop.f32.mrf.mxu1  ;;  %8757 = vmatmul.mubr.msk.f32.gmra.mxu1 %vm217_vm0, %v10297_v7  ;;  %1226 = vst.msk [vmem:[#allocation2 + $0x58] sm:$0xff] %vm217_vm0, %v1194_v27  ;;  %v1193_v39 = vadd.f32 %v1074_v28, %v838_v31  ;;  %778 = vst.msk [vmem:[#allocation2 + $0x70] sm:$0xff] %vm217_vm0, %v746_v29  ;;  %v749_v41 = vadd.f32 %v8408_v33, %v395_v60  ;;  %8709 = vmatprep.mubr.msk.f32.mxu0 %vm217_vm0, %v10300_v2  ;;  %v400_v0 = vld [vmem:[#allocation2 + $0xb0] sm:$0xff]  ;;  %v10369_v60 = vld [vmem:[%s9293_s27 + $0x141] sm:$0xff] }
  0xf6   : > { %8759 = vmatprep.mubr.msk.f32.mxu1 %vm217_vm0, %v10300_v2  ;;  %v841_v45 = vld [vmem:[#allocation2 + $0x68] sm:$0xff]  ;;  %v653_v47 = vpop.f32.mrf.mxu0 }
  0xf7   : > { %v1104_v51 = vpop.f32.mrf.mxu1  ;;  %1225 = vst.msk [vmem:[#allocation2 + $0x50] sm:$0xff] %vm217_vm0, %v1193_v39  ;;  %v1196_v57 = vadd.f32 %v8452_v42, %v841_v45  ;;  %781 = vst.msk [vmem:[#allocation2 + $0x88] sm:$0xff] %vm217_vm0, %v749_v41  ;;  %v748_v61 = vadd.f32 %v653_v47, %v394_v37  ;;  %v403_v33 = vld [vmem:[#allocation2 + $0xc8] sm:$0xff] }
  0xf8   : > { %v840_v62 = vld [vmem:[#allocation2 + $0x60] sm:$0xff]  ;;  %v8411_v8 = vpop.f32.mrf.mxu0  ;;  %8710 = vmatmul.mubr.msk.f32.gmra.mxu0 %vm217_vm0, %v10315_v43 }
  0xf9   : > { %v8461_v12 = vpop.f32.mrf.mxu1  ;;  %8760 = vmatmul.mubr.msk.f32.gmra.mxu1 %vm217_vm0, %v10315_v43  ;;  %1228 = vst.msk [vmem:[#allocation2 + $0x68] sm:$0xff] %vm217_vm0, %v1196_v57  ;;  %v1195_v16 = vadd.f32 %v1084_v54, %v840_v62  ;;  %780 = vst.msk [vmem:[#allocation2 + $0x80] sm:$0xff] %vm217_vm0, %v748_v61  ;;  %v751_v18 = vadd.f32 %v8411_v8, %v397_v53  ;;  %8712 = vmatprep.mubr.msk.f32.mxu0 %vm217_vm0, %v10318_v55  ;;  %v10387_v61 = vld [vmem:[%s9293_s27 + $0x159] sm:$0xff] }
  0xfa   : > { %8762 = vmatprep.mubr.msk.f32.mxu1 %vm217_vm0, %v10318_v55  ;;  %v843_v24 = vld [vmem:[#allocation2 + $0x78] sm:$0xff]  ;;  %v663_v26 = vpop.f32.mrf.mxu0 }
  0xfb   : > { %v1114_v28 = vpop.f32.mrf.mxu1  ;;  %1227 = vst.msk [vmem:[#allocation2 + $0x60] sm:$0xff] %vm217_vm0, %v1195_v16  ;;  %v1198_v13 = vadd.f32 %v8455_v3, %v843_v24  ;;  %783 = vst.msk [vmem:[#allocation2 + $0x98] sm:$0xff] %vm217_vm0, %v751_v18  ;;  %v750_v38 = vadd.f32 %v663_v26, %v396_v14  ;;  %v405_v14 = vld [vmem:[#allocation2 + $0xd8] sm:$0xff]  ;;  %v10390_v16 = vld [vmem:[%s9293_s27 + $0x169] sm:$0xff] }
  0xfc   : > { %v842_v40 = vld [vmem:[#allocation2 + $0x70] sm:$0xff]  ;;  %v8414_v42 = vpop.f32.mrf.mxu0  ;;  %8713 = vmatmul.mubr.msk.f32.gmra.mxu0 %vm217_vm0, %v10333_v20 }
  0xfd   : > { %v8464_v44 = vpop.f32.mrf.mxu1  ;;  %8763 = vmatmul.mubr.msk.f32.gmra.mxu1 %vm217_vm0, %v10333_v20  ;;  %1230 = vst.msk [vmem:[#allocation2 + $0x78] sm:$0xff] %vm217_vm0, %v1198_v13  ;;  %v1197_v46 = vadd.f32 %v1094_v10, %v842_v40  ;;  %782 = vst.msk [vmem:[#allocation2 + $0x90] sm:$0xff] %vm217_vm0, %v750_v38  ;;  %v753_v50 = vadd.f32 %v8414_v42, %v399_v9  ;;  %8715 = vmatprep.mubr.msk.f32.mxu0 %vm217_vm0, %v10336_v36  ;;  %v404_v13 = vld [vmem:[#allocation2 + $0xd0] sm:$0xff] }
  0xfe   : > { %8765 = vmatprep.mubr.msk.f32.mxu1 %vm217_vm0, %v10336_v36  ;;  %v845_v54 = vld [vmem:[#allocation2 + $0x88] sm:$0xff]  ;;  %v673_v56 = vpop.f32.mrf.mxu0  ;;  %v10405_v42 = vld [vmem:[%s9293_s27 + $0x171] sm:$0xff] }
  0xff   : > { %v1124_v58 = vpop.f32.mrf.mxu1  ;;  %1229 = vst.msk [vmem:[#allocation2 + $0x70] sm:$0xff] %vm217_vm0, %v1197_v46  ;;  %v1200_v1 = vadd.f32 %v8458_v35, %v845_v54  ;;  %785 = vst.msk [vmem:[#allocation2 + $0xa8] sm:$0xff] %vm217_vm0, %v753_v50  ;;  %v752_v3 = vadd.f32 %v673_v56, %v398_v15  ;;  %v10372_v35 = vld [vmem:[%s9293_s27 + $0x151] sm:$0xff]  ;;  %v407_v50 = vld [vmem:[#allocation2 + $0xe8] sm:$0xff] }
 0x100   : > { %v844_v4 = vld [vmem:[#allocation2 + $0x80] sm:$0xff]  ;;  %v8417_v21 = vpop.f32.mrf.mxu0  ;;  %8716 = vmatmul.mubr.msk.f32.gmra.mxu0 %vm217_vm0, %v10351_v52 }
 0x101   : > { %v8467_v5 = vpop.f32.mrf.mxu1  ;;  %8766 = vmatmul.mubr.msk.f32.gmra.mxu1 %vm217_vm0, %v10351_v52  ;;  %1232 = vst.msk [vmem:[#allocation2 + $0x88] sm:$0xff] %vm217_vm0, %v1200_v1  ;;  %v1199_v23 = vadd.f32 %v1104_v51, %v844_v4  ;;  %784 = vst.msk [vmem:[#allocation2 + $0xa0] sm:$0xff] %vm217_vm0, %v752_v3  ;;  %v755_v10 = vadd.f32 %v8417_v21, %v401_v19  ;;  %8718 = vmatprep.mubr.msk.f32.mxu0 %vm217_vm0, %v10354_v63  ;;  %v402_v51 = vld [vmem:[#allocation2 + $0xc0] sm:$0xff] }
 0x102   : > { %8768 = vmatprep.mubr.msk.f32.mxu1 %vm217_vm0, %v10354_v63  ;;  %v847_v27 = vld [vmem:[#allocation2 + $0x98] sm:$0xff]  ;;  %v683_v29 = vpop.f32.mrf.mxu0  ;;  %v10408_v54 = vld [vmem:[%s9293_s27 + $0x181] sm:$0xff] }
 0x103   : > { %v1134_v31 = vpop.f32.mrf.mxu1  ;;  %1231 = vst.msk [vmem:[#allocation2 + $0x80] sm:$0xff] %vm217_vm0, %v1199_v23  ;;  %v1202_v37 = vadd.f32 %v8461_v12, %v847_v27  ;;  %787 = vst.msk [vmem:[#allocation2 + $0xb8] sm:$0xff] %vm217_vm0, %v755_v10  ;;  %v754_v39 = vadd.f32 %v683_v29, %v400_v0  ;;  %v406_v4 = vld [vmem:[#allocation2 + $0xe0] sm:$0xff]  ;;  %v10425_v0 = vld [vmem:[%s9293_s27 + $0x189] sm:$0xff] }
 0x104   : > { %v846_v41 = vld [vmem:[#allocation2 + $0x90] sm:$0xff]  ;;  %v8420_v45 = vpop.f32.mrf.mxu0  ;;  %8719 = vmatmul.mubr.msk.f32.gmra.mxu0 %vm217_vm0, %v10369_v60  ;;  %v409_v29 = vld [vmem:[#allocation2 + $0xf8] sm:$0xff] }
 0x105   : > { %v8470_v47 = vpop.f32.mrf.mxu1  ;;  %8769 = vmatmul.mubr.msk.f32.gmra.mxu1 %vm217_vm0, %v10369_v60  ;;  %1234 = vst.msk [vmem:[#allocation2 + $0x98] sm:$0xff] %vm217_vm0, %v1202_v37  ;;  %v1201_v53 = vadd.f32 %v1114_v28, %v846_v41  ;;  %786 = vst.msk [vmem:[#allocation2 + $0xb0] sm:$0xff] %vm217_vm0, %v754_v39  ;;  %v757_v57 = vadd.f32 %v8420_v45, %v403_v33  ;;  %8721 = vmatprep.mubr.msk.f32.mxu0 %vm217_vm0, %v10372_v35  ;;  %v408_v45 = vld [vmem:[#allocation2 + $0xf0] sm:$0xff] }
 0x106   : > { %8771 = vmatprep.mubr.msk.f32.mxu1 %vm217_vm0, %v10372_v35  ;;  %v849_v62 = vld [vmem:[#allocation2 + $0xa8] sm:$0xff]  ;;  %v693_v8 = vpop.f32.mrf.mxu0 }
 0x107   : > { %v1144_v12 = vpop.f32.mrf.mxu1  ;;  %1233 = vst.msk [vmem:[#allocation2 + $0x90] sm:$0xff] %vm217_vm0, %v1201_v53  ;;  %v1204_v18 = vadd.f32 %v8464_v44, %v849_v62  ;;  %789 = vst.msk [vmem:[#allocation2 + $0xc8] sm:$0xff] %vm217_vm0, %v757_v57  ;;  %v756_v24 = vadd.f32 %v693_v8, %v402_v51  ;;  %v9205_v53 = vld [vmem:[%s9293_s27 + $0x19] sm:$0xff] }
 0x108   : > { %v848_v26 = vld [vmem:[#allocation2 + $0xa0] sm:$0xff]  ;;  %v8423_v28 = vpop.f32.mrf.mxu0  ;;  %8722 = vmatmul.mubr.msk.f32.gmra.mxu0 %vm217_vm0, %v10387_v61 }
 0x109   : > { %v8473_v9 = vpop.f32.mrf.mxu1  ;;  %8772 = vmatmul.mubr.msk.f32.gmra.mxu1 %vm217_vm0, %v10387_v61  ;;  %1236 = vst.msk [vmem:[#allocation2 + $0xa8] sm:$0xff] %vm217_vm0, %v1204_v18  ;;  %v1203_v38 = vadd.f32 %v1124_v58, %v848_v26  ;;  %788 = vst.msk [vmem:[#allocation2 + $0xc0] sm:$0xff] %vm217_vm0, %v756_v24  ;;  %v759_v40 = vadd.f32 %v8423_v28, %v405_v14  ;;  %8724 = vmatprep.mubr.msk.f32.mxu0 %vm217_vm0, %v10390_v16  ;;  %v1249_v14 = vld [vmem:[#allocation2 + $0x108] sm:$0xff]  ;;  %v1248_v24 = vld [vmem:[#allocation2 + $0x100] sm:$0xff] }
 0x10a   : > { %8774 = vmatprep.mubr.msk.f32.mxu1 %vm217_vm0, %v10390_v16  ;;  %v851_v44 = vld [vmem:[#allocation2 + $0xb8] sm:$0xff]  ;;  %v703_v15 = vpop.f32.mrf.mxu0 }
 0x10b   : > { %v1154_v46 = vpop.f32.mrf.mxu1  ;;  %1235 = vst.msk [vmem:[#allocation2 + $0xa0] sm:$0xff] %vm217_vm0, %v1203_v38  ;;  %v1206_v56 = vadd.f32 %v8467_v5, %v851_v44  ;;  %791 = vst.msk [vmem:[#allocation2 + $0xd8] sm:$0xff] %vm217_vm0, %v759_v40  ;;  %v758_v58 = vadd.f32 %v703_v15, %v404_v13  ;;  %v9206_v38 = vld [vmem:[%s9293_s27 + $0x21] sm:$0xff]  ;;  %v10454_v40 = vld [vmem:[%s11787_s1 + $0x50] sm:$0xff] }
 0x10c   : > { %v850_v19 = vld [vmem:[#allocation2 + $0xb0] sm:$0xff]  ;;  %v8426_v1 = vpop.f32.mrf.mxu0  ;;  %8725 = vmatmul.mubr.msk.f32.gmra.mxu0 %vm217_vm0, %v10405_v42 }
 0x10d   : > { %v10412_v3 = vpop.f32.mrf.mxu1  ;;  %8775 = vmatmul.mubr.msk.f32.gmra.mxu1 %vm217_vm0, %v10405_v42  ;;  %1238 = vst.msk [vmem:[#allocation2 + $0xb8] sm:$0xff] %vm217_vm0, %v1206_v56  ;;  %v1205_v21 = vadd.f32 %v1134_v31, %v850_v19  ;;  %790 = vst.msk [vmem:[#allocation2 + $0xd0] sm:$0xff] %vm217_vm0, %v758_v58  ;;  %v761_v5 = vadd.f32 %v8426_v1, %v407_v50  ;;  %8727 = vmatprep.mubr.msk.f32.mxu0 %vm217_vm0, %v10408_v54  ;;  %v9207_v50 = vld [vmem:[%s9293_s27 + $0x31] sm:$0xff] }
 0x10e   : > { %8777 = vmatprep.mubr.msk.f32.mxu1 %vm217_vm0, %v10408_v54  ;;  %v853_v23 = vld [vmem:[#allocation2 + $0xc8] sm:$0xff]  ;;  %v713_v10 = vpop.f32.mrf.mxu0  ;;  %v1251_v1 = vld [vmem:[#allocation2 + $0x118] sm:$0xff] }
 0x10f   : > { %v10427_v27 = vpop.f32.mrf.mxu1  ;;  %1237 = vst.msk [vmem:[#allocation2 + $0xb0] sm:$0xff] %vm217_vm0, %v1205_v21  ;;  %v1208_v31 = vadd.f32 %v8470_v47, %v853_v23  ;;  %793 = vst.msk [vmem:[#allocation2 + $0xe8] sm:$0xff] %vm217_vm0, %v761_v5  ;;  %v760_v33 = vadd.f32 %v713_v10, %v406_v4  ;;  %v9208_v23 = vld [vmem:[%s9293_s27 + $0x39] sm:$0xff] }
 0x110   : > { %v852_v37 = vld [vmem:[#allocation2 + $0xc0] sm:$0xff]  ;;  %v8429_v39 = vpop.f32.mrf.mxu0  ;;  %8728 = vmatmul.mubr.msk.f32.gmra.mxu0 %vm217_vm0, %v10425_v0 }
 0x111   : > { %v10431_v41 = vpop.f32.mrf.mxu1  ;;  %8778 = vmatmul.mubr.msk.f32.gmra.mxu1 %vm217_vm0, %v10425_v0  ;;  %1240 = vst.msk [vmem:[#allocation2 + $0xc8] sm:$0xff] %vm217_vm0, %v1208_v31  ;;  %v1207_v51 = vadd.f32 %v1144_v12, %v852_v37  ;;  %792 = vst.msk [vmem:[#allocation2 + $0xe0] sm:$0xff] %vm217_vm0, %v760_v33  ;;  %v763_v47 = vadd.f32 %v8429_v39, %v409_v29  ;;  %8782 = vmatprep.mubr.msk.f32.mxu0 %vm217_vm0, %v9205_v53  ;;  %v9209_v29 = vld [vmem:[%s9293_s27 + $0x49] sm:$0xff] }
 0x112   : > { %8832 = vmatprep.mubr.msk.f32.mxu1 %vm217_vm0, %v9205_v53  ;;  %v855_v57 = vld [vmem:[#allocation2 + $0xd8] sm:$0xff]  ;;  %v723_v62 = vpop.f32.mrf.mxu0  ;;  %v1253_v39 = vld [vmem:[#allocation2 + $0x128] sm:$0xff] }
 0x113   : > { %v10442_v8 = vpop.f32.mrf.mxu1  ;;  %1239 = vst.msk [vmem:[#allocation2 + $0xc0] sm:$0xff] %vm217_vm0, %v1207_v51  ;;  %v1210_v18 = vadd.f32 %v8473_v9, %v855_v57  ;;  %795 = vst.msk [vmem:[#allocation2 + $0xf8] sm:$0xff] %vm217_vm0, %v763_v47  ;;  %v762_v12 = vadd.f32 %v723_v62, %v408_v45  ;;  %v10459_v9 = vld [vmem:[%s11787_s1 + $0x58] sm:$0xff]  ;;  %v1252_v62 = vld [vmem:[#allocation2 + $0x120] sm:$0xff] }
 0x114   : > { %v854_v26 = vld [vmem:[#allocation2 + $0xd0] sm:$0xff]  ;;  %v8484_v28 = vpop.f32.mrf.mxu0  ;;  %8783 = vmatmul.mubr.msk.f32.vlgmr.msra.gmra.mxu0 %vm217_vm0, %v9206_v38 }
 0x115   : > { %v10446_v13 = vpop.f32.mrf.mxu1  ;;  %8833 = vmatmul.mubr.msk.f32.vlgmr.msra.gmra.mxu1 %vm217_vm0, %v9206_v38  ;;  %1242 = vst.msk [vmem:[#allocation2 + $0xd8] sm:$0xff] %vm217_vm0, %v1210_v18  ;;  %v1209_v44 = vadd.f32 %v1154_v46, %v854_v26  ;;  %794 = vst.msk [vmem:[#allocation2 + $0xf0] sm:$0xff] %vm217_vm0, %v762_v12  ;;  %v1508_v15 = vadd.f32 %v8484_v28, %v1249_v14  ;;  %8881 = vmatpush3.msra.mxu0 %v10175_v30  ;;  %v9210_v57 = vld [vmem:[%s9293_s27 + $0x51] sm:$0xff]  ;;  %v9211_v18 = vld [vmem:[%s9293_s27 + $0x61] sm:$0xff] }
 0x116   : > { %8785 = vmatprep.mubr.msk.f32.mxu0 %vm217_vm0, %v9207_v50  ;;  %v857_v56 = vld [vmem:[#allocation2 + $0xe8] sm:$0xff]  ;;  %v1348_v58 = vpop.f32.mrf.mxu0  ;;  %8835 = vmatprep.mubr.msk.f32.mxu1 %vm217_vm0, %v9207_v50  ;;  %v1255_v28 = vld [vmem:[#allocation2 + $0x138] sm:$0xff] }
 0x117   : > { %v1799_v19 = vpop.f32.mrf.mxu1  ;;  %8931 = vmatpush3.msra.mxu1 %v10180_v32  ;;  %1241 = vst.msk [vmem:[#allocation2 + $0xd0] sm:$0xff] %vm217_vm0, %v1209_v44  ;;  %v1212_v46 = vadd.f32 %v10412_v3, %v857_v56  ;;  %1540 = vst.msk [vmem:[#allocation2 + $0x108] sm:$0xff] %vm217_vm0, %v1508_v15  ;;  %v1507_v30 = vadd.f32 %v1348_v58, %v1248_v24  ;;  %8980 = vmatprep.subr.mxu0 %v10454_v40  ;;  %v1250_v32 = vld [vmem:[#allocation2 + $0x110] sm:$0xff] }
 0x118   : > { %9030 = vmatprep.subr.mxu1 %v10459_v9  ;;  %v856_v4 = vld [vmem:[#allocation2 + $0xe0] sm:$0xff]  ;;  %v8487_v21 = vpop.f32.mrf.mxu0  ;;  %8786 = vmatmul.mubr.msk.f32.gmra.mxu0 %vm217_vm0, %v9208_v23  ;;  %v9212_v56 = vld [vmem:[%s9293_s27 + $0x69] sm:$0xff] }
 0x119   : > { %v8537_v5 = vpop.f32.mrf.mxu1  ;;  %8836 = vmatmul.mubr.msk.f32.gmra.mxu1 %vm217_vm0, %v9208_v23  ;;  %1244 = vst.msk [vmem:[#allocation2 + $0xe8] sm:$0xff] %vm217_vm0, %v1212_v46  ;;  %v1211_v3 = vadd.f32 %v10427_v27, %v856_v4  ;;  %1539 = vst.msk [vmem:[#allocation2 + $0x100] sm:$0xff] %vm217_vm0, %v1507_v30  ;;  %v1510_v10 = vadd.f32 %v8487_v21, %v1251_v1  ;;  %8788 = vmatprep.mubr.msk.f32.mxu0 %vm217_vm0, %v9209_v29  ;;  %v1254_v58 = vld [vmem:[#allocation2 + $0x130] sm:$0xff]  ;;  %v1257_v21 = vld [vmem:[#allocation2 + $0x148] sm:$0xff] }
 0x11a   : > { %8838 = vmatprep.mubr.msk.f32.mxu1 %vm217_vm0, %v9209_v29  ;;  %v859_v31 = vld [vmem:[#allocation2 + $0xf8] sm:$0xff]  ;;  %v1358_v33 = vpop.f32.mrf.mxu0 }
 0x11b   : > { %v1809_v37 = vpop.f32.mrf.mxu1  ;;  %1243 = vst.msk [vmem:[#allocation2 + $0xe0] sm:$0xff] %vm217_vm0, %v1211_v3  ;;  %v1214_v45 = vadd.f32 %v10431_v41, %v859_v31  ;;  %1542 = vst.msk [vmem:[#allocation2 + $0x118] sm:$0xff] %vm217_vm0, %v1510_v10  ;;  %v1509_v27 = vadd.f32 %v1358_v33, %v1250_v32 }
 0x11c   : > { %v858_v51 = vld [vmem:[#allocation2 + $0xf0] sm:$0xff]  ;;  %v8490_v47 = vpop.f32.mrf.mxu0  ;;  %8789 = vmatmul.mubr.msk.f32.gmra.mxu0 %vm217_vm0, %v9210_v57 }
 0x11d   : > { %v8540_v53 = vpop.f32.mrf.mxu1  ;;  %8839 = vmatmul.mubr.msk.f32.gmra.mxu1 %vm217_vm0, %v9210_v57  ;;  %1246 = vst.msk [vmem:[#allocation2 + $0xf8] sm:$0xff] %vm217_vm0, %v1214_v45  ;;  %v1213_v14 = vadd.f32 %v10442_v8, %v858_v51  ;;  %1541 = vst.msk [vmem:[#allocation2 + $0x110] sm:$0xff] %vm217_vm0, %v1509_v27  ;;  %v1512_v41 = vadd.f32 %v8490_v47, %v1253_v39  ;;  %8791 = vmatprep.mubr.msk.f32.mxu0 %vm217_vm0, %v9211_v18  ;;  %v1259_v45 = vld [vmem:[#allocation2 + $0x158] sm:$0xff] }
 0x11e   : > { %8841 = vmatprep.mubr.msk.f32.mxu1 %vm217_vm0, %v9211_v18  ;;  %v1604_v12 = vld [vmem:[#allocation2 + $0x108] sm:$0xff]  ;;  %v1368_v24 = vpop.f32.mrf.mxu0 }
 0x11f   : > { %v1819_v26 = vpop.f32.mrf.mxu1  ;;  %1245 = vst.msk [vmem:[#allocation2 + $0xf0] sm:$0xff] %vm217_vm0, %v1213_v14  ;;  %v1959_v38 = vadd.f32 %v10446_v13, %v1604_v12  ;;  %1544 = vst.msk [vmem:[#allocation2 + $0x128] sm:$0xff] %vm217_vm0, %v1512_v41  ;;  %v1511_v8 = vadd.f32 %v1368_v24, %v1252_v62  ;;  %v1261_v18 = vld [vmem:[#allocation2 + $0x168] sm:$0xff] }
 0x120   : > { %v1603_v44 = vld [vmem:[#allocation2 + $0x100] sm:$0xff]  ;;  %v8493_v15 = vpop.f32.mrf.mxu0  ;;  %8792 = vmatmul.mubr.msk.f32.gmra.mxu0 %vm217_vm0, %v9212_v56 }
 0x121   : > { %v8543_v50 = vpop.f32.mrf.mxu1  ;;  %8842 = vmatmul.mubr.msk.f32.gmra.mxu1 %vm217_vm0, %v9212_v56  ;;  %1991 = vst.msk [vmem:[#allocation2 + $0x108] sm:$0xff] %vm217_vm0, %v1959_v38  ;;  %v1958_v1 = vadd.f32 %v1799_v19, %v1603_v44  ;;  %1543 = vst.msk [vmem:[#allocation2 + $0x120] sm:$0xff] %vm217_vm0, %v1511_v8  ;;  %v1514_v46 = vadd.f32 %v8493_v15, %v1255_v28  ;;  %8794 = vmatprep.mubr.msk.f32.mxu0 %vm217_vm0, %v10211_v6  ;;  %v1263_v56 = vld [vmem:[#allocation2 + $0x178] sm:$0xff] }
 0x122   : > { %8844 = vmatprep.mubr.msk.f32.mxu1 %vm217_vm0, %v10211_v6  ;;  %v1606_v13 = vld [vmem:[#allocation2 + $0x118] sm:$0xff]  ;;  %v1378_v30 = vpop.f32.mrf.mxu0  ;;  %v1256_v6 = vld [vmem:[#allocation2 + $0x140] sm:$0xff] }
 0x123   : > { %v1829_v4 = vpop.f32.mrf.mxu1  ;;  %1990 = vst.msk [vmem:[#allocation2 + $0x100] sm:$0xff] %vm217_vm0, %v1958_v1  ;;  %v1961_v23 = vadd.f32 %v8537_v5, %v1606_v13  ;;  %1546 = vst.msk [vmem:[#allocation2 + $0x138] sm:$0xff] %vm217_vm0, %v1514_v46  ;;  %v1513_v32 = vadd.f32 %v1378_v30, %v1254_v58 }
 0x124   : > { %v1605_v19 = vld [vmem:[#allocation2 + $0x110] sm:$0xff]  ;;  %v8496_v3 = vpop.f32.mrf.mxu0  ;;  %8795 = vmatmul.mubr.msk.f32.gmra.mxu0 %vm217_vm0, %v10225_v11 }
 0x125   : > { %v8546_v10 = vpop.f32.mrf.mxu1  ;;  %8845 = vmatmul.mubr.msk.f32.gmra.mxu1 %vm217_vm0, %v10225_v11  ;;  %1993 = vst.msk [vmem:[#allocation2 + $0x118] sm:$0xff] %vm217_vm0, %v1961_v23  ;;  %v1960_v29 = vadd.f32 %v1809_v37, %v1605_v19  ;;  %1545 = vst.msk [vmem:[#allocation2 + $0x130] sm:$0xff] %vm217_vm0, %v1513_v32  ;;  %v1516_v31 = vadd.f32 %v8496_v3, %v1257_v21  ;;  %8797 = vmatprep.mubr.msk.f32.mxu0 %vm217_vm0, %v10228_v25  ;;  %v1265_v19 = vld [vmem:[#allocation2 + $0x188] sm:$0xff] }
 0x126   : > { %8847 = vmatprep.mubr.msk.f32.mxu1 %vm217_vm0, %v10228_v25  ;;  %v1608_v5 = vld [vmem:[#allocation2 + $0x128] sm:$0xff]  ;;  %v1388_v33 = vpop.f32.mrf.mxu0  ;;  %v1258_v25 = vld [vmem:[#allocation2 + $0x150] sm:$0xff] }
 0x127   : > { %v1839_v39 = vpop.f32.mrf.mxu1  ;;  %1992 = vst.msk [vmem:[#allocation2 + $0x110] sm:$0xff] %vm217_vm0, %v1960_v29  ;;  %v1963_v11 = vadd.f32 %v8540_v53, %v1608_v5  ;;  %1548 = vst.msk [vmem:[#allocation2 + $0x148] sm:$0xff] %vm217_vm0, %v1516_v31  ;;  %v1515_v27 = vadd.f32 %v1388_v33, %v1256_v6 }
 0x128   : > { %v1607_v37 = vld [vmem:[#allocation2 + $0x120] sm:$0xff]  ;;  %v8499_v51 = vpop.f32.mrf.mxu0  ;;  %8798 = vmatmul.mubr.msk.f32.gmra.mxu0 %vm217_vm0, %v10243_v49 }
 0x129   : > { %v8549_v47 = vpop.f32.mrf.mxu1  ;;  %8848 = vmatmul.mubr.msk.f32.gmra.mxu1 %vm217_vm0, %v10243_v49  ;;  %1995 = vst.msk [vmem:[#allocation2 + $0x128] sm:$0xff] %vm217_vm0, %v1963_v11  ;;  %v1962_v57 = vadd.f32 %v1819_v26, %v1607_v37  ;;  %1547 = vst.msk [vmem:[#allocation2 + $0x140] sm:$0xff] %vm217_vm0, %v1515_v27  ;;  %v1518_v62 = vadd.f32 %v8499_v51, %v1259_v45  ;;  %8800 = vmatprep.mubr.msk.f32.mxu0 %vm217_vm0, %v10246_v59  ;;  %v1267_v11 = vld [vmem:[#allocation2 + $0x198] sm:$0xff] }
 0x12a   : > { %8850 = vmatprep.mubr.msk.f32.mxu1 %vm217_vm0, %v10246_v59  ;;  %v1610_v53 = vld [vmem:[#allocation2 + $0x138] sm:$0xff]  ;;  %v1398_v14 = vpop.f32.mrf.mxu0  ;;  %v1260_v59 = vld [vmem:[#allocation2 + $0x160] sm:$0xff] }
 0x12b   : > { %v1849_v41 = vpop.f32.mrf.mxu1  ;;  %1994 = vst.msk [vmem:[#allocation2 + $0x120] sm:$0xff] %vm217_vm0, %v1962_v57  ;;  %v1965_v49 = vadd.f32 %v8543_v50, %v1610_v53  ;;  %1550 = vst.msk [vmem:[#allocation2 + $0x158] sm:$0xff] %vm217_vm0, %v1518_v62  ;;  %v1517_v12 = vadd.f32 %v1398_v14, %v1258_v25 }
 0x12c   : > { %v1609_v24 = vld [vmem:[#allocation2 + $0x130] sm:$0xff]  ;;  %v8502_v26 = vpop.f32.mrf.mxu0  ;;  %8801 = vmatmul.mubr.msk.f32.gmra.mxu0 %vm217_vm0, %v10261_v22 }
 0x12d   : > { %v8552_v28 = vpop.f32.mrf.mxu1  ;;  %8851 = vmatmul.mubr.msk.f32.gmra.mxu1 %vm217_vm0, %v10261_v22  ;;  %1997 = vst.msk [vmem:[#allocation2 + $0x138] sm:$0xff] %vm217_vm0, %v1965_v49  ;;  %v1964_v38 = vadd.f32 %v1829_v4, %v1609_v24  ;;  %1549 = vst.msk [vmem:[#allocation2 + $0x150] sm:$0xff] %vm217_vm0, %v1517_v12  ;;  %v1520_v8 = vadd.f32 %v8502_v26, %v1261_v18  ;;  %8803 = vmatprep.mubr.msk.f32.mxu0 %vm217_vm0, %v10264_v34 }
 0x12e   : > { %8853 = vmatprep.mubr.msk.f32.mxu1 %vm217_vm0, %v10264_v34  ;;  %v1612_v44 = vld [vmem:[#allocation2 + $0x148] sm:$0xff]  ;;  %v1408_v15 = vpop.f32.mrf.mxu0  ;;  %v1262_v34 = vld [vmem:[#allocation2 + $0x170] sm:$0xff] }
 0x12f   : > { %v1859_v50 = vpop.f32.mrf.mxu1  ;;  %1996 = vst.msk [vmem:[#allocation2 + $0x130] sm:$0xff] %vm217_vm0, %v1964_v38  ;;  %v1967_v22 = vadd.f32 %v8546_v10, %v1612_v44  ;;  %1552 = vst.msk [vmem:[#allocation2 + $0x168] sm:$0xff] %vm217_vm0, %v1520_v8  ;;  %v1519_v58 = vadd.f32 %v1408_v15, %v1260_v59  ;;  %v1271_v44 = vld [vmem:[#allocation2 + $0x1b8] sm:$0xff] }
 0x130   : > { %v1611_v1 = vld [vmem:[#allocation2 + $0x140] sm:$0xff]  ;;  %v8505_v46 = vpop.f32.mrf.mxu0  ;;  %8804 = vmatmul.mubr.msk.f32.gmra.mxu0 %vm217_vm0, %v10279_v48 }
 0x131   : > { %v8555_v13 = vpop.f32.mrf.mxu1  ;;  %8854 = vmatmul.mubr.msk.f32.gmra.mxu1 %vm217_vm0, %v10279_v48  ;;  %1999 = vst.msk [vmem:[#allocation2 + $0x148] sm:$0xff] %vm217_vm0, %v1967_v22  ;;  %v1966_v30 = vadd.f32 %v1839_v39, %v1611_v1  ;;  %1551 = vst.msk [vmem:[#allocation2 + $0x160] sm:$0xff] %vm217_vm0, %v1519_v58  ;;  %v1522_v4 = vadd.f32 %v8505_v46, %v1263_v56  ;;  %8806 = vmatprep.mubr.msk.f32.mxu0 %vm217_vm0, %v10282_v17 }
 0x132   : > { %8856 = vmatprep.mubr.msk.f32.mxu1 %vm217_vm0, %v10282_v17  ;;  %v1614_v21 = vld [vmem:[#allocation2 + $0x158] sm:$0xff]  ;;  %v1418_v23 = vpop.f32.mrf.mxu0  ;;  %v1264_v17 = vld [vmem:[#allocation2 + $0x180] sm:$0xff] }
 0x133   : > { %v1869_v32 = vpop.f32.mrf.mxu1  ;;  %1998 = vst.msk [vmem:[#allocation2 + $0x140] sm:$0xff] %vm217_vm0, %v1966_v30  ;;  %v1969_v48 = vadd.f32 %v8549_v47, %v1614_v21  ;;  %1554 = vst.msk [vmem:[#allocation2 + $0x178] sm:$0xff] %vm217_vm0, %v1522_v4  ;;  %v1521_v3 = vadd.f32 %v1418_v23, %v1262_v34  ;;  %v1273_v30 = vld [vmem:[#allocation2 + $0x1c8] sm:$0xff] }
 0x134   : > { %v1613_v10 = vld [vmem:[#allocation2 + $0x150] sm:$0xff]  ;;  %v8508_v6 = vpop.f32.mrf.mxu0  ;;  %8807 = vmatmul.mubr.msk.f32.gmra.mxu0 %vm217_vm0, %v10297_v7 }
 0x135   : > { %v8558_v29 = vpop.f32.mrf.mxu1  ;;  %8857 = vmatmul.mubr.msk.f32.gmra.mxu1 %vm217_vm0, %v10297_v7  ;;  %2001 = vst.msk [vmem:[#allocation2 + $0x158] sm:$0xff] %vm217_vm0, %v1969_v48  ;;  %v1968_v31 = vadd.f32 %v1849_v41, %v1613_v10  ;;  %1553 = vst.msk [vmem:[#allocation2 + $0x170] sm:$0xff] %vm217_vm0, %v1521_v3  ;;  %v1524_v5 = vadd.f32 %v8508_v6, %v1265_v19  ;;  %8809 = vmatprep.mubr.msk.f32.mxu0 %vm217_vm0, %v10300_v2  ;;  %v1269_v41 = vld [vmem:[#allocation2 + $0x1a8] sm:$0xff] }
 0x136   : > { %8859 = vmatprep.mubr.msk.f32.mxu1 %vm217_vm0, %v10300_v2  ;;  %v1616_v33 = vld [vmem:[#allocation2 + $0x168] sm:$0xff]  ;;  %v1428_v39 = vpop.f32.mrf.mxu0  ;;  %v1266_v2 = vld [vmem:[#allocation2 + $0x190] sm:$0xff] }
 0x137   : > { %v1879_v45 = vpop.f32.mrf.mxu1  ;;  %2000 = vst.msk [vmem:[#allocation2 + $0x150] sm:$0xff] %vm217_vm0, %v1968_v31  ;;  %v1971_v7 = vadd.f32 %v8552_v28, %v1616_v33  ;;  %1556 = vst.msk [vmem:[#allocation2 + $0x188] sm:$0xff] %vm217_vm0, %v1524_v5  ;;  %v1523_v27 = vadd.f32 %v1428_v39, %v1264_v17 }
 0x138   : > { %v1615_v37 = vld [vmem:[#allocation2 + $0x160] sm:$0xff]  ;;  %v8511_v51 = vpop.f32.mrf.mxu0  ;;  %8810 = vmatmul.mubr.msk.f32.gmra.mxu0 %vm217_vm0, %v10315_v43 }
 0x139   : > { %v8561_v47 = vpop.f32.mrf.mxu1  ;;  %8860 = vmatmul.mubr.msk.f32.gmra.mxu1 %vm217_vm0, %v10315_v43  ;;  %2003 = vst.msk [vmem:[#allocation2 + $0x168] sm:$0xff] %vm217_vm0, %v1971_v7  ;;  %v1970_v25 = vadd.f32 %v1859_v50, %v1615_v37  ;;  %1555 = vst.msk [vmem:[#allocation2 + $0x180] sm:$0xff] %vm217_vm0, %v1523_v27  ;;  %v1526_v57 = vadd.f32 %v8511_v51, %v1267_v11  ;;  %8812 = vmatprep.mubr.msk.f32.mxu0 %vm217_vm0, %v10318_v55  ;;  %v1277_v37 = vld [vmem:[#allocation2 + $0x1e8] sm:$0xff] }
 0x13a   : > { %8862 = vmatprep.mubr.msk.f32.mxu1 %vm217_vm0, %v10318_v55  ;;  %v1618_v62 = vld [vmem:[#allocation2 + $0x178] sm:$0xff]  ;;  %v1438_v53 = vpop.f32.mrf.mxu0  ;;  %v1268_v55 = vld [vmem:[#allocation2 + $0x1a0] sm:$0xff] }
 0x13b   : > { %v1889_v14 = vpop.f32.mrf.mxu1  ;;  %2002 = vst.msk [vmem:[#allocation2 + $0x160] sm:$0xff] %vm217_vm0, %v1970_v25  ;;  %v1973_v43 = vadd.f32 %v8555_v13, %v1618_v62  ;;  %1558 = vst.msk [vmem:[#allocation2 + $0x198] sm:$0xff] %vm217_vm0, %v1526_v57  ;;  %v1525_v18 = vadd.f32 %v1438_v53, %v1266_v2 }
 0x13c   : > { %v1617_v49 = vld [vmem:[#allocation2 + $0x170] sm:$0xff]  ;;  %v8514_v12 = vpop.f32.mrf.mxu0  ;;  %8813 = vmatmul.mubr.msk.f32.gmra.mxu0 %vm217_vm0, %v10333_v20 }
 0x13d   : > { %v8564_v24 = vpop.f32.mrf.mxu1  ;;  %8863 = vmatmul.mubr.msk.f32.gmra.mxu1 %vm217_vm0, %v10333_v20  ;;  %2005 = vst.msk [vmem:[#allocation2 + $0x178] sm:$0xff] %vm217_vm0, %v1973_v43  ;;  %v1972_v26 = vadd.f32 %v1869_v32, %v1617_v49  ;;  %1557 = vst.msk [vmem:[#allocation2 + $0x190] sm:$0xff] %vm217_vm0, %v1525_v18  ;;  %v1528_v28 = vadd.f32 %v8514_v12, %v1269_v41  ;;  %8815 = vmatprep.mubr.msk.f32.mxu0 %vm217_vm0, %v10336_v36  ;;  %v1279_v43 = vld [vmem:[#allocation2 + $0x1f8] sm:$0xff] }
 0x13e   : > { %8865 = vmatprep.mubr.msk.f32.mxu1 %vm217_vm0, %v10336_v36  ;;  %v1620_v59 = vld [vmem:[#allocation2 + $0x188] sm:$0xff]  ;;  %v1448_v38 = vpop.f32.mrf.mxu0  ;;  %v1270_v36 = vld [vmem:[#allocation2 + $0x1b0] sm:$0xff]  ;;  %v7427_v18 = vld [vmem:[%s9293_s27 + $0x1a] sm:$0xff] }
 0x13f   : > { %v1899_v8 = vpop.f32.mrf.mxu1  ;;  %2004 = vst.msk [vmem:[#allocation2 + $0x170] sm:$0xff] %vm217_vm0, %v1972_v26  ;;  %v1975_v20 = vadd.f32 %v8558_v29, %v1620_v59  ;;  %1560 = vst.msk [vmem:[#allocation2 + $0x1a8] sm:$0xff] %vm217_vm0, %v1528_v28  ;;  %v1527_v15 = vadd.f32 %v1448_v38, %v1268_v55  ;;  %v1275_v29 = vld [vmem:[#allocation2 + $0x1d8] sm:$0xff]  ;;  %v7428_v59 = vld [vmem:[%s9293_s27 + $0x22] sm:$0xff] }
 0x140   : > { %v1619_v50 = vld [vmem:[#allocation2 + $0x180] sm:$0xff]  ;;  %v8517_v56 = vpop.f32.mrf.mxu0  ;;  %8816 = vmatmul.mubr.msk.f32.gmra.mxu0 %vm217_vm0, %v10351_v52 }
 0x141   : > { %v8567_v22 = vpop.f32.mrf.mxu1  ;;  %8866 = vmatmul.mubr.msk.f32.gmra.mxu1 %vm217_vm0, %v10351_v52  ;;  %2007 = vst.msk [vmem:[#allocation2 + $0x188] sm:$0xff] %vm217_vm0, %v1975_v20  ;;  %v1974_v58 = vadd.f32 %v1879_v45, %v1619_v50  ;;  %1559 = vst.msk [vmem:[#allocation2 + $0x1a0] sm:$0xff] %vm217_vm0, %v1527_v15  ;;  %v1530_v1 = vadd.f32 %v8517_v56, %v1271_v44  ;;  %8818 = vmatprep.mubr.msk.f32.mxu0 %vm217_vm0, %v10354_v63  ;;  %v2476_v20 = vld [vmem:[#allocation2 + $0x208] sm:$0xff]  ;;  %v7429_v15 = vld [vmem:[%s9293_s27 + $0x32] sm:$0xff] }
 0x142   : > { %8868 = vmatprep.mubr.msk.f32.mxu1 %vm217_vm0, %v10354_v63  ;;  %v1622_v46 = vld [vmem:[#allocation2 + $0x198] sm:$0xff]  ;;  %v1458_v13 = vpop.f32.mrf.mxu0  ;;  %v1272_v63 = vld [vmem:[#allocation2 + $0x1c0] sm:$0xff]  ;;  %v2056_v56 = vld [vmem:[#allocation2 + $0x8] sm:$0xff] }
 0x143   : > { %v1909_v34 = vpop.f32.mrf.mxu1  ;;  %2006 = vst.msk [vmem:[#allocation2 + $0x180] sm:$0xff] %vm217_vm0, %v1974_v58  ;;  %v1977_v52 = vadd.f32 %v8561_v47, %v1622_v46  ;;  %1562 = vst.msk [vmem:[#allocation2 + $0x1b8] sm:$0xff] %vm217_vm0, %v1530_v1  ;;  %v1529_v4 = vadd.f32 %v1458_v13, %v1270_v36  ;;  %v10666_v46 = vld [vmem:[%s11787_s1 + $0x70] sm:$0xff]  ;;  %v10671_v13 = vld [vmem:[%s11787_s1 + $0x78] sm:$0xff] }
 0x144   : > { %v1621_v21 = vld [vmem:[#allocation2 + $0x190] sm:$0xff]  ;;  %v8520_v23 = vpop.f32.mrf.mxu0  ;;  %8819 = vmatmul.mubr.msk.f32.gmra.mxu0 %vm217_vm0, %v10369_v60 }
 0x145   : > { %v8570_v32 = vpop.f32.mrf.mxu1  ;;  %8869 = vmatmul.mubr.msk.f32.gmra.mxu1 %vm217_vm0, %v10369_v60  ;;  %2009 = vst.msk [vmem:[#allocation2 + $0x198] sm:$0xff] %vm217_vm0, %v1977_v52  ;;  %v1976_v19 = vadd.f32 %v1889_v14, %v1621_v21  ;;  %1561 = vst.msk [vmem:[#allocation2 + $0x1b0] sm:$0xff] %vm217_vm0, %v1529_v4  ;;  %v1532_v48 = vadd.f32 %v8520_v23, %v1273_v30  ;;  %8821 = vmatprep.mubr.msk.f32.mxu0 %vm217_vm0, %v10372_v35  ;;  %v7430_v4 = vld [vmem:[%s9293_s27 + $0x3a] sm:$0xff]  ;;  %v7431_v21 = vld [vmem:[%s9293_s27 + $0x4a] sm:$0xff] }
 0x146   : > { %8871 = vmatprep.mubr.msk.f32.mxu1 %vm217_vm0, %v10372_v35  ;;  %v1624_v3 = vld [vmem:[#allocation2 + $0x1a8] sm:$0xff]  ;;  %v1468_v10 = vpop.f32.mrf.mxu0  ;;  %v1274_v35 = vld [vmem:[#allocation2 + $0x1d0] sm:$0xff] }
 0x147   : > { %v1919_v6 = vpop.f32.mrf.mxu1  ;;  %2008 = vst.msk [vmem:[#allocation2 + $0x190] sm:$0xff] %vm217_vm0, %v1976_v19  ;;  %v1979_v60 = vadd.f32 %v8564_v24, %v1624_v3  ;;  %1564 = vst.msk [vmem:[#allocation2 + $0x1c8] sm:$0xff] %vm217_vm0, %v1532_v48  ;;  %v1531_v17 = vadd.f32 %v1468_v10, %v1272_v63  ;;  %v2478_v48 = vld [vmem:[#allocation2 + $0x218] sm:$0xff] }
 0x148   : > { %v1623_v31 = vld [vmem:[#allocation2 + $0x1a0] sm:$0xff]  ;;  %v8523_v5 = vpop.f32.mrf.mxu0  ;;  %8822 = vmatmul.mubr.msk.f32.gmra.mxu0 %vm217_vm0, %v10387_v61 }
 0x149   : > { %v8573_v33 = vpop.f32.mrf.mxu1  ;;  %8872 = vmatmul.mubr.msk.f32.gmra.mxu1 %vm217_vm0, %v10387_v61  ;;  %2011 = vst.msk [vmem:[#allocation2 + $0x1a8] sm:$0xff] %vm217_vm0, %v1979_v60  ;;  %v1978_v39 = vadd.f32 %v1899_v8, %v1623_v31  ;;  %1563 = vst.msk [vmem:[#allocation2 + $0x1c0] sm:$0xff] %vm217_vm0, %v1531_v17  ;;  %v1534_v45 = vadd.f32 %v8523_v5, %v1275_v29  ;;  %8824 = vmatprep.mubr.msk.f32.mxu0 %vm217_vm0, %v10390_v16  ;;  %v2058_v29 = vld [vmem:[#allocation2 + $0x18] sm:$0xff] }
 0x14a   : > { %8874 = vmatprep.mubr.msk.f32.mxu1 %vm217_vm0, %v10390_v16  ;;  %v1626_v11 = vld [vmem:[#allocation2 + $0x1b8] sm:$0xff]  ;;  %v1478_v7 = vpop.f32.mrf.mxu0  ;;  %v1276_v16 = vld [vmem:[#allocation2 + $0x1e0] sm:$0xff] }
 0x14b   : > { %v1929_v27 = vpop.f32.mrf.mxu1  ;;  %2010 = vst.msk [vmem:[#allocation2 + $0x1a0] sm:$0xff] %vm217_vm0, %v1978_v39  ;;  %v1981_v61 = vadd.f32 %v8567_v22, %v1626_v11  ;;  %1566 = vst.msk [vmem:[#allocation2 + $0x1d8] sm:$0xff] %vm217_vm0, %v1534_v45  ;;  %v1533_v51 = vadd.f32 %v1478_v7, %v1274_v35  ;;  %v2475_v22 = vld [vmem:[#allocation2 + $0x200] sm:$0xff]  ;;  %v2480_v35 = vld [vmem:[#allocation2 + $0x228] sm:$0xff] }
 0x14c   : > { %v1625_v47 = vld [vmem:[#allocation2 + $0x1b0] sm:$0xff]  ;;  %v8526_v2 = vpop.f32.mrf.mxu0  ;;  %8825 = vmatmul.mubr.msk.f32.gmra.mxu0 %vm217_vm0, %v10405_v42 }
 0x14d   : > { %v10628_v25 = vpop.f32.mrf.mxu1  ;;  %8875 = vmatmul.mubr.msk.f32.gmra.mxu1 %vm217_vm0, %v10405_v42  ;;  %2013 = vst.msk [vmem:[#allocation2 + $0x1b8] sm:$0xff] %vm217_vm0, %v1981_v61  ;;  %v1980_v57 = vadd.f32 %v1909_v34, %v1625_v47  ;;  %1565 = vst.msk [vmem:[#allocation2 + $0x1d0] sm:$0xff] %vm217_vm0, %v1533_v51  ;;  %v1536_v62 = vadd.f32 %v8526_v2, %v1277_v37  ;;  %8827 = vmatprep.mubr.msk.f32.mxu0 %vm217_vm0, %v10408_v54  ;;  %v7432_v39 = vld [vmem:[%s9293_s27 + $0x52] sm:$0xff]  ;;  %v7433_v37 = vld [vmem:[%s9293_s27 + $0x62] sm:$0xff] }
 0x14e   : > { %8877 = vmatprep.mubr.msk.f32.mxu1 %vm217_vm0, %v10408_v54  ;;  %v1628_v53 = vld [vmem:[#allocation2 + $0x1c8] sm:$0xff]  ;;  %v1488_v14 = vpop.f32.mrf.mxu0  ;;  %v1278_v54 = vld [vmem:[#allocation2 + $0x1f0] sm:$0xff] }
 0x14f   : > { %v10640_v41 = vpop.f32.mrf.mxu1  ;;  %2012 = vst.msk [vmem:[#allocation2 + $0x1b0] sm:$0xff] %vm217_vm0, %v1980_v57  ;;  %v1983_v42 = vadd.f32 %v8570_v32, %v1628_v53  ;;  %1568 = vst.msk [vmem:[#allocation2 + $0x1e8] sm:$0xff] %vm217_vm0, %v1536_v62  ;;  %v1535_v49 = vadd.f32 %v1488_v14, %v1276_v16  ;;  %v2055_v32 = vld [vmem:[#allocation2] sm:$0xff]  ;;  %v2057_v11 = vld [vmem:[#allocation2 + $0x10] sm:$0xff] }
 0x150   : > { %v1627_v12 = vld [vmem:[#allocation2 + $0x1c0] sm:$0xff]  ;;  %v8529_v24 = vpop.f32.mrf.mxu0  ;;  %8828 = vmatmul.mubr.msk.f32.gmra.mxu0 %vm217_vm0, %v10425_v0 }
 0x151   : > { %v10645_v55 = vpop.f32.mrf.mxu1  ;;  %8878 = vmatmul.mubr.msk.f32.gmra.mxu1 %vm217_vm0, %v10425_v0  ;;  %2015 = vst.msk [vmem:[#allocation2 + $0x1c8] sm:$0xff] %vm217_vm0, %v1983_v42  ;;  %v1982_v26 = vadd.f32 %v1919_v6, %v1627_v12  ;;  %1567 = vst.msk [vmem:[#allocation2 + $0x1e0] sm:$0xff] %vm217_vm0, %v1535_v49  ;;  %v1538_v28 = vadd.f32 %v8529_v24, %v1279_v43  ;;  %8882 = vmatprep.mubr.msk.f32.mxu0 %vm217_vm0, %v7427_v18  ;;  %v2479_v62 = vld [vmem:[#allocation2 + $0x220] sm:$0xff]  ;;  %v7434_v43 = vld [vmem:[%s9293_s27 + $0x6a] sm:$0xff] }
 0x152   : > { %8932 = vmatprep.mubr.msk.f32.mxu1 %vm217_vm0, %v7427_v18  ;;  %v1630_v38 = vld [vmem:[#allocation2 + $0x1d8] sm:$0xff]  ;;  %v1498_v8 = vpop.f32.mrf.mxu0  ;;  %v2059_v18 = vld [vmem:[#allocation2 + $0x20] sm:$0xff] }
 0x153   : > { %v10656_v44 = vpop.f32.mrf.mxu1  ;;  %2014 = vst.msk [vmem:[#allocation2 + $0x1c0] sm:$0xff] %vm217_vm0, %v1982_v26  ;;  %v1985_v0 = vadd.f32 %v8573_v33, %v1630_v38  ;;  %1570 = vst.msk [vmem:[#allocation2 + $0x1f8] sm:$0xff] %vm217_vm0, %v1538_v28  ;;  %v1537_v50 = vadd.f32 %v1498_v8, %v1278_v54  ;;  %v2482_v12 = vld [vmem:[#allocation2 + $0x238] sm:$0xff]  ;;  %v2481_v38 = vld [vmem:[#allocation2 + $0x230] sm:$0xff] }
 0x154   : > { %v1629_v36 = vld [vmem:[#allocation2 + $0x1d0] sm:$0xff]  ;;  %v8584_v58 = vpop.f32.mrf.mxu0  ;;  %8883 = vmatmul.mubr.msk.f32.vlgmr.msra.gmra.mxu0 %vm217_vm0, %v7428_v59  ;;  %v7435_v24 = vld [vmem:[%s9293_s27 + $0x7a] sm:$0xff] }
 0x155   : > { %v8634_v1 = vpop.f32.mrf.mxu1  ;;  %8933 = vmatmul.mubr.msk.f32.vlgmr.msra.gmra.mxu1 %vm217_vm0, %v7428_v59  ;;  %2017 = vst.msk [vmem:[#allocation2 + $0x1d8] sm:$0xff] %vm217_vm0, %v1985_v0  ;;  %v1984_v34 = vadd.f32 %v1929_v27, %v1629_v36  ;;  %1569 = vst.msk [vmem:[#allocation2 + $0x1f0] sm:$0xff] %vm217_vm0, %v1537_v50  ;;  %v2411_v30 = vadd.f32 %v8584_v58, %v2056_v56  ;;  %8981 = vmatpush3.msra.mxu0 %v10454_v40  ;;  %v2062_v26 = vld [vmem:[#allocation2 + $0x38] sm:$0xff]  ;;  %v2484_v56 = vld [vmem:[#allocation2 + $0x248] sm:$0xff] }
 0x156   : > { %v2735_v52 = vadd.f32 %v8634_v1, %v2476_v20  ;;  %8885 = vmatprep.mubr.msk.f32.mxu0 %vm217_vm0, %v7429_v15  ;;  %v1632_v23 = vld [vmem:[#allocation2 + $0x1e8] sm:$0xff]  ;;  %v2251_v63 = vpop.f32.mrf.mxu0  ;;  %8935 = vmatprep.mubr.msk.f32.mxu1 %vm217_vm0, %v7429_v15  ;;  %v2061_v15 = vld [vmem:[#allocation2 + $0x30] sm:$0xff] }
 0x157   : > { %v2575_v19 = vpop.f32.mrf.mxu1  ;;  %9031 = vmatpush3.msra.mxu1 %v10459_v9  ;;  %2016 = vst.msk [vmem:[#allocation2 + $0x1d0] sm:$0xff] %vm217_vm0, %v1984_v34  ;;  %v1987_v3 = vadd.f32 %v10628_v25, %v1632_v23  ;;  %2443 = vst.msk [vmem:[#allocation2 + $0x8] sm:$0xff] %vm217_vm0, %v2411_v30  ;;  %v2410_v40 = vadd.f32 %v2251_v63, %v2055_v32  ;;  %9080 = vmatprep.subr.mxu0 %v10666_v46  ;;  %v2477_v9 = vld [vmem:[#allocation2 + $0x210] sm:$0xff]  ;;  %v2060_v25 = vld [vmem:[#allocation2 + $0x28] sm:$0xff] }
 0x158   : > { %2767 = vst.msk [vmem:[#allocation2 + $0x208] sm:$0xff] %vm217_vm0, %v2735_v52  ;;  %v2734_v10 = vadd.f32 %v2575_v19, %v2475_v22  ;;  %9130 = vmatprep.subr.mxu1 %v10671_v13  ;;  %v1631_v6 = vld [vmem:[#allocation2 + $0x1e0] sm:$0xff]  ;;  %v8587_v60 = vpop.f32.mrf.mxu0  ;;  %8886 = vmatmul.mubr.msk.f32.gmra.mxu0 %vm217_vm0, %v7430_v4  ;;  %v7437_v22 = vld [vmem:[%s9293_s27 + $0x92] sm:$0xff]  ;;  %v2064_v1 = vld [vmem:[#allocation2 + $0x48] sm:$0xff] }
 0x159   : > { %v8637_v17 = vpop.f32.mrf.mxu1  ;;  %8936 = vmatmul.mubr.msk.f32.gmra.mxu1 %vm217_vm0, %v7430_v4  ;;  %2019 = vst.msk [vmem:[#allocation2 + $0x1e8] sm:$0xff] %vm217_vm0, %v1987_v3  ;;  %v1986_v31 = vadd.f32 %v10640_v41, %v1631_v6  ;;  %2442 = vst.msk [vmem:[#allocation2] sm:$0xff] %vm217_vm0, %v2410_v40  ;;  %v2413_v5 = vadd.f32 %v8587_v60, %v2058_v29  ;;  %8888 = vmatprep.mubr.msk.f32.mxu0 %vm217_vm0, %v7431_v21  ;;  %v7436_v20 = vld [vmem:[%s9293_s27 + $0x82] sm:$0xff]  ;;  %v7438_v23 = vld [vmem:[%s9293_s27 + $0x9a] sm:$0xff] }
 0x15a   : > { %2766 = vst.msk [vmem:[#allocation2 + $0x200] sm:$0xff] %vm217_vm0, %v2734_v10  ;;  %v2737_v33 = vadd.f32 %v8637_v17, %v2478_v48  ;;  %8938 = vmatprep.mubr.msk.f32.mxu1 %vm217_vm0, %v7431_v21  ;;  %v1634_v45 = vld [vmem:[#allocation2 + $0x1f8] sm:$0xff]  ;;  %v2261_v7 = vpop.f32.mrf.mxu0  ;;  %v2483_v52 = vld [vmem:[#allocation2 + $0x240] sm:$0xff]  ;;  %v7439_v3 = vld [vmem:[%s9293_s27 + $0xaa] sm:$0xff] }
 0x15b   : > { %v2585_v27 = vpop.f32.mrf.mxu1  ;;  %2018 = vst.msk [vmem:[#allocation2 + $0x1e0] sm:$0xff] %vm217_vm0, %v1986_v31  ;;  %v1989_v61 = vadd.f32 %v10645_v55, %v1634_v45  ;;  %2445 = vst.msk [vmem:[#allocation2 + $0x18] sm:$0xff] %vm217_vm0, %v2413_v5  ;;  %v2412_v51 = vadd.f32 %v2261_v7, %v2057_v11  ;;  %v2063_v32 = vld [vmem:[#allocation2 + $0x40] sm:$0xff]  ;;  %v2486_v48 = vld [vmem:[#allocation2 + $0x258] sm:$0xff] }
 0x15c   : > { %2769 = vst.msk [vmem:[#allocation2 + $0x218] sm:$0xff] %vm217_vm0, %v2737_v33  ;;  %v2736_v47 = vadd.f32 %v2585_v27, %v2477_v9  ;;  %v1633_v2 = vld [vmem:[#allocation2 + $0x1f0] sm:$0xff]  ;;  %v8590_v16 = vpop.f32.mrf.mxu0  ;;  %8889 = vmatmul.mubr.msk.f32.gmra.mxu0 %vm217_vm0, %v7432_v39  ;;  %v2066_v6 = vld [vmem:[#allocation2 + $0x58] sm:$0xff]  ;;  %v2488_v45 = vld [vmem:[#allocation2 + $0x268] sm:$0xff] }
 0x15d   : > { %v8640_v57 = vpop.f32.mrf.mxu1  ;;  %8939 = vmatmul.mubr.msk.f32.gmra.mxu1 %vm217_vm0, %v7432_v39  ;;  %2021 = vst.msk [vmem:[#allocation2 + $0x1f8] sm:$0xff] %vm217_vm0, %v1989_v61  ;;  %v1988_v53 = vadd.f32 %v10656_v44, %v1633_v2  ;;  %2444 = vst.msk [vmem:[#allocation2 + $0x10] sm:$0xff] %vm217_vm0, %v2412_v51  ;;  %v2415_v14 = vadd.f32 %v8590_v16, %v2060_v25  ;;  %8891 = vmatprep.mubr.msk.f32.mxu0 %vm217_vm0, %v7433_v37  ;;  %v2485_v17 = vld [vmem:[#allocation2 + $0x250] sm:$0xff]  ;;  %v7441_v11 = vld [vmem:[%s9293_s27 + $0xc2] sm:$0xff] }
 0x15e   : > { %2768 = vst.msk [vmem:[#allocation2 + $0x210] sm:$0xff] %vm217_vm0, %v2736_v47  ;;  %v2739_v41 = vadd.f32 %v8640_v57, %v2480_v35  ;;  %8941 = vmatprep.mubr.msk.f32.mxu1 %vm217_vm0, %v7433_v37  ;;  %v2271_v42 = vpop.f32.mrf.mxu0  ;;  %v7440_v5 = vld [vmem:[%s9293_s27 + $0xb2] sm:$0xff]  ;;  %v2068_v37 = vld [vmem:[#allocation2 + $0x68] sm:$0xff]  ;;  %v2487_v47 = vld [vmem:[#allocation2 + $0x260] sm:$0xff] }
 0x15f   : > { %v2595_v49 = vpop.f32.mrf.mxu1  ;;  %2020 = vst.msk [vmem:[#allocation2 + $0x1f0] sm:$0xff] %vm217_vm0, %v1988_v53  ;;  %2447 = vst.msk [vmem:[#allocation2 + $0x28] sm:$0xff] %vm217_vm0, %v2415_v14  ;;  %v2414_v55 = vadd.f32 %v2271_v42, %v2059_v18  ;;  %v2065_v33 = vld [vmem:[#allocation2 + $0x50] sm:$0xff]  ;;  %v2067_v57 = vld [vmem:[#allocation2 + $0x60] sm:$0xff] }
 0x160   : > { %2771 = vst.msk [vmem:[#allocation2 + $0x228] sm:$0xff] %vm217_vm0, %v2739_v41  ;;  %v2738_v54 = vadd.f32 %v2595_v49, %v2479_v62  ;;  %v8593_v28 = vpop.f32.mrf.mxu0  ;;  %8892 = vmatmul.mubr.msk.f32.gmra.mxu0 %vm217_vm0, %v7434_v43  ;;  %v7442_v16 = vld [vmem:[%s9293_s27 + $0xca] sm:$0xff]  ;;  %v2490_v14 = vld [vmem:[#allocation2 + $0x278] sm:$0xff] }
 0x161   : > { %v8643_v59 = vpop.f32.mrf.mxu1  ;;  %8942 = vmatmul.mubr.msk.f32.gmra.mxu1 %vm217_vm0, %v7434_v43  ;;  %2446 = vst.msk [vmem:[#allocation2 + $0x20] sm:$0xff] %vm217_vm0, %v2414_v55  ;;  %v2417_v8 = vadd.f32 %v8593_v28, %v2062_v26  ;;  %8894 = vmatprep.mubr.msk.f32.mxu0 %vm217_vm0, %v7435_v24  ;;  %v7443_v41 = vld [vmem:[%s9293_s27 + $0xda] sm:$0xff]  ;;  %v7444_v26 = vld [vmem:[%s9293_s27 + $0xe2] sm:$0xff]  ;;  %v2069_v28 = vld [vmem:[#allocation2 + $0x70] sm:$0xff] }
 0x162   : > { %2770 = vst.msk [vmem:[#allocation2 + $0x220] sm:$0xff] %vm217_vm0, %v2738_v54  ;;  %v2741_v44 = vadd.f32 %v8643_v59, %v2482_v12  ;;  %8944 = vmatprep.mubr.msk.f32.mxu1 %vm217_vm0, %v7435_v24  ;;  %v2281_v0 = vpop.f32.mrf.mxu0  ;;  %v2070_v42 = vld [vmem:[#allocation2 + $0x78] sm:$0xff]  ;;  %v2489_v24 = vld [vmem:[#allocation2 + $0x270] sm:$0xff] }
 0x163   : > { %v2605_v50 = vpop.f32.mrf.mxu1  ;;  %2449 = vst.msk [vmem:[#allocation2 + $0x38] sm:$0xff] %vm217_vm0, %v2417_v8  ;;  %v2416_v36 = vadd.f32 %v2281_v0, %v2061_v15  ;;  %v2492_v8 = vld [vmem:[#allocation2 + $0x288] sm:$0xff] }
 0x164   : > { %2773 = vst.msk [vmem:[#allocation2 + $0x238] sm:$0xff] %vm217_vm0, %v2741_v44  ;;  %v2740_v58 = vadd.f32 %v2605_v50, %v2481_v38  ;;  %v8596_v34 = vpop.f32.mrf.mxu0  ;;  %8895 = vmatmul.mubr.msk.f32.gmra.mxu0 %vm217_vm0, %v7436_v20  ;;  %v7445_v44 = vld [vmem:[%s9293_s27 + $0xf2] sm:$0xff]  ;;  %v2072_v0 = vld [vmem:[#allocation2 + $0x88] sm:$0xff] }
 0x165   : > { %v8646_v30 = vpop.f32.mrf.mxu1  ;;  %8945 = vmatmul.mubr.msk.f32.gmra.mxu1 %vm217_vm0, %v7436_v20  ;;  %2448 = vst.msk [vmem:[#allocation2 + $0x30] sm:$0xff] %vm217_vm0, %v2416_v36  ;;  %v2419_v4 = vadd.f32 %v8596_v34, %v2064_v1  ;;  %8897 = vmatprep.mubr.msk.f32.mxu0 %vm217_vm0, %v7437_v22  ;;  %v7446_v1 = vld [vmem:[%s9293_s27 + $0xfa] sm:$0xff] }
 0x166   : > { %2772 = vst.msk [vmem:[#allocation2 + $0x230] sm:$0xff] %vm217_vm0, %v2740_v58  ;;  %v2743_v21 = vadd.f32 %v8646_v30, %v2484_v56  ;;  %8947 = vmatprep.mubr.msk.f32.mxu1 %vm217_vm0, %v7437_v22  ;;  %v2291_v63 = vpop.f32.mrf.mxu0  ;;  %v2491_v22 = vld [vmem:[#allocation2 + $0x280] sm:$0xff] }
 0x167   : > { %v2615_v19 = vpop.f32.mrf.mxu1  ;;  %2451 = vst.msk [vmem:[#allocation2 + $0x48] sm:$0xff] %vm217_vm0, %v2419_v4  ;;  %v2418_v40 = vadd.f32 %v2291_v63, %v2063_v32  ;;  %v2071_v34 = vld [vmem:[#allocation2 + $0x80] sm:$0xff]  ;;  %v2494_v4 = vld [vmem:[#allocation2 + $0x298] sm:$0xff] }
 0x168   : > { %2775 = vst.msk [vmem:[#allocation2 + $0x248] sm:$0xff] %vm217_vm0, %v2743_v21  ;;  %v2742_v10 = vadd.f32 %v2615_v19, %v2483_v52  ;;  %v8599_v29 = vpop.f32.mrf.mxu0  ;;  %8898 = vmatmul.mubr.msk.f32.gmra.mxu0 %vm217_vm0, %v7438_v23  ;;  %v7447_v21 = vld [vmem:[%s9293_s27 + $0x10a] sm:$0xff]  ;;  %v2074_v63 = vld [vmem:[#allocation2 + $0x98] sm:$0xff] }
 0x169   : > { %v8649_v60 = vpop.f32.mrf.mxu1  ;;  %8948 = vmatmul.mubr.msk.f32.gmra.mxu1 %vm217_vm0, %v7438_v23  ;;  %2450 = vst.msk [vmem:[#allocation2 + $0x40] sm:$0xff] %vm217_vm0, %v2418_v40  ;;  %v2421_v9 = vadd.f32 %v8599_v29, %v2066_v6  ;;  %8900 = vmatprep.mubr.msk.f32.mxu0 %vm217_vm0, %v7439_v3  ;;  %v7448_v6 = vld [vmem:[%s9293_s27 + $0x112] sm:$0xff] }
 0x16a   : > { %2774 = vst.msk [vmem:[#allocation2 + $0x240] sm:$0xff] %vm217_vm0, %v2742_v10  ;;  %v2745_v31 = vadd.f32 %v8649_v60, %v2486_v48  ;;  %8950 = vmatprep.mubr.msk.f32.mxu1 %vm217_vm0, %v7439_v3  ;;  %v2301_v35 = vpop.f32.mrf.mxu0  ;;  %v2493_v3 = vld [vmem:[#allocation2 + $0x290] sm:$0xff] }
 0x16b   : > { %v2625_v39 = vpop.f32.mrf.mxu1  ;;  %2453 = vst.msk [vmem:[#allocation2 + $0x58] sm:$0xff] %vm217_vm0, %v2421_v9  ;;  %v2420_v7 = vadd.f32 %v2301_v35, %v2065_v33  ;;  %v2073_v29 = vld [vmem:[#allocation2 + $0x90] sm:$0xff]  ;;  %v2496_v9 = vld [vmem:[#allocation2 + $0x2a8] sm:$0xff] }
 0x16c   : > { %2777 = vst.msk [vmem:[#allocation2 + $0x258] sm:$0xff] %vm217_vm0, %v2745_v31  ;;  %v2744_v27 = vadd.f32 %v2625_v39, %v2485_v17  ;;  %v8602_v61 = vpop.f32.mrf.mxu0  ;;  %8901 = vmatmul.mubr.msk.f32.gmra.mxu0 %vm217_vm0, %v7440_v5  ;;  %v7449_v31 = vld [vmem:[%s9293_s27 + $0x122] sm:$0xff] }
 0x16d   : > { %v8652_v51 = vpop.f32.mrf.mxu1  ;;  %8951 = vmatmul.mubr.msk.f32.gmra.mxu1 %vm217_vm0, %v7440_v5  ;;  %2452 = vst.msk [vmem:[#allocation2 + $0x50] sm:$0xff] %vm217_vm0, %v2420_v7  ;;  %v2423_v2 = vadd.f32 %v8602_v61, %v2068_v37  ;;  %8903 = vmatprep.mubr.msk.f32.mxu0 %vm217_vm0, %v7441_v11  ;;  %v2076_v35 = vld [vmem:[#allocation2 + $0xa8] sm:$0xff]  ;;  %v2075_v61 = vld [vmem:[#allocation2 + $0xa0] sm:$0xff] }
 0x16e   : > { %2776 = vst.msk [vmem:[#allocation2 + $0x250] sm:$0xff] %vm217_vm0, %v2744_v27  ;;  %v2747_v25 = vadd.f32 %v8652_v51, %v2488_v45  ;;  %8953 = vmatprep.mubr.msk.f32.mxu1 %vm217_vm0, %v7441_v11  ;;  %v2311_v62 = vpop.f32.mrf.mxu0  ;;  %v2495_v11 = vld [vmem:[#allocation2 + $0x2a0] sm:$0xff]  ;;  %v7450_v37 = vld [vmem:[%s9293_s27 + $0x12a] sm:$0xff] }
 0x16f   : > { %v2635_v53 = vpop.f32.mrf.mxu1  ;;  %2455 = vst.msk [vmem:[#allocation2 + $0x68] sm:$0xff] %vm217_vm0, %v2423_v2  ;;  %v2422_v43 = vadd.f32 %v2311_v62, %v2067_v57  ;;  %v2498_v2 = vld [vmem:[#allocation2 + $0x2b8] sm:$0xff] }
 0x170   : > { %2779 = vst.msk [vmem:[#allocation2 + $0x268] sm:$0xff] %vm217_vm0, %v2747_v25  ;;  %v2746_v18 = vadd.f32 %v2635_v53, %v2487_v47  ;;  %v8605_v49 = vpop.f32.mrf.mxu0  ;;  %8904 = vmatmul.mubr.msk.f32.gmra.mxu0 %vm217_vm0, %v7442_v16  ;;  %v7451_v25 = vld [vmem:[%s9293_s27 + $0x13a] sm:$0xff] }
 0x171   : > { %v8655_v12 = vpop.f32.mrf.mxu1  ;;  %8954 = vmatmul.mubr.msk.f32.gmra.mxu1 %vm217_vm0, %v7442_v16  ;;  %2454 = vst.msk [vmem:[#allocation2 + $0x60] sm:$0xff] %vm217_vm0, %v2422_v43  ;;  %v2425_v55 = vadd.f32 %v8605_v49, %v2070_v42  ;;  %8906 = vmatprep.mubr.msk.f32.mxu0 %vm217_vm0, %v7443_v41  ;;  %v2078_v62 = vld [vmem:[#allocation2 + $0xb8] sm:$0xff]  ;;  %v7452_v42 = vld [vmem:[%s9293_s27 + $0x142] sm:$0xff]  ;;  %v2077_v49 = vld [vmem:[#allocation2 + $0xb0] sm:$0xff] }
 0x172   : > { %2778 = vst.msk [vmem:[#allocation2 + $0x260] sm:$0xff] %vm217_vm0, %v2746_v18  ;;  %v2749_v54 = vadd.f32 %v8655_v12, %v2490_v14  ;;  %8956 = vmatprep.mubr.msk.f32.mxu1 %vm217_vm0, %v7443_v41  ;;  %v2321_v59 = vpop.f32.mrf.mxu0  ;;  %v2497_v41 = vld [vmem:[#allocation2 + $0x2b0] sm:$0xff] }
 0x173   : > { %v2645_v38 = vpop.f32.mrf.mxu1  ;;  %2457 = vst.msk [vmem:[#allocation2 + $0x78] sm:$0xff] %vm217_vm0, %v2425_v55  ;;  %v2424_v20 = vadd.f32 %v2321_v59, %v2069_v28  ;;  %v2500_v55 = vld [vmem:[#allocation2 + $0x2c8] sm:$0xff] }
 0x174   : > { %2781 = vst.msk [vmem:[#allocation2 + $0x278] sm:$0xff] %vm217_vm0, %v2749_v54  ;;  %v2748_v15 = vadd.f32 %v2645_v38, %v2489_v24  ;;  %v8608_v50 = vpop.f32.mrf.mxu0  ;;  %8907 = vmatmul.mubr.msk.f32.gmra.mxu0 %vm217_vm0, %v7444_v26  ;;  %v7453_v54 = vld [vmem:[%s9293_s27 + $0x152] sm:$0xff]  ;;  %v2080_v59 = vld [vmem:[#allocation2 + $0xc8] sm:$0xff] }
 0x175   : > { %v8658_v56 = vpop.f32.mrf.mxu1  ;;  %8957 = vmatmul.mubr.msk.f32.gmra.mxu1 %vm217_vm0, %v7444_v26  ;;  %2456 = vst.msk [vmem:[#allocation2 + $0x70] sm:$0xff] %vm217_vm0, %v2424_v20  ;;  %v2427_v36 = vadd.f32 %v8608_v50, %v2072_v0  ;;  %8909 = vmatprep.mubr.msk.f32.mxu0 %vm217_vm0, %v7445_v44  ;;  %v7454_v0 = vld [vmem:[%s9293_s27 + $0x15a] sm:$0xff] }
 0x176   : > { %2780 = vst.msk [vmem:[#allocation2 + $0x270] sm:$0xff] %vm217_vm0, %v2748_v15  ;;  %v2751_v58 = vadd.f32 %v8658_v56, %v2492_v8  ;;  %8959 = vmatprep.mubr.msk.f32.mxu1 %vm217_vm0, %v7445_v44  ;;  %v2331_v30 = vpop.f32.mrf.mxu0  ;;  %v2499_v44 = vld [vmem:[#allocation2 + $0x2c0] sm:$0xff] }
 0x177   : > { %v2655_v52 = vpop.f32.mrf.mxu1  ;;  %2459 = vst.msk [vmem:[#allocation2 + $0x88] sm:$0xff] %vm217_vm0, %v2427_v36  ;;  %v2426_v23 = vadd.f32 %v2331_v30, %v2071_v34  ;;  %v2079_v50 = vld [vmem:[#allocation2 + $0xc0] sm:$0xff]  ;;  %v2502_v36 = vld [vmem:[#allocation2 + $0x2d8] sm:$0xff] }
 0x178   : > { %2783 = vst.msk [vmem:[#allocation2 + $0x288] sm:$0xff] %vm217_vm0, %v2751_v58  ;;  %v2750_v32 = vadd.f32 %v2655_v52, %v2491_v22  ;;  %v8611_v19 = vpop.f32.mrf.mxu0  ;;  %8910 = vmatmul.mubr.msk.f32.gmra.mxu0 %vm217_vm0, %v7446_v1  ;;  %v7455_v58 = vld [vmem:[%s9293_s27 + $0x16a] sm:$0xff]  ;;  %v2082_v30 = vld [vmem:[#allocation2 + $0xd8] sm:$0xff] }
 0x179   : > { %v8661_v48 = vpop.f32.mrf.mxu1  ;;  %8960 = vmatmul.mubr.msk.f32.gmra.mxu1 %vm217_vm0, %v7446_v1  ;;  %2458 = vst.msk [vmem:[#allocation2 + $0x80] sm:$0xff] %vm217_vm0, %v2426_v23  ;;  %v2429_v40 = vadd.f32 %v8611_v19, %v2074_v63  ;;  %8912 = vmatprep.mubr.msk.f32.mxu0 %vm217_vm0, %v7447_v21  ;;  %v7456_v63 = vld [vmem:[%s9293_s27 + $0x172] sm:$0xff] }
 0x17a   : > { %2782 = vst.msk [vmem:[#allocation2 + $0x280] sm:$0xff] %vm217_vm0, %v2750_v32  ;;  %v2753_v10 = vadd.f32 %v8661_v48, %v2494_v4  ;;  %8962 = vmatprep.mubr.msk.f32.mxu1 %vm217_vm0, %v7447_v21  ;;  %v2341_v60 = vpop.f32.mrf.mxu0  ;;  %v2501_v21 = vld [vmem:[#allocation2 + $0x2d0] sm:$0xff] }
 0x17b   : > { %v2665_v17 = vpop.f32.mrf.mxu1  ;;  %2461 = vst.msk [vmem:[#allocation2 + $0x98] sm:$0xff] %vm217_vm0, %v2429_v40  ;;  %v2428_v5 = vadd.f32 %v2341_v60, %v2073_v29  ;;  %v2081_v19 = vld [vmem:[#allocation2 + $0xd0] sm:$0xff]  ;;  %v2504_v40 = vld [vmem:[#allocation2 + $0x2e8] sm:$0xff] }
 0x17c   : > { %2785 = vst.msk [vmem:[#allocation2 + $0x298] sm:$0xff] %vm217_vm0, %v2753_v10  ;;  %v2752_v33 = vadd.f32 %v2665_v17, %v2493_v3  ;;  %v8614_v39 = vpop.f32.mrf.mxu0  ;;  %8913 = vmatmul.mubr.msk.f32.gmra.mxu0 %vm217_vm0, %v7448_v6  ;;  %v7457_v10 = vld [vmem:[%s9293_s27 + $0x182] sm:$0xff] }
 0x17d   : > { %v8664_v45 = vpop.f32.mrf.mxu1  ;;  %8963 = vmatmul.mubr.msk.f32.gmra.mxu1 %vm217_vm0, %v7448_v6  ;;  %2460 = vst.msk [vmem:[#allocation2 + $0x90] sm:$0xff] %vm217_vm0, %v2428_v5  ;;  %v2431_v7 = vadd.f32 %v8614_v39, %v2076_v35  ;;  %8915 = vmatprep.mubr.msk.f32.mxu0 %vm217_vm0, %v7449_v31  ;;  %v2084_v60 = vld [vmem:[#allocation2 + $0xe8] sm:$0xff]  ;;  %v7525_v39 = vld [vmem:[%s9293_s27 + $0x30] sm:$0xff] }
 0x17e   : > { %2784 = vst.msk [vmem:[#allocation2 + $0x290] sm:$0xff] %vm217_vm0, %v2752_v33  ;;  %v2755_v27 = vadd.f32 %v8664_v45, %v2496_v9  ;;  %8965 = vmatprep.mubr.msk.f32.mxu1 %vm217_vm0, %v7449_v31  ;;  %v2351_v51 = vpop.f32.mrf.mxu0  ;;  %v2503_v31 = vld [vmem:[#allocation2 + $0x2e0] sm:$0xff]  ;;  %v7458_v35 = vld [vmem:[%s9293_s27 + $0x18a] sm:$0xff] }
 0x17f   : > { %v2675_v47 = vpop.f32.mrf.mxu1  ;;  %2463 = vst.msk [vmem:[#allocation2 + $0xa8] sm:$0xff] %vm217_vm0, %v2431_v7  ;;  %v2430_v16 = vadd.f32 %v2351_v51, %v2075_v61  ;;  %v2083_v45 = vld [vmem:[#allocation2 + $0xe0] sm:$0xff] }
 0x180   : > { %2787 = vst.msk [vmem:[#allocation2 + $0x2a8] sm:$0xff] %vm217_vm0, %v2755_v27  ;;  %v2754_v57 = vadd.f32 %v2675_v47, %v2495_v11  ;;  %v8617_v53 = vpop.f32.mrf.mxu0  ;;  %8916 = vmatmul.mubr.msk.f32.gmra.mxu0 %vm217_vm0, %v7450_v37  ;;  %v2506_v27 = vld [vmem:[#allocation2 + $0x2f8] sm:$0xff] }
 0x181   : > { %v8667_v14 = vpop.f32.mrf.mxu1  ;;  %8966 = vmatmul.mubr.msk.f32.gmra.mxu1 %vm217_vm0, %v7450_v37  ;;  %2462 = vst.msk [vmem:[#allocation2 + $0xa0] sm:$0xff] %vm217_vm0, %v2430_v16  ;;  %v2433_v43 = vadd.f32 %v8617_v53, %v2078_v62  ;;  %8918 = vmatprep.mubr.msk.f32.mxu0 %vm217_vm0, %v7451_v25  ;;  %v10833_v37 = vld [vmem:[%s9293_s27 + $0x31] sm:$0xff] }
 0x182   : > { %2786 = vst.msk [vmem:[#allocation2 + $0x2a0] sm:$0xff] %vm217_vm0, %v2754_v57  ;;  %v2757_v18 = vadd.f32 %v8667_v14, %v2498_v2  ;;  %8968 = vmatprep.mubr.msk.f32.mxu1 %vm217_vm0, %v7451_v25  ;;  %v2361_v12 = vpop.f32.mrf.mxu0  ;;  %v2086_v47 = vld [vmem:[#allocation2 + $0xf8] sm:$0xff]  ;;  %v2505_v16 = vld [vmem:[#allocation2 + $0x2f0] sm:$0xff] }
 0x183   : > { %v2685_v24 = vpop.f32.mrf.mxu1  ;;  %2465 = vst.msk [vmem:[#allocation2 + $0xb8] sm:$0xff] %vm217_vm0, %v2433_v43  ;;  %v2432_v26 = vadd.f32 %v2361_v12, %v2077_v49  ;;  %v7526_v53 = vld [vmem:[%s9293_s27 + $0x38] sm:$0xff] }
 0x184   : > { %2789 = vst.msk [vmem:[#allocation2 + $0x2b8] sm:$0xff] %vm217_vm0, %v2757_v18  ;;  %v2756_v28 = vadd.f32 %v2685_v24, %v2497_v41  ;;  %v8620_v38 = vpop.f32.mrf.mxu0  ;;  %8919 = vmatmul.mubr.msk.f32.gmra.mxu0 %vm217_vm0, %v7452_v42  ;;  %v10846_v14 = vld [vmem:[%s9293_s27 + $0x39] sm:$0xff]  ;;  %v2085_v41 = vld [vmem:[#allocation2 + $0xf0] sm:$0xff] }
 0x185   : > { %v8670_v8 = vpop.f32.mrf.mxu1  ;;  %8969 = vmatmul.mubr.msk.f32.gmra.mxu1 %vm217_vm0, %v7452_v42  ;;  %2464 = vst.msk [vmem:[#allocation2 + $0xb0] sm:$0xff] %vm217_vm0, %v2432_v26  ;;  %v2435_v20 = vadd.f32 %v8620_v38, %v2080_v59  ;;  %8921 = vmatprep.mubr.msk.f32.mxu0 %vm217_vm0, %v7453_v54  ;;  %v7527_v42 = vld [vmem:[%s9293_s27 + $0x48] sm:$0xff] }
 0x186   : > { %2788 = vst.msk [vmem:[#allocation2 + $0x2b0] sm:$0xff] %vm217_vm0, %v2756_v28  ;;  %v2759_v15 = vadd.f32 %v8670_v8, %v2500_v55  ;;  %8971 = vmatprep.mubr.msk.f32.mxu1 %vm217_vm0, %v7453_v54  ;;  %v2371_v56 = vpop.f32.mrf.mxu0  ;;  %v10852_v24 = vld [vmem:[%s9293_s27 + $0x49] sm:$0xff] }
 0x187   : > { %v2695_v22 = vpop.f32.mrf.mxu1  ;;  %2467 = vst.msk [vmem:[#allocation2 + $0xc8] sm:$0xff] %vm217_vm0, %v2435_v20  ;;  %v2434_v1 = vadd.f32 %v2371_v56, %v2079_v50  ;;  %v2831_v55 = vld [vmem:[#allocation2 + $0x8] sm:$0xff]  ;;  %v7528_v8 = vld [vmem:[%s9293_s27 + $0x50] sm:$0xff]  ;;  %v3249_v50 = vld [vmem:[#allocation2 + $0x100] sm:$0xff] }
 0x188   : > { %2791 = vst.msk [vmem:[#allocation2 + $0x2c8] sm:$0xff] %vm217_vm0, %v2759_v15  ;;  %v2758_v34 = vadd.f32 %v2695_v22, %v2499_v44  ;;  %v8623_v52 = vpop.f32.mrf.mxu0  ;;  %8922 = vmatmul.mubr.msk.f32.gmra.mxu0 %vm217_vm0, %v7454_v0  ;;  %v3250_v26 = vld [vmem:[#allocation2 + $0x108] sm:$0xff]  ;;  %v7529_v44 = vld [vmem:[%s9293_s27 + $0x60] sm:$0xff]  ;;  %v10864_v20 = vld [vmem:[%s9293_s27 + $0x51] sm:$0xff] }
 0x189   : > { %v8673_v4 = vpop.f32.mrf.mxu1  ;;  %8972 = vmatmul.mubr.msk.f32.gmra.mxu1 %vm217_vm0, %v7454_v0  ;;  %2466 = vst.msk [vmem:[#allocation2 + $0xc0] sm:$0xff] %vm217_vm0, %v2434_v1  ;;  %v2437_v23 = vadd.f32 %v8623_v52, %v2082_v30  ;;  %8924 = vmatprep.mubr.msk.f32.mxu0 %vm217_vm0, %v7455_v58  ;;  %v2830_v15 = vld [vmem:[#allocation2] sm:$0xff] }
 0x18a   : > { %2790 = vst.msk [vmem:[#allocation2 + $0x2c0] sm:$0xff] %vm217_vm0, %v2758_v34  ;;  %v2761_v32 = vadd.f32 %v8673_v4, %v2502_v36  ;;  %8974 = vmatprep.mubr.msk.f32.mxu1 %vm217_vm0, %v7455_v58  ;;  %v2381_v48 = vpop.f32.mrf.mxu0  ;;  %v10870_v22 = vld [vmem:[%s9293_s27 + $0x61] sm:$0xff]  ;;  %v2833_v58 = vld [vmem:[#allocation2 + $0x18] sm:$0xff] }
 0x18b   : > { %v2705_v3 = vpop.f32.mrf.mxu1  ;;  %2469 = vst.msk [vmem:[#allocation2 + $0xd8] sm:$0xff] %vm217_vm0, %v2437_v23  ;;  %v2436_v6 = vadd.f32 %v2381_v48, %v2081_v19  ;;  %v3252_v34 = vld [vmem:[#allocation2 + $0x118] sm:$0xff]  ;;  %v7530_v4 = vld [vmem:[%s9293_s27 + $0x68] sm:$0xff]  ;;  %v3251_v19 = vld [vmem:[#allocation2 + $0x110] sm:$0xff] }
 0x18c   : > { %2793 = vst.msk [vmem:[#allocation2 + $0x2d8] sm:$0xff] %vm217_vm0, %v2761_v32  ;;  %v2760_v29 = vadd.f32 %v2705_v3, %v2501_v21  ;;  %v8626_v17 = vpop.f32.mrf.mxu0  ;;  %8925 = vmatmul.mubr.msk.f32.gmra.mxu0 %vm217_vm0, %v7456_v63  ;;  %v7531_v21 = vld [vmem:[%s9293_s27 + $0x78] sm:$0xff]  ;;  %v10886_v23 = vld [vmem:[%s9293_s27 + $0x69] sm:$0xff] }
 0x18d   : > { %v8676_v9 = vpop.f32.mrf.mxu1  ;;  %8975 = vmatmul.mubr.msk.f32.gmra.mxu1 %vm217_vm0, %v7456_v63  ;;  %2468 = vst.msk [vmem:[#allocation2 + $0xd0] sm:$0xff] %vm217_vm0, %v2436_v6  ;;  %v2439_v5 = vadd.f32 %v8626_v17, %v2084_v60  ;;  %8927 = vmatprep.mubr.msk.f32.mxu0 %vm217_vm0, %v7457_v10  ;;  %v2832_v32 = vld [vmem:[#allocation2 + $0x10] sm:$0xff]  ;;  %v10889_v3 = vld [vmem:[%s9293_s27 + $0x79] sm:$0xff]  ;;  %v2835_v6 = vld [vmem:[#allocation2 + $0x28] sm:$0xff] }
 0x18e   : > { %2792 = vst.msk [vmem:[#allocation2 + $0x2d0] sm:$0xff] %vm217_vm0, %v2760_v29  ;;  %v2763_v33 = vadd.f32 %v8676_v9, %v2504_v40  ;;  %8977 = vmatprep.mubr.msk.f32.mxu1 %vm217_vm0, %v7457_v10  ;;  %v2391_v11 = vpop.f32.mrf.mxu0  ;;  %v3254_v60 = vld [vmem:[#allocation2 + $0x128] sm:$0xff]  ;;  %v7532_v9 = vld [vmem:[%s9293_s27 + $0x80] sm:$0xff] }
 0x18f   : > { %v2715_v7 = vpop.f32.mrf.mxu1  ;;  %2471 = vst.msk [vmem:[#allocation2 + $0xe8] sm:$0xff] %vm217_vm0, %v2439_v5  ;;  %v2438_v61 = vadd.f32 %v2391_v11, %v2083_v45  ;;  %v2834_v11 = vld [vmem:[#allocation2 + $0x20] sm:$0xff] }
 0x190   : > { %2795 = vst.msk [vmem:[#allocation2 + $0x2e8] sm:$0xff] %vm217_vm0, %v2763_v33  ;;  %v2762_v51 = vadd.f32 %v2715_v7, %v2503_v31  ;;  %v8629_v2 = vpop.f32.mrf.mxu0  ;;  %8928 = vmatmul.mubr.msk.f32.gmra.mxu0 %vm217_vm0, %v7458_v35  ;;  %v7533_v33 = vld [vmem:[%s9293_s27 + $0x90] sm:$0xff] }
 0x191   : > { %v8679_v25 = vpop.f32.mrf.mxu1  ;;  %8978 = vmatmul.mubr.msk.f32.gmra.mxu1 %vm217_vm0, %v7458_v35  ;;  %2470 = vst.msk [vmem:[#allocation2 + $0xe0] sm:$0xff] %vm217_vm0, %v2438_v61  ;;  %v2441_v57 = vadd.f32 %v8629_v2, %v2086_v47  ;;  %8982 = vmatprep.mubr.msk.f32.mxu0 %vm217_vm0, %v7525_v39  ;;  %v10909_v35 = vld [vmem:[%s9293_s27 + $0x81] sm:$0xff]  ;;  %v10912_v39 = vld [vmem:[%s9293_s27 + $0x91] sm:$0xff] }
 0x192   : > { %2794 = vst.msk [vmem:[#allocation2 + $0x2e0] sm:$0xff] %vm217_vm0, %v2762_v51  ;;  %v2765_v62 = vadd.f32 %v8679_v25, %v2506_v27  ;;  %9032 = vmatprep.mubr.msk.f32.mxu1 %vm217_vm0, %v10833_v37  ;;  %v2401_v43 = vpop.f32.mrf.mxu0  ;;  %v3253_v27 = vld [vmem:[#allocation2 + $0x120] sm:$0xff]  ;;  %v7534_v2 = vld [vmem:[%s9293_s27 + $0x98] sm:$0xff] }
 0x193   : > { %v2725_v18 = vpop.f32.mrf.mxu1  ;;  %2473 = vst.msk [vmem:[#allocation2 + $0xf8] sm:$0xff] %vm217_vm0, %v2441_v57  ;;  %v2440_v49 = vadd.f32 %v2401_v43, %v2085_v41 }
 0x194   : > { %2797 = vst.msk [vmem:[#allocation2 + $0x2f8] sm:$0xff] %vm217_vm0, %v2765_v62  ;;  %v2764_v12 = vadd.f32 %v2725_v18, %v2505_v16  ;;  %v8684_v54 = vpop.f32.mrf.mxu0  ;;  %8983 = vmatmul.mubr.msk.f32.vlgmr.msra.gmra.mxu0 %vm217_vm0, %v7526_v53  ;;  %v2837_v16 = vld [vmem:[#allocation2 + $0x38] sm:$0xff]  ;;  %v7535_v18 = vld [vmem:[%s9293_s27 + $0xa8] sm:$0xff] }
 0x195   : > { %v8734_v28 = vpop.f32.mrf.mxu1  ;;  %9033 = vmatmul.mubr.msk.f32.vlgmr.msra.gmra.mxu1 %vm217_vm0, %v10846_v14  ;;  %2472 = vst.msk [vmem:[#allocation2 + $0xf0] sm:$0xff] %vm217_vm0, %v2440_v49  ;;  %v3186_v59 = vadd.f32 %v8684_v54, %v2831_v55  ;;  %9081 = vmatpush3.msra.mxu0 %v10666_v46  ;;  %v3256_v62 = vld [vmem:[#allocation2 + $0x138] sm:$0xff]  ;;  %v10934_v49 = vld [vmem:[%s9293_s27 + $0xa9] sm:$0xff] }
 0x196   : > { %2796 = vst.msk [vmem:[#allocation2 + $0x2f0] sm:$0xff] %vm217_vm0, %v2764_v12  ;;  %v3509_v38 = vadd.f32 %v8734_v28, %v3250_v26  ;;  %8985 = vmatprep.mubr.msk.f32.mxu0 %vm217_vm0, %v7527_v42  ;;  %v3026_v0 = vpop.f32.mrf.mxu0  ;;  %9131 = vmatpush3.msra.mxu1 %v10671_v13  ;;  %v10931_v42 = vld [vmem:[%s9293_s27 + $0x99] sm:$0xff]  ;;  %v2836_v55 = vld [vmem:[#allocation2 + $0x30] sm:$0xff] }
 0x197   : > { %v3349_v56 = vpop.f32.mrf.mxu1  ;;  %9035 = vmatprep.mubr.msk.f32.mxu1 %vm217_vm0, %v10852_v24  ;;  %3218 = vst.msk [vmem:[#allocation2 + $0x8] sm:$0xff] %vm217_vm0, %v3186_v59  ;;  %v3185_v46 = vadd.f32 %v3026_v0, %v2830_v15  ;;  %v3255_v26 = vld [vmem:[#allocation2 + $0x130] sm:$0xff]  ;;  %v2839_v15 = vld [vmem:[#allocation2 + $0x48] sm:$0xff] }
 0x198   : > { %3541 = vst.msk [vmem:[#allocation2 + $0x108] sm:$0xff] %vm217_vm0, %v3509_v38  ;;  %v3508_v36 = vadd.f32 %v3349_v56, %v3249_v50  ;;  %v8687_v1 = vpop.f32.mrf.mxu0  ;;  %8986 = vmatmul.mubr.msk.f32.gmra.mxu0 %vm217_vm0, %v7528_v8  ;;  %v7536_v8 = vld [vmem:[%s9293_s27 + $0xb0] sm:$0xff]  ;;  %v3258_v50 = vld [vmem:[#allocation2 + $0x148] sm:$0xff] }
 0x199   : > { %v8737_v30 = vpop.f32.mrf.mxu1  ;;  %9036 = vmatmul.mubr.msk.f32.gmra.mxu1 %vm217_vm0, %v10864_v20  ;;  %3217 = vst.msk [vmem:[#allocation2] sm:$0xff] %vm217_vm0, %v3185_v46  ;;  %v3188_v13 = vadd.f32 %v8687_v1, %v2833_v58  ;;  %8988 = vmatprep.mubr.msk.f32.mxu0 %vm217_vm0, %v7529_v44  ;;  %v7537_v58 = vld [vmem:[%s9293_s27 + $0xc0] sm:$0xff]  ;;  %v10953_v1 = vld [vmem:[%s9293_s27 + $0xb1] sm:$0xff] }
 0x19a   : > { %3540 = vst.msk [vmem:[#allocation2 + $0x100] sm:$0xff] %vm217_vm0, %v3508_v36  ;;  %v3511_v52 = vadd.f32 %v8737_v30, %v3252_v34  ;;  %9038 = vmatprep.mubr.msk.f32.mxu1 %vm217_vm0, %v10870_v22  ;;  %v3036_v63 = vpop.f32.mrf.mxu0  ;;  %v10956_v34 = vld [vmem:[%s9293_s27 + $0xc1] sm:$0xff] }
 0x19b   : > { %v3359_v48 = vpop.f32.mrf.mxu1  ;;  %3220 = vst.msk [vmem:[#allocation2 + $0x18] sm:$0xff] %vm217_vm0, %v3188_v13  ;;  %v3187_v40 = vadd.f32 %v3036_v63, %v2832_v32  ;;  %v2838_v13 = vld [vmem:[#allocation2 + $0x40] sm:$0xff] }
 0x19c   : > { %3543 = vst.msk [vmem:[#allocation2 + $0x118] sm:$0xff] %vm217_vm0, %v3511_v52  ;;  %v3510_v10 = vadd.f32 %v3359_v48, %v3251_v19  ;;  %v8690_v29 = vpop.f32.mrf.mxu0  ;;  %8989 = vmatmul.mubr.msk.f32.gmra.mxu0 %vm217_vm0, %v7530_v4  ;;  %v3257_v4 = vld [vmem:[#allocation2 + $0x140] sm:$0xff]  ;;  %v7538_v19 = vld [vmem:[%s9293_s27 + $0xc8] sm:$0xff] }
 0x19d   : > { %v8740_v17 = vpop.f32.mrf.mxu1  ;;  %9039 = vmatmul.mubr.msk.f32.gmra.mxu1 %vm217_vm0, %v10886_v23  ;;  %3219 = vst.msk [vmem:[#allocation2 + $0x10] sm:$0xff] %vm217_vm0, %v3187_v40  ;;  %v3190_v31 = vadd.f32 %v8690_v29, %v2835_v6  ;;  %8991 = vmatprep.mubr.msk.f32.mxu0 %vm217_vm0, %v7531_v21  ;;  %v2841_v40 = vld [vmem:[#allocation2 + $0x58] sm:$0xff] }
 0x19e   : > { %3542 = vst.msk [vmem:[#allocation2 + $0x110] sm:$0xff] %vm217_vm0, %v3510_v10  ;;  %v3513_v5 = vadd.f32 %v8740_v17, %v3254_v60  ;;  %9041 = vmatprep.mubr.msk.f32.mxu1 %vm217_vm0, %v10889_v3  ;;  %v6671_v45 = vld [vmem:[#allocation2 + $0x8] sm:$0xff]  ;;  %v3046_v7 = vpop.f32.mrf.mxu0  ;;  %v3260_v6 = vld [vmem:[#allocation2 + $0x158] sm:$0xff] }
 0x19f   : > { %v3369_v61 = vpop.f32.mrf.mxu1  ;;  %6703 = vst.msk [vmem:[%s10896_s7 + $0x8] sm:$0xff] %vm217_vm0, %v6671_v45  ;;  %3222 = vst.msk [vmem:[#allocation2 + $0x28] sm:$0xff] %vm217_vm0, %v3190_v31  ;;  %v3189_v51 = vadd.f32 %v3046_v7, %v2834_v11  ;;  %v10975_v31 = vld [vmem:[%s9293_s27 + $0xc9] sm:$0xff] }
 0x1a0   : > { %3545 = vst.msk [vmem:[#allocation2 + $0x128] sm:$0xff] %vm217_vm0, %v3513_v5  ;;  %v3512_v47 = vadd.f32 %v3369_v61, %v3253_v27  ;;  %v6670_v25 = vld [vmem:[#allocation2] sm:$0xff]  ;;  %v8693_v57 = vpop.f32.mrf.mxu0  ;;  %8992 = vmatmul.mubr.msk.f32.gmra.mxu0 %vm217_vm0, %v7532_v9  ;;  %v7539_v9 = vld [vmem:[%s9293_s27 + $0xd8] sm:$0xff]  ;;  %v2840_v45 = vld [vmem:[#allocation2 + $0x50] sm:$0xff] }
 0x1a1   : > { %v8743_v53 = vpop.f32.mrf.mxu1  ;;  %9042 = vmatmul.mubr.msk.f32.gmra.mxu1 %vm217_vm0, %v10909_v35  ;;  %6702 = vst.msk [vmem:[%s10896_s7] sm:$0xff] %vm217_vm0, %v6670_v25  ;;  %3221 = vst.msk [vmem:[#allocation2 + $0x20] sm:$0xff] %vm217_vm0, %v3189_v51  ;;  %v3192_v41 = vadd.f32 %v8693_v57, %v2837_v16  ;;  %8994 = vmatprep.mubr.msk.f32.mxu0 %vm217_vm0, %v7533_v33  ;;  %v10978_v5 = vld [vmem:[%s9293_s27 + $0xd9] sm:$0xff]  ;;  %v3259_v7 = vld [vmem:[#allocation2 + $0x150] sm:$0xff] }
 0x1a2   : > { %3544 = vst.msk [vmem:[#allocation2 + $0x120] sm:$0xff] %vm217_vm0, %v3512_v47  ;;  %v3515_v43 = vadd.f32 %v8743_v53, %v3256_v62  ;;  %9044 = vmatprep.mubr.msk.f32.mxu1 %vm217_vm0, %v10912_v39  ;;  %v6673_v12 = vld [vmem:[#allocation2 + $0x18] sm:$0xff]  ;;  %v3056_v54 = vpop.f32.mrf.mxu0  ;;  %v7540_v47 = vld [vmem:[%s9293_s27 + $0xe0] sm:$0xff]  ;;  %v2843_v25 = vld [vmem:[#allocation2 + $0x68] sm:$0xff] }
 0x1a3   : > { %v3379_v28 = vpop.f32.mrf.mxu1  ;;  %6705 = vst.msk [vmem:[%s10896_s7 + $0x18] sm:$0xff] %vm217_vm0, %v6673_v12  ;;  %3224 = vst.msk [vmem:[#allocation2 + $0x38] sm:$0xff] %vm217_vm0, %v3192_v41  ;;  %v3191_v59 = vadd.f32 %v3056_v54, %v2836_v55  ;;  %v3262_v57 = vld [vmem:[#allocation2 + $0x168] sm:$0xff]  ;;  %v11000_v12 = vld [vmem:[%s9293_s27 + $0xf1] sm:$0xff] }
 0x1a4   : > { %3547 = vst.msk [vmem:[#allocation2 + $0x138] sm:$0xff] %vm217_vm0, %v3515_v43  ;;  %v3514_v38 = vadd.f32 %v3379_v28, %v3255_v26  ;;  %v6672_v44 = vld [vmem:[#allocation2 + $0x10] sm:$0xff]  ;;  %v8696_v0 = vpop.f32.mrf.mxu0  ;;  %8995 = vmatmul.mubr.msk.f32.gmra.mxu0 %vm217_vm0, %v7534_v2  ;;  %v2842_v54 = vld [vmem:[#allocation2 + $0x60] sm:$0xff] }
 0x1a5   : > { %v8746_v56 = vpop.f32.mrf.mxu1  ;;  %9045 = vmatmul.mubr.msk.f32.gmra.mxu1 %vm217_vm0, %v10931_v42  ;;  %6704 = vst.msk [vmem:[%s10896_s7 + $0x10] sm:$0xff] %vm217_vm0, %v6672_v44  ;;  %3223 = vst.msk [vmem:[#allocation2 + $0x30] sm:$0xff] %vm217_vm0, %v3191_v59  ;;  %v3194_v46 = vadd.f32 %v8696_v0, %v2839_v15  ;;  %8997 = vmatprep.mubr.msk.f32.mxu0 %vm217_vm0, %v7535_v18  ;;  %v7541_v43 = vld [vmem:[%s9293_s27 + $0xf0] sm:$0xff]  ;;  %v10997_v18 = vld [vmem:[%s9293_s27 + $0xe1] sm:$0xff] }
 0x1a6   : > { %3546 = vst.msk [vmem:[#allocation2 + $0x130] sm:$0xff] %vm217_vm0, %v3514_v38  ;;  %v3517_v36 = vadd.f32 %v8746_v56, %v3258_v50  ;;  %9047 = vmatprep.mubr.msk.f32.mxu1 %vm217_vm0, %v10934_v49  ;;  %v6675_v30 = vld [vmem:[#allocation2 + $0x28] sm:$0xff]  ;;  %v3066_v52 = vpop.f32.mrf.mxu0  ;;  %v3261_v28 = vld [vmem:[#allocation2 + $0x160] sm:$0xff]  ;;  %v7542_v44 = vld [vmem:[%s9293_s27 + $0xf8] sm:$0xff] }
 0x1a7   : > { %v3389_v21 = vpop.f32.mrf.mxu1  ;;  %6707 = vst.msk [vmem:[%s10896_s7 + $0x28] sm:$0xff] %vm217_vm0, %v6675_v30  ;;  %3226 = vst.msk [vmem:[#allocation2 + $0x48] sm:$0xff] %vm217_vm0, %v3194_v46  ;;  %v3193_v32 = vadd.f32 %v3066_v52, %v2838_v13  ;;  %v2845_v0 = vld [vmem:[#allocation2 + $0x78] sm:$0xff]  ;;  %v7543_v30 = vld [vmem:[%s9293_s27 + $0x108] sm:$0xff] }
 0x1a8   : > { %3549 = vst.msk [vmem:[#allocation2 + $0x148] sm:$0xff] %vm217_vm0, %v3517_v36  ;;  %v3516_v63 = vadd.f32 %v3389_v21, %v3257_v4  ;;  %v6674_v48 = vld [vmem:[#allocation2 + $0x20] sm:$0xff]  ;;  %v8699_v10 = vpop.f32.mrf.mxu0  ;;  %8998 = vmatmul.mubr.msk.f32.gmra.mxu0 %vm217_vm0, %v7536_v8  ;;  %v3264_v56 = vld [vmem:[#allocation2 + $0x178] sm:$0xff]  ;;  %v11022_v52 = vld [vmem:[%s9293_s27 + $0x109] sm:$0xff] }
 0x1a9   : > { %v8749_v29 = vpop.f32.mrf.mxu1  ;;  %9048 = vmatmul.mubr.msk.f32.gmra.mxu1 %vm217_vm0, %v10953_v1  ;;  %6706 = vst.msk [vmem:[%s10896_s7 + $0x20] sm:$0xff] %vm217_vm0, %v6674_v48  ;;  %3225 = vst.msk [vmem:[#allocation2 + $0x40] sm:$0xff] %vm217_vm0, %v3193_v32  ;;  %v3196_v60 = vadd.f32 %v8699_v10, %v2841_v40  ;;  %9000 = vmatprep.mubr.msk.f32.mxu0 %vm217_vm0, %v7537_v58  ;;  %v11019_v13 = vld [vmem:[%s9293_s27 + $0xf9] sm:$0xff]  ;;  %v2844_v21 = vld [vmem:[#allocation2 + $0x70] sm:$0xff] }
 0x1aa   : > { %3548 = vst.msk [vmem:[#allocation2 + $0x140] sm:$0xff] %vm217_vm0, %v3516_v63  ;;  %v3519_v17 = vadd.f32 %v8749_v29, %v3260_v6  ;;  %9050 = vmatprep.mubr.msk.f32.mxu1 %vm217_vm0, %v10956_v34  ;;  %v6677_v33 = vld [vmem:[#allocation2 + $0x38] sm:$0xff]  ;;  %v3076_v11 = vpop.f32.mrf.mxu0  ;;  %v3263_v63 = vld [vmem:[#allocation2 + $0x170] sm:$0xff]  ;;  %v2847_v29 = vld [vmem:[#allocation2 + $0x88] sm:$0xff] }
 0x1ab   : > { %v3399_v27 = vpop.f32.mrf.mxu1  ;;  %6709 = vst.msk [vmem:[%s10896_s7 + $0x38] sm:$0xff] %vm217_vm0, %v6677_v33  ;;  %3228 = vst.msk [vmem:[#allocation2 + $0x58] sm:$0xff] %vm217_vm0, %v3196_v60  ;;  %v3195_v61 = vadd.f32 %v3076_v11, %v2840_v45  ;;  %v7544_v10 = vld [vmem:[%s9293_s27 + $0x110] sm:$0xff]  ;;  %v7545_v11 = vld [vmem:[%s9293_s27 + $0x120] sm:$0xff] }
 0x1ac   : > { %3551 = vst.msk [vmem:[#allocation2 + $0x158] sm:$0xff] %vm217_vm0, %v3519_v17  ;;  %v3518_v51 = vadd.f32 %v3399_v27, %v3259_v7  ;;  %v6676_v2 = vld [vmem:[#allocation2 + $0x30] sm:$0xff]  ;;  %v8702_v16 = vpop.f32.mrf.mxu0  ;;  %9001 = vmatmul.mubr.msk.f32.gmra.mxu0 %vm217_vm0, %v7538_v19  ;;  %v3266_v17 = vld [vmem:[#allocation2 + $0x188] sm:$0xff] }
 0x1ad   : > { %v8752_v62 = vpop.f32.mrf.mxu1  ;;  %9051 = vmatmul.mubr.msk.f32.gmra.mxu1 %vm217_vm0, %v10975_v31  ;;  %6708 = vst.msk [vmem:[%s10896_s7 + $0x30] sm:$0xff] %vm217_vm0, %v6676_v2  ;;  %3227 = vst.msk [vmem:[#allocation2 + $0x50] sm:$0xff] %vm217_vm0, %v3195_v61  ;;  %v3198_v53 = vadd.f32 %v8702_v16, %v2843_v25  ;;  %9003 = vmatprep.mubr.msk.f32.mxu0 %vm217_vm0, %v7539_v9  ;;  %v11041_v7 = vld [vmem:[%s9293_s27 + $0x111] sm:$0xff]  ;;  %v11044_v27 = vld [vmem:[%s9293_s27 + $0x121] sm:$0xff] }
 0x1ae   : > { %3550 = vst.msk [vmem:[#allocation2 + $0x150] sm:$0xff] %vm217_vm0, %v3518_v51  ;;  %v3521_v41 = vadd.f32 %v8752_v62, %v3262_v57  ;;  %9053 = vmatprep.mubr.msk.f32.mxu1 %vm217_vm0, %v10978_v5  ;;  %v6679_v55 = vld [vmem:[#allocation2 + $0x48] sm:$0xff]  ;;  %v3086_v26 = vpop.f32.mrf.mxu0  ;;  %v2846_v51 = vld [vmem:[#allocation2 + $0x80] sm:$0xff] }
 0x1af   : > { %v3409_v59 = vpop.f32.mrf.mxu1  ;;  %6711 = vst.msk [vmem:[%s10896_s7 + $0x48] sm:$0xff] %vm217_vm0, %v6679_v55  ;;  %3230 = vst.msk [vmem:[#allocation2 + $0x68] sm:$0xff] %vm217_vm0, %v3198_v53  ;;  %v3197_v38 = vadd.f32 %v3086_v26, %v2842_v54  ;;  %v3265_v2 = vld [vmem:[#allocation2 + $0x180] sm:$0xff]  ;;  %v7546_v62 = vld [vmem:[%s9293_s27 + $0x128] sm:$0xff] }
 0x1b0   : > { %3553 = vst.msk [vmem:[#allocation2 + $0x168] sm:$0xff] %vm217_vm0, %v3521_v41  ;;  %v3520_v8 = vadd.f32 %v3409_v59, %v3261_v28  ;;  %v6678_v15 = vld [vmem:[#allocation2 + $0x40] sm:$0xff]  ;;  %v8705_v50 = vpop.f32.mrf.mxu0  ;;  %9004 = vmatmul.mubr.msk.f32.gmra.mxu0 %vm217_vm0, %v7540_v47  ;;  %v2849_v41 = vld [vmem:[#allocation2 + $0x98] sm:$0xff] }
 0x1b1   : > { %v8755_v46 = vpop.f32.mrf.mxu1  ;;  %9054 = vmatmul.mubr.msk.f32.gmra.mxu1 %vm217_vm0, %v10997_v18  ;;  %6710 = vst.msk [vmem:[%s10896_s7 + $0x40] sm:$0xff] %vm217_vm0, %v6678_v15  ;;  %3229 = vst.msk [vmem:[#allocation2 + $0x60] sm:$0xff] %vm217_vm0, %v3197_v38  ;;  %v3200_v36 = vadd.f32 %v8705_v50, %v2845_v0  ;;  %9006 = vmatprep.mubr.msk.f32.mxu0 %vm217_vm0, %v7541_v43  ;;  %v3268_v55 = vld [vmem:[#allocation2 + $0x198] sm:$0xff]  ;;  %v11063_v38 = vld [vmem:[%s9293_s27 + $0x129] sm:$0xff] }
 0x1b2   : > { %3552 = vst.msk [vmem:[#allocation2 + $0x160] sm:$0xff] %vm217_vm0, %v3520_v8  ;;  %v3523_v58 = vadd.f32 %v8755_v46, %v3264_v56  ;;  %9056 = vmatprep.mubr.msk.f32.mxu1 %vm217_vm0, %v11000_v12  ;;  %v6681_v4 = vld [vmem:[#allocation2 + $0x58] sm:$0xff]  ;;  %v3096_v32 = vpop.f32.mrf.mxu0  ;;  %v2848_v15 = vld [vmem:[#allocation2 + $0x90] sm:$0xff] }
 0x1b3   : > { %v3419_v19 = vpop.f32.mrf.mxu1  ;;  %6713 = vst.msk [vmem:[%s10896_s7 + $0x58] sm:$0xff] %vm217_vm0, %v6681_v4  ;;  %3232 = vst.msk [vmem:[#allocation2 + $0x78] sm:$0xff] %vm217_vm0, %v3200_v36  ;;  %v3199_v48 = vadd.f32 %v3096_v32, %v2844_v21  ;;  %v7547_v59 = vld [vmem:[%s9293_s27 + $0x138] sm:$0xff]  ;;  %v3267_v50 = vld [vmem:[#allocation2 + $0x190] sm:$0xff] }
 0x1b4   : > { %3555 = vst.msk [vmem:[#allocation2 + $0x178] sm:$0xff] %vm217_vm0, %v3523_v58  ;;  %v3522_v40 = vadd.f32 %v3419_v19, %v3263_v63  ;;  %v6680_v6 = vld [vmem:[#allocation2 + $0x50] sm:$0xff]  ;;  %v8708_v60 = vpop.f32.mrf.mxu0  ;;  %9007 = vmatmul.mubr.msk.f32.gmra.mxu0 %vm217_vm0, %v7542_v44  ;;  %v11066_v8 = vld [vmem:[%s9293_s27 + $0x139] sm:$0xff]  ;;  %v2851_v4 = vld [vmem:[#allocation2 + $0xa8] sm:$0xff] }
 0x1b5   : > { %v8758_v9 = vpop.f32.mrf.mxu1  ;;  %9057 = vmatmul.mubr.msk.f32.gmra.mxu1 %vm217_vm0, %v11019_v13  ;;  %6712 = vst.msk [vmem:[%s10896_s7 + $0x50] sm:$0xff] %vm217_vm0, %v6680_v6  ;;  %3231 = vst.msk [vmem:[#allocation2 + $0x70] sm:$0xff] %vm217_vm0, %v3199_v48  ;;  %v3202_v33 = vadd.f32 %v8708_v60, %v2847_v29  ;;  %9009 = vmatprep.mubr.msk.f32.mxu0 %vm217_vm0, %v7543_v30  ;;  %v7548_v58 = vld [vmem:[%s9293_s27 + $0x140] sm:$0xff]  ;;  %v3270_v32 = vld [vmem:[#allocation2 + $0x1a8] sm:$0xff] }
 0x1b6   : > { %3554 = vst.msk [vmem:[#allocation2 + $0x170] sm:$0xff] %vm217_vm0, %v3522_v40  ;;  %v3525_v45 = vadd.f32 %v8758_v9, %v3266_v17  ;;  %9059 = vmatprep.mubr.msk.f32.mxu1 %vm217_vm0, %v11022_v52  ;;  %v6683_v61 = vld [vmem:[#allocation2 + $0x68] sm:$0xff]  ;;  %v3106_v47 = vpop.f32.mrf.mxu0  ;;  %v7549_v40 = vld [vmem:[%s9293_s27 + $0x150] sm:$0xff]  ;;  %v2850_v60 = vld [vmem:[#allocation2 + $0xa0] sm:$0xff] }
 0x1b7   : > { %v3429_v25 = vpop.f32.mrf.mxu1  ;;  %6715 = vst.msk [vmem:[%s10896_s7 + $0x68] sm:$0xff] %vm217_vm0, %v6683_v61  ;;  %3234 = vst.msk [vmem:[#allocation2 + $0x88] sm:$0xff] %vm217_vm0, %v3202_v33  ;;  %v3201_v16 = vadd.f32 %v3106_v47, %v2846_v51  ;;  %v11088_v6 = vld [vmem:[%s9293_s27 + $0x151] sm:$0xff]  ;;  %v3269_v9 = vld [vmem:[#allocation2 + $0x1a0] sm:$0xff] }
 0x1b8   : > { %3557 = vst.msk [vmem:[#allocation2 + $0x188] sm:$0xff] %vm217_vm0, %v3525_v45  ;;  %v3524_v57 = vadd.f32 %v3429_v25, %v3265_v2  ;;  %v6682_v53 = vld [vmem:[#allocation2 + $0x60] sm:$0xff]  ;;  %v8711_v43 = vpop.f32.mrf.mxu0  ;;  %9010 = vmatmul.mubr.msk.f32.gmra.mxu0 %vm217_vm0, %v7544_v10  ;;  %v7550_v61 = vld [vmem:[%s9293_s27 + $0x158] sm:$0xff] }
 0x1b9   : > { %v8761_v54 = vpop.f32.mrf.mxu1  ;;  %9060 = vmatmul.mubr.msk.f32.gmra.mxu1 %vm217_vm0, %v11041_v7  ;;  %6714 = vst.msk [vmem:[%s10896_s7 + $0x60] sm:$0xff] %vm217_vm0, %v6682_v53  ;;  %3233 = vst.msk [vmem:[#allocation2 + $0x80] sm:$0xff] %vm217_vm0, %v3201_v16  ;;  %v3204_v26 = vadd.f32 %v8711_v43, %v2849_v41  ;;  %9012 = vmatprep.mubr.msk.f32.mxu0 %vm217_vm0, %v7545_v11  ;;  %v11085_v10 = vld [vmem:[%s9293_s27 + $0x141] sm:$0xff]  ;;  %v2853_v47 = vld [vmem:[#allocation2 + $0xb8] sm:$0xff] }
 0x1ba   : > { %3556 = vst.msk [vmem:[#allocation2 + $0x180] sm:$0xff] %vm217_vm0, %v3524_v57  ;;  %v3527_v28 = vadd.f32 %v8761_v54, %v3268_v55  ;;  %9062 = vmatprep.mubr.msk.f32.mxu1 %vm217_vm0, %v11044_v27  ;;  %v6685_v44 = vld [vmem:[#allocation2 + $0x78] sm:$0xff]  ;;  %v3116_v0 = vpop.f32.mrf.mxu0  ;;  %v7551_v53 = vld [vmem:[%s9293_s27 + $0x168] sm:$0xff]  ;;  %v2852_v54 = vld [vmem:[#allocation2 + $0xb0] sm:$0xff] }
 0x1bb   : > { %v3439_v56 = vpop.f32.mrf.mxu1  ;;  %6717 = vst.msk [vmem:[%s10896_s7 + $0x78] sm:$0xff] %vm217_vm0, %v6685_v44  ;;  %3236 = vst.msk [vmem:[#allocation2 + $0x98] sm:$0xff] %vm217_vm0, %v3204_v26  ;;  %v3203_v46 = vadd.f32 %v3116_v0, %v2848_v15  ;;  %v3272_v25 = vld [vmem:[#allocation2 + $0x1b8] sm:$0xff]  ;;  %v11110_v43 = vld [vmem:[%s9293_s27 + $0x169] sm:$0xff] }
 0x1bc   : > { %3559 = vst.msk [vmem:[#allocation2 + $0x198] sm:$0xff] %vm217_vm0, %v3527_v28  ;;  %v3526_v36 = vadd.f32 %v3439_v56, %v3267_v50  ;;  %v6684_v30 = vld [vmem:[#allocation2 + $0x70] sm:$0xff]  ;;  %v8714_v21 = vpop.f32.mrf.mxu0  ;;  %9013 = vmatmul.mubr.msk.f32.gmra.mxu0 %vm217_vm0, %v7546_v62  ;;  %v11107_v41 = vld [vmem:[%s9293_s27 + $0x159] sm:$0xff]  ;;  %v2855_v56 = vld [vmem:[#allocation2 + $0xc8] sm:$0xff] }
 0x1bd   : > { %v8764_v63 = vpop.f32.mrf.mxu1  ;;  %9063 = vmatmul.mubr.msk.f32.gmra.mxu1 %vm217_vm0, %v11063_v38  ;;  %6716 = vst.msk [vmem:[%s10896_s7 + $0x70] sm:$0xff] %vm217_vm0, %v6684_v30  ;;  %3235 = vst.msk [vmem:[#allocation2 + $0x90] sm:$0xff] %vm217_vm0, %v3203_v46  ;;  %v3206_v19 = vadd.f32 %v8714_v21, %v2851_v4  ;;  %9015 = vmatprep.mubr.msk.f32.mxu0 %vm217_vm0, %v7547_v59  ;;  %v3271_v28 = vld [vmem:[#allocation2 + $0x1b0] sm:$0xff]  ;;  %v7553_v21 = vld [vmem:[%s9293_s27 + $0x180] sm:$0xff] }
 0x1be   : > { %3558 = vst.msk [vmem:[#allocation2 + $0x190] sm:$0xff] %vm217_vm0, %v3526_v36  ;;  %v3529_v48 = vadd.f32 %v8764_v63, %v3270_v32  ;;  %9065 = vmatprep.mubr.msk.f32.mxu1 %vm217_vm0, %v11066_v8  ;;  %v6687_v29 = vld [vmem:[#allocation2 + $0x88] sm:$0xff]  ;;  %v3126_v17 = vpop.f32.mrf.mxu0  ;;  %v7552_v0 = vld [vmem:[%s9293_s27 + $0x170] sm:$0xff] }
 0x1bf   : > { %v3449_v33 = vpop.f32.mrf.mxu1  ;;  %6719 = vst.msk [vmem:[%s10896_s7 + $0x88] sm:$0xff] %vm217_vm0, %v6687_v29  ;;  %3238 = vst.msk [vmem:[#allocation2 + $0xa8] sm:$0xff] %vm217_vm0, %v3206_v19  ;;  %v3205_v45 = vadd.f32 %v3126_v17, %v2850_v60  ;;  %v3274_v36 = vld [vmem:[#allocation2 + $0x1c8] sm:$0xff]  ;;  %v11129_v32 = vld [vmem:[%s9293_s27 + $0x171] sm:$0xff] }
 0x1c0   : > { %3561 = vst.msk [vmem:[#allocation2 + $0x1a8] sm:$0xff] %vm217_vm0, %v3529_v48  ;;  %v3528_v11 = vadd.f32 %v3449_v33, %v3269_v9  ;;  %v6686_v51 = vld [vmem:[#allocation2 + $0x80] sm:$0xff]  ;;  %v8717_v2 = vpop.f32.mrf.mxu0  ;;  %9016 = vmatmul.mubr.msk.f32.gmra.mxu0 %vm217_vm0, %v7548_v58  ;;  %v7554_v33 = vld [vmem:[%s9293_s27 + $0x188] sm:$0xff] }
 0x1c1   : > { %v8767_v16 = vpop.f32.mrf.mxu1  ;;  %9066 = vmatmul.mubr.msk.f32.gmra.mxu1 %vm217_vm0, %v11085_v10  ;;  %6718 = vst.msk [vmem:[%s10896_s7 + $0x80] sm:$0xff] %vm217_vm0, %v6686_v51  ;;  %3237 = vst.msk [vmem:[#allocation2 + $0xa0] sm:$0xff] %vm217_vm0, %v3205_v45  ;;  %v3208_v57 = vadd.f32 %v8717_v2, %v2853_v47  ;;  %9018 = vmatprep.mubr.msk.f32.mxu0 %vm217_vm0, %v7549_v40  ;;  %v11132_v63 = vld [vmem:[%s9293_s27 + $0x181] sm:$0xff]  ;;  %v3276_v51 = vld [vmem:[#allocation2 + $0x1d8] sm:$0xff] }
 0x1c2   : > { %3560 = vst.msk [vmem:[#allocation2 + $0x1a0] sm:$0xff] %vm217_vm0, %v3528_v11  ;;  %v3531_v62 = vadd.f32 %v8767_v16, %v3272_v25  ;;  %9068 = vmatprep.mubr.msk.f32.mxu1 %vm217_vm0, %v11088_v6  ;;  %v6689_v55 = vld [vmem:[#allocation2 + $0x98] sm:$0xff]  ;;  %v3136_v26 = vpop.f32.mrf.mxu0  ;;  %v2854_v48 = vld [vmem:[#allocation2 + $0xc0] sm:$0xff] }
 0x1c3   : > { %v3459_v59 = vpop.f32.mrf.mxu1  ;;  %6721 = vst.msk [vmem:[%s10896_s7 + $0x98] sm:$0xff] %vm217_vm0, %v6689_v55  ;;  %3240 = vst.msk [vmem:[#allocation2 + $0xb8] sm:$0xff] %vm217_vm0, %v3208_v57  ;;  %v3207_v44 = vadd.f32 %v3136_v26, %v2852_v54  ;;  %v3273_v29 = vld [vmem:[#allocation2 + $0x1c0] sm:$0xff]  ;;  %v2857_v11 = vld [vmem:[#allocation2 + $0xd8] sm:$0xff] }
 0x1c4   : > { %3563 = vst.msk [vmem:[#allocation2 + $0x1b8] sm:$0xff] %vm217_vm0, %v3531_v62  ;;  %v3530_v15 = vadd.f32 %v3459_v59, %v3271_v28  ;;  %v6688_v50 = vld [vmem:[#allocation2 + $0x90] sm:$0xff]  ;;  %v8720_v46 = vpop.f32.mrf.mxu0  ;;  %9019 = vmatmul.mubr.msk.f32.gmra.mxu0 %vm217_vm0, %v7550_v61  ;;  %v7555_v16 = vld [vmem:[%s9293_s27 + $0x198] sm:$0xff] }
 0x1c5   : > { %v8770_v58 = vpop.f32.mrf.mxu1  ;;  %9069 = vmatmul.mubr.msk.f32.gmra.mxu1 %vm217_vm0, %v11107_v41  ;;  %6720 = vst.msk [vmem:[%s10896_s7 + $0x90] sm:$0xff] %vm217_vm0, %v6688_v50  ;;  %3239 = vst.msk [vmem:[#allocation2 + $0xb0] sm:$0xff] %vm217_vm0, %v3207_v44  ;;  %v3210_v30 = vadd.f32 %v8720_v46, %v2855_v56  ;;  %9021 = vmatprep.mubr.msk.f32.mxu0 %vm217_vm0, %v7551_v53  ;;  %v11151_v57 = vld [vmem:[%s9293_s27 + $0x189] sm:$0xff]  ;;  %v11154_v62 = vld [vmem:[%s9293_s27 + $0x199] sm:$0xff] }
 0x1c6   : > { %3562 = vst.msk [vmem:[#allocation2 + $0x1b0] sm:$0xff] %vm217_vm0, %v3530_v15  ;;  %v3533_v4 = vadd.f32 %v8770_v58, %v3274_v36  ;;  %9071 = vmatprep.mubr.msk.f32.mxu1 %vm217_vm0, %v11110_v43  ;;  %v6691_v19 = vld [vmem:[#allocation2 + $0xa8] sm:$0xff]  ;;  %v3146_v40 = vpop.f32.mrf.mxu0  ;;  %v2856_v55 = vld [vmem:[#allocation2 + $0xd0] sm:$0xff] }
 0x1c7   : > { %v3469_v60 = vpop.f32.mrf.mxu1  ;;  %6723 = vst.msk [vmem:[%s10896_s7 + $0xa8] sm:$0xff] %vm217_vm0, %v6691_v19  ;;  %3242 = vst.msk [vmem:[#allocation2 + $0xc8] sm:$0xff] %vm217_vm0, %v3210_v30  ;;  %v3209_v17 = vadd.f32 %v3146_v40, %v2854_v48  ;;  %v3275_v26 = vld [vmem:[#allocation2 + $0x1d0] sm:$0xff]  ;;  %v3278_v56 = vld [vmem:[#allocation2 + $0x1e8] sm:$0xff] }
 0x1c8   : > { %3565 = vst.msk [vmem:[#allocation2 + $0x1c8] sm:$0xff] %vm217_vm0, %v3533_v4  ;;  %v3532_v9 = vadd.f32 %v3469_v60, %v3273_v29  ;;  %v6690_v45 = vld [vmem:[#allocation2 + $0xa0] sm:$0xff]  ;;  %v8723_v61 = vpop.f32.mrf.mxu0  ;;  %9022 = vmatmul.mubr.msk.f32.gmra.mxu0 %vm217_vm0, %v7552_v0  ;;  %v2859_v0 = vld [vmem:[#allocation2 + $0xe8] sm:$0xff] }
 0x1c9   : > { %v8773_v47 = vpop.f32.mrf.mxu1  ;;  %9072 = vmatmul.mubr.msk.f32.gmra.mxu1 %vm217_vm0, %v11129_v32  ;;  %6722 = vst.msk [vmem:[%s10896_s7 + $0xa0] sm:$0xff] %vm217_vm0, %v6690_v45  ;;  %3241 = vst.msk [vmem:[#allocation2 + $0xc0] sm:$0xff] %vm217_vm0, %v3209_v17  ;;  %v3212_v2 = vadd.f32 %v8723_v61, %v2857_v11  ;;  %9024 = vmatprep.mubr.msk.f32.mxu0 %vm217_vm0, %v7553_v21  ;;  %v7556_v30 = vld [vmem:[%s9293_s27 + $0x1a0] sm:$0xff]  ;;  %v7688_v21 = vld [vmem:[%s9293_s27 + $0x32] sm:$0xff] }
 0x1ca   : > { %3564 = vst.msk [vmem:[#allocation2 + $0x1c0] sm:$0xff] %vm217_vm0, %v3532_v9  ;;  %v3535_v25 = vadd.f32 %v8773_v47, %v3276_v51  ;;  %9074 = vmatprep.mubr.msk.f32.mxu1 %vm217_vm0, %v11132_v63  ;;  %v6693_v53 = vld [vmem:[#allocation2 + $0xb8] sm:$0xff]  ;;  %v3156_v54 = vpop.f32.mrf.mxu0  ;;  %v11172_v4 = vld [vmem:[%s9293_s27 + $0x1a1] sm:$0xff] }
 0x1cb   : > { %v3479_v28 = vpop.f32.mrf.mxu1  ;;  %6725 = vst.msk [vmem:[%s10896_s7 + $0xb8] sm:$0xff] %vm217_vm0, %v6693_v53  ;;  %3244 = vst.msk [vmem:[#allocation2 + $0xd8] sm:$0xff] %vm217_vm0, %v3212_v2  ;;  %v3211_v59 = vadd.f32 %v3156_v54, %v2856_v55  ;;  %v2858_v48 = vld [vmem:[#allocation2 + $0xe0] sm:$0xff]  ;;  %v2861_v45 = vld [vmem:[#allocation2 + $0xf8] sm:$0xff] }
 0x1cc   : > { %3567 = vst.msk [vmem:[#allocation2 + $0x1d8] sm:$0xff] %vm217_vm0, %v3535_v25  ;;  %v3534_v44 = vadd.f32 %v3479_v28, %v3275_v26  ;;  %v6692_v15 = vld [vmem:[#allocation2 + $0xb0] sm:$0xff]  ;;  %v8726_v50 = vpop.f32.mrf.mxu0  ;;  %9025 = vmatmul.mubr.msk.f32.gmra.mxu0 %vm217_vm0, %v7554_v33  ;;  %v3277_v29 = vld [vmem:[#allocation2 + $0x1e0] sm:$0xff]  ;;  %v3280_v61 = vld [vmem:[#allocation2 + $0x1f8] sm:$0xff] }
 0x1cd   : > { %v8776_v46 = vpop.f32.mrf.mxu1  ;;  %9075 = vmatmul.mubr.msk.f32.gmra.mxu1 %vm217_vm0, %v11151_v57  ;;  %6724 = vst.msk [vmem:[%s10896_s7 + $0xb0] sm:$0xff] %vm217_vm0, %v6692_v15  ;;  %3243 = vst.msk [vmem:[#allocation2 + $0xd0] sm:$0xff] %vm217_vm0, %v3211_v59  ;;  %v3214_v36 = vadd.f32 %v8726_v50, %v2859_v0  ;;  %9027 = vmatprep.mubr.msk.f32.mxu0 %vm217_vm0, %v7555_v16  ;;  %v3897_v25 = vld [vmem:[#allocation2 + $0x308] sm:$0xff]  ;;  %v7689_v16 = vld [vmem:[%s9293_s27 + $0x3a] sm:$0xff] }
 0x1ce   : > { %3566 = vst.msk [vmem:[#allocation2 + $0x1d0] sm:$0xff] %vm217_vm0, %v3534_v44  ;;  %v3537_v58 = vadd.f32 %v8776_v46, %v3278_v56  ;;  %9077 = vmatprep.mubr.msk.f32.mxu1 %vm217_vm0, %v11154_v62  ;;  %v6695_v19 = vld [vmem:[#allocation2 + $0xc8] sm:$0xff]  ;;  %v3166_v40 = vpop.f32.mrf.mxu0  ;;  %v2860_v54 = vld [vmem:[#allocation2 + $0xf0] sm:$0xff]  ;;  %v3896_v46 = vld [vmem:[#allocation2 + $0x300] sm:$0xff] }
 0x1cf   : > { %v3489_v60 = vpop.f32.mrf.mxu1  ;;  %6727 = vst.msk [vmem:[%s10896_s7 + $0xc8] sm:$0xff] %vm217_vm0, %v6695_v19  ;;  %3246 = vst.msk [vmem:[#allocation2 + $0xe8] sm:$0xff] %vm217_vm0, %v3214_v36  ;;  %v3213_v17 = vadd.f32 %v3166_v40, %v2858_v48  ;;  %v7690_v53 = vld [vmem:[%s9293_s27 + $0x4a] sm:$0xff]  ;;  %v3572_v19 = vld [vmem:[#allocation2 + $0x200] sm:$0xff] }
 0x1d0   : > { %3569 = vst.msk [vmem:[#allocation2 + $0x1e8] sm:$0xff] %vm217_vm0, %v3537_v58  ;;  %v3536_v9 = vadd.f32 %v3489_v60, %v3277_v29  ;;  %v6694_v33 = vld [vmem:[#allocation2 + $0xc0] sm:$0xff]  ;;  %v8729_v11 = vpop.f32.mrf.mxu0  ;;  %9028 = vmatmul.mubr.msk.f32.gmra.mxu0 %vm217_vm0, %v7556_v30  ;;  %v3279_v28 = vld [vmem:[#allocation2 + $0x1f0] sm:$0xff]  ;;  %v3573_v0 = vld [vmem:[#allocation2 + $0x208] sm:$0xff] }
 0x1d1   : > { %v8779_v51 = vpop.f32.mrf.mxu1  ;;  %9078 = vmatmul.mubr.msk.f32.gmra.mxu1 %vm217_vm0, %v11172_v4  ;;  %6726 = vst.msk [vmem:[%s10896_s7 + $0xc0] sm:$0xff] %vm217_vm0, %v6694_v33  ;;  %3245 = vst.msk [vmem:[#allocation2 + $0xe0] sm:$0xff] %vm217_vm0, %v3213_v17  ;;  %v3216_v47 = vadd.f32 %v8729_v11, %v2861_v45  ;;  %9082 = vmatprep.mubr.msk.f32.mxu0 %vm217_vm0, %v10833_v37  ;;  %v3899_v30 = vld [vmem:[#allocation2 + $0x318] sm:$0xff]  ;;  %v7692_v29 = vld [vmem:[%s9293_s27 + $0x62] sm:$0xff] }
 0x1d2   : > { %3568 = vst.msk [vmem:[#allocation2 + $0x1e0] sm:$0xff] %vm217_vm0, %v3536_v9  ;;  %v3539_v2 = vadd.f32 %v8779_v51, %v3280_v61  ;;  %9132 = vmatprep.mubr.msk.f32.mxu1 %vm217_vm0, %v7688_v21  ;;  %v6697_v55 = vld [vmem:[#allocation2 + $0xd8] sm:$0xff]  ;;  %v3176_v26 = vpop.f32.mrf.mxu0  ;;  %v3898_v11 = vld [vmem:[#allocation2 + $0x310] sm:$0xff] }
 0x1d3   : > { %v3499_v59 = vpop.f32.mrf.mxu1  ;;  %6729 = vst.msk [vmem:[%s10896_s7 + $0xd8] sm:$0xff] %vm217_vm0, %v6697_v55  ;;  %3248 = vst.msk [vmem:[#allocation2 + $0xf8] sm:$0xff] %vm217_vm0, %v3216_v47  ;;  %v3215_v44 = vadd.f32 %v3176_v26, %v2860_v54  ;;  %v3575_v9 = vld [vmem:[#allocation2 + $0x218] sm:$0xff]  ;;  %v3901_v47 = vld [vmem:[#allocation2 + $0x328] sm:$0xff] }
 0x1d4   : > { %3571 = vst.msk [vmem:[#allocation2 + $0x1f8] sm:$0xff] %vm217_vm0, %v3539_v2  ;;  %v3538_v15 = vadd.f32 %v3499_v59, %v3279_v28  ;;  %v6696_v37 = vld [vmem:[#allocation2 + $0xd0] sm:$0xff]  ;;  %v8784_v50 = vpop.f32.mrf.mxu0  ;;  %9083 = vmatmul.mubr.msk.f32.vlgmr.msra.gmra.mxu0 %vm217_vm0, %v10846_v14  ;;  %v7694_v55 = vld [vmem:[%s9293_s27 + $0x7a] sm:$0xff]  ;;  %v3577_v28 = vld [vmem:[#allocation2 + $0x228] sm:$0xff] }
 0x1d5   : > { %v8834_v56 = vpop.f32.mrf.mxu1  ;;  %9133 = vmatmul.mubr.msk.f32.vlgmr.msra.gmra.mxu1 %vm217_vm0, %v7689_v16  ;;  %6728 = vst.msk [vmem:[%s10896_s7 + $0xd0] sm:$0xff] %vm217_vm0, %v6696_v37  ;;  %3247 = vst.msk [vmem:[#allocation2 + $0xf0] sm:$0xff] %vm217_vm0, %v3215_v44  ;;  %v3832_v36 = vadd.f32 %v8784_v50, %v3573_v0  ;;  %9085 = vmatprep.mubr.msk.f32.mxu0 %vm217_vm0, %v10852_v24  ;;  %v7691_v14 = vld [vmem:[%s9293_s27 + $0x52] sm:$0xff]  ;;  %v7695_v50 = vld [vmem:[%s9293_s27 + $0x82] sm:$0xff] }
 0x1d6   : > { %3570 = vst.msk [vmem:[#allocation2 + $0x1f0] sm:$0xff] %vm217_vm0, %v3538_v15  ;;  %v4156_v58 = vadd.f32 %v8834_v56, %v3897_v25  ;;  %9135 = vmatprep.mubr.msk.f32.mxu1 %vm217_vm0, %v7690_v53  ;;  %v6699_v21 = vld [vmem:[#allocation2 + $0xe8] sm:$0xff]  ;;  %v3672_v48 = vpop.f32.mrf.mxu0  ;;  %v3574_v25 = vld [vmem:[#allocation2 + $0x210] sm:$0xff]  ;;  %v3900_v15 = vld [vmem:[#allocation2 + $0x320] sm:$0xff] }
 0x1d7   : > { %v3996_v40 = vpop.f32.mrf.mxu1  ;;  %6731 = vst.msk [vmem:[%s10896_s7 + $0xe8] sm:$0xff] %vm217_vm0, %v6699_v21  ;;  %3864 = vst.msk [vmem:[#allocation2 + $0x208] sm:$0xff] %vm217_vm0, %v3832_v36  ;;  %v3831_v60 = vadd.f32 %v3672_v48, %v3572_v19  ;;  %v3576_v56 = vld [vmem:[#allocation2 + $0x220] sm:$0xff]  ;;  %v3903_v36 = vld [vmem:[#allocation2 + $0x338] sm:$0xff] }
 0x1d8   : > { %4188 = vst.msk [vmem:[#allocation2 + $0x308] sm:$0xff] %vm217_vm0, %v4156_v58  ;;  %v4155_v17 = vadd.f32 %v3996_v40, %v3896_v46  ;;  %v6698_v24 = vld [vmem:[#allocation2 + $0xe0] sm:$0xff]  ;;  %v8787_v33 = vpop.f32.mrf.mxu0  ;;  %9086 = vmatmul.mubr.msk.f32.gmra.mxu0 %vm217_vm0, %v10864_v20  ;;  %v7693_v20 = vld [vmem:[%s9293_s27 + $0x6a] sm:$0xff]  ;;  %v7696_v58 = vld [vmem:[%s9293_s27 + $0x92] sm:$0xff] }
 0x1d9   : > { %v8837_v45 = vpop.f32.mrf.mxu1  ;;  %9136 = vmatmul.mubr.msk.f32.gmra.mxu1 %vm217_vm0, %v7691_v14  ;;  %6730 = vst.msk [vmem:[%s10896_s7 + $0xe0] sm:$0xff] %vm217_vm0, %v6698_v24  ;;  %3863 = vst.msk [vmem:[#allocation2 + $0x200] sm:$0xff] %vm217_vm0, %v3831_v60  ;;  %v3834_v61 = vadd.f32 %v8787_v33, %v3575_v9  ;;  %9088 = vmatprep.mubr.msk.f32.mxu0 %vm217_vm0, %v10870_v22  ;;  %v3579_v21 = vld [vmem:[#allocation2 + $0x238] sm:$0xff]  ;;  %v3905_v33 = vld [vmem:[#allocation2 + $0x348] sm:$0xff] }
 0x1da   : > { %4187 = vst.msk [vmem:[#allocation2 + $0x300] sm:$0xff] %vm217_vm0, %v4155_v17  ;;  %v4158_v51 = vadd.f32 %v8837_v45, %v3899_v30  ;;  %9138 = vmatprep.mubr.msk.f32.mxu1 %vm217_vm0, %v7692_v29  ;;  %v6701_v2 = vld [vmem:[#allocation2 + $0xf8] sm:$0xff]  ;;  %v3682_v16 = vpop.f32.mrf.mxu0  ;;  %v3578_v17 = vld [vmem:[#allocation2 + $0x230] sm:$0xff] }
 0x1db   : > { %v4006_v53 = vpop.f32.mrf.mxu1  ;;  %6733 = vst.msk [vmem:[%s10896_s7 + $0xf8] sm:$0xff] %vm217_vm0, %v6701_v2  ;;  %3866 = vst.msk [vmem:[#allocation2 + $0x218] sm:$0xff] %vm217_vm0, %v3834_v61  ;;  %v3833_v54 = vadd.f32 %v3682_v16, %v3574_v25  ;;  %v7697_v60 = vld [vmem:[%s9293_s27 + $0x9a] sm:$0xff]  ;;  %v3581_v61 = vld [vmem:[#allocation2 + $0x248] sm:$0xff] }
 0x1dc   : > { %4190 = vst.msk [vmem:[#allocation2 + $0x318] sm:$0xff] %vm217_vm0, %v4158_v51  ;;  %v4157_v26 = vadd.f32 %v4006_v53, %v3898_v11  ;;  %v6700_v22 = vld [vmem:[#allocation2 + $0xf0] sm:$0xff]  ;;  %v8790_v59 = vpop.f32.mrf.mxu0  ;;  %9089 = vmatmul.mubr.msk.f32.gmra.mxu0 %vm217_vm0, %v10886_v23  ;;  %v3580_v16 = vld [vmem:[#allocation2 + $0x240] sm:$0xff] }
 0x1dd   : > { %v8840_v44 = vpop.f32.mrf.mxu1  ;;  %9139 = vmatmul.mubr.msk.f32.gmra.mxu1 %vm217_vm0, %v7693_v20  ;;  %6732 = vst.msk [vmem:[%s10896_s7 + $0xf0] sm:$0xff] %vm217_vm0, %v6700_v22  ;;  %3865 = vst.msk [vmem:[#allocation2 + $0x210] sm:$0xff] %vm217_vm0, %v3833_v54  ;;  %v3836_v37 = vadd.f32 %v8790_v59, %v3577_v28  ;;  %9091 = vmatprep.mubr.msk.f32.mxu0 %vm217_vm0, %v10889_v3  ;;  %v3902_v3 = vld [vmem:[#allocation2 + $0x330] sm:$0xff]  ;;  %v3907_v54 = vld [vmem:[#allocation2 + $0x358] sm:$0xff] }
 0x1de   : > { %4189 = vst.msk [vmem:[#allocation2 + $0x310] sm:$0xff] %vm217_vm0, %v4157_v26  ;;  %v4160_v0 = vadd.f32 %v8840_v44, %v3901_v47  ;;  %9141 = vmatprep.mubr.msk.f32.mxu1 %vm217_vm0, %v7694_v55  ;;  %v3692_v46 = vpop.f32.mrf.mxu0  ;;  %v7699_v25 = vld [vmem:[%s9293_s27 + $0xb2] sm:$0xff] }
 0x1df   : > { %v4016_v23 = vpop.f32.mrf.mxu1  ;;  %3868 = vst.msk [vmem:[#allocation2 + $0x228] sm:$0xff] %vm217_vm0, %v3836_v37  ;;  %v3835_v30 = vadd.f32 %v3692_v46, %v3576_v56  ;;  %v3583_v28 = vld [vmem:[#allocation2 + $0x258] sm:$0xff] }
 0x1e0   : > { %4192 = vst.msk [vmem:[#allocation2 + $0x328] sm:$0xff] %vm217_vm0, %v4160_v0  ;;  %v4159_v14 = vadd.f32 %v4016_v23, %v3900_v15  ;;  %v8793_v19 = vpop.f32.mrf.mxu0  ;;  %9092 = vmatmul.mubr.msk.f32.gmra.mxu0 %vm217_vm0, %v10909_v35  ;;  %v7698_v35 = vld [vmem:[%s9293_s27 + $0xaa] sm:$0xff] }
 0x1e1   : > { %v8843_v48 = vpop.f32.mrf.mxu1  ;;  %9142 = vmatmul.mubr.msk.f32.gmra.mxu1 %vm217_vm0, %v7695_v50  ;;  %3867 = vst.msk [vmem:[#allocation2 + $0x220] sm:$0xff] %vm217_vm0, %v3835_v30  ;;  %v3838_v40 = vadd.f32 %v8793_v19, %v3579_v21  ;;  %9094 = vmatprep.mubr.msk.f32.mxu0 %vm217_vm0, %v10912_v39  ;;  %v3904_v39 = vld [vmem:[#allocation2 + $0x340] sm:$0xff]  ;;  %v7701_v0 = vld [vmem:[%s9293_s27 + $0xca] sm:$0xff] }
 0x1e2   : > { %4191 = vst.msk [vmem:[#allocation2 + $0x320] sm:$0xff] %vm217_vm0, %v4159_v14  ;;  %v4162_v29 = vadd.f32 %v8843_v48, %v3903_v36  ;;  %9144 = vmatprep.mubr.msk.f32.mxu1 %vm217_vm0, %v7696_v58  ;;  %v3702_v24 = vpop.f32.mrf.mxu0  ;;  %v3582_v50 = vld [vmem:[#allocation2 + $0x250] sm:$0xff]  ;;  %v3909_v23 = vld [vmem:[#allocation2 + $0x368] sm:$0xff] }
 0x1e3   : > { %v4026_v9 = vpop.f32.mrf.mxu1  ;;  %3870 = vst.msk [vmem:[#allocation2 + $0x238] sm:$0xff] %vm217_vm0, %v3838_v40  ;;  %v3837_v45 = vadd.f32 %v3702_v24, %v3578_v17  ;;  %v3585_v30 = vld [vmem:[#allocation2 + $0x268] sm:$0xff]  ;;  %v3584_v40 = vld [vmem:[#allocation2 + $0x260] sm:$0xff]  ;;  %v3911_v17 = vld [vmem:[#allocation2 + $0x378] sm:$0xff] }
 0x1e4   : > { %4194 = vst.msk [vmem:[#allocation2 + $0x338] sm:$0xff] %vm217_vm0, %v4162_v29  ;;  %v4161_v11 = vadd.f32 %v4026_v9, %v3902_v3  ;;  %v8796_v51 = vpop.f32.mrf.mxu0  ;;  %9095 = vmatmul.mubr.msk.f32.gmra.mxu0 %vm217_vm0, %v10931_v42  ;;  %v7700_v42 = vld [vmem:[%s9293_s27 + $0xc2] sm:$0xff] }
 0x1e5   : > { %v8846_v47 = vpop.f32.mrf.mxu1  ;;  %9145 = vmatmul.mubr.msk.f32.gmra.mxu1 %vm217_vm0, %v7697_v60  ;;  %3869 = vst.msk [vmem:[#allocation2 + $0x230] sm:$0xff] %vm217_vm0, %v3837_v45  ;;  %v3840_v20 = vadd.f32 %v8796_v51, %v3581_v61  ;;  %9097 = vmatprep.mubr.msk.f32.mxu0 %vm217_vm0, %v10934_v49  ;;  %v3906_v49 = vld [vmem:[#allocation2 + $0x350] sm:$0xff]  ;;  %v7703_v3 = vld [vmem:[%s9293_s27 + $0xe2] sm:$0xff]  ;;  %v7705_v51 = vld [vmem:[%s9293_s27 + $0xfa] sm:$0xff] }
 0x1e6   : > { %4193 = vst.msk [vmem:[#allocation2 + $0x330] sm:$0xff] %vm217_vm0, %v4161_v11  ;;  %v4164_v2 = vadd.f32 %v8846_v47, %v3905_v33  ;;  %9147 = vmatprep.mubr.msk.f32.mxu1 %vm217_vm0, %v7698_v35  ;;  %v3712_v53 = vpop.f32.mrf.mxu0  ;;  %v3587_v33 = vld [vmem:[#allocation2 + $0x278] sm:$0xff]  ;;  %v3586_v47 = vld [vmem:[#allocation2 + $0x270] sm:$0xff] }
 0x1e7   : > { %v4036_v55 = vpop.f32.mrf.mxu1  ;;  %3872 = vst.msk [vmem:[#allocation2 + $0x248] sm:$0xff] %vm217_vm0, %v3840_v20  ;;  %v3839_v26 = vadd.f32 %v3712_v53, %v3580_v16  ;;  %v3589_v53 = vld [vmem:[#allocation2 + $0x288] sm:$0xff] }
 0x1e8   : > { %4196 = vst.msk [vmem:[#allocation2 + $0x348] sm:$0xff] %vm217_vm0, %v4164_v2  ;;  %v4163_v22 = vadd.f32 %v4036_v55, %v3904_v39  ;;  %v8799_v59 = vpop.f32.mrf.mxu0  ;;  %9098 = vmatmul.mubr.msk.f32.gmra.mxu0 %vm217_vm0, %v10953_v1  ;;  %v7702_v1 = vld [vmem:[%s9293_s27 + $0xda] sm:$0xff]  ;;  %v3913_v2 = vld [vmem:[#allocation2 + $0x388] sm:$0xff] }
 0x1e9   : > { %v8849_v44 = vpop.f32.mrf.mxu1  ;;  %9148 = vmatmul.mubr.msk.f32.gmra.mxu1 %vm217_vm0, %v7699_v25  ;;  %3871 = vst.msk [vmem:[#allocation2 + $0x240] sm:$0xff] %vm217_vm0, %v3839_v26  ;;  %v3842_v15 = vadd.f32 %v8799_v59, %v3583_v28  ;;  %9100 = vmatprep.mubr.msk.f32.mxu0 %vm217_vm0, %v10956_v34  ;;  %v3908_v34 = vld [vmem:[#allocation2 + $0x360] sm:$0xff] }
 0x1ea   : > { %4195 = vst.msk [vmem:[#allocation2 + $0x340] sm:$0xff] %vm217_vm0, %v4163_v22  ;;  %v4166_v37 = vadd.f32 %v8849_v44, %v3907_v54  ;;  %9150 = vmatprep.mubr.msk.f32.mxu1 %vm217_vm0, %v7700_v42  ;;  %v3722_v56 = vpop.f32.mrf.mxu0  ;;  %v7707_v22 = vld [vmem:[%s9293_s27 + $0x112] sm:$0xff]  ;;  %v3588_v28 = vld [vmem:[#allocation2 + $0x280] sm:$0xff] }
 0x1eb   : > { %v4046_v46 = vpop.f32.mrf.mxu1  ;;  %3874 = vst.msk [vmem:[#allocation2 + $0x258] sm:$0xff] %vm217_vm0, %v3842_v15  ;;  %v3841_v36 = vadd.f32 %v3722_v56, %v3582_v50 }
 0x1ec   : > { %4198 = vst.msk [vmem:[#allocation2 + $0x358] sm:$0xff] %vm217_vm0, %v4166_v37  ;;  %v4165_v58 = vadd.f32 %v4046_v46, %v3906_v49  ;;  %v8802_v14 = vpop.f32.mrf.mxu0  ;;  %9101 = vmatmul.mubr.msk.f32.gmra.mxu0 %vm217_vm0, %v10975_v31  ;;  %v7704_v31 = vld [vmem:[%s9293_s27 + $0xf2] sm:$0xff] }
 0x1ed   : > { %v8852_v21 = vpop.f32.mrf.mxu1  ;;  %9151 = vmatmul.mubr.msk.f32.gmra.mxu1 %vm217_vm0, %v7701_v0  ;;  %3873 = vst.msk [vmem:[#allocation2 + $0x250] sm:$0xff] %vm217_vm0, %v3841_v36  ;;  %v3844_v19 = vadd.f32 %v8802_v14, %v3585_v30  ;;  %9103 = vmatprep.mubr.msk.f32.mxu0 %vm217_vm0, %v10978_v5  ;;  %v3910_v5 = vld [vmem:[#allocation2 + $0x370] sm:$0xff]  ;;  %v3915_v49 = vld [vmem:[#allocation2 + $0x398] sm:$0xff]  ;;  %v3917_v14 = vld [vmem:[#allocation2 + $0x3a8] sm:$0xff] }
 0x1ee   : > { %4197 = vst.msk [vmem:[#allocation2 + $0x350] sm:$0xff] %vm217_vm0, %v4165_v58  ;;  %v4168_v48 = vadd.f32 %v8852_v21, %v3909_v23  ;;  %9153 = vmatprep.mubr.msk.f32.mxu1 %vm217_vm0, %v7702_v1  ;;  %v3732_v29 = vpop.f32.mrf.mxu0  ;;  %v3591_v0 = vld [vmem:[#allocation2 + $0x298] sm:$0xff]  ;;  %v7709_v1 = vld [vmem:[%s9293_s27 + $0x12a] sm:$0xff] }
 0x1ef   : > { %v4056_v60 = vpop.f32.mrf.mxu1  ;;  %3876 = vst.msk [vmem:[#allocation2 + $0x268] sm:$0xff] %vm217_vm0, %v3844_v19  ;;  %v3843_v24 = vadd.f32 %v3732_v29, %v3584_v40  ;;  %v3590_v36 = vld [vmem:[#allocation2 + $0x290] sm:$0xff]  ;;  %v3593_v19 = vld [vmem:[#allocation2 + $0x2a8] sm:$0xff] }
 0x1f0   : > { %4200 = vst.msk [vmem:[#allocation2 + $0x368] sm:$0xff] %vm217_vm0, %v4168_v48  ;;  %v4167_v9 = vadd.f32 %v4056_v60, %v3908_v34  ;;  %v8805_v35 = vpop.f32.mrf.mxu0  ;;  %9104 = vmatmul.mubr.msk.f32.gmra.mxu0 %vm217_vm0, %v10997_v18  ;;  %v7706_v18 = vld [vmem:[%s9293_s27 + $0x10a] sm:$0xff]  ;;  %v7711_v60 = vld [vmem:[%s9293_s27 + $0x142] sm:$0xff] }
 0x1f1   : > { %v8855_v45 = vpop.f32.mrf.mxu1  ;;  %9154 = vmatmul.mubr.msk.f32.gmra.mxu1 %vm217_vm0, %v7703_v3  ;;  %3875 = vst.msk [vmem:[#allocation2 + $0x260] sm:$0xff] %vm217_vm0, %v3843_v24  ;;  %v3846_v11 = vadd.f32 %v8805_v35, %v3587_v33  ;;  %9106 = vmatprep.mubr.msk.f32.mxu0 %vm217_vm0, %v11000_v12  ;;  %v3912_v12 = vld [vmem:[#allocation2 + $0x380] sm:$0xff] }
 0x1f2   : > { %4199 = vst.msk [vmem:[#allocation2 + $0x360] sm:$0xff] %vm217_vm0, %v4167_v9  ;;  %v4170_v61 = vadd.f32 %v8855_v45, %v3911_v17  ;;  %9156 = vmatprep.mubr.msk.f32.mxu1 %vm217_vm0, %v7704_v31  ;;  %v3742_v39 = vpop.f32.mrf.mxu0  ;;  %v3592_v17 = vld [vmem:[#allocation2 + $0x2a0] sm:$0xff]  ;;  %v3919_v9 = vld [vmem:[#allocation2 + $0x3b8] sm:$0xff] }
 0x1f3   : > { %v4066_v20 = vpop.f32.mrf.mxu1  ;;  %3878 = vst.msk [vmem:[#allocation2 + $0x278] sm:$0xff] %vm217_vm0, %v3846_v11  ;;  %v3845_v25 = vadd.f32 %v3742_v39, %v3586_v47  ;;  %v3595_v45 = vld [vmem:[#allocation2 + $0x2b8] sm:$0xff]  ;;  %v3594_v39 = vld [vmem:[#allocation2 + $0x2b0] sm:$0xff] }
 0x1f4   : > { %4202 = vst.msk [vmem:[#allocation2 + $0x378] sm:$0xff] %vm217_vm0, %v4170_v61  ;;  %v4169_v16 = vadd.f32 %v4066_v20, %v3910_v5  ;;  %v8808_v55 = vpop.f32.mrf.mxu0  ;;  %9107 = vmatmul.mubr.msk.f32.gmra.mxu0 %vm217_vm0, %v11019_v13  ;;  %v7708_v13 = vld [vmem:[%s9293_s27 + $0x122] sm:$0xff]  ;;  %v7713_v47 = vld [vmem:[%s9293_s27 + $0x15a] sm:$0xff] }
 0x1f5   : > { %v8858_v54 = vpop.f32.mrf.mxu1  ;;  %9157 = vmatmul.mubr.msk.f32.gmra.mxu1 %vm217_vm0, %v7705_v51  ;;  %3877 = vst.msk [vmem:[#allocation2 + $0x270] sm:$0xff] %vm217_vm0, %v3845_v25  ;;  %v3848_v42 = vadd.f32 %v8808_v55, %v3589_v53  ;;  %9109 = vmatprep.mubr.msk.f32.mxu0 %vm217_vm0, %v11022_v52  ;;  %v3914_v52 = vld [vmem:[#allocation2 + $0x390] sm:$0xff]  ;;  %v3597_v53 = vld [vmem:[#allocation2 + $0x2c8] sm:$0xff] }
 0x1f6   : > { %4201 = vst.msk [vmem:[#allocation2 + $0x370] sm:$0xff] %vm217_vm0, %v4169_v16  ;;  %v4172_v26 = vadd.f32 %v8858_v54, %v3913_v2  ;;  %9159 = vmatprep.mubr.msk.f32.mxu1 %vm217_vm0, %v7706_v18  ;;  %v3752_v59 = vpop.f32.mrf.mxu0  ;;  %v3921_v18 = vld [vmem:[#allocation2 + $0x3c8] sm:$0xff] }
 0x1f7   : > { %v4076_v44 = vpop.f32.mrf.mxu1  ;;  %3880 = vst.msk [vmem:[#allocation2 + $0x288] sm:$0xff] %vm217_vm0, %v3848_v42  ;;  %v3847_v15 = vadd.f32 %v3752_v59, %v3588_v28 }
 0x1f8   : > { %4204 = vst.msk [vmem:[#allocation2 + $0x388] sm:$0xff] %vm217_vm0, %v4172_v26  ;;  %v4171_v37 = vadd.f32 %v4076_v44, %v3912_v12  ;;  %v8811_v50 = vpop.f32.mrf.mxu0  ;;  %9110 = vmatmul.mubr.msk.f32.gmra.mxu0 %vm217_vm0, %v11041_v7  ;;  %v7710_v7 = vld [vmem:[%s9293_s27 + $0x13a] sm:$0xff]  ;;  %v7715_v26 = vld [vmem:[%s9293_s27 + $0x172] sm:$0xff] }
 0x1f9   : > { %v8861_v56 = vpop.f32.mrf.mxu1  ;;  %9160 = vmatmul.mubr.msk.f32.gmra.mxu1 %vm217_vm0, %v7707_v22  ;;  %3879 = vst.msk [vmem:[#allocation2 + $0x280] sm:$0xff] %vm217_vm0, %v3847_v15  ;;  %v3850_v46 = vadd.f32 %v8811_v50, %v3591_v0  ;;  %9112 = vmatprep.mubr.msk.f32.mxu0 %vm217_vm0, %v11044_v27  ;;  %v3916_v27 = vld [vmem:[#allocation2 + $0x3a0] sm:$0xff]  ;;  %v3923_v44 = vld [vmem:[#allocation2 + $0x3d8] sm:$0xff] }
 0x1fa   : > { %4203 = vst.msk [vmem:[#allocation2 + $0x380] sm:$0xff] %vm217_vm0, %v4171_v37  ;;  %v4174_v23 = vadd.f32 %v8861_v56, %v3915_v49  ;;  %9162 = vmatprep.mubr.msk.f32.mxu1 %vm217_vm0, %v7708_v13  ;;  %v3762_v58 = vpop.f32.mrf.mxu0  ;;  %v3596_v22 = vld [vmem:[#allocation2 + $0x2c0] sm:$0xff]  ;;  %v3599_v15 = vld [vmem:[#allocation2 + $0x2d8] sm:$0xff] }
 0x1fb   : > { %v4086_v30 = vpop.f32.mrf.mxu1  ;;  %3882 = vst.msk [vmem:[#allocation2 + $0x298] sm:$0xff] %vm217_vm0, %v3850_v46  ;;  %v3849_v21 = vadd.f32 %v3762_v58, %v3590_v36  ;;  %v3598_v46 = vld [vmem:[#allocation2 + $0x2d0] sm:$0xff]  ;;  %v3925_v36 = vld [vmem:[#allocation2 + $0x3e8] sm:$0xff] }
 0x1fc   : > { %4206 = vst.msk [vmem:[#allocation2 + $0x398] sm:$0xff] %vm217_vm0, %v4174_v23  ;;  %v4173_v34 = vadd.f32 %v4086_v30, %v3914_v52  ;;  %v8814_v48 = vpop.f32.mrf.mxu0  ;;  %9113 = vmatmul.mubr.msk.f32.gmra.mxu0 %vm217_vm0, %v11063_v38  ;;  %v7712_v38 = vld [vmem:[%s9293_s27 + $0x152] sm:$0xff]  ;;  %v7717_v52 = vld [vmem:[%s9293_s27 + $0x18a] sm:$0xff] }
 0x1fd   : > { %v8864_v3 = vpop.f32.mrf.mxu1  ;;  %9163 = vmatmul.mubr.msk.f32.gmra.mxu1 %vm217_vm0, %v7709_v1  ;;  %3881 = vst.msk [vmem:[#allocation2 + $0x290] sm:$0xff] %vm217_vm0, %v3849_v21  ;;  %v3852_v40 = vadd.f32 %v8814_v48, %v3593_v19  ;;  %9115 = vmatprep.mubr.msk.f32.mxu0 %vm217_vm0, %v11066_v8  ;;  %v3918_v8 = vld [vmem:[#allocation2 + $0x3b0] sm:$0xff]  ;;  %v7719_v48 = vld [vmem:[%s9293_s27 + $0x1a2] sm:$0xff] }
 0x1fe   : > { %4205 = vst.msk [vmem:[#allocation2 + $0x390] sm:$0xff] %vm217_vm0, %v4173_v34  ;;  %v4176_v29 = vadd.f32 %v8864_v3, %v3917_v14  ;;  %9165 = vmatprep.mubr.msk.f32.mxu1 %vm217_vm0, %v7710_v7  ;;  %v3772_v31 = vpop.f32.mrf.mxu0  ;;  %v3601_v14 = vld [vmem:[#allocation2 + $0x2e8] sm:$0xff]  ;;  %v3600_v3 = vld [vmem:[#allocation2 + $0x2e0] sm:$0xff] }
 0x1ff   : > { %v4096_v24 = vpop.f32.mrf.mxu1  ;;  %3884 = vst.msk [vmem:[#allocation2 + $0x2a8] sm:$0xff] %vm217_vm0, %v3852_v40  ;;  %v3851_v33 = vadd.f32 %v3772_v31, %v3592_v17  ;;  %v3603_v17 = vld [vmem:[#allocation2 + $0x2f8] sm:$0xff] }
 0x200   : > { %4208 = vst.msk [vmem:[#allocation2 + $0x3a8] sm:$0xff] %vm217_vm0, %v4176_v29  ;;  %v4175_v35 = vadd.f32 %v4096_v24, %v3916_v27  ;;  %v8817_v5 = vpop.f32.mrf.mxu0  ;;  %9116 = vmatmul.mubr.msk.f32.gmra.mxu0 %vm217_vm0, %v11085_v10  ;;  %v7714_v10 = vld [vmem:[%s9293_s27 + $0x16a] sm:$0xff]  ;;  %v3927_v29 = vld [vmem:[#allocation2 + $0x3f8] sm:$0xff] }
 0x201   : > { %v8867_v11 = vpop.f32.mrf.mxu1  ;;  %9166 = vmatmul.mubr.msk.f32.gmra.mxu1 %vm217_vm0, %v7711_v60  ;;  %3883 = vst.msk [vmem:[#allocation2 + $0x2a0] sm:$0xff] %vm217_vm0, %v3851_v33  ;;  %v3854_v61 = vadd.f32 %v8817_v5, %v3595_v45  ;;  %9118 = vmatprep.mubr.msk.f32.mxu0 %vm217_vm0, %v11088_v6  ;;  %v3920_v6 = vld [vmem:[#allocation2 + $0x3c0] sm:$0xff]  ;;  %v3602_v33 = vld [vmem:[#allocation2 + $0x2f0] sm:$0xff] }
 0x202   : > { %4207 = vst.msk [vmem:[#allocation2 + $0x3a0] sm:$0xff] %vm217_vm0, %v4175_v35  ;;  %v4178_v51 = vadd.f32 %v8867_v11, %v3919_v9  ;;  %9168 = vmatprep.mubr.msk.f32.mxu1 %vm217_vm0, %v7712_v38  ;;  %v3782_v20 = vpop.f32.mrf.mxu0 }
 0x203   : > { %v4106_v2 = vpop.f32.mrf.mxu1  ;;  %3886 = vst.msk [vmem:[#allocation2 + $0x2b8] sm:$0xff] %vm217_vm0, %v3854_v61  ;;  %v3853_v25 = vadd.f32 %v3782_v20, %v3594_v39  ;;  %v4671_v61 = vld [vmem:[#allocation2 + $0x308] sm:$0xff]  ;;  %v4251_v20 = vld [vmem:[#allocation2 + $0x100] sm:$0xff] }
 0x204   : > { %4210 = vst.msk [vmem:[#allocation2 + $0x3b8] sm:$0xff] %vm217_vm0, %v4178_v51  ;;  %v4177_v16 = vadd.f32 %v4106_v2, %v3918_v8  ;;  %v8820_v55 = vpop.f32.mrf.mxu0  ;;  %9119 = vmatmul.mubr.msk.f32.gmra.mxu0 %vm217_vm0, %v11107_v41  ;;  %v7716_v41 = vld [vmem:[%s9293_s27 + $0x182] sm:$0xff] }
 0x205   : > { %v8870_v54 = vpop.f32.mrf.mxu1  ;;  %9169 = vmatmul.mubr.msk.f32.gmra.mxu1 %vm217_vm0, %v7713_v47  ;;  %3885 = vst.msk [vmem:[#allocation2 + $0x2b0] sm:$0xff] %vm217_vm0, %v3853_v25  ;;  %v3856_v12 = vadd.f32 %v8820_v55, %v3597_v53  ;;  %9121 = vmatprep.mubr.msk.f32.mxu0 %vm217_vm0, %v11110_v43  ;;  %v3922_v43 = vld [vmem:[#allocation2 + $0x3d0] sm:$0xff]  ;;  %v4252_v8 = vld [vmem:[#allocation2 + $0x108] sm:$0xff]  ;;  %v4254_v53 = vld [vmem:[#allocation2 + $0x118] sm:$0xff] }
 0x206   : > { %4209 = vst.msk [vmem:[#allocation2 + $0x3b0] sm:$0xff] %vm217_vm0, %v4177_v16  ;;  %v4180_v42 = vadd.f32 %v8870_v54, %v3921_v18  ;;  %9171 = vmatprep.mubr.msk.f32.mxu1 %vm217_vm0, %v7714_v10  ;;  %v3792_v28 = vpop.f32.mrf.mxu0  ;;  %v4670_v18 = vld [vmem:[#allocation2 + $0x300] sm:$0xff]  ;;  %v4673_v54 = vld [vmem:[#allocation2 + $0x318] sm:$0xff] }
 0x207   : > { %v4116_v59 = vpop.f32.mrf.mxu1  ;;  %3888 = vst.msk [vmem:[#allocation2 + $0x2c8] sm:$0xff] %vm217_vm0, %v3856_v12  ;;  %v3855_v49 = vadd.f32 %v3792_v28, %v3596_v22  ;;  %v4672_v28 = vld [vmem:[#allocation2 + $0x310] sm:$0xff] }
 0x208   : > { %4212 = vst.msk [vmem:[#allocation2 + $0x3c8] sm:$0xff] %vm217_vm0, %v4180_v42  ;;  %v4179_v13 = vadd.f32 %v4116_v59, %v3920_v6  ;;  %v8823_v37 = vpop.f32.mrf.mxu0  ;;  %9122 = vmatmul.mubr.msk.f32.gmra.mxu0 %vm217_vm0, %v11129_v32  ;;  %v7718_v32 = vld [vmem:[%s9293_s27 + $0x19a] sm:$0xff] }
 0x209   : > { %v8873_v0 = vpop.f32.mrf.mxu1  ;;  %9172 = vmatmul.mubr.msk.f32.gmra.mxu1 %vm217_vm0, %v7715_v26  ;;  %3887 = vst.msk [vmem:[#allocation2 + $0x2c0] sm:$0xff] %vm217_vm0, %v3855_v49  ;;  %v3858_v50 = vadd.f32 %v8823_v37, %v3599_v15  ;;  %9124 = vmatprep.mubr.msk.f32.mxu0 %vm217_vm0, %v11132_v63  ;;  %v3924_v63 = vld [vmem:[#allocation2 + $0x3e0] sm:$0xff]  ;;  %v4253_v26 = vld [vmem:[#allocation2 + $0x110] sm:$0xff]  ;;  %v4256_v49 = vld [vmem:[#allocation2 + $0x128] sm:$0xff] }
 0x20a   : > { %4211 = vst.msk [vmem:[#allocation2 + $0x3c0] sm:$0xff] %vm217_vm0, %v4179_v13  ;;  %v4182_v56 = vadd.f32 %v8873_v0, %v3923_v44  ;;  %9174 = vmatprep.mubr.msk.f32.mxu1 %vm217_vm0, %v7716_v41  ;;  %v3802_v23 = vpop.f32.mrf.mxu0  ;;  %v4675_v15 = vld [vmem:[#allocation2 + $0x328] sm:$0xff] }
 0x20b   : > { %v4126_v1 = vpop.f32.mrf.mxu1  ;;  %3890 = vst.msk [vmem:[#allocation2 + $0x2d8] sm:$0xff] %vm217_vm0, %v3858_v50  ;;  %v3857_v58 = vadd.f32 %v3802_v23, %v3598_v46  ;;  %v4674_v46 = vld [vmem:[#allocation2 + $0x320] sm:$0xff] }
 0x20c   : > { %4214 = vst.msk [vmem:[#allocation2 + $0x3d8] sm:$0xff] %vm217_vm0, %v4182_v56  ;;  %v4181_v30 = vadd.f32 %v4126_v1, %v3922_v43  ;;  %v8826_v7 = vpop.f32.mrf.mxu0  ;;  %9125 = vmatmul.mubr.msk.f32.gmra.mxu0 %vm217_vm0, %v11151_v57  ;;  %v4255_v56 = vld [vmem:[#allocation2 + $0x120] sm:$0xff] }
 0x20d   : > { %v8876_v21 = vpop.f32.mrf.mxu1  ;;  %9175 = vmatmul.mubr.msk.f32.gmra.mxu1 %vm217_vm0, %v7717_v52  ;;  %3889 = vst.msk [vmem:[#allocation2 + $0x2d0] sm:$0xff] %vm217_vm0, %v3857_v58  ;;  %v3860_v34 = vadd.f32 %v8826_v7, %v3601_v14  ;;  %9127 = vmatprep.mubr.msk.f32.mxu0 %vm217_vm0, %v11154_v62  ;;  %v3926_v62 = vld [vmem:[#allocation2 + $0x3f0] sm:$0xff]  ;;  %v4258_v58 = vld [vmem:[#allocation2 + $0x138] sm:$0xff] }
 0x20e   : > { %4213 = vst.msk [vmem:[#allocation2 + $0x3d0] sm:$0xff] %vm217_vm0, %v4181_v30  ;;  %v4184_v19 = vadd.f32 %v8876_v21, %v3925_v36  ;;  %9177 = vmatprep.mubr.msk.f32.mxu1 %vm217_vm0, %v7718_v32  ;;  %v3812_v27 = vpop.f32.mrf.mxu0  ;;  %v4677_v14 = vld [vmem:[#allocation2 + $0x338] sm:$0xff] }
 0x20f   : > { %v4136_v40 = vpop.f32.mrf.mxu1  ;;  %3892 = vst.msk [vmem:[#allocation2 + $0x2e8] sm:$0xff] %vm217_vm0, %v3860_v34  ;;  %v3859_v57 = vadd.f32 %v3812_v27, %v3600_v3  ;;  %v4676_v3 = vld [vmem:[#allocation2 + $0x330] sm:$0xff] }
 0x210   : > { %4216 = vst.msk [vmem:[#allocation2 + $0x3e8] sm:$0xff] %vm217_vm0, %v4184_v19  ;;  %v4183_v60 = vadd.f32 %v4136_v40, %v3924_v63  ;;  %v8829_v31 = vpop.f32.mrf.mxu0  ;;  %9128 = vmatmul.mubr.msk.f32.gmra.mxu0 %vm217_vm0, %v11172_v4  ;;  %v4257_v19 = vld [vmem:[#allocation2 + $0x130] sm:$0xff] }
 0x211   : > { %v8879_v24 = vpop.f32.mrf.mxu1  ;;  %9178 = vmatmul.mubr.msk.f32.gmra.mxu1 %vm217_vm0, %v7719_v48  ;;  %3891 = vst.msk [vmem:[#allocation2 + $0x2e0] sm:$0xff] %vm217_vm0, %v3859_v57  ;;  %v3862_v9 = vadd.f32 %v8829_v31, %v3603_v17  ;;  %v4679_v31 = vld [vmem:[#allocation2 + $0x348] sm:$0xff] }
 0x212   : > { %4215 = vst.msk [vmem:[#allocation2 + $0x3e0] sm:$0xff] %vm217_vm0, %v4183_v60  ;;  %v4186_v38 = vadd.f32 %v8879_v24, %v3927_v29  ;;  %v3822_v35 = vpop.f32.mrf.mxu0  ;;  %v4260_v60 = vld [vmem:[#allocation2 + $0x148] sm:$0xff] }
 0x213   : > { %v4146_v45 = vpop.f32.mrf.mxu1  ;;  %3894 = vst.msk [vmem:[#allocation2 + $0x2f8] sm:$0xff] %vm217_vm0, %v3862_v9  ;;  %v3861_v5 = vadd.f32 %v3822_v35, %v3602_v33  ;;  %v4259_v33 = vld [vmem:[#allocation2 + $0x140] sm:$0xff] }
 0x214   : > { %4218 = vst.msk [vmem:[#allocation2 + $0x3f8] sm:$0xff] %vm217_vm0, %v4186_v38  ;;  %v4185_v11 = vadd.f32 %v4146_v45, %v3926_v62  ;;  %v8884_v4 = vpop.f32.mrf.mxu0  ;;  %v4678_v45 = vld [vmem:[#allocation2 + $0x340] sm:$0xff] }
 0x215   : > { %v8934_v51 = vpop.f32.mrf.mxu1  ;;  %3893 = vst.msk [vmem:[#allocation2 + $0x2f0] sm:$0xff] %vm217_vm0, %v3861_v5  ;;  %v4607_v47 = vadd.f32 %v8884_v4, %v4252_v8 }
 0x216   : > { %4217 = vst.msk [vmem:[#allocation2 + $0x3f0] sm:$0xff] %vm217_vm0, %v4185_v11  ;;  %v4930_v39 = vadd.f32 %v8934_v51, %v4671_v61  ;;  %v4447_v2 = vpop.f32.mrf.mxu0  ;;  %v4262_v61 = vld [vmem:[#allocation2 + $0x158] sm:$0xff] }
 0x217   : > { %v4770_v10 = vpop.f32.mrf.mxu1  ;;  %4639 = vst.msk [vmem:[#allocation2 + $0x108] sm:$0xff] %vm217_vm0, %v4607_v47  ;;  %v4606_v25 = vadd.f32 %v4447_v2, %v4251_v20  ;;  %v4681_v47 = vld [vmem:[#allocation2 + $0x358] sm:$0xff] }
 0x218   : > { %4962 = vst.msk [vmem:[#allocation2 + $0x308] sm:$0xff] %vm217_vm0, %v4930_v39  ;;  %v4929_v16 = vadd.f32 %v4770_v10, %v4670_v18  ;;  %v8887_v55 = vpop.f32.mrf.mxu0  ;;  %v4261_v10 = vld [vmem:[#allocation2 + $0x150] sm:$0xff] }
 0x219   : > { %v8937_v6 = vpop.f32.mrf.mxu1  ;;  %4638 = vst.msk [vmem:[#allocation2 + $0x100] sm:$0xff] %vm217_vm0, %v4606_v25  ;;  %v4609_v12 = vadd.f32 %v8887_v55, %v4254_v53 }
 0x21a   : > { %4961 = vst.msk [vmem:[#allocation2 + $0x300] sm:$0xff] %vm217_vm0, %v4929_v16  ;;  %v4932_v42 = vadd.f32 %v8937_v6, %v4673_v54  ;;  %v4457_v22 = vpop.f32.mrf.mxu0  ;;  %v4680_v16 = vld [vmem:[#allocation2 + $0x350] sm:$0xff] }
 0x21b   : > { %v4780_v59 = vpop.f32.mrf.mxu1  ;;  %4641 = vst.msk [vmem:[#allocation2 + $0x118] sm:$0xff] %vm217_vm0, %v4609_v12  ;;  %v4608_v44 = vadd.f32 %v4457_v22, %v4253_v26  ;;  %v4264_v12 = vld [vmem:[#allocation2 + $0x168] sm:$0xff] }
 0x21c   : > { %4964 = vst.msk [vmem:[#allocation2 + $0x318] sm:$0xff] %vm217_vm0, %v4932_v42  ;;  %v4931_v41 = vadd.f32 %v4780_v59, %v4672_v28  ;;  %v8890_v13 = vpop.f32.mrf.mxu0  ;;  %v4683_v26 = vld [vmem:[#allocation2 + $0x368] sm:$0xff] }
 0x21d   : > { %v8940_v37 = vpop.f32.mrf.mxu1  ;;  %4640 = vst.msk [vmem:[#allocation2 + $0x110] sm:$0xff] %vm217_vm0, %v4608_v44  ;;  %v4611_v0 = vadd.f32 %v8890_v13, %v4256_v49  ;;  %v4682_v13 = vld [vmem:[#allocation2 + $0x360] sm:$0xff] }
 0x21e   : > { %4963 = vst.msk [vmem:[#allocation2 + $0x310] sm:$0xff] %vm217_vm0, %v4931_v41  ;;  %v4934_v43 = vadd.f32 %v8940_v37, %v4675_v15  ;;  %v6735_v50 = vld [vmem:[#allocation2 + $0x108] sm:$0xff]  ;;  %v4467_v52 = vpop.f32.mrf.mxu0  ;;  %v4263_v41 = vld [vmem:[#allocation2 + $0x160] sm:$0xff] }
 0x21f   : > { %v4790_v23 = vpop.f32.mrf.mxu1  ;;  %7754 = vst.msk [vmem:[%s10896_s7 + $0x108] sm:$0xff] %vm217_vm0, %v6735_v50  ;;  %4643 = vst.msk [vmem:[#allocation2 + $0x128] sm:$0xff] %vm217_vm0, %v4611_v0  ;;  %v4610_v1 = vadd.f32 %v4467_v52, %v4255_v56  ;;  %v4266_v50 = vld [vmem:[#allocation2 + $0x178] sm:$0xff] }
 0x220   : > { %4966 = vst.msk [vmem:[#allocation2 + $0x328] sm:$0xff] %vm217_vm0, %v4934_v43  ;;  %v4933_v36 = vadd.f32 %v4790_v23, %v4674_v46  ;;  %v6734_v32 = vld [vmem:[#allocation2 + $0x100] sm:$0xff]  ;;  %v8893_v30 = vpop.f32.mrf.mxu0  ;;  %v4685_v52 = vld [vmem:[#allocation2 + $0x378] sm:$0xff] }
 0x221   : > { %v8943_v7 = vpop.f32.mrf.mxu1  ;;  %7753 = vst.msk [vmem:[%s10896_s7 + $0x100] sm:$0xff] %vm217_vm0, %v6734_v32  ;;  %4642 = vst.msk [vmem:[#allocation2 + $0x120] sm:$0xff] %vm217_vm0, %v4610_v1  ;;  %v4613_v21 = vadd.f32 %v8893_v30, %v4258_v58  ;;  %v4265_v32 = vld [vmem:[#allocation2 + $0x170] sm:$0xff] }
 0x222   : > { %4965 = vst.msk [vmem:[#allocation2 + $0x320] sm:$0xff] %vm217_vm0, %v4933_v36  ;;  %v4936_v63 = vadd.f32 %v8943_v7, %v4677_v14  ;;  %v6737_v34 = vld [vmem:[#allocation2 + $0x118] sm:$0xff]  ;;  %v4477_v48 = vpop.f32.mrf.mxu0  ;;  %v4684_v30 = vld [vmem:[#allocation2 + $0x370] sm:$0xff] }
 0x223   : > { %v4800_v27 = vpop.f32.mrf.mxu1  ;;  %7756 = vst.msk [vmem:[%s10896_s7 + $0x118] sm:$0xff] %vm217_vm0, %v6737_v34  ;;  %4645 = vst.msk [vmem:[#allocation2 + $0x138] sm:$0xff] %vm217_vm0, %v4613_v21  ;;  %v4612_v40 = vadd.f32 %v4477_v48, %v4257_v19  ;;  %v4268_v34 = vld [vmem:[#allocation2 + $0x188] sm:$0xff] }
 0x224   : > { %4968 = vst.msk [vmem:[#allocation2 + $0x338] sm:$0xff] %vm217_vm0, %v4936_v63  ;;  %v4935_v29 = vadd.f32 %v4800_v27, %v4676_v3  ;;  %v6736_v57 = vld [vmem:[#allocation2 + $0x110] sm:$0xff]  ;;  %v8896_v17 = vpop.f32.mrf.mxu0  ;;  %v4687_v48 = vld [vmem:[#allocation2 + $0x388] sm:$0xff] }
 0x225   : > { %v8946_v24 = vpop.f32.mrf.mxu1  ;;  %7755 = vst.msk [vmem:[%s10896_s7 + $0x110] sm:$0xff] %vm217_vm0, %v6736_v57  ;;  %4644 = vst.msk [vmem:[#allocation2 + $0x130] sm:$0xff] %vm217_vm0, %v4612_v40  ;;  %v4615_v62 = vadd.f32 %v8896_v17, %v4260_v60  ;;  %v4267_v57 = vld [vmem:[#allocation2 + $0x180] sm:$0xff] }
 0x226   : > { %4967 = vst.msk [vmem:[#allocation2 + $0x330] sm:$0xff] %vm217_vm0, %v4935_v29  ;;  %v4938_v9 = vadd.f32 %v8946_v24, %v4679_v31  ;;  %v6739_v38 = vld [vmem:[#allocation2 + $0x128] sm:$0xff]  ;;  %v4487_v35 = vpop.f32.mrf.mxu0  ;;  %v4686_v17 = vld [vmem:[#allocation2 + $0x380] sm:$0xff] }
 0x227   : > { %v4810_v5 = vpop.f32.mrf.mxu1  ;;  %7758 = vst.msk [vmem:[%s10896_s7 + $0x128] sm:$0xff] %vm217_vm0, %v6739_v38  ;;  %4647 = vst.msk [vmem:[#allocation2 + $0x148] sm:$0xff] %vm217_vm0, %v4615_v62  ;;  %v4614_v11 = vadd.f32 %v4487_v35, %v4259_v33  ;;  %v4270_v38 = vld [vmem:[#allocation2 + $0x198] sm:$0xff] }
 0x228   : > { %4970 = vst.msk [vmem:[#allocation2 + $0x348] sm:$0xff] %vm217_vm0, %v4938_v9  ;;  %v4937_v8 = vadd.f32 %v4810_v5, %v4678_v45  ;;  %v6738_v4 = vld [vmem:[#allocation2 + $0x120] sm:$0xff]  ;;  %v8899_v51 = vpop.f32.mrf.mxu0  ;;  %v4689_v35 = vld [vmem:[#allocation2 + $0x398] sm:$0xff] }
 0x229   : > { %v8949_v39 = vpop.f32.mrf.mxu1  ;;  %7757 = vst.msk [vmem:[%s10896_s7 + $0x120] sm:$0xff] %vm217_vm0, %v6738_v4  ;;  %4646 = vst.msk [vmem:[#allocation2 + $0x140] sm:$0xff] %vm217_vm0, %v4614_v11  ;;  %v4617_v20 = vadd.f32 %v8899_v51, %v4262_v61  ;;  %v4269_v4 = vld [vmem:[#allocation2 + $0x190] sm:$0xff] }
 0x22a   : > { %4969 = vst.msk [vmem:[#allocation2 + $0x340] sm:$0xff] %vm217_vm0, %v4937_v8  ;;  %v4940_v2 = vadd.f32 %v8949_v39, %v4681_v47  ;;  %v6741_v18 = vld [vmem:[#allocation2 + $0x138] sm:$0xff]  ;;  %v4497_v25 = vpop.f32.mrf.mxu0  ;;  %v4688_v51 = vld [vmem:[#allocation2 + $0x390] sm:$0xff] }
 0x22b   : > { %v4820_v53 = vpop.f32.mrf.mxu1  ;;  %7760 = vst.msk [vmem:[%s10896_s7 + $0x138] sm:$0xff] %vm217_vm0, %v6741_v18  ;;  %4649 = vst.msk [vmem:[#allocation2 + $0x158] sm:$0xff] %vm217_vm0, %v4617_v20  ;;  %v4616_v55 = vadd.f32 %v4497_v25, %v4261_v10  ;;  %v4272_v18 = vld [vmem:[#allocation2 + $0x1a8] sm:$0xff] }
 0x22c   : > { %4972 = vst.msk [vmem:[#allocation2 + $0x358] sm:$0xff] %vm217_vm0, %v4940_v2  ;;  %v4939_v54 = vadd.f32 %v4820_v53, %v4680_v16  ;;  %v6740_v6 = vld [vmem:[#allocation2 + $0x130] sm:$0xff]  ;;  %v8902_v42 = vpop.f32.mrf.mxu0  ;;  %v4691_v25 = vld [vmem:[#allocation2 + $0x3a8] sm:$0xff] }
 0x22d   : > { %v8952_v22 = vpop.f32.mrf.mxu1  ;;  %7759 = vst.msk [vmem:[%s10896_s7 + $0x130] sm:$0xff] %vm217_vm0, %v6740_v6  ;;  %4648 = vst.msk [vmem:[#allocation2 + $0x150] sm:$0xff] %vm217_vm0, %v4616_v55  ;;  %v4619_v28 = vadd.f32 %v8902_v42, %v4264_v12  ;;  %v4271_v6 = vld [vmem:[#allocation2 + $0x1a0] sm:$0xff] }
 0x22e   : > { %4971 = vst.msk [vmem:[#allocation2 + $0x350] sm:$0xff] %vm217_vm0, %v4939_v54  ;;  %v4942_v59 = vadd.f32 %v8952_v22, %v4683_v26  ;;  %v6743_v44 = vld [vmem:[#allocation2 + $0x148] sm:$0xff]  ;;  %v4507_v49 = vpop.f32.mrf.mxu0  ;;  %v4690_v42 = vld [vmem:[#allocation2 + $0x3a0] sm:$0xff] }
 0x22f   : > { %v4830_v15 = vpop.f32.mrf.mxu1  ;;  %7762 = vst.msk [vmem:[%s10896_s7 + $0x148] sm:$0xff] %vm217_vm0, %v6743_v44  ;;  %4651 = vst.msk [vmem:[#allocation2 + $0x168] sm:$0xff] %vm217_vm0, %v4619_v28  ;;  %v4618_v37 = vadd.f32 %v4507_v49, %v4263_v41  ;;  %v4274_v44 = vld [vmem:[#allocation2 + $0x1b8] sm:$0xff] }
 0x230   : > { %4974 = vst.msk [vmem:[#allocation2 + $0x368] sm:$0xff] %vm217_vm0, %v4942_v59  ;;  %v4941_v0 = vadd.f32 %v4830_v15, %v4682_v13  ;;  %v6742_v43 = vld [vmem:[#allocation2 + $0x140] sm:$0xff]  ;;  %v8905_v56 = vpop.f32.mrf.mxu0  ;;  %v4693_v49 = vld [vmem:[#allocation2 + $0x3b8] sm:$0xff] }
 0x231   : > { %v8955_v46 = vpop.f32.mrf.mxu1  ;;  %7761 = vst.msk [vmem:[%s10896_s7 + $0x140] sm:$0xff] %vm217_vm0, %v6742_v43  ;;  %4650 = vst.msk [vmem:[#allocation2 + $0x160] sm:$0xff] %vm217_vm0, %v4618_v37  ;;  %v4621_v23 = vadd.f32 %v8905_v56, %v4266_v50  ;;  %v4273_v43 = vld [vmem:[#allocation2 + $0x1b0] sm:$0xff] }
 0x232   : > { %4973 = vst.msk [vmem:[#allocation2 + $0x360] sm:$0xff] %vm217_vm0, %v4941_v0  ;;  %v4944_v1 = vadd.f32 %v8955_v46, %v4685_v52  ;;  %v6745_v36 = vld [vmem:[#allocation2 + $0x158] sm:$0xff]  ;;  %v4517_v58 = vpop.f32.mrf.mxu0  ;;  %v4692_v56 = vld [vmem:[#allocation2 + $0x3b0] sm:$0xff] }
 0x233   : > { %v4840_v14 = vpop.f32.mrf.mxu1  ;;  %7764 = vst.msk [vmem:[%s10896_s7 + $0x158] sm:$0xff] %vm217_vm0, %v6745_v36  ;;  %4653 = vst.msk [vmem:[#allocation2 + $0x178] sm:$0xff] %vm217_vm0, %v4621_v23  ;;  %v4620_v7 = vadd.f32 %v4517_v58, %v4265_v32  ;;  %v4276_v36 = vld [vmem:[#allocation2 + $0x1c8] sm:$0xff] }
 0x234   : > { %4976 = vst.msk [vmem:[#allocation2 + $0x378] sm:$0xff] %vm217_vm0, %v4944_v1  ;;  %v4943_v21 = vadd.f32 %v4840_v14, %v4684_v30  ;;  %v6744_v63 = vld [vmem:[#allocation2 + $0x150] sm:$0xff]  ;;  %v8908_v19 = vpop.f32.mrf.mxu0  ;;  %v4695_v58 = vld [vmem:[#allocation2 + $0x3c8] sm:$0xff] }
 0x235   : > { %v8958_v3 = vpop.f32.mrf.mxu1  ;;  %7763 = vst.msk [vmem:[%s10896_s7 + $0x150] sm:$0xff] %vm217_vm0, %v6744_v63  ;;  %4652 = vst.msk [vmem:[#allocation2 + $0x170] sm:$0xff] %vm217_vm0, %v4620_v7  ;;  %v4623_v27 = vadd.f32 %v8908_v19, %v4268_v34  ;;  %v4275_v63 = vld [vmem:[#allocation2 + $0x1c0] sm:$0xff] }
 0x236   : > { %4975 = vst.msk [vmem:[#allocation2 + $0x370] sm:$0xff] %vm217_vm0, %v4943_v21  ;;  %v4946_v40 = vadd.f32 %v8958_v3, %v4687_v48  ;;  %v6747_v29 = vld [vmem:[#allocation2 + $0x168] sm:$0xff]  ;;  %v4527_v60 = vpop.f32.mrf.mxu0  ;;  %v4694_v19 = vld [vmem:[#allocation2 + $0x3c0] sm:$0xff] }
 0x237   : > { %v4850_v31 = vpop.f32.mrf.mxu1  ;;  %7766 = vst.msk [vmem:[%s10896_s7 + $0x168] sm:$0xff] %vm217_vm0, %v6747_v29  ;;  %4655 = vst.msk [vmem:[#allocation2 + $0x188] sm:$0xff] %vm217_vm0, %v4623_v27  ;;  %v4622_v24 = vadd.f32 %v4527_v60, %v4267_v57  ;;  %v4278_v29 = vld [vmem:[#allocation2 + $0x1d8] sm:$0xff] }
 0x238   : > { %4978 = vst.msk [vmem:[#allocation2 + $0x388] sm:$0xff] %vm217_vm0, %v4946_v40  ;;  %v4945_v62 = vadd.f32 %v4850_v31, %v4686_v17  ;;  %v6746_v9 = vld [vmem:[#allocation2 + $0x160] sm:$0xff]  ;;  %v8911_v33 = vpop.f32.mrf.mxu0  ;;  %v4697_v60 = vld [vmem:[#allocation2 + $0x3d8] sm:$0xff] }
 0x239   : > { %v8961_v45 = vpop.f32.mrf.mxu1  ;;  %7765 = vst.msk [vmem:[%s10896_s7 + $0x160] sm:$0xff] %vm217_vm0, %v6746_v9  ;;  %4654 = vst.msk [vmem:[#allocation2 + $0x180] sm:$0xff] %vm217_vm0, %v4622_v24  ;;  %v4625_v5 = vadd.f32 %v8911_v33, %v4270_v38  ;;  %v4277_v9 = vld [vmem:[#allocation2 + $0x1d0] sm:$0xff] }
 0x23a   : > { %4977 = vst.msk [vmem:[#allocation2 + $0x380] sm:$0xff] %vm217_vm0, %v4945_v62  ;;  %v4948_v11 = vadd.f32 %v8961_v45, %v4689_v35  ;;  %v6749_v8 = vld [vmem:[#allocation2 + $0x178] sm:$0xff]  ;;  %v4537_v61 = vpop.f32.mrf.mxu0  ;;  %v4696_v33 = vld [vmem:[#allocation2 + $0x3d0] sm:$0xff] }
 0x23b   : > { %v4860_v47 = vpop.f32.mrf.mxu1  ;;  %7768 = vst.msk [vmem:[%s10896_s7 + $0x178] sm:$0xff] %vm217_vm0, %v6749_v8  ;;  %4657 = vst.msk [vmem:[#allocation2 + $0x198] sm:$0xff] %vm217_vm0, %v4625_v5  ;;  %v4624_v39 = vadd.f32 %v4537_v61, %v4269_v4  ;;  %v4280_v8 = vld [vmem:[#allocation2 + $0x1e8] sm:$0xff] }
 0x23c   : > { %4980 = vst.msk [vmem:[#allocation2 + $0x398] sm:$0xff] %vm217_vm0, %v4948_v11  ;;  %v4947_v20 = vadd.f32 %v4860_v47, %v4688_v51  ;;  %v6748_v2 = vld [vmem:[#allocation2 + $0x170] sm:$0xff]  ;;  %v8914_v10 = vpop.f32.mrf.mxu0  ;;  %v4699_v61 = vld [vmem:[#allocation2 + $0x3e8] sm:$0xff] }
 0x23d   : > { %v8964_v16 = vpop.f32.mrf.mxu1  ;;  %7767 = vst.msk [vmem:[%s10896_s7 + $0x170] sm:$0xff] %vm217_vm0, %v6748_v2  ;;  %4656 = vst.msk [vmem:[#allocation2 + $0x190] sm:$0xff] %vm217_vm0, %v4624_v39  ;;  %v4627_v53 = vadd.f32 %v8914_v10, %v4272_v18  ;;  %v4279_v2 = vld [vmem:[#allocation2 + $0x1e0] sm:$0xff] }
 0x23e   : > { %4979 = vst.msk [vmem:[#allocation2 + $0x390] sm:$0xff] %vm217_vm0, %v4947_v20  ;;  %v4950_v55 = vadd.f32 %v8964_v16, %v4691_v25  ;;  %v6751_v54 = vld [vmem:[#allocation2 + $0x188] sm:$0xff]  ;;  %v4547_v12 = vpop.f32.mrf.mxu0  ;;  %v4698_v10 = vld [vmem:[#allocation2 + $0x3e0] sm:$0xff] }
 0x23f   : > { %v4870_v26 = vpop.f32.mrf.mxu1  ;;  %7770 = vst.msk [vmem:[%s10896_s7 + $0x188] sm:$0xff] %vm217_vm0, %v6751_v54  ;;  %4659 = vst.msk [vmem:[#allocation2 + $0x1a8] sm:$0xff] %vm217_vm0, %v4627_v53  ;;  %v4626_v22 = vadd.f32 %v4547_v12, %v4271_v6  ;;  %v4282_v54 = vld [vmem:[#allocation2 + $0x1f8] sm:$0xff] }
 0x240   : > { %4982 = vst.msk [vmem:[#allocation2 + $0x3a8] sm:$0xff] %vm217_vm0, %v4950_v55  ;;  %v4949_v28 = vadd.f32 %v4870_v26, %v4690_v42  ;;  %v6750_v59 = vld [vmem:[#allocation2 + $0x180] sm:$0xff]  ;;  %v8917_v41 = vpop.f32.mrf.mxu0  ;;  %v4701_v12 = vld [vmem:[#allocation2 + $0x3f8] sm:$0xff] }
 0x241   : > { %v8967_v13 = vpop.f32.mrf.mxu1  ;;  %7769 = vst.msk [vmem:[%s10896_s7 + $0x180] sm:$0xff] %vm217_vm0, %v6750_v59  ;;  %4658 = vst.msk [vmem:[#allocation2 + $0x1a0] sm:$0xff] %vm217_vm0, %v4626_v22  ;;  %v4629_v15 = vadd.f32 %v8917_v41, %v4274_v44  ;;  %v4281_v59 = vld [vmem:[#allocation2 + $0x1f0] sm:$0xff] }
 0x242   : > { %4981 = vst.msk [vmem:[#allocation2 + $0x3a0] sm:$0xff] %vm217_vm0, %v4949_v28  ;;  %v4952_v37 = vadd.f32 %v8967_v13, %v4693_v49  ;;  %v6753_v0 = vld [vmem:[#allocation2 + $0x198] sm:$0xff]  ;;  %v4557_v50 = vpop.f32.mrf.mxu0  ;;  %v4700_v41 = vld [vmem:[#allocation2 + $0x3f0] sm:$0xff] }
 0x243   : > { %v4880_v52 = vpop.f32.mrf.mxu1  ;;  %7772 = vst.msk [vmem:[%s10896_s7 + $0x198] sm:$0xff] %vm217_vm0, %v6753_v0  ;;  %4661 = vst.msk [vmem:[#allocation2 + $0x1b8] sm:$0xff] %vm217_vm0, %v4629_v15  ;;  %v4628_v46 = vadd.f32 %v4557_v50, %v4273_v43  ;;  %v5027_v0 = vld [vmem:[#allocation2 + $0x208] sm:$0xff] }
 0x244   : > { %4984 = vst.msk [vmem:[#allocation2 + $0x3b8] sm:$0xff] %vm217_vm0, %v4952_v37  ;;  %v4951_v23 = vadd.f32 %v4880_v52, %v4692_v56  ;;  %v6752_v1 = vld [vmem:[#allocation2 + $0x190] sm:$0xff]  ;;  %v8920_v32 = vpop.f32.mrf.mxu0 }
 0x245   : > { %v8970_v30 = vpop.f32.mrf.mxu1  ;;  %7771 = vst.msk [vmem:[%s10896_s7 + $0x190] sm:$0xff] %vm217_vm0, %v6752_v1  ;;  %4660 = vst.msk [vmem:[#allocation2 + $0x1b0] sm:$0xff] %vm217_vm0, %v4628_v46  ;;  %v4631_v14 = vadd.f32 %v8920_v32, %v4276_v36  ;;  %v5026_v46 = vld [vmem:[#allocation2 + $0x200] sm:$0xff] }
 0x246   : > { %4983 = vst.msk [vmem:[#allocation2 + $0x3b0] sm:$0xff] %vm217_vm0, %v4951_v23  ;;  %v4954_v7 = vadd.f32 %v8970_v30, %v4695_v58  ;;  %v6755_v21 = vld [vmem:[#allocation2 + $0x1a8] sm:$0xff]  ;;  %v4567_v34 = vpop.f32.mrf.mxu0  ;;  %v5029_v58 = vld [vmem:[#allocation2 + $0x218] sm:$0xff] }
 0x247   : > { %v4890_v48 = vpop.f32.mrf.mxu1  ;;  %7774 = vst.msk [vmem:[%s10896_s7 + $0x1a8] sm:$0xff] %vm217_vm0, %v6755_v21  ;;  %4663 = vst.msk [vmem:[#allocation2 + $0x1c8] sm:$0xff] %vm217_vm0, %v4631_v14  ;;  %v4630_v3 = vadd.f32 %v4567_v34, %v4275_v63  ;;  %v5028_v63 = vld [vmem:[#allocation2 + $0x210] sm:$0xff] }
 0x248   : > { %4986 = vst.msk [vmem:[#allocation2 + $0x3c8] sm:$0xff] %vm217_vm0, %v4954_v7  ;;  %v4953_v27 = vadd.f32 %v4890_v48, %v4694_v19  ;;  %v6754_v40 = vld [vmem:[#allocation2 + $0x1a0] sm:$0xff]  ;;  %v8923_v57 = vpop.f32.mrf.mxu0 }
 0x249   : > { %v8973_v17 = vpop.f32.mrf.mxu1  ;;  %7773 = vst.msk [vmem:[%s10896_s7 + $0x1a0] sm:$0xff] %vm217_vm0, %v6754_v40  ;;  %4662 = vst.msk [vmem:[#allocation2 + $0x1c0] sm:$0xff] %vm217_vm0, %v4630_v3  ;;  %v4633_v31 = vadd.f32 %v8923_v57, %v4278_v29 }
 0x24a   : > { %4985 = vst.msk [vmem:[#allocation2 + $0x3c0] sm:$0xff] %vm217_vm0, %v4953_v27  ;;  %v4956_v24 = vadd.f32 %v8973_v17, %v4697_v60  ;;  %v6757_v62 = vld [vmem:[#allocation2 + $0x1b8] sm:$0xff]  ;;  %v4577_v38 = vpop.f32.mrf.mxu0  ;;  %v5031_v27 = vld [vmem:[#allocation2 + $0x228] sm:$0xff]  ;;  %v5030_v17 = vld [vmem:[#allocation2 + $0x220] sm:$0xff] }
 0x24b   : > { %v4900_v35 = vpop.f32.mrf.mxu1  ;;  %7776 = vst.msk [vmem:[%s10896_s7 + $0x1b8] sm:$0xff] %vm217_vm0, %v6757_v62  ;;  %4665 = vst.msk [vmem:[#allocation2 + $0x1d8] sm:$0xff] %vm217_vm0, %v4633_v31  ;;  %v4632_v45 = vadd.f32 %v4577_v38, %v4277_v9 }
 0x24c   : > { %4988 = vst.msk [vmem:[#allocation2 + $0x3d8] sm:$0xff] %vm217_vm0, %v4956_v24  ;;  %v4955_v5 = vadd.f32 %v4900_v35, %v4696_v33  ;;  %v6756_v11 = vld [vmem:[#allocation2 + $0x1b0] sm:$0xff]  ;;  %v8926_v4 = vpop.f32.mrf.mxu0  ;;  %v5033_v33 = vld [vmem:[#allocation2 + $0x238] sm:$0xff] }
 0x24d   : > { %v8976_v51 = vpop.f32.mrf.mxu1  ;;  %7775 = vst.msk [vmem:[%s10896_s7 + $0x1b0] sm:$0xff] %vm217_vm0, %v6756_v11  ;;  %4664 = vst.msk [vmem:[#allocation2 + $0x1d0] sm:$0xff] %vm217_vm0, %v4632_v45  ;;  %v4635_v47 = vadd.f32 %v8926_v4, %v4280_v8  ;;  %v5032_v4 = vld [vmem:[#allocation2 + $0x230] sm:$0xff] }
 0x24e   : > { %4987 = vst.msk [vmem:[#allocation2 + $0x3d0] sm:$0xff] %vm217_vm0, %v4955_v5  ;;  %v4958_v39 = vadd.f32 %v8976_v51, %v4699_v61  ;;  %v6759_v20 = vld [vmem:[#allocation2 + $0x1c8] sm:$0xff]  ;;  %v4587_v18 = vpop.f32.mrf.mxu0 }
 0x24f   : > { %v4910_v25 = vpop.f32.mrf.mxu1  ;;  %7778 = vst.msk [vmem:[%s10896_s7 + $0x1c8] sm:$0xff] %vm217_vm0, %v6759_v20  ;;  %4667 = vst.msk [vmem:[#allocation2 + $0x1e8] sm:$0xff] %vm217_vm0, %v4635_v47  ;;  %v4634_v16 = vadd.f32 %v4587_v18, %v4279_v2  ;;  %v5035_v2 = vld [vmem:[#allocation2 + $0x248] sm:$0xff] }
 0x250   : > { %4990 = vst.msk [vmem:[#allocation2 + $0x3e8] sm:$0xff] %vm217_vm0, %v4958_v39  ;;  %v4957_v53 = vadd.f32 %v4910_v25, %v4698_v10  ;;  %v6758_v55 = vld [vmem:[#allocation2 + $0x1c0] sm:$0xff]  ;;  %v8929_v6 = vpop.f32.mrf.mxu0 }
 0x251   : > { %v8979_v42 = vpop.f32.mrf.mxu1  ;;  %7777 = vst.msk [vmem:[%s10896_s7 + $0x1c0] sm:$0xff] %vm217_vm0, %v6758_v55  ;;  %4666 = vst.msk [vmem:[#allocation2 + $0x1e0] sm:$0xff] %vm217_vm0, %v4634_v16  ;;  %v4637_v26 = vadd.f32 %v8929_v6, %v4282_v54  ;;  %v5034_v55 = vld [vmem:[#allocation2 + $0x240] sm:$0xff] }
 0x252   : > { %4989 = vst.msk [vmem:[#allocation2 + $0x3e0] sm:$0xff] %vm217_vm0, %v4957_v53  ;;  %v4960_v22 = vadd.f32 %v8979_v42, %v4701_v12  ;;  %v6761_v28 = vld [vmem:[#allocation2 + $0x1d8] sm:$0xff]  ;;  %v4597_v44 = vpop.f32.mrf.mxu0 }
 0x253   : > { %v4920_v49 = vpop.f32.mrf.mxu1  ;;  %7780 = vst.msk [vmem:[%s10896_s7 + $0x1d8] sm:$0xff] %vm217_vm0, %v6761_v28  ;;  %4669 = vst.msk [vmem:[#allocation2 + $0x1f8] sm:$0xff] %vm217_vm0, %v4637_v26  ;;  %v4636_v13 = vadd.f32 %v4597_v44, %v4281_v59  ;;  %v5037_v28 = vld [vmem:[#allocation2 + $0x258] sm:$0xff] }
 0x254   : > { %4992 = vst.msk [vmem:[#allocation2 + $0x3f8] sm:$0xff] %vm217_vm0, %v4960_v22  ;;  %v4959_v15 = vadd.f32 %v4920_v49, %v4700_v41  ;;  %v6760_v37 = vld [vmem:[#allocation2 + $0x1d0] sm:$0xff]  ;;  %v8984_v43 = vpop.f32.mrf.mxu0 }
 0x255   : > { %v9034_v50 = vpop.f32.mrf.mxu1  ;;  %7779 = vst.msk [vmem:[%s10896_s7 + $0x1d0] sm:$0xff] %vm217_vm0, %v6760_v37  ;;  %4668 = vst.msk [vmem:[#allocation2 + $0x1f0] sm:$0xff] %vm217_vm0, %v4636_v13  ;;  %v5382_v56 = vadd.f32 %v8984_v43, %v5027_v0  ;;  %v5036_v37 = vld [vmem:[#allocation2 + $0x250] sm:$0xff] }
 0x256   : > { %4991 = vst.msk [vmem:[#allocation2 + $0x3f0] sm:$0xff] %vm217_vm0, %v4959_v15  ;;  %v6763_v52 = vld [vmem:[#allocation2 + $0x1e8] sm:$0xff]  ;;  %v5222_v23 = vpop.f32.mrf.mxu0 }
 0x257   : > { %v5673_v1 = vpop.f32.mrf.mxu1  ;;  %7782 = vst.msk [vmem:[%s10896_s7 + $0x1e8] sm:$0xff] %vm217_vm0, %v6763_v52  ;;  %5414 = vst.msk [vmem:[#allocation2 + $0x208] sm:$0xff] %vm217_vm0, %v5382_v56  ;;  %v5381_v36 = vadd.f32 %v5222_v23, %v5026_v46  ;;  %v5039_v23 = vld [vmem:[#allocation2 + $0x268] sm:$0xff] }
 0x258   : > { %v6762_v32 = vld [vmem:[#allocation2 + $0x1e0] sm:$0xff]  ;;  %v8987_v30 = vpop.f32.mrf.mxu0 }
 0x259   : > { %v9037_v14 = vpop.f32.mrf.mxu1  ;;  %7781 = vst.msk [vmem:[%s10896_s7 + $0x1e0] sm:$0xff] %vm217_vm0, %v6762_v32  ;;  %5413 = vst.msk [vmem:[#allocation2 + $0x200] sm:$0xff] %vm217_vm0, %v5381_v36  ;;  %v5384_v7 = vadd.f32 %v8987_v30, %v5029_v58 }
 0x25a   : > { %v6765_v21 = vld [vmem:[#allocation2 + $0x1f8] sm:$0xff]  ;;  %v5232_v34 = vpop.f32.mrf.mxu0 }
 0x25b   : > { %v5683_v19 = vpop.f32.mrf.mxu1  ;;  %7784 = vst.msk [vmem:[%s10896_s7 + $0x1f8] sm:$0xff] %vm217_vm0, %v6765_v21  ;;  %5416 = vst.msk [vmem:[#allocation2 + $0x218] sm:$0xff] %vm217_vm0, %v5384_v7  ;;  %v5383_v48 = vadd.f32 %v5232_v34, %v5028_v63  ;;  %v5038_v7 = vld [vmem:[#allocation2 + $0x260] sm:$0xff] }
 0x25c   : > { %v6764_v3 = vld [vmem:[#allocation2 + $0x1f0] sm:$0xff]  ;;  %v8990_v40 = vpop.f32.mrf.mxu0 }
 0x25d   : > { %v9040_v29 = vpop.f32.mrf.mxu1  ;;  %7783 = vst.msk [vmem:[%s10896_s7 + $0x1f0] sm:$0xff] %vm217_vm0, %v6764_v3  ;;  %5415 = vst.msk [vmem:[#allocation2 + $0x210] sm:$0xff] %vm217_vm0, %v5383_v48  ;;  %v5386_v57 = vadd.f32 %v8990_v40, %v5031_v27  ;;  %v5041_v27 = vld [vmem:[#allocation2 + $0x278] sm:$0xff] }
 0x25e   : > { %v5478_v60 = vld [vmem:[#allocation2 + $0x208] sm:$0xff]  ;;  %v5242_v31 = vpop.f32.mrf.mxu0 }
 0x25f   : > { %v5693_v24 = vpop.f32.mrf.mxu1  ;;  %5418 = vst.msk [vmem:[#allocation2 + $0x228] sm:$0xff] %vm217_vm0, %v5386_v57  ;;  %v5833_v62 = vadd.f32 %v9034_v50, %v5478_v60  ;;  %v5385_v9 = vadd.f32 %v5242_v31, %v5030_v17 }
 0x260   : > { %v5477_v38 = vld [vmem:[#allocation2 + $0x200] sm:$0xff]  ;;  %v8993_v35 = vpop.f32.mrf.mxu0 }
 0x261   : > { %v9043_v45 = vpop.f32.mrf.mxu1  ;;  %5865 = vst.msk [vmem:[#allocation2 + $0x208] sm:$0xff] %vm217_vm0, %v5833_v62  ;;  %5417 = vst.msk [vmem:[#allocation2 + $0x220] sm:$0xff] %vm217_vm0, %v5385_v9  ;;  %v5832_v5 = vadd.f32 %v5673_v1, %v5477_v38  ;;  %v5388_v11 = vadd.f32 %v8993_v35, %v5033_v33 }
 0x262   : > { %v5480_v8 = vld [vmem:[#allocation2 + $0x218] sm:$0xff]  ;;  %v5252_v61 = vpop.f32.mrf.mxu0 }
 0x263   : > { %v5703_v51 = vpop.f32.mrf.mxu1  ;;  %5864 = vst.msk [vmem:[#allocation2 + $0x200] sm:$0xff] %vm217_vm0, %v5832_v5  ;;  %5420 = vst.msk [vmem:[#allocation2 + $0x238] sm:$0xff] %vm217_vm0, %v5388_v11  ;;  %v5835_v47 = vadd.f32 %v9037_v14, %v5480_v8  ;;  %v5387_v39 = vadd.f32 %v5252_v61, %v5032_v4  ;;  %v5043_v5 = vld [vmem:[#allocation2 + $0x288] sm:$0xff] }
 0x264   : > { %v5479_v20 = vld [vmem:[#allocation2 + $0x210] sm:$0xff]  ;;  %v8996_v18 = vpop.f32.mrf.mxu0 }
 0x265   : > { %v9046_v10 = vpop.f32.mrf.mxu1  ;;  %5867 = vst.msk [vmem:[#allocation2 + $0x218] sm:$0xff] %vm217_vm0, %v5835_v47  ;;  %5419 = vst.msk [vmem:[#allocation2 + $0x230] sm:$0xff] %vm217_vm0, %v5387_v39  ;;  %v5834_v25 = vadd.f32 %v5683_v19, %v5479_v20  ;;  %v5390_v16 = vadd.f32 %v8996_v18, %v5035_v2  ;;  %v5042_v39 = vld [vmem:[#allocation2 + $0x280] sm:$0xff] }
 0x266   : > { %v5482_v53 = vld [vmem:[#allocation2 + $0x228] sm:$0xff]  ;;  %v5262_v54 = vpop.f32.mrf.mxu0 }
 0x267   : > { %v5713_v6 = vpop.f32.mrf.mxu1  ;;  %5866 = vst.msk [vmem:[#allocation2 + $0x210] sm:$0xff] %vm217_vm0, %v5834_v25  ;;  %5422 = vst.msk [vmem:[#allocation2 + $0x248] sm:$0xff] %vm217_vm0, %v5390_v16  ;;  %v5837_v12 = vadd.f32 %v9040_v29, %v5482_v53  ;;  %v5389_v42 = vadd.f32 %v5262_v54, %v5034_v55  ;;  %v5045_v53 = vld [vmem:[#allocation2 + $0x298] sm:$0xff] }
 0x268   : > { %v6800_v26 = vld [vmem:[#allocation2 + $0x208] sm:$0xff]  ;;  %v5481_v22 = vld [vmem:[#allocation2 + $0x220] sm:$0xff]  ;;  %v8999_v59 = vpop.f32.mrf.mxu0 }
 0x269   : > { %v9049_v44 = vpop.f32.mrf.mxu1  ;;  %7786 = vst.msk [vmem:[%s10896_s7 + $0x208] sm:$0xff] %vm217_vm0, %v6800_v26  ;;  %5869 = vst.msk [vmem:[#allocation2 + $0x228] sm:$0xff] %vm217_vm0, %v5837_v12  ;;  %v5836_v41 = vadd.f32 %v5693_v24, %v5481_v22  ;;  %v5392_v49 = vadd.f32 %v8999_v59, %v5037_v28  ;;  %v5040_v24 = vld [vmem:[#allocation2 + $0x270] sm:$0xff] }
 0x26a   : > { %5421 = vst.msk [vmem:[#allocation2 + $0x240] sm:$0xff] %vm217_vm0, %v5389_v42  ;;  %v6799_v13 = vld [vmem:[#allocation2 + $0x200] sm:$0xff]  ;;  %v5484_v15 = vld [vmem:[#allocation2 + $0x238] sm:$0xff]  ;;  %v5272_v0 = vpop.f32.mrf.mxu0  ;;  %v5044_v22 = vld [vmem:[#allocation2 + $0x290] sm:$0xff] }
 0x26b   : > { %v5723_v43 = vpop.f32.mrf.mxu1  ;;  %7785 = vst.msk [vmem:[%s10896_s7 + $0x200] sm:$0xff] %vm217_vm0, %v6799_v13  ;;  %5868 = vst.msk [vmem:[#allocation2 + $0x220] sm:$0xff] %vm217_vm0, %v5836_v41  ;;  %v5839_v50 = vadd.f32 %v9043_v45, %v5484_v15  ;;  %v5391_v56 = vadd.f32 %v5272_v0, %v5036_v37  ;;  %v5047_v15 = vld [vmem:[#allocation2 + $0x2a8] sm:$0xff] }
 0x26c   : > { %5424 = vst.msk [vmem:[#allocation2 + $0x258] sm:$0xff] %vm217_vm0, %v5392_v49  ;;  %v6802_v52 = vld [vmem:[#allocation2 + $0x218] sm:$0xff]  ;;  %v5483_v46 = vld [vmem:[#allocation2 + $0x230] sm:$0xff]  ;;  %v9002_v1 = vpop.f32.mrf.mxu0 }
 0x26d   : > { %v9052_v36 = vpop.f32.mrf.mxu1  ;;  %7788 = vst.msk [vmem:[%s10896_s7 + $0x218] sm:$0xff] %vm217_vm0, %v6802_v52  ;;  %5871 = vst.msk [vmem:[#allocation2 + $0x238] sm:$0xff] %vm217_vm0, %v5839_v50  ;;  %v5838_v32 = vadd.f32 %v5703_v51, %v5483_v46  ;;  %v5394_v58 = vadd.f32 %v9002_v1, %v5039_v23  ;;  %v5046_v46 = vld [vmem:[#allocation2 + $0x2a0] sm:$0xff] }
 0x26e   : > { %5423 = vst.msk [vmem:[#allocation2 + $0x250] sm:$0xff] %vm217_vm0, %v5391_v56  ;;  %v6801_v30 = vld [vmem:[#allocation2 + $0x210] sm:$0xff]  ;;  %v5486_v14 = vld [vmem:[#allocation2 + $0x248] sm:$0xff]  ;;  %v5282_v21 = vpop.f32.mrf.mxu0 }
 0x26f   : > { %v5733_v63 = vpop.f32.mrf.mxu1  ;;  %7787 = vst.msk [vmem:[%s10896_s7 + $0x210] sm:$0xff] %vm217_vm0, %v6801_v30  ;;  %5870 = vst.msk [vmem:[#allocation2 + $0x230] sm:$0xff] %vm217_vm0, %v5838_v32  ;;  %v5841_v34 = vadd.f32 %v9046_v10, %v5486_v14  ;;  %v5393_v19 = vadd.f32 %v5282_v21, %v5038_v7  ;;  %v5049_v14 = vld [vmem:[#allocation2 + $0x2b8] sm:$0xff] }
 0x270   : > { %5426 = vst.msk [vmem:[#allocation2 + $0x268] sm:$0xff] %vm217_vm0, %v5394_v58  ;;  %v6804_v48 = vld [vmem:[#allocation2 + $0x228] sm:$0xff]  ;;  %v9005_v40 = vpop.f32.mrf.mxu0 }
 0x271   : > { %v5485_v3 = vld [vmem:[#allocation2 + $0x240] sm:$0xff]  ;;  %v9055_v29 = vpop.f32.mrf.mxu1  ;;  %7790 = vst.msk [vmem:[%s10896_s7 + $0x228] sm:$0xff] %vm217_vm0, %v6804_v48  ;;  %5873 = vst.msk [vmem:[#allocation2 + $0x248] sm:$0xff] %vm217_vm0, %v5841_v34  ;;  %v5396_v60 = vadd.f32 %v9005_v40, %v5041_v27 }
 0x272   : > { %5425 = vst.msk [vmem:[#allocation2 + $0x260] sm:$0xff] %vm217_vm0, %v5393_v19  ;;  %v5840_v57 = vadd.f32 %v5713_v6, %v5485_v3  ;;  %v6803_v17 = vld [vmem:[#allocation2 + $0x220] sm:$0xff]  ;;  %v5292_v62 = vpop.f32.mrf.mxu0  ;;  %v5048_v3 = vld [vmem:[#allocation2 + $0x2b0] sm:$0xff] }
 0x273   : > { %v5488_v31 = vld [vmem:[#allocation2 + $0x258] sm:$0xff]  ;;  %v5743_v9 = vpop.f32.mrf.mxu1  ;;  %7789 = vst.msk [vmem:[%s10896_s7 + $0x220] sm:$0xff] %vm217_vm0, %v6803_v17  ;;  %5428 = vst.msk [vmem:[#allocation2 + $0x278] sm:$0xff] %vm217_vm0, %v5396_v60  ;;  %v5395_v33 = vadd.f32 %v5292_v62, %v5040_v24 }
 0x274   : > { %5872 = vst.msk [vmem:[#allocation2 + $0x240] sm:$0xff] %vm217_vm0, %v5840_v57  ;;  %v5843_v38 = vadd.f32 %v9049_v44, %v5488_v31  ;;  %v6806_v35 = vld [vmem:[#allocation2 + $0x238] sm:$0xff]  ;;  %v9008_v11 = vpop.f32.mrf.mxu0  ;;  %v5051_v31 = vld [vmem:[#allocation2 + $0x2c8] sm:$0xff] }
 0x275   : > { %v5487_v45 = vld [vmem:[#allocation2 + $0x250] sm:$0xff]  ;;  %v9058_v8 = vpop.f32.mrf.mxu1  ;;  %7792 = vst.msk [vmem:[%s10896_s7 + $0x238] sm:$0xff] %vm217_vm0, %v6806_v35  ;;  %5427 = vst.msk [vmem:[#allocation2 + $0x270] sm:$0xff] %vm217_vm0, %v5395_v33  ;;  %v5398_v61 = vadd.f32 %v9008_v11, %v5043_v5 }
 0x276   : > { %5875 = vst.msk [vmem:[#allocation2 + $0x258] sm:$0xff] %vm217_vm0, %v5843_v38  ;;  %v5842_v4 = vadd.f32 %v5723_v43, %v5487_v45  ;;  %v6805_v51 = vld [vmem:[#allocation2 + $0x230] sm:$0xff]  ;;  %v5302_v20 = vpop.f32.mrf.mxu0  ;;  %v5050_v45 = vld [vmem:[#allocation2 + $0x2c0] sm:$0xff] }
 0x277   : > { %v5490_v47 = vld [vmem:[#allocation2 + $0x268] sm:$0xff]  ;;  %v5753_v2 = vpop.f32.mrf.mxu1  ;;  %7791 = vst.msk [vmem:[%s10896_s7 + $0x230] sm:$0xff] %vm217_vm0, %v6805_v51  ;;  %5430 = vst.msk [vmem:[#allocation2 + $0x288] sm:$0xff] %vm217_vm0, %v5398_v61  ;;  %v5397_v10 = vadd.f32 %v5302_v20, %v5042_v39 }
 0x278   : > { %5874 = vst.msk [vmem:[#allocation2 + $0x250] sm:$0xff] %vm217_vm0, %v5842_v4  ;;  %v5845_v18 = vadd.f32 %v9052_v36, %v5490_v47  ;;  %v6808_v25 = vld [vmem:[#allocation2 + $0x248] sm:$0xff]  ;;  %v9011_v55 = vpop.f32.mrf.mxu0  ;;  %v5053_v47 = vld [vmem:[#allocation2 + $0x2d8] sm:$0xff] }
 0x279   : > { %v5489_v16 = vld [vmem:[#allocation2 + $0x260] sm:$0xff]  ;;  %v9061_v54 = vpop.f32.mrf.mxu1  ;;  %7794 = vst.msk [vmem:[%s10896_s7 + $0x248] sm:$0xff] %vm217_vm0, %v6808_v25  ;;  %5429 = vst.msk [vmem:[#allocation2 + $0x280] sm:$0xff] %vm217_vm0, %v5397_v10  ;;  %v5400_v12 = vadd.f32 %v9011_v55, %v5045_v53 }
 0x27a   : > { %5877 = vst.msk [vmem:[#allocation2 + $0x268] sm:$0xff] %vm217_vm0, %v5845_v18  ;;  %v5844_v6 = vadd.f32 %v5733_v63, %v5489_v16  ;;  %v5492_v26 = vld [vmem:[#allocation2 + $0x278] sm:$0xff]  ;;  %v5312_v28 = vpop.f32.mrf.mxu0  ;;  %v5052_v16 = vld [vmem:[#allocation2 + $0x2d0] sm:$0xff] }
 0x27b   : > { %v6807_v42 = vld [vmem:[#allocation2 + $0x240] sm:$0xff]  ;;  %v5763_v59 = vpop.f32.mrf.mxu1  ;;  %5432 = vst.msk [vmem:[#allocation2 + $0x298] sm:$0xff] %vm217_vm0, %v5400_v12  ;;  %v5847_v44 = vadd.f32 %v9055_v29, %v5492_v26  ;;  %v5399_v41 = vadd.f32 %v5312_v28, %v5044_v22  ;;  %v5055_v26 = vld [vmem:[#allocation2 + $0x2e8] sm:$0xff] }
 0x27c   : > { %7793 = vst.msk [vmem:[%s10896_s7 + $0x240] sm:$0xff] %vm217_vm0, %v6807_v42  ;;  %5876 = vst.msk [vmem:[#allocation2 + $0x260] sm:$0xff] %vm217_vm0, %v5844_v6  ;;  %v5491_v13 = vld [vmem:[#allocation2 + $0x270] sm:$0xff]  ;;  %v9014_v37 = vpop.f32.mrf.mxu0 }
 0x27d   : > { %v6810_v49 = vld [vmem:[#allocation2 + $0x258] sm:$0xff]  ;;  %v9064_v0 = vpop.f32.mrf.mxu1  ;;  %5879 = vst.msk [vmem:[#allocation2 + $0x278] sm:$0xff] %vm217_vm0, %v5847_v44  ;;  %5431 = vst.msk [vmem:[#allocation2 + $0x290] sm:$0xff] %vm217_vm0, %v5399_v41  ;;  %v5846_v43 = vadd.f32 %v5743_v9, %v5491_v13  ;;  %v5402_v50 = vadd.f32 %v9014_v37, %v5047_v15  ;;  %v5054_v13 = vld [vmem:[#allocation2 + $0x2e0] sm:$0xff] }
 0x27e   : > { %7796 = vst.msk [vmem:[%s10896_s7 + $0x258] sm:$0xff] %vm217_vm0, %v6810_v49  ;;  %v5494_v52 = vld [vmem:[#allocation2 + $0x288] sm:$0xff]  ;;  %v5322_v23 = vpop.f32.mrf.mxu0 }
 0x27f   : > { %v6809_v56 = vld [vmem:[#allocation2 + $0x250] sm:$0xff]  ;;  %v5773_v1 = vpop.f32.mrf.mxu1  ;;  %5878 = vst.msk [vmem:[#allocation2 + $0x270] sm:$0xff] %vm217_vm0, %v5846_v43  ;;  %5434 = vst.msk [vmem:[#allocation2 + $0x2a8] sm:$0xff] %vm217_vm0, %v5402_v50  ;;  %v5849_v36 = vadd.f32 %v9058_v8, %v5494_v52  ;;  %v5401_v32 = vadd.f32 %v5322_v23, %v5046_v46  ;;  %v5057_v52 = vld [vmem:[#allocation2 + $0x2f8] sm:$0xff] }
 0x280   : > { %7795 = vst.msk [vmem:[%s10896_s7 + $0x250] sm:$0xff] %vm217_vm0, %v6809_v56  ;;  %v5493_v30 = vld [vmem:[#allocation2 + $0x280] sm:$0xff]  ;;  %v9017_v7 = vpop.f32.mrf.mxu0 }
 0x281   : > { %v6812_v58 = vld [vmem:[#allocation2 + $0x268] sm:$0xff]  ;;  %v9067_v21 = vpop.f32.mrf.mxu1  ;;  %5881 = vst.msk [vmem:[#allocation2 + $0x288] sm:$0xff] %vm217_vm0, %v5849_v36  ;;  %5433 = vst.msk [vmem:[#allocation2 + $0x2a0] sm:$0xff] %vm217_vm0, %v5401_v32  ;;  %v5848_v63 = vadd.f32 %v5753_v2, %v5493_v30  ;;  %v5404_v34 = vadd.f32 %v9017_v7, %v5049_v14  ;;  %v5056_v30 = vld [vmem:[#allocation2 + $0x2f0] sm:$0xff] }
 0x282   : > { %7798 = vst.msk [vmem:[%s10896_s7 + $0x268] sm:$0xff] %vm217_vm0, %v6812_v58  ;;  %v5496_v48 = vld [vmem:[#allocation2 + $0x298] sm:$0xff]  ;;  %v5332_v27 = vpop.f32.mrf.mxu0 }
 0x283   : > { %v6811_v19 = vld [vmem:[#allocation2 + $0x260] sm:$0xff]  ;;  %v5783_v40 = vpop.f32.mrf.mxu1  ;;  %5880 = vst.msk [vmem:[#allocation2 + $0x280] sm:$0xff] %vm217_vm0, %v5848_v63  ;;  %5436 = vst.msk [vmem:[#allocation2 + $0x2b8] sm:$0xff] %vm217_vm0, %v5404_v34  ;;  %v5851_v29 = vadd.f32 %v9061_v54, %v5496_v48  ;;  %v5403_v57 = vadd.f32 %v5332_v27, %v5048_v3  ;;  %v5897_v48 = vld [vmem:[#allocation2 + $0x308] sm:$0xff] }
 0x284   : > { %7797 = vst.msk [vmem:[%s10896_s7 + $0x260] sm:$0xff] %vm217_vm0, %v6811_v19  ;;  %v6814_v60 = vld [vmem:[#allocation2 + $0x278] sm:$0xff]  ;;  %v5495_v17 = vld [vmem:[#allocation2 + $0x290] sm:$0xff]  ;;  %v9020_v24 = vpop.f32.mrf.mxu0 }
 0x285   : > { %v9070_v62 = vpop.f32.mrf.mxu1  ;;  %7800 = vst.msk [vmem:[%s10896_s7 + $0x278] sm:$0xff] %vm217_vm0, %v6814_v60  ;;  %5883 = vst.msk [vmem:[#allocation2 + $0x298] sm:$0xff] %vm217_vm0, %v5851_v29  ;;  %v5850_v9 = vadd.f32 %v5763_v59, %v5495_v17  ;;  %v5406_v38 = vadd.f32 %v9020_v24, %v5051_v31  ;;  %v5896_v17 = vld [vmem:[#allocation2 + $0x300] sm:$0xff] }
 0x286   : > { %5435 = vst.msk [vmem:[#allocation2 + $0x2b0] sm:$0xff] %vm217_vm0, %v5403_v57  ;;  %v6813_v33 = vld [vmem:[#allocation2 + $0x270] sm:$0xff]  ;;  %v5498_v35 = vld [vmem:[#allocation2 + $0x2a8] sm:$0xff]  ;;  %v5342_v5 = vpop.f32.mrf.mxu0 }
 0x287   : > { %v5793_v11 = vpop.f32.mrf.mxu1  ;;  %7799 = vst.msk [vmem:[%s10896_s7 + $0x270] sm:$0xff] %vm217_vm0, %v6813_v33  ;;  %5882 = vst.msk [vmem:[#allocation2 + $0x290] sm:$0xff] %vm217_vm0, %v5850_v9  ;;  %v5853_v8 = vadd.f32 %v9064_v0, %v5498_v35  ;;  %v5405_v4 = vadd.f32 %v5342_v5, %v5050_v45  ;;  %v5899_v35 = vld [vmem:[#allocation2 + $0x318] sm:$0xff] }
 0x288   : > { %5438 = vst.msk [vmem:[#allocation2 + $0x2c8] sm:$0xff] %vm217_vm0, %v5406_v38  ;;  %v6816_v61 = vld [vmem:[#allocation2 + $0x288] sm:$0xff]  ;;  %v5497_v51 = vld [vmem:[#allocation2 + $0x2a0] sm:$0xff]  ;;  %v9023_v39 = vpop.f32.mrf.mxu0 }
 0x289   : > { %v9073_v20 = vpop.f32.mrf.mxu1  ;;  %7802 = vst.msk [vmem:[%s10896_s7 + $0x288] sm:$0xff] %vm217_vm0, %v6816_v61  ;;  %5885 = vst.msk [vmem:[#allocation2 + $0x2a8] sm:$0xff] %vm217_vm0, %v5853_v8  ;;  %v5852_v2 = vadd.f32 %v5773_v1, %v5497_v51  ;;  %v5408_v18 = vadd.f32 %v9023_v39, %v5053_v47  ;;  %v5898_v51 = vld [vmem:[#allocation2 + $0x310] sm:$0xff] }
 0x28a   : > { %5437 = vst.msk [vmem:[#allocation2 + $0x2c0] sm:$0xff] %vm217_vm0, %v5405_v4  ;;  %v6815_v10 = vld [vmem:[#allocation2 + $0x280] sm:$0xff]  ;;  %v5500_v25 = vld [vmem:[#allocation2 + $0x2b8] sm:$0xff]  ;;  %v5352_v53 = vpop.f32.mrf.mxu0 }
 0x28b   : > { %v5803_v55 = vpop.f32.mrf.mxu1  ;;  %7801 = vst.msk [vmem:[%s10896_s7 + $0x280] sm:$0xff] %vm217_vm0, %v6815_v10  ;;  %5884 = vst.msk [vmem:[#allocation2 + $0x2a0] sm:$0xff] %vm217_vm0, %v5852_v2  ;;  %v5855_v54 = vadd.f32 %v9067_v21, %v5500_v25  ;;  %v5407_v6 = vadd.f32 %v5352_v53, %v5052_v16  ;;  %v5901_v25 = vld [vmem:[#allocation2 + $0x328] sm:$0xff] }
 0x28c   : > { %5440 = vst.msk [vmem:[#allocation2 + $0x2d8] sm:$0xff] %vm217_vm0, %v5408_v18  ;;  %v6818_v12 = vld [vmem:[#allocation2 + $0x298] sm:$0xff]  ;;  %v9026_v22 = vpop.f32.mrf.mxu0 }
 0x28d   : > { %v5499_v42 = vld [vmem:[#allocation2 + $0x2b0] sm:$0xff]  ;;  %v9076_v28 = vpop.f32.mrf.mxu1  ;;  %7804 = vst.msk [vmem:[%s10896_s7 + $0x298] sm:$0xff] %vm217_vm0, %v6818_v12  ;;  %5887 = vst.msk [vmem:[#allocation2 + $0x2b8] sm:$0xff] %vm217_vm0, %v5855_v54  ;;  %v5410_v44 = vadd.f32 %v9026_v22, %v5055_v26 }
 0x28e   : > { %5439 = vst.msk [vmem:[#allocation2 + $0x2d0] sm:$0xff] %vm217_vm0, %v5407_v6  ;;  %v5854_v59 = vadd.f32 %v5783_v40, %v5499_v42  ;;  %v6817_v41 = vld [vmem:[#allocation2 + $0x290] sm:$0xff]  ;;  %v5362_v15 = vpop.f32.mrf.mxu0  ;;  %v5900_v42 = vld [vmem:[#allocation2 + $0x320] sm:$0xff] }
 0x28f   : > { %v5502_v49 = vld [vmem:[#allocation2 + $0x2c8] sm:$0xff]  ;;  %v5813_v37 = vpop.f32.mrf.mxu1  ;;  %7803 = vst.msk [vmem:[%s10896_s7 + $0x290] sm:$0xff] %vm217_vm0, %v6817_v41  ;;  %5442 = vst.msk [vmem:[#allocation2 + $0x2e8] sm:$0xff] %vm217_vm0, %v5410_v44  ;;  %v5409_v43 = vadd.f32 %v5362_v15, %v5054_v13 }
 0x290   : > { %5886 = vst.msk [vmem:[#allocation2 + $0x2b0] sm:$0xff] %vm217_vm0, %v5854_v59  ;;  %v5857_v0 = vadd.f32 %v9070_v62, %v5502_v49  ;;  %v6820_v50 = vld [vmem:[#allocation2 + $0x2a8] sm:$0xff]  ;;  %v9029_v46 = vpop.f32.mrf.mxu0  ;;  %v5903_v49 = vld [vmem:[#allocation2 + $0x338] sm:$0xff] }
 0x291   : > { %v5501_v56 = vld [vmem:[#allocation2 + $0x2c0] sm:$0xff]  ;;  %v9079_v23 = vpop.f32.mrf.mxu1  ;;  %7806 = vst.msk [vmem:[%s10896_s7 + $0x2a8] sm:$0xff] %vm217_vm0, %v6820_v50  ;;  %5441 = vst.msk [vmem:[#allocation2 + $0x2e0] sm:$0xff] %vm217_vm0, %v5409_v43  ;;  %v5412_v36 = vadd.f32 %v9029_v46, %v5057_v52 }
 0x292   : > { %5889 = vst.msk [vmem:[#allocation2 + $0x2c8] sm:$0xff] %vm217_vm0, %v5857_v0  ;;  %v5856_v1 = vadd.f32 %v5793_v11, %v5501_v56  ;;  %v6819_v32 = vld [vmem:[#allocation2 + $0x2a0] sm:$0xff]  ;;  %v5372_v14 = vpop.f32.mrf.mxu0  ;;  %v5902_v56 = vld [vmem:[#allocation2 + $0x330] sm:$0xff] }
 0x293   : > { %v5504_v58 = vld [vmem:[#allocation2 + $0x2d8] sm:$0xff]  ;;  %v5823_v7 = vpop.f32.mrf.mxu1  ;;  %7805 = vst.msk [vmem:[%s10896_s7 + $0x2a0] sm:$0xff] %vm217_vm0, %v6819_v32  ;;  %5444 = vst.msk [vmem:[#allocation2 + $0x2f8] sm:$0xff] %vm217_vm0, %v5412_v36  ;;  %v5411_v63 = vadd.f32 %v5372_v14, %v5056_v30 }
 0x294   : > { %5888 = vst.msk [vmem:[#allocation2 + $0x2c0] sm:$0xff] %vm217_vm0, %v5856_v1  ;;  %v5859_v21 = vadd.f32 %v9073_v20, %v5504_v58  ;;  %v6822_v34 = vld [vmem:[#allocation2 + $0x2b8] sm:$0xff]  ;;  %v9084_v3 = vpop.f32.mrf.mxu0  ;;  %v5905_v58 = vld [vmem:[#allocation2 + $0x348] sm:$0xff] }
 0x295   : > { %v5503_v19 = vld [vmem:[#allocation2 + $0x2d0] sm:$0xff]  ;;  %v9134_v27 = vpop.f32.mrf.mxu1  ;;  %7808 = vst.msk [vmem:[%s10896_s7 + $0x2b8] sm:$0xff] %vm217_vm0, %v6822_v34  ;;  %5443 = vst.msk [vmem:[#allocation2 + $0x2f0] sm:$0xff] %vm217_vm0, %v5411_v63  ;;  %v6156_v29 = vadd.f32 %v9084_v3, %v5897_v48 }
 0x296   : > { %5891 = vst.msk [vmem:[#allocation2 + $0x2d8] sm:$0xff] %vm217_vm0, %v5859_v21  ;;  %v5858_v40 = vadd.f32 %v5803_v55, %v5503_v19  ;;  %v5506_v60 = vld [vmem:[#allocation2 + $0x2e8] sm:$0xff]  ;;  %v5996_v31 = vpop.f32.mrf.mxu0  ;;  %v5904_v19 = vld [vmem:[#allocation2 + $0x340] sm:$0xff] }
 0x297   : > { %v6821_v57 = vld [vmem:[#allocation2 + $0x2b0] sm:$0xff]  ;;  %v6447_v24 = vpop.f32.mrf.mxu1  ;;  %v5861_v62 = vadd.f32 %v9076_v28, %v5506_v60  ;;  %6188 = vst.msk [vmem:[#allocation2 + $0x308] sm:$0xff] %vm217_vm0, %v6156_v29  ;;  %v6155_v9 = vadd.f32 %v5996_v31, %v5896_v17  ;;  %v5907_v60 = vld [vmem:[#allocation2 + $0x358] sm:$0xff] }
 0x298   : > { %7807 = vst.msk [vmem:[%s10896_s7 + $0x2b0] sm:$0xff] %vm217_vm0, %v6821_v57  ;;  %5890 = vst.msk [vmem:[#allocation2 + $0x2d0] sm:$0xff] %vm217_vm0, %v5858_v40  ;;  %v5505_v33 = vld [vmem:[#allocation2 + $0x2e0] sm:$0xff]  ;;  %v9087_v45 = vpop.f32.mrf.mxu0 }
 0x299   : > { %v6824_v38 = vld [vmem:[#allocation2 + $0x2c8] sm:$0xff]  ;;  %v9137_v5 = vpop.f32.mrf.mxu1  ;;  %5893 = vst.msk [vmem:[#allocation2 + $0x2e8] sm:$0xff] %vm217_vm0, %v5861_v62  ;;  %v5860_v11 = vadd.f32 %v5813_v37, %v5505_v33  ;;  %6187 = vst.msk [vmem:[#allocation2 + $0x300] sm:$0xff] %vm217_vm0, %v6155_v9  ;;  %v6158_v8 = vadd.f32 %v9087_v45, %v5899_v35  ;;  %v5906_v33 = vld [vmem:[#allocation2 + $0x350] sm:$0xff] }
 0x29a   : > { %7810 = vst.msk [vmem:[%s10896_s7 + $0x2c8] sm:$0xff] %vm217_vm0, %v6824_v38  ;;  %v5508_v61 = vld [vmem:[#allocation2 + $0x2f8] sm:$0xff]  ;;  %v6006_v47 = vpop.f32.mrf.mxu0 }
 0x29b   : > { %v6823_v4 = vld [vmem:[#allocation2 + $0x2c0] sm:$0xff]  ;;  %v6457_v39 = vpop.f32.mrf.mxu1  ;;  %5892 = vst.msk [vmem:[#allocation2 + $0x2e0] sm:$0xff] %vm217_vm0, %v5860_v11  ;;  %v5863_v20 = vadd.f32 %v9079_v23, %v5508_v61  ;;  %6190 = vst.msk [vmem:[#allocation2 + $0x318] sm:$0xff] %vm217_vm0, %v6158_v8  ;;  %v6157_v2 = vadd.f32 %v6006_v47, %v5898_v51  ;;  %v5909_v61 = vld [vmem:[#allocation2 + $0x368] sm:$0xff] }
 0x29c   : > { %7809 = vst.msk [vmem:[%s10896_s7 + $0x2c0] sm:$0xff] %vm217_vm0, %v6823_v4  ;;  %v5507_v10 = vld [vmem:[#allocation2 + $0x2f0] sm:$0xff]  ;;  %v9090_v16 = vpop.f32.mrf.mxu0 }
 0x29d   : > { %v6826_v18 = vld [vmem:[#allocation2 + $0x2d8] sm:$0xff]  ;;  %v9140_v53 = vpop.f32.mrf.mxu1  ;;  %5895 = vst.msk [vmem:[#allocation2 + $0x2f8] sm:$0xff] %vm217_vm0, %v5863_v20  ;;  %v5862_v55 = vadd.f32 %v5823_v7, %v5507_v10  ;;  %6189 = vst.msk [vmem:[#allocation2 + $0x310] sm:$0xff] %vm217_vm0, %v6157_v2  ;;  %v6160_v54 = vadd.f32 %v9090_v16, %v5901_v25  ;;  %v5908_v10 = vld [vmem:[#allocation2 + $0x360] sm:$0xff] }
 0x29e   : > { %7812 = vst.msk [vmem:[%s10896_s7 + $0x2d8] sm:$0xff] %vm217_vm0, %v6826_v18  ;;  %v6252_v12 = vld [vmem:[#allocation2 + $0x308] sm:$0xff]  ;;  %v6016_v26 = vpop.f32.mrf.mxu0 }
 0x29f   : > { %v6825_v6 = vld [vmem:[#allocation2 + $0x2d0] sm:$0xff]  ;;  %v6467_v22 = vpop.f32.mrf.mxu1  ;;  %5894 = vst.msk [vmem:[#allocation2 + $0x2f0] sm:$0xff] %vm217_vm0, %v5862_v55  ;;  %6192 = vst.msk [vmem:[#allocation2 + $0x328] sm:$0xff] %vm217_vm0, %v6160_v54  ;;  %v6607_v28 = vadd.f32 %v9134_v27, %v6252_v12  ;;  %v6159_v59 = vadd.f32 %v6016_v26, %v5900_v42  ;;  %v5911_v12 = vld [vmem:[#allocation2 + $0x378] sm:$0xff] }
 0x2a0   : > { %7811 = vst.msk [vmem:[%s10896_s7 + $0x2d0] sm:$0xff] %vm217_vm0, %v6825_v6  ;;  %v6828_v44 = vld [vmem:[#allocation2 + $0x2e8] sm:$0xff]  ;;  %v6251_v41 = vld [vmem:[#allocation2 + $0x300] sm:$0xff]  ;;  %v9093_v13 = vpop.f32.mrf.mxu0 }
 0x2a1   : > { %v9143_v15 = vpop.f32.mrf.mxu1  ;;  %7814 = vst.msk [vmem:[%s10896_s7 + $0x2e8] sm:$0xff] %vm217_vm0, %v6828_v44  ;;  %6639 = vst.msk [vmem:[#allocation2 + $0x308] sm:$0xff] %vm217_vm0, %v6607_v28  ;;  %v6606_v37 = vadd.f32 %v6447_v24, %v6251_v41  ;;  %v6162_v0 = vadd.f32 %v9093_v13, %v5903_v49  ;;  %v5910_v41 = vld [vmem:[#allocation2 + $0x370] sm:$0xff] }
 0x2a2   : > { %6191 = vst.msk [vmem:[#allocation2 + $0x320] sm:$0xff] %vm217_vm0, %v6159_v59  ;;  %v6827_v43 = vld [vmem:[#allocation2 + $0x2e0] sm:$0xff]  ;;  %v6254_v50 = vld [vmem:[#allocation2 + $0x318] sm:$0xff]  ;;  %v6026_v52 = vpop.f32.mrf.mxu0 }
 0x2a3   : > { %v6477_v46 = vpop.f32.mrf.mxu1  ;;  %7813 = vst.msk [vmem:[%s10896_s7 + $0x2e0] sm:$0xff] %vm217_vm0, %v6827_v43  ;;  %6638 = vst.msk [vmem:[#allocation2 + $0x300] sm:$0xff] %vm217_vm0, %v6606_v37  ;;  %v6609_v23 = vadd.f32 %v9137_v5, %v6254_v50  ;;  %v6161_v1 = vadd.f32 %v6026_v52, %v5902_v56  ;;  %v5913_v50 = vld [vmem:[#allocation2 + $0x388] sm:$0xff] }
 0x2a4   : > { %6194 = vst.msk [vmem:[#allocation2 + $0x338] sm:$0xff] %vm217_vm0, %v6162_v0  ;;  %v6830_v36 = vld [vmem:[#allocation2 + $0x2f8] sm:$0xff]  ;;  %v6253_v32 = vld [vmem:[#allocation2 + $0x310] sm:$0xff]  ;;  %v9096_v30 = vpop.f32.mrf.mxu0 }
 0x2a5   : > { %v9146_v14 = vpop.f32.mrf.mxu1  ;;  %7816 = vst.msk [vmem:[%s10896_s7 + $0x2f8] sm:$0xff] %vm217_vm0, %v6830_v36  ;;  %6641 = vst.msk [vmem:[#allocation2 + $0x318] sm:$0xff] %vm217_vm0, %v6609_v23  ;;  %v6608_v7 = vadd.f32 %v6457_v39, %v6253_v32  ;;  %v6164_v21 = vadd.f32 %v9096_v30, %v5905_v58  ;;  %v5912_v32 = vld [vmem:[#allocation2 + $0x380] sm:$0xff] }
 0x2a6   : > { %6193 = vst.msk [vmem:[#allocation2 + $0x330] sm:$0xff] %vm217_vm0, %v6161_v1  ;;  %v6829_v63 = vld [vmem:[#allocation2 + $0x2f0] sm:$0xff]  ;;  %v6256_v34 = vld [vmem:[#allocation2 + $0x328] sm:$0xff]  ;;  %v6036_v48 = vpop.f32.mrf.mxu0 }
 0x2a7   : > { %v6487_v3 = vpop.f32.mrf.mxu1  ;;  %7815 = vst.msk [vmem:[%s10896_s7 + $0x2f0] sm:$0xff] %vm217_vm0, %v6829_v63  ;;  %6640 = vst.msk [vmem:[#allocation2 + $0x310] sm:$0xff] %vm217_vm0, %v6608_v7  ;;  %v6611_v27 = vadd.f32 %v9140_v53, %v6256_v34  ;;  %v6163_v40 = vadd.f32 %v6036_v48, %v5904_v19  ;;  %v5915_v34 = vld [vmem:[#allocation2 + $0x398] sm:$0xff] }
 0x2a8   : > { %6196 = vst.msk [vmem:[#allocation2 + $0x348] sm:$0xff] %vm217_vm0, %v6164_v21  ;;  %v6865_v29 = vld [vmem:[#allocation2 + $0x308] sm:$0xff]  ;;  %v9099_v17 = vpop.f32.mrf.mxu0 }
 0x2a9   : > { %v6255_v57 = vld [vmem:[#allocation2 + $0x320] sm:$0xff]  ;;  %v9149_v31 = vpop.f32.mrf.mxu1  ;;  %7818 = vst.msk [vmem:[%s10896_s7 + $0x308] sm:$0xff] %vm217_vm0, %v6865_v29  ;;  %6643 = vst.msk [vmem:[#allocation2 + $0x328] sm:$0xff] %vm217_vm0, %v6611_v27  ;;  %v6166_v62 = vadd.f32 %v9099_v17, %v5907_v60 }
 0x2aa   : > { %6195 = vst.msk [vmem:[#allocation2 + $0x340] sm:$0xff] %vm217_vm0, %v6163_v40  ;;  %v6610_v24 = vadd.f32 %v6467_v22, %v6255_v57  ;;  %v6864_v9 = vld [vmem:[#allocation2 + $0x300] sm:$0xff]  ;;  %v6046_v35 = vpop.f32.mrf.mxu0  ;;  %v5914_v57 = vld [vmem:[#allocation2 + $0x390] sm:$0xff] }
 0x2ab   : > { %v6258_v38 = vld [vmem:[#allocation2 + $0x338] sm:$0xff]  ;;  %v6497_v45 = vpop.f32.mrf.mxu1  ;;  %7817 = vst.msk [vmem:[%s10896_s7 + $0x300] sm:$0xff] %vm217_vm0, %v6864_v9  ;;  %6198 = vst.msk [vmem:[#allocation2 + $0x358] sm:$0xff] %vm217_vm0, %v6166_v62  ;;  %v6165_v11 = vadd.f32 %v6046_v35, %v5906_v33 }
 0x2ac   : > { %6642 = vst.msk [vmem:[#allocation2 + $0x320] sm:$0xff] %vm217_vm0, %v6610_v24  ;;  %v6613_v5 = vadd.f32 %v9143_v15, %v6258_v38  ;;  %v6867_v8 = vld [vmem:[#allocation2 + $0x318] sm:$0xff]  ;;  %v9102_v51 = vpop.f32.mrf.mxu0  ;;  %v5917_v38 = vld [vmem:[#allocation2 + $0x3a8] sm:$0xff] }
 0x2ad   : > { %v6257_v4 = vld [vmem:[#allocation2 + $0x330] sm:$0xff]  ;;  %v9152_v47 = vpop.f32.mrf.mxu1  ;;  %7820 = vst.msk [vmem:[%s10896_s7 + $0x318] sm:$0xff] %vm217_vm0, %v6867_v8  ;;  %6197 = vst.msk [vmem:[#allocation2 + $0x350] sm:$0xff] %vm217_vm0, %v6165_v11  ;;  %v6168_v20 = vadd.f32 %v9102_v51, %v5909_v61 }
 0x2ae   : > { %6645 = vst.msk [vmem:[#allocation2 + $0x338] sm:$0xff] %vm217_vm0, %v6613_v5  ;;  %v6612_v39 = vadd.f32 %v6477_v46, %v6257_v4  ;;  %v6866_v2 = vld [vmem:[#allocation2 + $0x310] sm:$0xff]  ;;  %v6056_v25 = vpop.f32.mrf.mxu0  ;;  %v5916_v4 = vld [vmem:[#allocation2 + $0x3a0] sm:$0xff] }
 0x2af   : > { %v6260_v18 = vld [vmem:[#allocation2 + $0x348] sm:$0xff]  ;;  %v6507_v16 = vpop.f32.mrf.mxu1  ;;  %7819 = vst.msk [vmem:[%s10896_s7 + $0x310] sm:$0xff] %vm217_vm0, %v6866_v2  ;;  %6200 = vst.msk [vmem:[#allocation2 + $0x368] sm:$0xff] %vm217_vm0, %v6168_v20  ;;  %v6167_v55 = vadd.f32 %v6056_v25, %v5908_v10 }
 0x2b0   : > { %6644 = vst.msk [vmem:[#allocation2 + $0x330] sm:$0xff] %vm217_vm0, %v6612_v39  ;;  %v6615_v53 = vadd.f32 %v9146_v14, %v6260_v18  ;;  %v6869_v54 = vld [vmem:[#allocation2 + $0x328] sm:$0xff]  ;;  %v9105_v42 = vpop.f32.mrf.mxu0  ;;  %v5919_v18 = vld [vmem:[#allocation2 + $0x3b8] sm:$0xff] }
 0x2b1   : > { %v6259_v6 = vld [vmem:[#allocation2 + $0x340] sm:$0xff]  ;;  %v9155_v26 = vpop.f32.mrf.mxu1  ;;  %7822 = vst.msk [vmem:[%s10896_s7 + $0x328] sm:$0xff] %vm217_vm0, %v6869_v54  ;;  %6199 = vst.msk [vmem:[#allocation2 + $0x360] sm:$0xff] %vm217_vm0, %v6167_v55  ;;  %v6170_v28 = vadd.f32 %v9105_v42, %v5911_v12 }
 0x2b2   : > { %6647 = vst.msk [vmem:[#allocation2 + $0x348] sm:$0xff] %vm217_vm0, %v6615_v53  ;;  %v6614_v22 = vadd.f32 %v6487_v3, %v6259_v6  ;;  %v6262_v44 = vld [vmem:[#allocation2 + $0x358] sm:$0xff]  ;;  %v6066_v49 = vpop.f32.mrf.mxu0  ;;  %v5918_v6 = vld [vmem:[#allocation2 + $0x3b0] sm:$0xff] }
 0x2b3   : > { %v6868_v59 = vld [vmem:[#allocation2 + $0x320] sm:$0xff]  ;;  %v6517_v13 = vpop.f32.mrf.mxu1  ;;  %6202 = vst.msk [vmem:[#allocation2 + $0x378] sm:$0xff] %vm217_vm0, %v6170_v28  ;;  %v6617_v15 = vadd.f32 %v9149_v31, %v6262_v44  ;;  %v6169_v37 = vadd.f32 %v6066_v49, %v5910_v41  ;;  %v5921_v44 = vld [vmem:[#allocation2 + $0x3c8] sm:$0xff] }
 0x2b4   : > { %7821 = vst.msk [vmem:[%s10896_s7 + $0x320] sm:$0xff] %vm217_vm0, %v6868_v59  ;;  %6646 = vst.msk [vmem:[#allocation2 + $0x340] sm:$0xff] %vm217_vm0, %v6614_v22  ;;  %v6261_v43 = vld [vmem:[#allocation2 + $0x350] sm:$0xff]  ;;  %v9108_v56 = vpop.f32.mrf.mxu0 }
 0x2b5   : > { %v6871_v0 = vld [vmem:[#allocation2 + $0x338] sm:$0xff]  ;;  %v9158_v52 = vpop.f32.mrf.mxu1  ;;  %6649 = vst.msk [vmem:[#allocation2 + $0x358] sm:$0xff] %vm217_vm0, %v6617_v15  ;;  %6201 = vst.msk [vmem:[#allocation2 + $0x370] sm:$0xff] %vm217_vm0, %v6169_v37  ;;  %v6616_v46 = vadd.f32 %v6497_v45, %v6261_v43  ;;  %v6172_v23 = vadd.f32 %v9108_v56, %v5913_v50  ;;  %v5920_v43 = vld [vmem:[#allocation2 + $0x3c0] sm:$0xff] }
 0x2b6   : > { %7824 = vst.msk [vmem:[%s10896_s7 + $0x338] sm:$0xff] %vm217_vm0, %v6871_v0  ;;  %v6264_v36 = vld [vmem:[#allocation2 + $0x368] sm:$0xff]  ;;  %v6076_v58 = vpop.f32.mrf.mxu0 }
 0x2b7   : > { %v6870_v1 = vld [vmem:[#allocation2 + $0x330] sm:$0xff]  ;;  %v6527_v30 = vpop.f32.mrf.mxu1  ;;  %6648 = vst.msk [vmem:[#allocation2 + $0x350] sm:$0xff] %vm217_vm0, %v6616_v46  ;;  %6204 = vst.msk [vmem:[#allocation2 + $0x388] sm:$0xff] %vm217_vm0, %v6172_v23  ;;  %v6619_v14 = vadd.f32 %v9152_v47, %v6264_v36  ;;  %v6171_v7 = vadd.f32 %v6076_v58, %v5912_v32  ;;  %v5923_v36 = vld [vmem:[#allocation2 + $0x3d8] sm:$0xff] }
 0x2b8   : > { %7823 = vst.msk [vmem:[%s10896_s7 + $0x330] sm:$0xff] %vm217_vm0, %v6870_v1  ;;  %v6263_v63 = vld [vmem:[#allocation2 + $0x360] sm:$0xff]  ;;  %v9111_v19 = vpop.f32.mrf.mxu0 }
 0x2b9   : > { %v6873_v21 = vld [vmem:[#allocation2 + $0x348] sm:$0xff]  ;;  %v9161_v48 = vpop.f32.mrf.mxu1  ;;  %6651 = vst.msk [vmem:[#allocation2 + $0x368] sm:$0xff] %vm217_vm0, %v6619_v14  ;;  %6203 = vst.msk [vmem:[#allocation2 + $0x380] sm:$0xff] %vm217_vm0, %v6171_v7  ;;  %v6618_v3 = vadd.f32 %v6507_v16, %v6263_v63  ;;  %v6174_v27 = vadd.f32 %v9111_v19, %v5915_v34  ;;  %v5922_v63 = vld [vmem:[#allocation2 + $0x3d0] sm:$0xff] }
 0x2ba   : > { %7826 = vst.msk [vmem:[%s10896_s7 + $0x348] sm:$0xff] %vm217_vm0, %v6873_v21  ;;  %v6266_v29 = vld [vmem:[#allocation2 + $0x378] sm:$0xff]  ;;  %v6086_v60 = vpop.f32.mrf.mxu0 }
 0x2bb   : > { %v6872_v40 = vld [vmem:[#allocation2 + $0x340] sm:$0xff]  ;;  %v6537_v17 = vpop.f32.mrf.mxu1  ;;  %6650 = vst.msk [vmem:[#allocation2 + $0x360] sm:$0xff] %vm217_vm0, %v6618_v3  ;;  %6206 = vst.msk [vmem:[#allocation2 + $0x398] sm:$0xff] %vm217_vm0, %v6174_v27  ;;  %v6621_v31 = vadd.f32 %v9155_v26, %v6266_v29  ;;  %v6173_v24 = vadd.f32 %v6086_v60, %v5914_v57 }
 0x2bc   : > { %7825 = vst.msk [vmem:[%s10896_s7 + $0x340] sm:$0xff] %vm217_vm0, %v6872_v40  ;;  %v6875_v62 = vld [vmem:[#allocation2 + $0x358] sm:$0xff]  ;;  %v6265_v9 = vld [vmem:[#allocation2 + $0x370] sm:$0xff]  ;;  %v9114_v33 = vpop.f32.mrf.mxu0  ;;  %v5925_v40 = vld [vmem:[#allocation2 + $0x3e8] sm:$0xff] }
 0x2bd   : > { %v9164_v35 = vpop.f32.mrf.mxu1  ;;  %7828 = vst.msk [vmem:[%s10896_s7 + $0x358] sm:$0xff] %vm217_vm0, %v6875_v62  ;;  %6653 = vst.msk [vmem:[#allocation2 + $0x378] sm:$0xff] %vm217_vm0, %v6621_v31  ;;  %v6620_v45 = vadd.f32 %v6517_v13, %v6265_v9  ;;  %v6176_v5 = vadd.f32 %v9114_v33, %v5917_v38  ;;  %v5924_v62 = vld [vmem:[#allocation2 + $0x3e0] sm:$0xff] }
 0x2be   : > { %6205 = vst.msk [vmem:[#allocation2 + $0x390] sm:$0xff] %vm217_vm0, %v6173_v24  ;;  %v6874_v11 = vld [vmem:[#allocation2 + $0x350] sm:$0xff]  ;;  %v6268_v8 = vld [vmem:[#allocation2 + $0x388] sm:$0xff]  ;;  %v6096_v61 = vpop.f32.mrf.mxu0 }
 0x2bf   : > { %v6547_v51 = vpop.f32.mrf.mxu1  ;;  %7827 = vst.msk [vmem:[%s10896_s7 + $0x350] sm:$0xff] %vm217_vm0, %v6874_v11  ;;  %6652 = vst.msk [vmem:[#allocation2 + $0x370] sm:$0xff] %vm217_vm0, %v6620_v45  ;;  %v6623_v47 = vadd.f32 %v9158_v52, %v6268_v8  ;;  %v6175_v39 = vadd.f32 %v6096_v61, %v5916_v4 }
 0x2c0   : > { %6208 = vst.msk [vmem:[#allocation2 + $0x3a8] sm:$0xff] %vm217_vm0, %v6176_v5  ;;  %v6877_v20 = vld [vmem:[#allocation2 + $0x368] sm:$0xff]  ;;  %v6267_v2 = vld [vmem:[#allocation2 + $0x380] sm:$0xff]  ;;  %v9117_v10 = vpop.f32.mrf.mxu0  ;;  %v5927_v5 = vld [vmem:[#allocation2 + $0x3f8] sm:$0xff] }
 0x2c1   : > { %v9167_v25 = vpop.f32.mrf.mxu1  ;;  %7830 = vst.msk [vmem:[%s10896_s7 + $0x368] sm:$0xff] %vm217_vm0, %v6877_v20  ;;  %6655 = vst.msk [vmem:[#allocation2 + $0x388] sm:$0xff] %vm217_vm0, %v6623_v47  ;;  %v6622_v16 = vadd.f32 %v6527_v30, %v6267_v2  ;;  %v6178_v53 = vadd.f32 %v9117_v10, %v5919_v18 }
 0x2c2   : > { %6207 = vst.msk [vmem:[#allocation2 + $0x3a0] sm:$0xff] %vm217_vm0, %v6175_v39  ;;  %v6876_v55 = vld [vmem:[#allocation2 + $0x360] sm:$0xff]  ;;  %v6270_v54 = vld [vmem:[#allocation2 + $0x398] sm:$0xff]  ;;  %v6106_v12 = vpop.f32.mrf.mxu0  ;;  %v5926_v39 = vld [vmem:[#allocation2 + $0x3f0] sm:$0xff] }
 0x2c3   : > { %v6557_v42 = vpop.f32.mrf.mxu1  ;;  %7829 = vst.msk [vmem:[%s10896_s7 + $0x360] sm:$0xff] %vm217_vm0, %v6876_v55  ;;  %6654 = vst.msk [vmem:[#allocation2 + $0x380] sm:$0xff] %vm217_vm0, %v6622_v16  ;;  %v6625_v26 = vadd.f32 %v9161_v48, %v6270_v54  ;;  %v6177_v22 = vadd.f32 %v6106_v12, %v5918_v6 }
 0x2c4   : > { %6210 = vst.msk [vmem:[#allocation2 + $0x3b8] sm:$0xff] %vm217_vm0, %v6178_v53  ;;  %v6879_v28 = vld [vmem:[#allocation2 + $0x378] sm:$0xff]  ;;  %v9120_v41 = vpop.f32.mrf.mxu0 }
 0x2c5   : > { %v6269_v59 = vld [vmem:[#allocation2 + $0x390] sm:$0xff]  ;;  %v9170_v49 = vpop.f32.mrf.mxu1  ;;  %7832 = vst.msk [vmem:[%s10896_s7 + $0x378] sm:$0xff] %vm217_vm0, %v6879_v28  ;;  %6657 = vst.msk [vmem:[#allocation2 + $0x398] sm:$0xff] %vm217_vm0, %v6625_v26  ;;  %v6180_v15 = vadd.f32 %v9120_v41, %v5921_v44 }
 0x2c6   : > { %6209 = vst.msk [vmem:[#allocation2 + $0x3b0] sm:$0xff] %vm217_vm0, %v6177_v22  ;;  %v6624_v13 = vadd.f32 %v6537_v17, %v6269_v59  ;;  %v6878_v37 = vld [vmem:[#allocation2 + $0x370] sm:$0xff]  ;;  %v6116_v50 = vpop.f32.mrf.mxu0 }
 0x2c7   : > { %v6272_v0 = vld [vmem:[#allocation2 + $0x3a8] sm:$0xff]  ;;  %v6567_v56 = vpop.f32.mrf.mxu1  ;;  %7831 = vst.msk [vmem:[%s10896_s7 + $0x370] sm:$0xff] %vm217_vm0, %v6878_v37  ;;  %6212 = vst.msk [vmem:[#allocation2 + $0x3c8] sm:$0xff] %vm217_vm0, %v6180_v15  ;;  %v6179_v46 = vadd.f32 %v6116_v50, %v5920_v43 }
 0x2c8   : > { %6656 = vst.msk [vmem:[#allocation2 + $0x390] sm:$0xff] %vm217_vm0, %v6624_v13  ;;  %v6627_v52 = vadd.f32 %v9164_v35, %v6272_v0  ;;  %v6881_v23 = vld [vmem:[#allocation2 + $0x388] sm:$0xff]  ;;  %v9123_v32 = vpop.f32.mrf.mxu0 }
 0x2c9   : > { %v6271_v1 = vld [vmem:[#allocation2 + $0x3a0] sm:$0xff]  ;;  %v9173_v58 = vpop.f32.mrf.mxu1  ;;  %7834 = vst.msk [vmem:[%s10896_s7 + $0x388] sm:$0xff] %vm217_vm0, %v6881_v23  ;;  %6211 = vst.msk [vmem:[#allocation2 + $0x3c0] sm:$0xff] %vm217_vm0, %v6179_v46  ;;  %v6182_v14 = vadd.f32 %v9123_v32, %v5923_v36 }
 0x2ca   : > { %6659 = vst.msk [vmem:[#allocation2 + $0x3a8] sm:$0xff] %vm217_vm0, %v6627_v52  ;;  %v6626_v30 = vadd.f32 %v6547_v51, %v6271_v1  ;;  %v6880_v7 = vld [vmem:[#allocation2 + $0x380] sm:$0xff]  ;;  %v6126_v34 = vpop.f32.mrf.mxu0 }
 0x2cb   : > { %v6274_v21 = vld [vmem:[#allocation2 + $0x3b8] sm:$0xff]  ;;  %7833 = vst.msk [vmem:[%s10896_s7 + $0x380] sm:$0xff] %vm217_vm0, %v6880_v7  ;;  %6214 = vst.msk [vmem:[#allocation2 + $0x3d8] sm:$0xff] %vm217_vm0, %v6182_v14  ;;  %v6181_v48 = vadd.f32 %v6126_v34, %v5922_v63  ;;  %v6577_v57 = vpop.f32.mrf.mxu1 }
 0x2cc   : > { %6658 = vst.msk [vmem:[#allocation2 + $0x3a0] sm:$0xff] %vm217_vm0, %v6626_v30  ;;  %v6629_v19 = vadd.f32 %v9167_v25, %v6274_v21  ;;  %v6883_v3 = vld [vmem:[#allocation2 + $0x398] sm:$0xff]  ;;  %v9126_v29 = vpop.f32.mrf.mxu0 }
 0x2cd   : > { %v6273_v27 = vld [vmem:[#allocation2 + $0x3b0] sm:$0xff]  ;;  %7836 = vst.msk [vmem:[%s10896_s7 + $0x398] sm:$0xff] %vm217_vm0, %v6883_v3  ;;  %6213 = vst.msk [vmem:[#allocation2 + $0x3d0] sm:$0xff] %vm217_vm0, %v6181_v48  ;;  %v6184_v17 = vadd.f32 %v9126_v29, %v5925_v40  ;;  %v9176_v8 = vpop.f32.mrf.mxu1 }
 0x2ce   : > { %6661 = vst.msk [vmem:[#allocation2 + $0x3b8] sm:$0xff] %vm217_vm0, %v6629_v19  ;;  %v6628_v60 = vadd.f32 %v6557_v42, %v6273_v27  ;;  %v6276_v24 = vld [vmem:[#allocation2 + $0x3c8] sm:$0xff]  ;;  %v6136_v9 = vpop.f32.mrf.mxu0 }
 0x2cf   : > { %v6882_v31 = vld [vmem:[#allocation2 + $0x390] sm:$0xff]  ;;  %6216 = vst.msk [vmem:[#allocation2 + $0x3e8] sm:$0xff] %vm217_vm0, %v6184_v17  ;;  %v6631_v38 = vadd.f32 %v9170_v49, %v6276_v24  ;;  %v6183_v33 = vadd.f32 %v6136_v9, %v5924_v62  ;;  %v6587_v16 = vpop.f32.mrf.mxu1 }
 0x2d0   : > { %7835 = vst.msk [vmem:[%s10896_s7 + $0x390] sm:$0xff] %vm217_vm0, %v6882_v31  ;;  %6660 = vst.msk [vmem:[#allocation2 + $0x3b0] sm:$0xff] %vm217_vm0, %v6628_v60  ;;  %v6275_v45 = vld [vmem:[#allocation2 + $0x3c0] sm:$0xff]  ;;  %v9129_v11 = vpop.f32.mrf.mxu0 }
 0x2d1   : > { %v6885_v35 = vld [vmem:[#allocation2 + $0x3a8] sm:$0xff]  ;;  %6663 = vst.msk [vmem:[#allocation2 + $0x3c8] sm:$0xff] %vm217_vm0, %v6631_v38  ;;  %6215 = vst.msk [vmem:[#allocation2 + $0x3e0] sm:$0xff] %vm217_vm0, %v6183_v33  ;;  %v6630_v4 = vadd.f32 %v6567_v56, %v6275_v45  ;;  %v6186_v61 = vadd.f32 %v9129_v11, %v5927_v5  ;;  %v9179_v26 = vpop.f32.mrf.mxu1 }
 0x2d2   : > { %7838 = vst.msk [vmem:[%s10896_s7 + $0x3a8] sm:$0xff] %vm217_vm0, %v6885_v35  ;;  %v6278_v47 = vld [vmem:[#allocation2 + $0x3d8] sm:$0xff]  ;;  %v6146_v20 = vpop.f32.mrf.mxu0 }
 0x2d3   : > { %v6884_v51 = vld [vmem:[#allocation2 + $0x3a0] sm:$0xff]  ;;  %6662 = vst.msk [vmem:[#allocation2 + $0x3c0] sm:$0xff] %vm217_vm0, %v6630_v4  ;;  %6218 = vst.msk [vmem:[#allocation2 + $0x3f8] sm:$0xff] %vm217_vm0, %v6186_v61  ;;  %v6633_v2 = vadd.f32 %v9173_v58, %v6278_v47  ;;  %v6185_v18 = vadd.f32 %v6146_v20, %v5926_v39  ;;  %v6597_v13 = vpop.f32.mrf.mxu1 }
 0x2d4   : > { %7837 = vst.msk [vmem:[%s10896_s7 + $0x3a0] sm:$0xff] %vm217_vm0, %v6884_v51  ;;  %v6277_v25 = vld [vmem:[#allocation2 + $0x3d0] sm:$0xff] }
 0x2d5   : > { %v6887_v10 = vld [vmem:[#allocation2 + $0x3b8] sm:$0xff]  ;;  %6665 = vst.msk [vmem:[#allocation2 + $0x3d8] sm:$0xff] %vm217_vm0, %v6633_v2  ;;  %6217 = vst.msk [vmem:[#allocation2 + $0x3f0] sm:$0xff] %vm217_vm0, %v6185_v18  ;;  %v6632_v53 = vadd.f32 %v6577_v57, %v6277_v25 }
 0x2d6   : > { %7840 = vst.msk [vmem:[%s10896_s7 + $0x3b8] sm:$0xff] %vm217_vm0, %v6887_v10  ;;  %v6280_v54 = vld [vmem:[#allocation2 + $0x3e8] sm:$0xff] }
 0x2d7   : > { %v6886_v55 = vld [vmem:[#allocation2 + $0x3b0] sm:$0xff]  ;;  %6664 = vst.msk [vmem:[#allocation2 + $0x3d0] sm:$0xff] %vm217_vm0, %v6632_v53  ;;  %v6635_v6 = vadd.f32 %v9176_v8, %v6280_v54 }
 0x2d8   : > { %7839 = vst.msk [vmem:[%s10896_s7 + $0x3b0] sm:$0xff] %vm217_vm0, %v6886_v55  ;;  %v6889_v12 = vld [vmem:[#allocation2 + $0x3c8] sm:$0xff]  ;;  %v6279_v42 = vld [vmem:[#allocation2 + $0x3e0] sm:$0xff] }
 0x2d9   : > { %7842 = vst.msk [vmem:[%s10896_s7 + $0x3c8] sm:$0xff] %vm217_vm0, %v6889_v12  ;;  %6667 = vst.msk [vmem:[#allocation2 + $0x3e8] sm:$0xff] %vm217_vm0, %v6635_v6  ;;  %v6634_v22 = vadd.f32 %v6587_v16, %v6279_v42 }
 0x2da   : > { %v6888_v28 = vld [vmem:[#allocation2 + $0x3c0] sm:$0xff]  ;;  %v6282_v59 = vld [vmem:[#allocation2 + $0x3f8] sm:$0xff] }
 0x2db   : > { %7841 = vst.msk [vmem:[%s10896_s7 + $0x3c0] sm:$0xff] %vm217_vm0, %v6888_v28  ;;  %6666 = vst.msk [vmem:[#allocation2 + $0x3e0] sm:$0xff] %vm217_vm0, %v6634_v22  ;;  %v6637_v44 = vadd.f32 %v9179_v26, %v6282_v59 }
 0x2dc   : > { %v6891_v41 = vld [vmem:[#allocation2 + $0x3d8] sm:$0xff]  ;;  %v6281_v49 = vld [vmem:[#allocation2 + $0x3f0] sm:$0xff] }
 0x2dd   : > { %7844 = vst.msk [vmem:[%s10896_s7 + $0x3d8] sm:$0xff] %vm217_vm0, %v6891_v41  ;;  %6669 = vst.msk [vmem:[#allocation2 + $0x3f8] sm:$0xff] %vm217_vm0, %v6637_v44  ;;  %v6636_v15 = vadd.f32 %v6597_v13, %v6281_v49 }
 0x2de   : > { %v6890_v37 = vld [vmem:[#allocation2 + $0x3d0] sm:$0xff] }
 0x2df   : > { %7843 = vst.msk [vmem:[%s10896_s7 + $0x3d0] sm:$0xff] %vm217_vm0, %v6890_v37  ;;  %6668 = vst.msk [vmem:[#allocation2 + $0x3f0] sm:$0xff] %vm217_vm0, %v6636_v15 }
 0x2e0   : > { %v6893_v0 = vld [vmem:[#allocation2 + $0x3e8] sm:$0xff] }
 0x2e1   : > { %7846 = vst.msk [vmem:[%s10896_s7 + $0x3e8] sm:$0xff] %vm217_vm0, %v6893_v0 }
 0x2e2   : > { %v6892_v43 = vld [vmem:[#allocation2 + $0x3e0] sm:$0xff] }
 0x2e3   : > { %7845 = vst.msk [vmem:[%s10896_s7 + $0x3e0] sm:$0xff] %vm217_vm0, %v6892_v43 }
 0x2e4   : > { %v6895_v50 = vld [vmem:[#allocation2 + $0x3f8] sm:$0xff] }
 0x2e5   : > { %7848 = vst.msk [vmem:[%s10896_s7 + $0x3f8] sm:$0xff] %vm217_vm0, %v6895_v50 }
 0x2e6   : > { %v6894_v56 = vld [vmem:[#allocation2 + $0x3f0] sm:$0xff] }
 0x2e7   : > { %7847 = vst.msk [vmem:[%s10896_s7 + $0x3f0] sm:$0xff] %vm217_vm0, %v6894_v56 }
 0x2e8 PF: > { %s13_s14 = sadd.s32 1, %s9235_s14   ;;  %s11806_s12 = smov %s9231_s13 }
 0x2e9   : > { %p10_p5 = scmp.ge.s32.totalorder %s13_s14, 4   ;;  %s11807_s13 = smov %s11809_s15 }
 0x2eb   :  { %12 = sbr.rel (!%p10_p5) target bundleno = 2 (0x2), region = 85 }

</bundles_post_ra>
